<compile_context>
chip_gen: v5e
topology: v5e:2x2
jax: 0.10.0
libtpu: 0.0.40
codegen_flags: <defaults>
</compile_context>

<pallas_src>
import functools

import jax
import jax.numpy as jnp
import numpy as np
from jax.experimental import pallas as pl
from jax.experimental.pallas import tpu as pltpu

EPS = 1e-6


def _layernorm(x, w, b):
    mu = jnp.mean(x, axis=-1, keepdims=True)
    var = jnp.mean(jnp.square(x - mu), axis=-1, keepdims=True)
    return (x - mu) * jax.lax.rsqrt(var + EPS) * w + b


def _gelu_exact(x):
    # nn.GELU() default (approximate='none'): 0.5 * x * (1 + erf(x / sqrt(2)))
    return 0.5 * x * (1.0 + jax.lax.erf(x * (2.0 ** -0.5)))


def _vit_cross_kernel(n_heads,
                      enc_ref, dec_ref,
                      n1w_ref, n1b_ref, kvw_ref, kvb_ref,
                      pw_ref, pb_ref, n2w_ref, n2b_ref,
                      f1w_ref, f1b_ref, f2w_ref, f2b_ref,
                      nfw_ref, nfb_ref,
                      out_ref):
    blk = pl.program_id(0)
    last = pl.num_programs(0) - 1
    bf16 = jnp.bfloat16
    f32 = jnp.float32

    # First block: initialize resident decoder state from the input `de`.
    @pl.when(blk == 0)
    def _():
        out_ref[...] = dec_ref[...]

    x3 = out_ref[...]                       # (B, N, D) f32 running decoder state
    B, N, D = x3.shape
    BN = B * N
    hd = D // n_heads
    scale = float(hd) ** -0.5

    x = x3.reshape(BN, D)                   # leading-dim merge: free reshape
    enc = enc_ref[...].reshape(BN, D)       # (BN, D) bf16 encoder features

    # ---------- CrossAttention: q = norm1(dec), k/v = Linear(enc) ----------
    q = _layernorm(x, n1w_ref[0, 0, :], n1b_ref[0, 0, :])        # (BN, D) f32
    kv = jnp.dot(enc, kvw_ref[0],
                 preferred_element_type=f32) + kvb_ref[0, 0, :]  # (BN, 2D) f32

    # Fold the attention scale into q once (cheaper than per-head score scaling).
    q3 = (q * scale).reshape(B, N, D).astype(bf16)
    k3 = kv[:, :D].reshape(B, N, D).astype(bf16)
    v3 = kv[:, D:].reshape(B, N, D).astype(bf16)
    pw = pw_ref[0]                                               # (D, D) bf16

    attn_out = jnp.zeros((BN, D), f32)
    for h in range(n_heads):                # static, unrolled head loop
        sl = slice(h * hd, (h + 1) * hd)    # lane-aligned static slice
        s = jnp.einsum('bqd,bkd->bqk', q3[:, :, sl], k3[:, :, sl],
                       preferred_element_type=f32)
        s = s - jnp.max(s, axis=-1, keepdims=True)
        p = jnp.exp(s)
        p = p * pl.reciprocal(jnp.sum(p, axis=-1, keepdims=True), approx=True)
        wa = jnp.einsum('bqk,bkd->bqd', p.astype(bf16), v3[:, :, sl],
                        preferred_element_type=f32)              # (B, N, hd)
        # Fold this head directly into the output projection (no concat).
        attn_out = attn_out + jnp.dot(wa.reshape(BN, hd).astype(bf16),
                                      pw[sl, :], preferred_element_type=f32)
    x = x + attn_out + pb_ref[0, 0, :]

    # -------------------------------- MLP ---------------------------------
    y = _layernorm(x, n2w_ref[0, 0, :], n2b_ref[0, 0, :])
    hmid = jnp.dot(y.astype(bf16), f1w_ref[0],
                   preferred_element_type=f32) + f1b_ref[0, 0, :]
    hmid = _gelu_exact(hmid)
    x = x + jnp.dot(hmid.astype(bf16), f2w_ref[0],
                    preferred_element_type=f32) + f2b_ref[0, 0, :]

    # -------- write back resident state / fused final LayerNorm -----------
    @pl.when(blk != last)
    def _():
        out_ref[...] = x.reshape(B, N, D)

    @pl.when(blk == last)
    def _():
        out_ref[...] = _layernorm(x, nfw_ref[0, :],
                                  nfb_ref[0, :]).reshape(B, N, D)


def vit_cross_forward(enc, dec, params):
    B, N, D = dec.shape
    depth = params['kvw'].shape[0]
    hid = params['f1w'].shape[-1]
    n_heads = params['n_heads']
    bf16 = jnp.bfloat16

    kernel = functools.partial(_vit_cross_kernel, n_heads)

    def full_spec(shape):
        nd = len(shape)
        return pl.BlockSpec(shape, lambda d, _nd=nd: (0,) * _nd)

    def per_block_spec(shape):
        nd = len(shape)
        return pl.BlockSpec((1,) + shape[1:],
                            lambda d, _nd=nd: (d,) + (0,) * (_nd - 1))

    in_specs = [
        full_spec((B, N, D)),                    # enc (bf16, resident)
        full_spec((B, N, D)),                    # dec (f32, read only at block 0)
        per_block_spec((depth, 1, D)),           # norm1 weight
        per_block_spec((depth, 1, D)),           # norm1 bias
        per_block_spec((depth, D, 2 * D)),       # kv weight (bf16)
        per_block_spec((depth, 1, 2 * D)),       # kv bias
        per_block_spec((depth, D, D)),           # attn proj weight (bf16)
        per_block_spec((depth, 1, D)),           # attn proj bias
        per_block_spec((depth, 1, D)),           # norm2 weight
        per_block_spec((depth, 1, D)),           # norm2 bias
        per_block_spec((depth, D, hid)),         # fc1 weight (bf16)
        per_block_spec((depth, 1, hid)),         # fc1 bias
        per_block_spec((depth, hid, D)),         # fc2 weight (bf16)
        per_block_spec((depth, 1, D)),           # fc2 bias
        full_spec((1, D)),                       # final norm weight
        full_spec((1, D)),                       # final norm bias
    ]
    out_spec = pl.BlockSpec((B, N, D), lambda d: (0, 0, 0))

    return pl.pallas_call(
        kernel,
        grid=(depth,),
        in_specs=in_specs,
        out_specs=out_spec,
        out_shape=jax.ShapeDtypeStruct((B, N, D), jnp.float32),
        compiler_params=pltpu.CompilerParams(
            dimension_semantics=("arbitrary",),
            vmem_limit_bytes=48 << 20),          # headroom-safe on v7x (64 MiB)
    )(enc.astype(bf16), dec,
      params['n1w'], params['n1b'],
      params['kvw'].astype(bf16), params['kvb'],
      params['pw'].astype(bf16), params['pb'],
      params['n2w'], params['n2b'],
      params['f1w'].astype(bf16), params['f1b'],
      params['f2w'].astype(bf16), params['f2b'],
      params['nfw'], params['nfb'])


# ------------------------- pure-JAX reference (f32) ------------------------
def vit_cross_reference(enc, dec, params):
    B, N, D = dec.shape
    depth = params['kvw'].shape[0]
    H = params['n_heads']
    hd = D // H
    x = dec
    for i in range(depth):
        q_in = _layernorm(x, params['n1w'][i, 0], params['n1b'][i, 0])
        kv = enc @ params['kvw'][i] + params['kvb'][i, 0]
        k, v = kv[..., :D], kv[..., D:]

        def heads(t):
            return t.reshape(B, N, H, hd).transpose(0, 2, 1, 3)

        q, kk, vv = heads(q_in), heads(k), heads(v)
        dp = jnp.einsum('bhqd,bhkd->bhqk', q, kk) * (hd ** -0.5)
        attn = jax.nn.softmax(dp, axis=-1)
        wa = jnp.einsum('bhqk,bhkd->bhqd', attn, vv)
        wa = wa.transpose(0, 2, 1, 3).reshape(B, N, D)
        x = x + wa @ params['pw'][i] + params['pb'][i, 0]

        y = _layernorm(x, params['n2w'][i, 0], params['n2b'][i, 0])
        hmid = _gelu_exact(y @ params['f1w'][i] + params['f1b'][i, 0])
        x = x + hmid @ params['f2w'][i] + params['f2b'][i, 0]
    return _layernorm(x, params['nfw'][0], params['nfb'][0])


def init_params(key, depth, dim, n_heads, mlp_ratio=4.0):
    hid = int(dim * mlp_ratio)
    ks = jax.random.split(key, 8)
    s = 0.02
    f32 = jnp.float32
    return dict(
        n_heads=n_heads,
        n1w=jnp.ones((depth, 1, dim), f32),
        n1b=jnp.zeros((depth, 1, dim), f32),
        kvw=s * jax.random.normal(ks[0], (depth, dim, 2 * dim), f32),
        kvb=s * jax.random.normal(ks[1], (depth, 1, 2 * dim), f32),
        pw=s * jax.random.normal(ks[2], (depth, dim, dim), f32),
        pb=s * jax.random.normal(ks[3], (depth, 1, dim), f32),
        n2w=jnp.ones((depth, 1, dim), f32),
        n2b=jnp.zeros((depth, 1, dim), f32),
        f1w=s * jax.random.normal(ks[4], (depth, dim, hid), f32),
        f1b=s * jax.random.normal(ks[5], (depth, 1, hid), f32),
        f2w=s * jax.random.normal(ks[6], (depth, hid, dim), f32),
        f2b=s * jax.random.normal(ks[7], (depth, 1, dim), f32),
        nfw=jnp.ones((1, dim), f32),
        nfb=jnp.zeros((1, dim), f32),
    )


if __name__ == "__main__":
    # Small config: batch=2, tokens=16, embed_dim=256, heads=2 (head_dim=128,
    # lane-aligned), depth=2, mlp_ratio=4.0.
    B, N, D, HEADS, DEPTH = 2, 16, 256, 2, 2

    key = jax.random.PRNGKey(0)
    kp, ke, kd = jax.random.split(key, 3)
    params = init_params(kp, DEPTH, D, HEADS)
    enc = jax.random.normal(ke, (B, N, D), jnp.float32)
    dec = jax.random.normal(kd, (B, N, D), jnp.float32)

    out = jax.block_until_ready(vit_cross_forward(enc, dec, params))
    ref = jax.block_until_ready(vit_cross_reference(enc, dec, params))

    np.testing.assert_allclose(np.asarray(out), np.asarray(ref),
                               rtol=2e-2, atol=2e-2)
    print("KERNEL_OK")
</pallas_src>

<mosaic_0001>
module attributes {stable_mosaic.version = 11 : i64} {
  func.func @_vit_cross_kernel(%arg0: i32, %arg1: memref<2x16x256xbf16, #tpu.memory_space<vmem>>, %arg2: memref<2x16x256xf32, #tpu.memory_space<vmem>>, %arg3: memref<1x1x256xf32, #tpu.memory_space<vmem>>, %arg4: memref<1x1x256xf32, #tpu.memory_space<vmem>>, %arg5: memref<1x256x512xbf16, #tpu.memory_space<vmem>>, %arg6: memref<1x1x512xf32, #tpu.memory_space<vmem>>, %arg7: memref<1x256x256xbf16, #tpu.memory_space<vmem>>, %arg8: memref<1x1x256xf32, #tpu.memory_space<vmem>>, %arg9: memref<1x1x256xf32, #tpu.memory_space<vmem>>, %arg10: memref<1x1x256xf32, #tpu.memory_space<vmem>>, %arg11: memref<1x256x1024xbf16, #tpu.memory_space<vmem>>, %arg12: memref<1x1x1024xf32, #tpu.memory_space<vmem>>, %arg13: memref<1x1024x256xbf16, #tpu.memory_space<vmem>>, %arg14: memref<1x1x256xf32, #tpu.memory_space<vmem>>, %arg15: memref<1x256xf32, #tpu.memory_space<vmem>>, %arg16: memref<1x256xf32, #tpu.memory_space<vmem>>, %arg17: memref<2x16x256xf32, #tpu.memory_space<vmem>>) attributes {dimension_semantics = [#tpu.dimension_semantics<arbitrary>], iteration_bounds = array<i64: 2>, scalar_prefetch = 0 : i64, scratch_operands = 0 : i64, tpu.core_type = #tpu.core_type<tc>, window_params = [{pipeline_mode = #tpu.pipeline_mode<synchronous>, transform_indices = @transform_0, window_bounds = array<i64: 2, 16, 256>}, {pipeline_mode = #tpu.pipeline_mode<synchronous>, transform_indices = @transform_1, window_bounds = array<i64: 2, 16, 256>}, {transform_indices = @transform_2, window_bounds = array<i64: 1, 1, 256>}, {transform_indices = @transform_3, window_bounds = array<i64: 1, 1, 256>}, {transform_indices = @transform_4, window_bounds = array<i64: 1, 256, 512>}, {transform_indices = @transform_5, window_bounds = array<i64: 1, 1, 512>}, {transform_indices = @transform_6, window_bounds = array<i64: 1, 256, 256>}, {transform_indices = @transform_7, window_bounds = array<i64: 1, 1, 256>}, {transform_indices = @transform_8, window_bounds = array<i64: 1, 1, 256>}, {transform_indices = @transform_9, window_bounds = array<i64: 1, 1, 256>}, {transform_indices = @transform_10, window_bounds = array<i64: 1, 256, 1024>}, {transform_indices = @transform_11, window_bounds = array<i64: 1, 1, 1024>}, {transform_indices = @transform_12, window_bounds = array<i64: 1, 1024, 256>}, {transform_indices = @transform_13, window_bounds = array<i64: 1, 1, 256>}, {pipeline_mode = #tpu.pipeline_mode<synchronous>, transform_indices = @transform_14, window_bounds = array<i64: 1, 256>}, {pipeline_mode = #tpu.pipeline_mode<synchronous>, transform_indices = @transform_15, window_bounds = array<i64: 1, 256>}, {pipeline_mode = #tpu.pipeline_mode<synchronous>, transform_indices = @transform_16, window_bounds = array<i64: 2, 16, 256>}]} {
    %c0_i32 = arith.constant 0 : i32
    %0 = arith.cmpi eq, %arg0, %c0_i32 : i32
    %1 = arith.extui %0 : i1 to i32
    %c0_i32_0 = arith.constant 0 : i32
    %2 = arith.cmpi ne, %1, %c0_i32_0 : i32
    scf.if %2 {
      %c0_72 = arith.constant 0 : index
      %c0_73 = arith.constant 0 : index
      %c0_74 = arith.constant 0 : index
      %165 = vector.load %arg2[%c0_72, %c0_73, %c0_74] : memref<2x16x256xf32, #tpu.memory_space<vmem>>, vector<2x16x256xf32>
      %c0_75 = arith.constant 0 : index
      %c0_76 = arith.constant 0 : index
      %c0_77 = arith.constant 0 : index
      %166 = vector.load %arg17[%c0_75, %c0_76, %c0_77] : memref<2x16x256xf32, #tpu.memory_space<vmem>>, vector<2x16x256xf32>
      tpu.vector_store %arg17[%c0_75, %c0_76, %c0_77], %165 {strides = array<i32>} : memref<2x16x256xf32, #tpu.memory_space<vmem>>, vector<2x16x256xf32>,
    } else {
    }
    %c0 = arith.constant 0 : index
    %c0_1 = arith.constant 0 : index
    %c0_2 = arith.constant 0 : index
    %3 = vector.load %arg17[%c0, %c0_1, %c0_2] : memref<2x16x256xf32, #tpu.memory_space<vmem>>, vector<2x16x256xf32>
    %4 = vector.shape_cast %3 : vector<2x16x256xf32> to vector<32x256xf32>
    %c0_3 = arith.constant 0 : index
    %c0_4 = arith.constant 0 : index
    %c0_5 = arith.constant 0 : index
    %5 = vector.load %arg1[%c0_3, %c0_4, %c0_5] : memref<2x16x256xbf16, #tpu.memory_space<vmem>>, vector<2x16x256xbf16>
    %6 = vector.shape_cast %5 : vector<2x16x256xbf16> to vector<32x256xbf16>
    %c0_6 = arith.constant 0 : index
    %c0_7 = arith.constant 0 : index
    %c0_8 = arith.constant 0 : index
    %7 = vector.load %arg3[%c0_6, %c0_7, %c0_8] : memref<1x1x256xf32, #tpu.memory_space<vmem>>, vector<1x1x256xf32>
    %8 = vector.shape_cast %7 : vector<1x1x256xf32> to vector<256xf32>
    %c0_9 = arith.constant 0 : index
    %c0_10 = arith.constant 0 : index
    %c0_11 = arith.constant 0 : index
    %9 = vector.load %arg4[%c0_9, %c0_10, %c0_11] : memref<1x1x256xf32, #tpu.memory_space<vmem>>, vector<1x1x256xf32>
    %10 = vector.shape_cast %9 : vector<1x1x256xf32> to vector<256xf32>
    %cst = arith.constant dense<0.000000e+00> : vector<32xf32>
    %11 = vector.multi_reduction <add>, %4, %cst [1] : vector<32x256xf32> to vector<32xf32>
    %12 = vector.shape_cast %11 : vector<32xf32> to vector<32x1xf32>
    %cst_12 = arith.constant 2.560000e+02 : f32
    %13 = vector.broadcast %cst_12 : f32 to vector<32x1xf32>
    %14 = arith.divf %12, %13 : vector<32x1xf32>
    %15 = vector.broadcast %14 : vector<32x1xf32> to vector<32x256xf32>
    %16 = arith.subf %4, %15 : vector<32x256xf32>
    %17 = arith.mulf %16, %16 : vector<32x256xf32>
    %cst_13 = arith.constant dense<0.000000e+00> : vector<32xf32>
    %18 = vector.multi_reduction <add>, %17, %cst_13 [1] : vector<32x256xf32> to vector<32xf32>
    %19 = vector.shape_cast %18 : vector<32xf32> to vector<32x1xf32>
    %cst_14 = arith.constant 2.560000e+02 : f32
    %20 = vector.broadcast %cst_14 : f32 to vector<32x1xf32>
    %21 = arith.divf %19, %20 : vector<32x1xf32>
    %22 = vector.broadcast %14 : vector<32x1xf32> to vector<32x256xf32>
    %23 = arith.subf %4, %22 : vector<32x256xf32>
    %cst_15 = arith.constant 9.99999997E-7 : f32
    %24 = vector.broadcast %cst_15 : f32 to vector<32x1xf32>
    %25 = arith.addf %21, %24 : vector<32x1xf32>
    %26 = math.rsqrt %25 : vector<32x1xf32>
    %27 = vector.broadcast %26 : vector<32x1xf32> to vector<32x256xf32>
    %28 = arith.mulf %23, %27 : vector<32x256xf32>
    %29 = vector.shape_cast %8 : vector<256xf32> to vector<1x256xf32>
    %30 = vector.broadcast %29 : vector<1x256xf32> to vector<32x256xf32>
    %31 = arith.mulf %28, %30 : vector<32x256xf32>
    %32 = vector.shape_cast %10 : vector<256xf32> to vector<1x256xf32>
    %33 = vector.broadcast %32 : vector<1x256xf32> to vector<32x256xf32>
    %34 = arith.addf %31, %33 : vector<32x256xf32>
    %c0_16 = arith.constant 0 : index
    %c0_17 = arith.constant 0 : index
    %c0_18 = arith.constant 0 : index
    %35 = vector.load %arg5[%c0_16, %c0_17, %c0_18] : memref<1x256x512xbf16, #tpu.memory_space<vmem>>, vector<1x256x512xbf16>
    %36 = vector.shape_cast %35 : vector<1x256x512xbf16> to vector<256x512xbf16>
    %cst_19 = arith.constant dense<0.000000e+00> : vector<32x512xf32>
    %37 = tpu.matmul %6, %36, %cst_19 {dimension_numbers = #tpu.dot_dimension_numbers<[1], [0], [0], [1], [0, 0, 1, 1], [], []>} : vector<32x256xbf16>, vector<256x512xbf16>, vector<32x512xf32> -> vector<32x512xf32>
    %c0_20 = arith.constant 0 : index
    %c0_21 = arith.constant 0 : index
    %c0_22 = arith.constant 0 : index
    %38 = vector.load %arg6[%c0_20, %c0_21, %c0_22] : memref<1x1x512xf32, #tpu.memory_space<vmem>>, vector<1x1x512xf32>
    %39 = vector.shape_cast %38 : vector<1x1x512xf32> to vector<512xf32>
    %40 = vector.shape_cast %39 : vector<512xf32> to vector<1x512xf32>
    %41 = vector.broadcast %40 : vector<1x512xf32> to vector<32x512xf32>
    %42 = arith.addf %37, %41 : vector<32x512xf32>
    %cst_23 = arith.constant 0.0883883461 : f32
    %43 = vector.broadcast %cst_23 : f32 to vector<32x256xf32>
    %44 = arith.mulf %34, %43 : vector<32x256xf32>
    %45 = vector.shape_cast %44 : vector<32x256xf32> to vector<2x16x256xf32>
    %46 = arith.truncf %45 : vector<2x16x256xf32> to vector<2x16x256xbf16>
    %47 = vector.extract_strided_slice %42 {offsets = [0, 0], sizes = [32, 256], strides = [1, 1]} : vector<32x512xf32> to vector<32x256xf32>
    %48 = vector.shape_cast %47 : vector<32x256xf32> to vector<2x16x256xf32>
    %49 = arith.truncf %48 : vector<2x16x256xf32> to vector<2x16x256xbf16>
    %50 = vector.extract_strided_slice %42 {offsets = [0, 256], sizes = [32, 256], strides = [1, 1]} : vector<32x512xf32> to vector<32x256xf32>
    %51 = vector.shape_cast %50 : vector<32x256xf32> to vector<2x16x256xf32>
    %52 = arith.truncf %51 : vector<2x16x256xf32> to vector<2x16x256xbf16>
    %c0_24 = arith.constant 0 : index
    %c0_25 = arith.constant 0 : index
    %c0_26 = arith.constant 0 : index
    %53 = vector.load %arg7[%c0_24, %c0_25, %c0_26] : memref<1x256x256xbf16, #tpu.memory_space<vmem>>, vector<1x256x256xbf16>
    %54 = vector.shape_cast %53 : vector<1x256x256xbf16> to vector<256x256xbf16>
    %cst_27 = arith.constant 0.000000e+00 : f32
    %55 = vector.broadcast %cst_27 : f32 to vector<32x256xf32>
    %56 = vector.extract_strided_slice %46 {offsets = [0, 0, 0], sizes = [2, 16, 128], strides = [1, 1, 1]} : vector<2x16x256xbf16> to vector<2x16x128xbf16>
    %57 = vector.extract_strided_slice %49 {offsets = [0, 0, 0], sizes = [2, 16, 128], strides = [1, 1, 1]} : vector<2x16x256xbf16> to vector<2x16x128xbf16>
    "tpu.trace_start"() <{level = 10 : i32, message = "bqd,bkd->bqk"}> : () -> ()
    %cst_28 = arith.constant dense<0.000000e+00> : vector<2x16x16xf32>
    %58 = tpu.matmul %56, %57, %cst_28 {dimension_numbers = #tpu.dot_dimension_numbers<[2], [2], [1], [1], [0, 0, 0, 1, 1, 1], [0], [0]>} : vector<2x16x128xbf16>, vector<2x16x128xbf16>, vector<2x16x16xf32> -> vector<2x16x16xf32>
    "tpu.trace_stop"() : () -> ()
    %cst_29 = arith.constant dense<0xFF800000> : vector<2x16xf32>
    %59 = vector.multi_reduction <maximumf>, %58, %cst_29 [2] : vector<2x16x16xf32> to vector<2x16xf32>
    %60 = vector.shape_cast %59 : vector<2x16xf32> to vector<2x16x1xf32>
    %61 = vector.broadcast %60 : vector<2x16x1xf32> to vector<2x16x16xf32>
    %62 = arith.subf %58, %61 : vector<2x16x16xf32>
    %63 = math.exp %62 : vector<2x16x16xf32>
    %cst_30 = arith.constant dense<0.000000e+00> : vector<2x16xf32>
    %64 = vector.multi_reduction <add>, %63, %cst_30 [2] : vector<2x16x16xf32> to vector<2x16xf32>
    %65 = vector.shape_cast %64 : vector<2x16xf32> to vector<2x16x1xf32>
    %66 = tpu.reciprocal %65 {approx = true} : vector<2x16x1xf32> -> vector<2x16x1xf32>
    %67 = vector.broadcast %66 : vector<2x16x1xf32> to vector<2x16x16xf32>
    %68 = arith.mulf %63, %67 : vector<2x16x16xf32>
    %69 = arith.truncf %68 : vector<2x16x16xf32> to vector<2x16x16xbf16>
    %70 = vector.extract_strided_slice %52 {offsets = [0, 0, 0], sizes = [2, 16, 128], strides = [1, 1, 1]} : vector<2x16x256xbf16> to vector<2x16x128xbf16>
    "tpu.trace_start"() <{level = 10 : i32, message = "bqk,bkd->bqd"}> : () -> ()
    %cst_31 = arith.constant dense<0.000000e+00> : vector<2x16x128xf32>
    %71 = tpu.matmul %69, %70, %cst_31 {dimension_numbers = #tpu.dot_dimension_numbers<[2], [1], [1], [2], [0, 0, 0, 1, 1, 2], [0], [0]>} : vector<2x16x16xbf16>, vector<2x16x128xbf16>, vector<2x16x128xf32> -> vector<2x16x128xf32>
    "tpu.trace_stop"() : () -> ()
    %72 = vector.shape_cast %71 : vector<2x16x128xf32> to vector<32x128xf32>
    %73 = arith.truncf %72 : vector<32x128xf32> to vector<32x128xbf16>
    %74 = vector.extract_strided_slice %54 {offsets = [0, 0], sizes = [128, 256], strides = [1, 1]} : vector<256x256xbf16> to vector<128x256xbf16>
    %cst_32 = arith.constant dense<0.000000e+00> : vector<32x256xf32>
    %75 = tpu.matmul %73, %74, %cst_32 {dimension_numbers = #tpu.dot_dimension_numbers<[1], [0], [0], [1], [0, 0, 1, 1], [], []>} : vector<32x128xbf16>, vector<128x256xbf16>, vector<32x256xf32> -> vector<32x256xf32>
    %76 = arith.addf %55, %75 : vector<32x256xf32>
    %77 = vector.extract_strided_slice %46 {offsets = [0, 0, 128], sizes = [2, 16, 128], strides = [1, 1, 1]} : vector<2x16x256xbf16> to vector<2x16x128xbf16>
    %78 = vector.extract_strided_slice %49 {offsets = [0, 0, 128], sizes = [2, 16, 128], strides = [1, 1, 1]} : vector<2x16x256xbf16> to vector<2x16x128xbf16>
    "tpu.trace_start"() <{level = 10 : i32, message = "bqd,bkd->bqk"}> : () -> ()
    %cst_33 = arith.constant dense<0.000000e+00> : vector<2x16x16xf32>
    %79 = tpu.matmul %77, %78, %cst_33 {dimension_numbers = #tpu.dot_dimension_numbers<[2], [2], [1], [1], [0, 0, 0, 1, 1, 1], [0], [0]>} : vector<2x16x128xbf16>, vector<2x16x128xbf16>, vector<2x16x16xf32> -> vector<2x16x16xf32>
    "tpu.trace_stop"() : () -> ()
    %cst_34 = arith.constant dense<0xFF800000> : vector<2x16xf32>
    %80 = vector.multi_reduction <maximumf>, %79, %cst_34 [2] : vector<2x16x16xf32> to vector<2x16xf32>
    %81 = vector.shape_cast %80 : vector<2x16xf32> to vector<2x16x1xf32>
    %82 = vector.broadcast %81 : vector<2x16x1xf32> to vector<2x16x16xf32>
    %83 = arith.subf %79, %82 : vector<2x16x16xf32>
    %84 = math.exp %83 : vector<2x16x16xf32>
    %cst_35 = arith.constant dense<0.000000e+00> : vector<2x16xf32>
    %85 = vector.multi_reduction <add>, %84, %cst_35 [2] : vector<2x16x16xf32> to vector<2x16xf32>
    %86 = vector.shape_cast %85 : vector<2x16xf32> to vector<2x16x1xf32>
    %87 = tpu.reciprocal %86 {approx = true} : vector<2x16x1xf32> -> vector<2x16x1xf32>
    %88 = vector.broadcast %87 : vector<2x16x1xf32> to vector<2x16x16xf32>
    %89 = arith.mulf %84, %88 : vector<2x16x16xf32>
    %90 = arith.truncf %89 : vector<2x16x16xf32> to vector<2x16x16xbf16>
    %91 = vector.extract_strided_slice %52 {offsets = [0, 0, 128], sizes = [2, 16, 128], strides = [1, 1, 1]} : vector<2x16x256xbf16> to vector<2x16x128xbf16>
    "tpu.trace_start"() <{level = 10 : i32, message = "bqk,bkd->bqd"}> : () -> ()
    %cst_36 = arith.constant dense<0.000000e+00> : vector<2x16x128xf32>
    %92 = tpu.matmul %90, %91, %cst_36 {dimension_numbers = #tpu.dot_dimension_numbers<[2], [1], [1], [2], [0, 0, 0, 1, 1, 2], [0], [0]>} : vector<2x16x16xbf16>, vector<2x16x128xbf16>, vector<2x16x128xf32> -> vector<2x16x128xf32>
    "tpu.trace_stop"() : () -> ()
    %93 = vector.shape_cast %92 : vector<2x16x128xf32> to vector<32x128xf32>
    %94 = arith.truncf %93 : vector<32x128xf32> to vector<32x128xbf16>
    %95 = vector.extract_strided_slice %54 {offsets = [128, 0], sizes = [128, 256], strides = [1, 1]} : vector<256x256xbf16> to vector<128x256xbf16>
    %cst_37 = arith.constant dense<0.000000e+00> : vector<32x256xf32>
    %96 = tpu.matmul %94, %95, %cst_37 {dimension_numbers = #tpu.dot_dimension_numbers<[1], [0], [0], [1], [0, 0, 1, 1], [], []>} : vector<32x128xbf16>, vector<128x256xbf16>, vector<32x256xf32> -> vector<32x256xf32>
    %97 = arith.addf %76, %96 : vector<32x256xf32>
    %98 = arith.addf %4, %97 : vector<32x256xf32>
    %c0_38 = arith.constant 0 : index
    %c0_39 = arith.constant 0 : index
    %c0_40 = arith.constant 0 : index
    %99 = vector.load %arg8[%c0_38, %c0_39, %c0_40] : memref<1x1x256xf32, #tpu.memory_space<vmem>>, vector<1x1x256xf32>
    %100 = vector.shape_cast %99 : vector<1x1x256xf32> to vector<256xf32>
    %101 = vector.shape_cast %100 : vector<256xf32> to vector<1x256xf32>
    %102 = vector.broadcast %101 : vector<1x256xf32> to vector<32x256xf32>
    %103 = arith.addf %98, %102 : vector<32x256xf32>
    %c0_41 = arith.constant 0 : index
    %c0_42 = arith.constant 0 : index
    %c0_43 = arith.constant 0 : index
    %104 = vector.load %arg9[%c0_41, %c0_42, %c0_43] : memref<1x1x256xf32, #tpu.memory_space<vmem>>, vector<1x1x256xf32>
    %105 = vector.shape_cast %104 : vector<1x1x256xf32> to vector<256xf32>
    %c0_44 = arith.constant 0 : index
    %c0_45 = arith.constant 0 : index
    %c0_46 = arith.constant 0 : index
    %106 = vector.load %arg10[%c0_44, %c0_45, %c0_46] : memref<1x1x256xf32, #tpu.memory_space<vmem>>, vector<1x1x256xf32>
    %107 = vector.shape_cast %106 : vector<1x1x256xf32> to vector<256xf32>
    %cst_47 = arith.constant dense<0.000000e+00> : vector<32xf32>
    %108 = vector.multi_reduction <add>, %103, %cst_47 [1] : vector<32x256xf32> to vector<32xf32>
    %109 = vector.shape_cast %108 : vector<32xf32> to vector<32x1xf32>
    %cst_48 = arith.constant 2.560000e+02 : f32
    %110 = vector.broadcast %cst_48 : f32 to vector<32x1xf32>
    %111 = arith.divf %109, %110 : vector<32x1xf32>
    %112 = vector.broadcast %111 : vector<32x1xf32> to vector<32x256xf32>
    %113 = arith.subf %103, %112 : vector<32x256xf32>
    %114 = arith.mulf %113, %113 : vector<32x256xf32>
    %cst_49 = arith.constant dense<0.000000e+00> : vector<32xf32>
    %115 = vector.multi_reduction <add>, %114, %cst_49 [1] : vector<32x256xf32> to vector<32xf32>
    %116 = vector.shape_cast %115 : vector<32xf32> to vector<32x1xf32>
    %cst_50 = arith.constant 2.560000e+02 : f32
    %117 = vector.broadcast %cst_50 : f32 to vector<32x1xf32>
    %118 = arith.divf %116, %117 : vector<32x1xf32>
    %119 = vector.broadcast %111 : vector<32x1xf32> to vector<32x256xf32>
    %120 = arith.subf %103, %119 : vector<32x256xf32>
    %cst_51 = arith.constant 9.99999997E-7 : f32
    %121 = vector.broadcast %cst_51 : f32 to vector<32x1xf32>
    %122 = arith.addf %118, %121 : vector<32x1xf32>
    %123 = math.rsqrt %122 : vector<32x1xf32>
    %124 = vector.broadcast %123 : vector<32x1xf32> to vector<32x256xf32>
    %125 = arith.mulf %120, %124 : vector<32x256xf32>
    %126 = vector.shape_cast %105 : vector<256xf32> to vector<1x256xf32>
    %127 = vector.broadcast %126 : vector<1x256xf32> to vector<32x256xf32>
    %128 = arith.mulf %125, %127 : vector<32x256xf32>
    %129 = vector.shape_cast %107 : vector<256xf32> to vector<1x256xf32>
    %130 = vector.broadcast %129 : vector<1x256xf32> to vector<32x256xf32>
    %131 = arith.addf %128, %130 : vector<32x256xf32>
    %132 = arith.truncf %131 : vector<32x256xf32> to vector<32x256xbf16>
    %c0_52 = arith.constant 0 : index
    %c0_53 = arith.constant 0 : index
    %c0_54 = arith.constant 0 : index
    %133 = vector.load %arg11[%c0_52, %c0_53, %c0_54] : memref<1x256x1024xbf16, #tpu.memory_space<vmem>>, vector<1x256x1024xbf16>
    %134 = vector.shape_cast %133 : vector<1x256x1024xbf16> to vector<256x1024xbf16>
    %cst_55 = arith.constant dense<0.000000e+00> : vector<32x1024xf32>
    %135 = tpu.matmul %132, %134, %cst_55 {dimension_numbers = #tpu.dot_dimension_numbers<[1], [0], [0], [1], [0, 0, 1, 1], [], []>} : vector<32x256xbf16>, vector<256x1024xbf16>, vector<32x1024xf32> -> vector<32x1024xf32>
    %c0_56 = arith.constant 0 : index
    %c0_57 = arith.constant 0 : index
    %c0_58 = arith.constant 0 : index
    %136 = vector.load %arg12[%c0_56, %c0_57, %c0_58] : memref<1x1x1024xf32, #tpu.memory_space<vmem>>, vector<1x1x1024xf32>
    %137 = vector.shape_cast %136 : vector<1x1x1024xf32> to vector<1024xf32>
    %138 = vector.shape_cast %137 : vector<1024xf32> to vector<1x1024xf32>
    %139 = vector.broadcast %138 : vector<1x1024xf32> to vector<32x1024xf32>
    %140 = arith.addf %135, %139 : vector<32x1024xf32>
    %cst_59 = arith.constant 5.000000e-01 : f32
    %141 = vector.broadcast %cst_59 : f32 to vector<32x1024xf32>
    %142 = arith.mulf %141, %140 : vector<32x1024xf32>
    %cst_60 = arith.constant 0.707106769 : f32
    %143 = vector.broadcast %cst_60 : f32 to vector<32x1024xf32>
    %144 = arith.mulf %140, %143 : vector<32x1024xf32>
    %145 = math.erf %144 : vector<32x1024xf32>
    %cst_61 = arith.constant 1.000000e+00 : f32
    %146 = vector.broadcast %cst_61 : f32 to vector<32x1024xf32>
    %147 = arith.addf %146, %145 : vector<32x1024xf32>
    %148 = arith.mulf %142, %147 : vector<32x1024xf32>
    %149 = arith.truncf %148 : vector<32x1024xf32> to vector<32x1024xbf16>
    %c0_62 = arith.constant 0 : index
    %c0_63 = arith.constant 0 : index
    %c0_64 = arith.constant 0 : index
    %150 = vector.load %arg13[%c0_62, %c0_63, %c0_64] : memref<1x1024x256xbf16, #tpu.memory_space<vmem>>, vector<1x1024x256xbf16>
    %151 = vector.shape_cast %150 : vector<1x1024x256xbf16> to vector<1024x256xbf16>
    %cst_65 = arith.constant dense<0.000000e+00> : vector<32x256xf32>
    %152 = tpu.matmul %149, %151, %cst_65 {dimension_numbers = #tpu.dot_dimension_numbers<[1], [0], [0], [1], [0, 0, 1, 1], [], []>} : vector<32x1024xbf16>, vector<1024x256xbf16>, vector<32x256xf32> -> vector<32x256xf32>
    %153 = arith.addf %103, %152 : vector<32x256xf32>
    %c0_66 = arith.constant 0 : index
    %c0_67 = arith.constant 0 : index
    %c0_68 = arith.constant 0 : index
    %154 = vector.load %arg14[%c0_66, %c0_67, %c0_68] : memref<1x1x256xf32, #tpu.memory_space<vmem>>, vector<1x1x256xf32>
    %155 = vector.shape_cast %154 : vector<1x1x256xf32> to vector<256xf32>
    %156 = vector.shape_cast %155 : vector<256xf32> to vector<1x256xf32>
    %157 = vector.broadcast %156 : vector<1x256xf32> to vector<32x256xf32>
    %158 = arith.addf %153, %157 : vector<32x256xf32>
    %c1_i32 = arith.constant 1 : i32
    %159 = arith.cmpi ne, %arg0, %c1_i32 : i32
    %160 = arith.extui %159 : i1 to i32
    %c0_i32_69 = arith.constant 0 : i32
    %161 = arith.cmpi ne, %160, %c0_i32_69 : i32
    scf.if %161 {
      %165 = vector.shape_cast %158 : vector<32x256xf32> to vector<2x16x256xf32>
      %c0_72 = arith.constant 0 : index
      %c0_73 = arith.constant 0 : index
      %c0_74 = arith.constant 0 : index
      %166 = vector.load %arg17[%c0_72, %c0_73, %c0_74] : memref<2x16x256xf32, #tpu.memory_space<vmem>>, vector<2x16x256xf32>
      tpu.vector_store %arg17[%c0_72, %c0_73, %c0_74], %165 {strides = array<i32>} : memref<2x16x256xf32, #tpu.memory_space<vmem>>, vector<2x16x256xf32>,
    } else {
    }
    %c1_i32_70 = arith.constant 1 : i32
    %162 = arith.cmpi eq, %arg0, %c1_i32_70 : i32
    %163 = arith.extui %162 : i1 to i32
    %c0_i32_71 = arith.constant 0 : i32
    %164 = arith.cmpi ne, %163, %c0_i32_71 : i32
    scf.if %164 {
      %c0_72 = arith.constant 0 : index
      %c0_73 = arith.constant 0 : index
      %165 = vector.load %arg15[%c0_72, %c0_73] : memref<1x256xf32, #tpu.memory_space<vmem>>, vector<1x256xf32>
      %166 = vector.shape_cast %165 : vector<1x256xf32> to vector<256xf32>
      %c0_74 = arith.constant 0 : index
      %c0_75 = arith.constant 0 : index
      %167 = vector.load %arg16[%c0_74, %c0_75] : memref<1x256xf32, #tpu.memory_space<vmem>>, vector<1x256xf32>
      %168 = vector.shape_cast %167 : vector<1x256xf32> to vector<256xf32>
      %cst_76 = arith.constant dense<0.000000e+00> : vector<32xf32>
      %169 = vector.multi_reduction <add>, %158, %cst_76 [1] : vector<32x256xf32> to vector<32xf32>
      %170 = vector.shape_cast %169 : vector<32xf32> to vector<32x1xf32>
      %cst_77 = arith.constant 2.560000e+02 : f32
      %171 = vector.broadcast %cst_77 : f32 to vector<32x1xf32>
      %172 = arith.divf %170, %171 : vector<32x1xf32>
      %173 = vector.broadcast %172 : vector<32x1xf32> to vector<32x256xf32>
      %174 = arith.subf %158, %173 : vector<32x256xf32>
      %175 = arith.mulf %174, %174 : vector<32x256xf32>
      %cst_78 = arith.constant dense<0.000000e+00> : vector<32xf32>
      %176 = vector.multi_reduction <add>, %175, %cst_78 [1] : vector<32x256xf32> to vector<32xf32>
      %177 = vector.shape_cast %176 : vector<32xf32> to vector<32x1xf32>
      %cst_79 = arith.constant 2.560000e+02 : f32
      %178 = vector.broadcast %cst_79 : f32 to vector<32x1xf32>
      %179 = arith.divf %177, %178 : vector<32x1xf32>
      %180 = vector.broadcast %172 : vector<32x1xf32> to vector<32x256xf32>
      %181 = arith.subf %158, %180 : vector<32x256xf32>
      %cst_80 = arith.constant 9.99999997E-7 : f32
      %182 = vector.broadcast %cst_80 : f32 to vector<32x1xf32>
      %183 = arith.addf %179, %182 : vector<32x1xf32>
      %184 = math.rsqrt %183 : vector<32x1xf32>
      %185 = vector.broadcast %184 : vector<32x1xf32> to vector<32x256xf32>
      %186 = arith.mulf %181, %185 : vector<32x256xf32>
      %187 = vector.shape_cast %166 : vector<256xf32> to vector<1x256xf32>
      %188 = vector.broadcast %187 : vector<1x256xf32> to vector<32x256xf32>
      %189 = arith.mulf %186, %188 : vector<32x256xf32>
      %190 = vector.shape_cast %168 : vector<256xf32> to vector<1x256xf32>
      %191 = vector.broadcast %190 : vector<1x256xf32> to vector<32x256xf32>
      %192 = arith.addf %189, %191 : vector<32x256xf32>
      %193 = vector.shape_cast %192 : vector<32x256xf32> to vector<2x16x256xf32>
      %c0_81 = arith.constant 0 : index
      %c0_82 = arith.constant 0 : index
      %c0_83 = arith.constant 0 : index
      %194 = vector.load %arg17[%c0_81, %c0_82, %c0_83] : memref<2x16x256xf32, #tpu.memory_space<vmem>>, vector<2x16x256xf32>
      tpu.vector_store %arg17[%c0_81, %c0_82, %c0_83], %193 {strides = array<i32>} : memref<2x16x256xf32, #tpu.memory_space<vmem>>, vector<2x16x256xf32>,
    } else {
    }
    return
  }
  func.func @transform_0(%arg0: i32) -> (i32, i32, i32) {
    %c0_i32 = arith.constant 0 : i32
    %c0_i32_0 = arith.constant 0 : i32
    %c0_i32_1 = arith.constant 0 : i32
    %c0_i32_2 = arith.constant 0 : i32
    return %c0_i32, %c0_i32_0, %c0_i32_1 : i32, i32, i32
  }
  func.func @transform_1(%arg0: i32) -> (i32, i32, i32) {
    %c0_i32 = arith.constant 0 : i32
    %c0_i32_0 = arith.constant 0 : i32
    %c0_i32_1 = arith.constant 0 : i32
    %c0_i32_2 = arith.constant 0 : i32
    return %c0_i32, %c0_i32_0, %c0_i32_1 : i32, i32, i32
  }
  func.func @transform_2(%arg0: i32) -> (i32, i32, i32) {
    %c0_i32 = arith.constant 0 : i32
    %c0_i32_0 = arith.constant 0 : i32
    %c0_i32_1 = arith.constant 0 : i32
    return %arg0, %c0_i32, %c0_i32_0 : i32, i32, i32
  }
  func.func @transform_3(%arg0: i32) -> (i32, i32, i32) {
    %c0_i32 = arith.constant 0 : i32
    %c0_i32_0 = arith.constant 0 : i32
    %c0_i32_1 = arith.constant 0 : i32
    return %arg0, %c0_i32, %c0_i32_0 : i32, i32, i32
  }
  func.func @transform_4(%arg0: i32) -> (i32, i32, i32) {
    %c0_i32 = arith.constant 0 : i32
    %c0_i32_0 = arith.constant 0 : i32
    %c0_i32_1 = arith.constant 0 : i32
    return %arg0, %c0_i32, %c0_i32_0 : i32, i32, i32
  }
  func.func @transform_5(%arg0: i32) -> (i32, i32, i32) {
    %c0_i32 = arith.constant 0 : i32
    %c0_i32_0 = arith.constant 0 : i32
    %c0_i32_1 = arith.constant 0 : i32
    return %arg0, %c0_i32, %c0_i32_0 : i32, i32, i32
  }
  func.func @transform_6(%arg0: i32) -> (i32, i32, i32) {
    %c0_i32 = arith.constant 0 : i32
    %c0_i32_0 = arith.constant 0 : i32
    %c0_i32_1 = arith.constant 0 : i32
    return %arg0, %c0_i32, %c0_i32_0 : i32, i32, i32
  }
  func.func @transform_7(%arg0: i32) -> (i32, i32, i32) {
    %c0_i32 = arith.constant 0 : i32
    %c0_i32_0 = arith.constant 0 : i32
    %c0_i32_1 = arith.constant 0 : i32
    return %arg0, %c0_i32, %c0_i32_0 : i32, i32, i32
  }
  func.func @transform_8(%arg0: i32) -> (i32, i32, i32) {
    %c0_i32 = arith.constant 0 : i32
    %c0_i32_0 = arith.constant 0 : i32
    %c0_i32_1 = arith.constant 0 : i32
    return %arg0, %c0_i32, %c0_i32_0 : i32, i32, i32
  }
  func.func @transform_9(%arg0: i32) -> (i32, i32, i32) {
    %c0_i32 = arith.constant 0 : i32
    %c0_i32_0 = arith.constant 0 : i32
    %c0_i32_1 = arith.constant 0 : i32
    return %arg0, %c0_i32, %c0_i32_0 : i32, i32, i32
  }
  func.func @transform_10(%arg0: i32) -> (i32, i32, i32) {
    %c0_i32 = arith.constant 0 : i32
    %c0_i32_0 = arith.constant 0 : i32
    %c0_i32_1 = arith.constant 0 : i32
    return %arg0, %c0_i32, %c0_i32_0 : i32, i32, i32
  }
  func.func @transform_11(%arg0: i32) -> (i32, i32, i32) {
    %c0_i32 = arith.constant 0 : i32
    %c0_i32_0 = arith.constant 0 : i32
    %c0_i32_1 = arith.constant 0 : i32
    return %arg0, %c0_i32, %c0_i32_0 : i32, i32, i32
  }
  func.func @transform_12(%arg0: i32) -> (i32, i32, i32) {
    %c0_i32 = arith.constant 0 : i32
    %c0_i32_0 = arith.constant 0 : i32
    %c0_i32_1 = arith.constant 0 : i32
    return %arg0, %c0_i32, %c0_i32_0 : i32, i32, i32
  }
  func.func @transform_13(%arg0: i32) -> (i32, i32, i32) {
    %c0_i32 = arith.constant 0 : i32
    %c0_i32_0 = arith.constant 0 : i32
    %c0_i32_1 = arith.constant 0 : i32
    return %arg0, %c0_i32, %c0_i32_0 : i32, i32, i32
  }
  func.func @transform_14(%arg0: i32) -> (i32, i32) {
    %c0_i32 = arith.constant 0 : i32
    %c0_i32_0 = arith.constant 0 : i32
    %c0_i32_1 = arith.constant 0 : i32
    return %c0_i32, %c0_i32_0 : i32, i32
  }
  func.func @transform_15(%arg0: i32) -> (i32, i32) {
    %c0_i32 = arith.constant 0 : i32
    %c0_i32_0 = arith.constant 0 : i32
    %c0_i32_1 = arith.constant 0 : i32
    return %c0_i32, %c0_i32_0 : i32, i32
  }
  func.func @transform_16(%arg0: i32) -> (i32, i32, i32) {
    %c0_i32 = arith.constant 0 : i32
    %c0_i32_0 = arith.constant 0 : i32
    %c0_i32_1 = arith.constant 0 : i32
    %c0_i32_2 = arith.constant 0 : i32
    return %c0_i32, %c0_i32_0, %c0_i32_1 : i32, i32, i32
  }
}

</mosaic_0001>

<bundles_post_ra>
// kernel: tpu_custom_call.1
= control target key start
LH: loop header
LB: loop body
LE: loop exit
PB: predicated region body
PF: predicated region fallthrough
CT: control target
= control target key end

     0   :  { %s12516_s0 = inlined_call_operand.hbm [shape: bf16[2,16,256], index: 0, kind: input, shape index: {}]   ;;  %s12517_s1 = inlined_call_operand.hbm [shape: f32[2,16,256], index: 1, kind: input, shape index: {}]   ;;  %s12518_s2 = inlined_call_operand.hbm [shape: f32[2,1,256], index: 2, kind: input, shape index: {}]   ;;  %s12519_s3 = inlined_call_operand.hbm [shape: f32[2,1,256], index: 3, kind: input, shape index: {}]   ;;  %s12520_s4 = inlined_call_operand.hbm [shape: bf16[2,256,512], index: 4, kind: input, shape index: {}]   ;;  %s12521_s5 = inlined_call_operand.hbm [shape: f32[2,1,512], index: 5, kind: input, shape index: {}]   ;;  %s12522_s6 = inlined_call_operand.hbm [shape: bf16[2,256,256], index: 6, kind: input, shape index: {}]   ;;  %s12523_s7 = inlined_call_operand.vmem [shape: f32[2,1,256], index: 7, kind: input, shape index: {}]   ;;  %s12524_s8 = inlined_call_operand.hbm [shape: f32[2,1,256], index: 8, kind: input, shape index: {}]   ;;  %s12525_s9 = inlined_call_operand.vmem [shape: f32[2,1,256], index: 9, kind: input, shape index: {}]   ;;  %s12526_s10 = inlined_call_operand.hbm [shape: bf16[2,256,1024], index: 10, kind: input, shape index: {}]   ;;  %s12527_s11 = inlined_call_operand.hbm [shape: f32[2,1,1024], index: 11, kind: input, shape index: {}]   ;;  %s12528_s12 = inlined_call_operand.hbm [shape: bf16[2,1024,256], index: 12, kind: input, shape index: {}]   ;;  %s12529_s13 = inlined_call_operand.vmem [shape: f32[2,1,256], index: 13, kind: input, shape index: {}]   ;;  %s12530_s14 = inlined_call_operand.hbm [shape: f32[1,256], index: 14, kind: input, shape index: {}]   ;;  %s12531_s15 = inlined_call_operand.vmem [shape: f32[1,256], index: 15, kind: input, shape index: {}]   ;;  %s12532_s16 = inlined_call_operand.hbm [shape: f32[2,16,256], index: 16, kind: output, shape index: {}]  }
   0x1   :  { %12572 = sst [smem:[#allocation48_spill]] %s12516_s0 }
   0x2   :  { %12573 = sst [smem:[#allocation49_spill]] %s12517_s1 }
   0x3   :  { %12574 = sst [smem:[#allocation50_spill]] %s12518_s2 }
   0x4   :  { %12575 = sst [smem:[#allocation51_spill]] %s12519_s3 }
   0x5   :  { %12576 = sst [smem:[#allocation52_spill]] %s12520_s4 }
   0x6   :  { %12577 = sst [smem:[#allocation53_spill]] %s12523_s7 }
   0x7   :  { %12578 = sst [smem:[#allocation54_spill]] %s12525_s9 }
   0x8   :  { %12579 = sst [smem:[#allocation55_spill]] %s12528_s12 }
   0x9   :  { %12580 = sst [smem:[#allocation56_spill]] %s12529_s13 }
   0xa   :  { %12581 = sst [smem:[#allocation57_spill]] %s12531_s15 }
   0xb   :  { %12582 = sst [smem:[#allocation58_spill]] %s12532_s16 }
   0xc   :  { %21 = vsyncpa [#allocation3], 0 }
   0xd   :  { %22 = vsyncpa [#allocation6], 0 }
   0xe   :  { %23 = vsyncpa [#allocation4], 0  ;;  %s9128_s21 = smov 0   ;;  %s9130_s22 = smov 0  }
   0xf   :  { %s9132_s23 = smov 0   ;;  %s9134_s24 = smov 0  }
  0x10 LB: > { %12583 = sst [smem:[#allocation23_spill]] %s9020_s22  ;;  %s9147_s25 = sadd.s32 4294967295, %s9028_s24   ;;  %s9028_s24 = sphi %s9134_s24, %s12756_s24   ;;  %s9024_s23 = sphi %s9132_s23, %s12759_s23   ;;  %s9020_s22 = sphi %s9130_s22, %s12758_s22   ;;  %s9016_s21 = sphi %s9128_s21, %s12757_s21  }
  0x11   : > { %12584 = sst [smem:[#allocation24_spill]] %s9024_s23  ;;  %s9150_s26 = sadd.s32 1, %s9028_s24  }
  0x12   : > { %12585 = sst [smem:[#allocation25_spill]] %s9147_s25  ;;  %s75_s27 = ssub.s32 %s9028_s24, %s9150_s26 }
  0x13   : > { %12586 = sst [smem:[#allocation26_spill]] %s9150_s26  ;;  %s78_s28 = sadd.s32 1, %s9024_s23 }
  0x14   : > { %p76_p0 = scmp.eq.s32.totalorder %s75_s27, 0  ;;  %p85_p1 = scmp.ne.s32.totalorder %s9024_s23, %s9020_s22 }
  0x15   : > { %p86_p2 = scmp.eq.s32.totalorder %s9028_s24, 0  ;;  %p91_p3 = scmp.ne.s32.totalorder %s9020_s22, %s9016_s21 }
  0x16   : > { %s9160_s29 = scalar_select %p76_p0, %s9024_s23, %s78_s28  }
  0x17   : > { %p9162_p4 = por %p86_p2, %p85_p1  ;;  %p92_p5 = scmp.eq.s32.totalorder %s9147_s25, 0 }
  0x18   : > { %12587 = sst [smem:[#allocation27_spill]] %s9160_s29  ;;  %p6462_p6 = scmp.ge.s32.totalorder %s9028_s24, 1 }
  0x19   : > { %p451_p7 = scmp.lt.s32.totalorder %s9028_s24, 3  ;;  %p9171_p8 = por %p92_p5, %p91_p3 }
  0x1a   : > { %p6463_p9 = scmp.ne.s32.totalorder %s9147_s25, 0  ;;  %s12593_s20 = sld [smem:[#allocation48_spill]] }
  0x1b   : > { %s12589_s0 = scalar_select %p9171_p8, 1, 0 }
  0x1c   : > { %p9176_p10 = pnand %p6462_p6, %p451_p7  ;;  %s9030_s27 = smov [#allocation2]  }
  0x1d   : > { %12590 = sst [smem:[#allocation28_spill]] %s12589_s0  ;;  %s464_s28 = sshll.u32 %s9030_s27, 4  ;;  %s465_s28 = int_to_ptr.vmem [resolvable:$true] %s464_s28 }
  0x1e   : > { %s12591_s17 = scalar_select %p9176_p10, 1, 0 }
  0x1f   : > { %p8366_p11 = pneg %p9176_p10  ;;  %p8407_p13 = scmp.lt.s32.totalorder %s9028_s24, 2 }
  0x20   : > { %12592 = sst [smem:[#allocation29_spill]] %s12591_s17  ;;  %s462_s21 = sshll.u32 %s12593_s20, 4  ;;  %s463_s21 = int_to_ptr.hbm [resolvable:$true] %s462_s21 }
  0x21   : > { %p9187_p12 = pnand %p8366_p11, %p92_p5  ;;  %s507_s26 = sand.u32 1, %s9028_s24  }
  0x22   : > { %s12535_s16 = smov 128   ;;  %s12537_s15 = smov 8  }
  0x23   : > { %8369 = dma.hbm_to_vmem [thread:$0]  (!%p9187_p12), %s463_s21, 512, %s465_s28, [#allocation3], %s12535_s16, %s12535_s16, %s12537_s15  }
  0x24   : > { %p9200_p0 = pnand %p8407_p13, %p9162_p4  ;;  %s9205_s19 = sand.u32 1, %s9024_s23  }
  0x25   : > { %s9208_s20 = sshll.u32 %s9028_s24, 1  ;;  %s9211_s27 = sshll.u32 %s9205_s19, 1 }
  0x26   : > { %s12596_s2 = sld [smem:[#allocation50_spill]]  ;;  %s511_s30 = scalar_lea.vmem [#allocation7], %s9211_s27 }
  0x27   : > { %s519_s28 = sshll.u32 %s511_s30, 4  ;;  %s9218_s16 = scalar_lea.sflag [#allocation3], %s507_s26  ;;  %s520_s28 = int_to_ptr.vmem [resolvable:$true] %s519_s28 }
  0x28   : > { %p9222_p2 = pneg %p9200_p0 }
  0x2c   : > { %s515_s7 = scalar_lea.hbm %s12596_s2, %s9208_s20  ;;  %s8627_s13 = scalar_lea.hbm %s12596_s2, 4 }
  0x2d   : > { %s517_s21 = sshll.u32 %s515_s7, 4  ;;  %s518_s21 = int_to_ptr.hbm [resolvable:$true] %s517_s21 }
  0x2e   : > { %s8620_s15 = sshra.s32 %s518_s21, 4  ;;  %s8621_s15 = int_to_ptr.hbm [resolvable:$true] %s8620_s15 }
  0x2f   : > { %s8622_s23 = scalar_lea.hbm %s8621_s15, 2  ;;  %p8628_p6 = scmp.lt.s32.totalorder %s8621_s15, %s12596_s2 }
  0x30   : > { %p8623_p1 = scmp.ne.s32.totalorder %s8621_s15, %s8622_s23  ;;  %p8629_p7 = scmp.lt.s32.totalorder %s8627_s13, %s8622_s23 }
  0x32   : > { %p8625_p3 = pnand %p9222_p2, %p8623_p1  ;;  %p8630_p11 = por %p8629_p7, %p8628_p6 }
  0x34   : > { %p8626_p4 = pneg %p8625_p3 }
  0x36   : > { %p8631_p13 = pnand %p8630_p11, %p8626_p4 }
  0x38   : > { %8634 = shalt.err (!%p8631_p13)
}
  0x39   : > { %8379 = dma.hbm_to_vmem [thread:$0]  (!%p9200_p0), %s518_s21, 32, %s520_s28, %s9218_s16  }
  0x3a   : > { %s12598_s3 = sld [smem:[#allocation51_spill]]  ;;  %s530_s17 = scalar_lea.vmem [#allocation8], %s9211_s27 }
  0x3b   : > { %s538_s12 = sshll.u32 %s530_s17, 4  ;;  %s539_s12 = int_to_ptr.vmem [resolvable:$true] %s538_s12 }
  0x40   : > { %s534_s7 = scalar_lea.hbm %s12598_s3, %s9208_s20  ;;  %s8657_s21 = scalar_lea.hbm %s12598_s3, 4 }
  0x41   : > { %s536_s9 = sshll.u32 %s534_s7, 4  ;;  %s537_s9 = int_to_ptr.hbm [resolvable:$true] %s536_s9 }
  0x42   : > { %s8650_s15 = sshra.s32 %s537_s9, 4  ;;  %s8651_s15 = int_to_ptr.hbm [resolvable:$true] %s8650_s15 }
  0x43   : > { %s8652_s23 = scalar_lea.hbm %s8651_s15, 2  ;;  %p8658_p6 = scmp.lt.s32.totalorder %s8651_s15, %s12598_s3 }
  0x44   : > { %p8653_p1 = scmp.ne.s32.totalorder %s8651_s15, %s8652_s23  ;;  %p8659_p7 = scmp.lt.s32.totalorder %s8657_s21, %s8652_s23 }
  0x46   : > { %p8655_p3 = pnand %p8653_p1, %p9222_p2  ;;  %p8660_p11 = por %p8659_p7, %p8658_p6 }
  0x48   : > { %p8656_p4 = pneg %p8655_p3 }
  0x4a   : > { %p8661_p13 = pnand %p8660_p11, %p8656_p4 }
  0x4c   : > { %8664 = shalt.err (!%p8661_p13)
}
  0x4d   : > { %8382 = dma.hbm_to_vmem [thread:$0]  (!%p9200_p0), %s537_s9, 32, %s539_s12, %s9218_s16  }
  0x4e   : > { %s6471_s22 = sshll.u32 %s9205_s19, 9  ;;  %s7972_s25 = sshll.u32 %s9028_s24, 9 }
  0x4f   : > { %s12599_s4 = sld [smem:[#allocation52_spill]]  ;;  %s549_s28 = scalar_lea.vmem [#allocation9], %s6471_s22 }
  0x50   : > { %s557_s15 = sshll.u32 %s549_s28, 4  ;;  %s558_s15 = int_to_ptr.vmem [resolvable:$true] %s557_s15 }
  0x55   : > { %s554_s13 = scalar_lea.hbm %s12599_s4, %s7972_s25  ;;  %s8687_s9 = scalar_lea.hbm %s12599_s4, 1024 }
  0x56   : > { %s555_s30 = sshll.u32 %s554_s13, 4  ;;  %s556_s30 = int_to_ptr.hbm [resolvable:$true] %s555_s30 }
  0x57   : > { %s8680_s23 = sshra.s32 %s556_s30, 4  ;;  %s8681_s23 = int_to_ptr.hbm [resolvable:$true] %s8680_s23 }
  0x58   : > { %s8682_s21 = scalar_lea.hbm %s8681_s23, 512  ;;  %p8688_p6 = scmp.lt.s32.totalorder %s8681_s23, %s12599_s4 }
  0x59   : > { %p8683_p1 = scmp.ne.s32.totalorder %s8681_s23, %s8682_s21  ;;  %p8689_p7 = scmp.lt.s32.totalorder %s8687_s9, %s8682_s21 }
  0x5b   : > { %p8685_p3 = pnand %p8683_p1, %p9222_p2  ;;  %p8690_p11 = por %p8689_p7, %p8688_p6 }
  0x5d   : > { %p8686_p4 = pneg %p8685_p3 }
  0x5f   : > { %p8691_p13 = pnand %p8690_p11, %p8686_p4 }
  0x61   : > { %8694 = shalt.err (!%p8691_p13)
}
  0x62   : > { %s12549_s22 = smov 256   ;;  %s12550_s25 = smov 16  }
  0x63   : > { %8385 = dma.hbm_to_vmem [thread:$0]  (!%p9200_p0), %s556_s30, 8192, %s558_s15, %s9218_s16, %s12549_s22, %s12549_s22, %s12550_s25  }
  0x64   : > { %s6474_s17 = sshll.u32 %s9205_s19, 2  ;;  %s6475_s7 = sshll.u32 %s9028_s24, 2 }
  0x65   : > { %s575_s13 = scalar_lea.hbm %s12521_s5, %s6475_s7  ;;  %s571_s23 = scalar_lea.vmem [#allocation10], %s6474_s17 }
  0x66   : > { %s577_s28 = sshll.u32 %s575_s13, 4  ;;  %s579_s21 = sshll.u32 %s571_s23, 4  ;;  %s578_s28 = int_to_ptr.hbm [resolvable:$true] %s577_s28  ;;  %s580_s21 = int_to_ptr.vmem [resolvable:$true] %s579_s21 }
  0x67   : > { %s8710_s26 = sshra.s32 %s578_s28, 4  ;;  %s8717_s15 = scalar_lea.hbm %s12521_s5, 8  ;;  %s8711_s26 = int_to_ptr.hbm [resolvable:$true] %s8710_s26 }
  0x68   : > { %s8712_s12 = scalar_lea.hbm %s8711_s26, 4  ;;  %p8718_p6 = scmp.lt.s32.totalorder %s8711_s26, %s12521_s5 }
  0x69   : > { %p8713_p1 = scmp.ne.s32.totalorder %s8711_s26, %s8712_s12  ;;  %p8719_p7 = scmp.lt.s32.totalorder %s8717_s15, %s8712_s12 }
  0x6b   : > { %p8715_p3 = pnand %p8713_p1, %p9222_p2  ;;  %p8720_p11 = por %p8719_p7, %p8718_p6 }
  0x6d   : > { %p8716_p4 = pneg %p8715_p3 }
  0x6f   : > { %p8721_p13 = pnand %p8720_p11, %p8716_p4 }
  0x71   : > { %8724 = shalt.err (!%p8721_p13)
}
  0x72   : > { %8388 = dma.hbm_to_vmem [thread:$0]  (!%p9200_p0), %s578_s28, 64, %s580_s21, %s9218_s16  }
  0x73   : > { %s6476_s17 = sshll.u32 %s9205_s19, 8  ;;  %s7973_s7 = sshll.u32 %s9028_s24, 8 }
  0x74   : > { %s595_s13 = scalar_lea.hbm %s12522_s6, %s7973_s7  ;;  %s590_s22 = scalar_lea.vmem [#allocation11], %s6476_s17 }
  0x75   : > { %s596_s23 = sshll.u32 %s595_s13, 4  ;;  %s598_s25 = sshll.u32 %s590_s22, 4  ;;  %s597_s23 = int_to_ptr.hbm [resolvable:$true] %s596_s23  ;;  %s599_s25 = int_to_ptr.vmem [resolvable:$true] %s598_s25 }
  0x76   : > { %s8740_s26 = sshra.s32 %s597_s23, 4  ;;  %s8747_s21 = scalar_lea.hbm %s12522_s6, 512  ;;  %s8741_s26 = int_to_ptr.hbm [resolvable:$true] %s8740_s26 }
  0x77   : > { %s8742_s12 = scalar_lea.hbm %s8741_s26, 256  ;;  %p8748_p6 = scmp.lt.s32.totalorder %s8741_s26, %s12522_s6 }
  0x78   : > { %p8743_p1 = scmp.ne.s32.totalorder %s8741_s26, %s8742_s12  ;;  %p8749_p7 = scmp.lt.s32.totalorder %s8747_s21, %s8742_s12 }
  0x7a   : > { %p8745_p3 = pnand %p8743_p1, %p9222_p2  ;;  %p8750_p11 = por %p8749_p7, %p8748_p6 }
  0x7c   : > { %p8746_p4 = pneg %p8745_p3 }
  0x7e   : > { %p8751_p13 = pnand %p8750_p11, %p8746_p4 }
  0x80   : > { %8754 = shalt.err (!%p8751_p13)
}
  0x81   : > { %s12600_s17 = smov 8   ;;  %s12601_s7 = smov 128  }
  0x82   : > { %8391 = dma.hbm_to_vmem [thread:$0]  (!%p9200_p0), %s597_s23, 4096, %s599_s25, %s9218_s16, %s12601_s7, %s12601_s7, %s12600_s17  }
  0x83   : > { %s623_s13 = scalar_lea.hbm %s12524_s8, %s9208_s20  ;;  %s619_s26 = scalar_lea.vmem [#allocation12], %s9211_s27 }
  0x84   : > { %s625_s22 = sshll.u32 %s623_s13, 4  ;;  %s627_s12 = sshll.u32 %s619_s26, 4  ;;  %s626_s22 = int_to_ptr.hbm [resolvable:$true] %s625_s22  ;;  %s628_s12 = int_to_ptr.vmem [resolvable:$true] %s627_s12 }
  0x85   : > { %s8770_s9 = sshra.s32 %s626_s22, 4  ;;  %s8777_s23 = scalar_lea.hbm %s12524_s8, 4  ;;  %s8771_s9 = int_to_ptr.hbm [resolvable:$true] %s8770_s9 }
  0x86   : > { %s8772_s28 = scalar_lea.hbm %s8771_s9, 2  ;;  %p8778_p6 = scmp.lt.s32.totalorder %s8771_s9, %s12524_s8 }
  0x87   : > { %p8773_p1 = scmp.ne.s32.totalorder %s8771_s9, %s8772_s28  ;;  %p8779_p7 = scmp.lt.s32.totalorder %s8777_s23, %s8772_s28 }
  0x89   : > { %p8775_p3 = pnand %p8773_p1, %p9222_p2  ;;  %p8780_p11 = por %p8779_p7, %p8778_p6 }
  0x8b   : > { %p8776_p4 = pneg %p8775_p3 }
  0x8d   : > { %p8781_p13 = pnand %p8780_p11, %p8776_p4 }
  0x8f   : > { %8784 = shalt.err (!%p8781_p13)
}
  0x90   : > { %8394 = dma.hbm_to_vmem [thread:$0]  (!%p9200_p0), %s626_s22, 32, %s628_s12, %s9218_s16  }
  0x91   : > { %s12551_s20 = sshll.u32 %s9205_s19, 10  ;;  %s12552_s27 = sshll.u32 %s9028_s24, 10 }
  0x92   : > { %s650_s13 = scalar_lea.hbm %s12526_s10, %s12552_s27  ;;  %s645_s9 = scalar_lea.vmem [#allocation13], %s12551_s20 }
  0x93   : > { %s651_s26 = sshll.u32 %s650_s13, 4  ;;  %s653_s28 = sshll.u32 %s645_s9, 4  ;;  %s652_s26 = int_to_ptr.hbm [resolvable:$true] %s651_s26  ;;  %s654_s28 = int_to_ptr.vmem [resolvable:$true] %s653_s28 }
  0x94   : > { %s8800_s21 = sshra.s32 %s652_s26, 4  ;;  %s8807_s23 = scalar_lea.hbm %s12526_s10, 2048  ;;  %s8801_s21 = int_to_ptr.hbm [resolvable:$true] %s8800_s21 }
  0x95   : > { %s8802_s30 = scalar_lea.hbm %s8801_s21, 1024  ;;  %p8808_p6 = scmp.lt.s32.totalorder %s8801_s21, %s12526_s10 }
  0x96   : > { %p8803_p1 = scmp.ne.s32.totalorder %s8801_s21, %s8802_s30  ;;  %p8809_p7 = scmp.lt.s32.totalorder %s8807_s23, %s8802_s30 }
  0x98   : > { %p8805_p3 = pnand %p8803_p1, %p9222_p2  ;;  %p8810_p11 = por %p8809_p7, %p8808_p6 }
  0x9a   : > { %p8806_p4 = pneg %p8805_p3 }
  0x9c   : > { %p8811_p13 = pnand %p8810_p11, %p8806_p4 }
  0x9e   : > { %8814 = shalt.err (!%p8811_p13)
}
  0x9f   : > { %s9035_s2 = smov 512   ;;  %s9036_s3 = smov 32  }
  0xa0   : > { %8397 = dma.hbm_to_vmem [thread:$0]  (!%p9200_p0), %s652_s26, 16384, %s654_s28, %s9218_s16, %s9035_s2, %s9035_s2, %s9036_s3  }
  0xa1   : > { %s12602_s1 = sld [smem:[#allocation49_spill]]  ;;  %s9037_s12 = smov [#allocation5]  }
  0xa2   : > { %s478_s21 = sshll.u32 %s9037_s12, 4  ;;  %s6484_s30 = sshll.u32 %s9205_s19, 3  ;;  %s479_s21 = int_to_ptr.vmem [resolvable:$true] %s478_s21 }
  0xa3   : > { %s12603_s23 = smov 16   ;;  %s12604_s25 = smov 256  }
  0xa4   : > { %s6485_s15 = sshll.u32 %s9028_s24, 3  ;;  %s667_s28 = scalar_lea.vmem [#allocation14], %s6484_s30 }
  0xa5   : > { %s671_s26 = scalar_lea.hbm %s12527_s11, %s6485_s15  ;;  %s675_s2 = sshll.u32 %s667_s28, 4  ;;  %s676_s2 = int_to_ptr.vmem [resolvable:$true] %s675_s2 }
  0xa6   : > { %s673_s3 = sshll.u32 %s671_s26, 4  ;;  %s491_s12 = sshll.u32 %s12530_s14, 4  ;;  %s674_s3 = int_to_ptr.hbm [resolvable:$true] %s673_s3  ;;  %s492_s12 = int_to_ptr.hbm [resolvable:$true] %s491_s12 }
  0xa7   : > { %s476_s22 = sshll.u32 %s12602_s1, 4  ;;  %s8860_s1 = sshra.s32 %s674_s3, 4  ;;  %s477_s22 = int_to_ptr.hbm [resolvable:$true] %s476_s22  ;;  %s8861_s1 = int_to_ptr.hbm [resolvable:$true] %s8860_s1 }
  0xa8   : > { %8372 = dma.hbm_to_vmem [thread:$0]  (!%p9187_p12), %s477_s22, 1024, %s479_s21, [#allocation6], %s12604_s25, %s12604_s25, %s12603_s23  }
  0xa9   : > { %s8862_s4 = scalar_lea.hbm %s8861_s1, 8  ;;  %s8867_s20 = scalar_lea.hbm %s12527_s11, 16 }
  0xaa   : > { %p8863_p1 = scmp.ne.s32.totalorder %s8861_s1, %s8862_s4  ;;  %p8868_p6 = scmp.lt.s32.totalorder %s8861_s1, %s12527_s11 }
  0xab   : > { %p8869_p7 = scmp.lt.s32.totalorder %s8867_s20, %s8862_s4 }
  0xac   : > { %p8865_p3 = pnand %p8863_p1, %p9222_p2 }
  0xad   : > { %p8870_p11 = por %p8869_p7, %p8868_p6 }
  0xae   : > { %p8866_p4 = pneg %p8865_p3 }
  0xb0   : > { %p8871_p13 = pnand %p8870_p11, %p8866_p4 }
  0xb2   : > { %8874 = shalt.err (!%p8871_p13)
}
  0xb3   : > { %8400 = dma.hbm_to_vmem [thread:$0]  (!%p9200_p0), %s674_s3, 128, %s676_s2, %s9218_s16  }
  0xb4   : > { %s9038_s23 = smov [#allocation16]   ;;  %s12605_s15 = sshll.u32 %s9028_s24, 10 }
  0xb5   : > { %s493_s25 = sshll.u32 %s9038_s23, 4  ;;  %s12606_s1 = sld [smem:[#allocation55_spill]]  ;;  %s494_s25 = int_to_ptr.vmem [resolvable:$true] %s493_s25 }
  0xb6   : > { %8375 = dma.hbm_to_vmem [thread:$0]  (!%p9187_p12), %s492_s12, 32, %s494_s25, [#allocation6]  }
  0xb7   : > { %s12607_s9 = sshll.u32 %s9205_s19, 10 }
  0xb8   : > { %s686_s22 = scalar_lea.vmem [#allocation15], %s12607_s9 }
  0xb9   : > { %s694_s21 = sshll.u32 %s686_s22, 4  ;;  %s695_s21 = int_to_ptr.vmem [resolvable:$true] %s694_s21 }
  0xbb   : > { %s691_s4 = scalar_lea.hbm %s12606_s1, %s12605_s15  ;;  %s8927_s27 = scalar_lea.hbm %s12606_s1, 2048 }
  0xbc   : > { %s692_s13 = sshll.u32 %s691_s4, 4  ;;  %s693_s13 = int_to_ptr.hbm [resolvable:$true] %s692_s13 }
  0xbd   : > { %s8920_s20 = sshra.s32 %s693_s13, 4  ;;  %s8921_s20 = int_to_ptr.hbm [resolvable:$true] %s8920_s20 }
  0xbe   : > { %s8922_s2 = scalar_lea.hbm %s8921_s20, 1024  ;;  %p8928_p12 = scmp.lt.s32.totalorder %s8921_s20, %s12606_s1 }
  0xbf   : > { %p8923_p1 = scmp.ne.s32.totalorder %s8921_s20, %s8922_s2  ;;  %p8929_p6 = scmp.lt.s32.totalorder %s8927_s27, %s8922_s2 }
  0xc1   : > { %p8925_p3 = pnand %p8923_p1, %p9222_p2  ;;  %p8930_p7 = por %p8929_p6, %p8928_p12 }
  0xc3   : > { %p8926_p4 = pneg %p8925_p3 }
  0xc5   : > { %p8931_p11 = pnand %p8930_p7, %p8926_p4 }
  0xc7   : > { %8934 = shalt.err (!%p8931_p11)
}
  0xc8   : > { %8403 = dma.hbm_to_vmem [thread:$0]  (!%p9200_p0), %s693_s13, 16384, %s695_s21, %s9218_s16, %s12601_s7, %s12601_s7, %s12600_s17  }
  0xc9   : > { %713 = sbr.rel (%p9176_p10) target bundleno = 2557 (0x9fd), region = 84 }
  0xce   : > { %s12609_s19 = sld [smem:[#allocation25_spill]] }
  0xcf   : > { %8995 = dma.done.wait (%p92_p5), [#allocation3], 512  }
  0xd0   : > { %8997 = vsyncadd (%p92_p5), [#allocation3], 4294966784 }
  0xd1   : > { %8999 = dma.done.wait (%p92_p5), [#allocation6], 1024  }
  0xd2   : > { %9001 = vsyncadd (%p92_p5), [#allocation6], 4294966272  ;;  %s12610_s18 = sld [smem:[#allocation23_spill]] }
  0xd4   : > { %s725_s23 = sand.u32 1, %s12609_s19  }
  0xd5   : > { %s726_s7 = scalar_lea.sflag [#allocation3], %s725_s23 }
  0xd8   : > { %s727_s16 = sand.u32 1, %s12610_s18  }
  0xd9   : > { %s9405_s17 = sshll.u32 %s727_s16, 1 }
  0xda   : > { %s729_s25 = scalar_lea.vmem [#allocation7], %s9405_s17 }
  0xdb   : > { %9003 = dma.done.wait (%p9171_p8), %s726_s7, 45344  }
  0xdc   : > { %9005 = vsyncadd (%p9171_p8), %s726_s7, 4294921952  ;;  %s6494_s15 = sshll.u32 %s727_s16, 9  ;;  %s6495_s26 = sshll.u32 %s727_s16, 2 }
  0xdd   : > { %s6496_s28 = sshll.u32 %s727_s16, 8  ;;  %s6498_s4 = sshll.u32 %s727_s16, 10 }
  0xde   : > { %s6499_s13 = sshll.u32 %s727_s16, 3  ;;  %s739_s9 = scalar_lea.vmem [#allocation8], %s9405_s17 }
  0xdf   : > { %s9413_s22 = scalar_lea.vmem [#allocation9], %s6494_s15  ;;  %s9415_s21 = scalar_lea.vmem [#allocation10], %s6495_s26 }
  0xe0   : > { %s9417_s20 = scalar_lea.vmem [#allocation11], %s6496_s28  ;;  %s9420_s24 = scalar_lea.vmem [#allocation13], %s6498_s4 }
  0xe1   : > { %s9422_s3 = scalar_lea.vmem [#allocation14], %s6499_s13  ;;  %s9424_s27 = scalar_lea.vmem [#allocation15], %s6498_s4 }
  0xe2   : > { %9007 = dma.done.wait (%p92_p5), [#allocation6], 32  }
  0xe3   : > { %9009 = vsyncadd (%p92_p5), [#allocation6], 4294967264  ;;  %p911_p8 = scmp.lt.s32.totalorder %s12609_s19, 1  ;;  %s12612_s12 = sld [smem:[#allocation53_spill]] }
  0xe4   : > { %s12613_s15 = sld [smem:[#allocation54_spill]] }
  0xe5   : > { %s912_s30 = scalar_select %p911_p8, %s12609_s19, 1 }
  0xe6   : > { %s12614_s13 = sld [smem:[#allocation56_spill]] }
  0xe7   : > { %s9432_s29 = sshll.u32 %s912_s30, 1 }
  0xe8   : > { %927 = sbr.rel (%p6463_p9) target bundleno = 246 (0xf6), region = 136 }
  0xe9   : > { %s914_s23 = scalar_lea.vmem %s12612_s12, %s9432_s29 }
  0xea   : > { %s918_s26 = scalar_lea.vmem %s12613_s15, %s9432_s29 }
  0xec   : > { %s922_s2 = scalar_lea.vmem %s12614_s13, %s9432_s29 }
  0xed   : > { %v928_v0 = vld [vmem:[#allocation5] sm:$0xff]  ;;  %v929_v1 = vld [vmem:[#allocation5 + $0x8] sm:$0xff]  ;;  %v930_v2 = vld [vmem:[#allocation5 + $0x10] sm:$0xff] }
  0xee   : > { %936 = vst [vmem:[#allocation17] sm:$0xff] %v928_v0  ;;  %v931_v3 = vld [vmem:[#allocation5 + $0x18] sm:$0xff]  ;;  %v932_v4 = vld [vmem:[#allocation5 + $0x20] sm:$0xff]  ;;  %v933_v5 = vld [vmem:[#allocation5 + $0x28] sm:$0xff] }
  0xef   : > { %937 = vst [vmem:[#allocation17 + $0x8] sm:$0xff] %v929_v1  ;;  %v934_v6 = vld [vmem:[#allocation5 + $0x30] sm:$0xff]  ;;  %v935_v7 = vld [vmem:[#allocation5 + $0x38] sm:$0xff] }
  0xf0   : > { %938 = vst [vmem:[#allocation17 + $0x10] sm:$0xff] %v930_v2 }
  0xf1   : > { %939 = vst [vmem:[#allocation17 + $0x18] sm:$0xff] %v931_v3 }
  0xf2   : > { %940 = vst [vmem:[#allocation17 + $0x20] sm:$0xff] %v932_v4 }
  0xf3   : > { %941 = vst [vmem:[#allocation17 + $0x28] sm:$0xff] %v933_v5 }
  0xf4   : > { %942 = vst [vmem:[#allocation17 + $0x30] sm:$0xff] %v934_v6 }
  0xf5   : > { %943 = vst [vmem:[#allocation17 + $0x38] sm:$0xff] %v935_v7 }
  0xf6 PF: > { %v9452_v10 = vld [vmem:[#allocation17] sm:$0xff]  ;;  %v9456_v12 = vld [vmem:[#allocation17 + $0x8] sm:$0xff]  ;;  %v6638_v19 = vld [vmem:[%s9413_s22 + $0xf0] sm:$0xf0]  ;;  %vm1761_vm13 = vcmask 130048  }
  0xf7   : > { %v958_v13 = vadd.f32 %v9456_v12, %v9452_v10  ;;  %v8008_v16 = vld [vmem:[%s9413_s22 + $0xe4] sm:$0xf]  ;;  %v9465_v17 = vld [vmem:[#allocation17 + $0x10] sm:$0xff]  ;;  %v6636_v26 = vld [vmem:[%s9413_s22 + $0xe0] sm:$0xf] }
  0xf8   : > { %v9467_v18 = vld [vmem:[#allocation17 + $0x18] sm:$0xff]  ;;  %v8040_v20 = vld [vmem:[%s9413_s22 + $0x1e4] sm:$0xf]  ;;  %v6641_v22 = vor.u32 %v8008_v16, %v6638_v19  ;;  %v8010_v27 = vld [vmem:[%s9413_s22 + $0xec] sm:$0xf0] }
  0xf9   : > { %v9448_v8 = vld [vmem:[#allocation17 + $0x20] sm:$0xff]  ;;  %v6766_v21 = vld [vmem:[%s9413_s22 + $0x1f0] sm:$0xf0]  ;;  %959 = vadd.xlane.f32.xlu0 %v958_v13  ;;  %v6637_v31 = vor.u32 %v8010_v27, %v6636_v26  ;;  %v8042_v34 = vld [vmem:[%s9413_s22 + $0x1ec] sm:$0xf0]  ;;  %v961_v41 = vadd.f32 %v9467_v18, %v9465_v17 }
  0xfa   : > { %v9450_v9 = vld [vmem:[#allocation17 + $0x28] sm:$0xff]  ;;  %v6769_v23 = vor.u32 %v8040_v20, %v6766_v21  ;;  %v6622_v25 = vld [vmem:[%s9413_s22 + $0xd0] sm:$0xf0]  ;;  %1543 = vmatpush.bf16.msra.mxu2 %v6641_v22  ;;  %v6764_v33 = vld [vmem:[%s9413_s22 + $0x1e0] sm:$0xf] }
  0xfb   : > { %v964_v11 = vadd.f32 %v9450_v9, %v9448_v8  ;;  %v9460_v14 = vld [vmem:[#allocation17 + $0x30] sm:$0xff]  ;;  %v8004_v24 = vld [vmem:[%s9413_s22 + $0xc4] sm:$0xf]  ;;  %v6765_v37 = vor.u32 %v8042_v34, %v6764_v33  ;;  %v6620_v39 = vld [vmem:[%s9413_s22 + $0xc0] sm:$0xf]  ;;  %1505 = vmatpush.bf16.msra.mxu0 %v6637_v31 }
  0xfc   : > { %v9462_v15 = vld [vmem:[#allocation17 + $0x38] sm:$0xff]  ;;  %v8036_v28 = vld [vmem:[%s9413_s22 + $0x1c4] sm:$0xf]  ;;  %1562 = vmatpush.bf16.msra.mxu3 %v6769_v23  ;;  %v6625_v30 = vor.u32 %v8004_v24, %v6622_v25  ;;  %v8006_v40 = vld [vmem:[%s9413_s22 + $0xcc] sm:$0xf0] }
  0xfd   : > { %965 = vadd.xlane.f32.xlu1 %v964_v11  ;;  %v6750_v29 = vld [vmem:[%s9413_s22 + $0x1d0] sm:$0xf0]  ;;  %v8000_v35 = vld [vmem:[%s9413_s22 + $0xa4] sm:$0xf]  ;;  %v967_v36 = vadd.f32 %v9462_v15, %v9460_v14  ;;  %v6621_v42 = vor.u32 %v8006_v40, %v6620_v39  ;;  %v6748_v45 = vld [vmem:[%s9413_s22 + $0x1c0] sm:$0xf]  ;;  %1524 = vmatpush.bf16.msra.mxu1 %v6765_v37 }
  0xfe   : > { %v6753_v32 = vor.u32 %v8036_v28, %v6750_v29  ;;  %v6606_v38 = vld [vmem:[%s9413_s22 + $0xb0] sm:$0xf0]  ;;  %v8032_v43 = vld [vmem:[%s9413_s22 + $0x1a4] sm:$0xf]  ;;  %v8038_v46 = vld [vmem:[%s9413_s22 + $0x1cc] sm:$0xf0]  ;;  %1544 = vmatpush.bf16.msra.mxu2 %v6625_v30 }
  0xff   : > { %v6734_v44 = vld [vmem:[%s9413_s22 + $0x1b0] sm:$0xf0]  ;;  %v7996_v47 = vld [vmem:[%s9413_s22 + $0x84] sm:$0xf]  ;;  %v6609_v49 = vor.u32 %v8000_v35, %v6606_v38  ;;  %v6749_v51 = vor.u32 %v8038_v46, %v6748_v45  ;;  %v6604_v52 = vld [vmem:[%s9413_s22 + $0xa0] sm:$0xf]  ;;  %1506 = vmatpush.bf16.msra.mxu0 %v6621_v42 }
 0x100   : > { %v6590_v48 = vld [vmem:[%s9413_s22 + $0x90] sm:$0xf0]  ;;  %1563 = vmatpush.bf16.msra.mxu3 %v6753_v32  ;;  %v6737_v50 = vor.u32 %v8032_v43, %v6734_v44  ;;  %v8002_v53 = vld [vmem:[%s9413_s22 + $0xac] sm:$0xf0]  ;;  %v8028_v54 = vld [vmem:[%s9413_s22 + $0x184] sm:$0xf] }
 0x101   : > { %v6718_v55 = vld [vmem:[%s9413_s22 + $0x190] sm:$0xf0]  ;;  %v6732_v56 = vld [vmem:[%s9413_s22 + $0x1a0] sm:$0xf]  ;;  %v8034_v57 = vld [vmem:[%s9413_s22 + $0x1ac] sm:$0xf0]  ;;  %962 = vadd.xlane.f32.xlu0 %v961_v41  ;;  %v6605_v58 = vor.u32 %v8002_v53, %v6604_v52  ;;  %1525 = vmatpush.bf16.msra.mxu1 %v6749_v51  ;;  %v6593_v62 = vor.u32 %v7996_v47, %v6590_v48 }
 0x102   : > { %v6733_v59 = vor.u32 %v8034_v57, %v6732_v56  ;;  %v6588_v60 = vld [vmem:[%s9413_s22 + $0x80] sm:$0xf]  ;;  %v7998_v61 = vld [vmem:[%s9413_s22 + $0x8c] sm:$0xf0]  ;;  %1545 = vmatpush.bf16.msra.mxu2 %v6609_v49  ;;  %v6721_v63 = vor.u32 %v8028_v54, %v6718_v55  ;;  %v7992_v0 = vld [vmem:[%s9413_s22 + $0x64] sm:$0xf] }
 0x103   : > { %v6716_v1 = vld [vmem:[%s9413_s22 + $0x180] sm:$0xf]  ;;  %v8030_v2 = vld [vmem:[%s9413_s22 + $0x18c] sm:$0xf0]  ;;  %v6574_v3 = vld [vmem:[%s9413_s22 + $0x70] sm:$0xf0]  ;;  %1507 = vmatpush.bf16.msra.mxu0 %v6605_v58  ;;  %v6589_v6 = vor.u32 %v7998_v61, %v6588_v60 }
 0x104   : > { %1564 = vmatpush.bf16.msra.mxu3 %v6737_v50  ;;  %v8024_v4 = vld [vmem:[%s9413_s22 + $0x164] sm:$0xf]  ;;  %v6702_v5 = vld [vmem:[%s9413_s22 + $0x170] sm:$0xf0]  ;;  %v6717_v7 = vor.u32 %v8030_v2, %v6716_v1  ;;  %v6572_v11 = vld [vmem:[%s9413_s22 + $0x60] sm:$0xf]  ;;  %v6577_v16 = vor.u32 %v7992_v0, %v6574_v3 }
 0x105   : > { %968 = vadd.xlane.f32.xlu1 %v967_v36  ;;  %1526 = vmatpush.bf16.msra.mxu1 %v6733_v59  ;;  %v7994_v13 = vld [vmem:[%s9413_s22 + $0x6c] sm:$0xf0]  ;;  %v6705_v19 = vor.u32 %v8024_v4, %v6702_v5  ;;  %v7988_v20 = vld [vmem:[%s9413_s22 + $0x44] sm:$0xf]  ;;  %v6700_v21 = vld [vmem:[%s9413_s22 + $0x160] sm:$0xf] }
 0x106   : > { %1546 = vmatpush.bf16.msra.mxu2 %v6593_v62  ;;  %v8026_v22 = vld [vmem:[%s9413_s22 + $0x16c] sm:$0xf0]  ;;  %v6558_v23 = vld [vmem:[%s9413_s22 + $0x50] sm:$0xf0]  ;;  %v8020_v24 = vld [vmem:[%s9413_s22 + $0x144] sm:$0xf]  ;;  %v6573_v26 = vor.u32 %v7994_v13, %v6572_v11 }
 0x107   : > { %v6686_v25 = vld [vmem:[%s9413_s22 + $0x150] sm:$0xf0]  ;;  %1508 = vmatpush.bf16.msra.mxu0 %v6589_v6  ;;  %v6701_v27 = vor.u32 %v8026_v22, %v6700_v21  ;;  %v6556_v28 = vld [vmem:[%s9413_s22 + $0x40] sm:$0xf]  ;;  %v7990_v29 = vld [vmem:[%s9413_s22 + $0x4c] sm:$0xf0]  ;;  %v6561_v30 = vor.u32 %v7988_v20, %v6558_v23 }
 0x108   : > { %1565 = vmatpush.bf16.msra.mxu3 %v6721_v63  ;;  %v6689_v31 = vor.u32 %v8020_v24, %v6686_v25  ;;  %v7984_v32 = vld [vmem:[%s9413_s22 + $0x24] sm:$0xf]  ;;  %v6684_v33 = vld [vmem:[%s9413_s22 + $0x140] sm:$0xf]  ;;  %v8022_v34 = vld [vmem:[%s9413_s22 + $0x14c] sm:$0xf0]  ;;  %v6557_v38 = vor.u32 %v7990_v29, %v6556_v28 }
 0x109   : > { %1527 = vmatpush.bf16.msra.mxu1 %v6717_v7  ;;  %v6542_v35 = vld [vmem:[%s9413_s22 + $0x30] sm:$0xf0]  ;;  %v8016_v36 = vld [vmem:[%s9413_s22 + $0x124] sm:$0xf]  ;;  %v6685_v39 = vor.u32 %v8022_v34, %v6684_v33  ;;  %v6540_v40 = vld [vmem:[%s9413_s22 + $0x20] sm:$0xf] }
 0x10a   : > { %1547 = vmatpush.bf16.msra.mxu2 %v6577_v16  ;;  %v6670_v37 = vld [vmem:[%s9413_s22 + $0x130] sm:$0xf0]  ;;  %v7986_v41 = vld [vmem:[%s9413_s22 + $0x2c] sm:$0xf0]  ;;  %v6545_v42 = vor.u32 %v7984_v32, %v6542_v35  ;;  %v7980_v44 = vld [vmem:[%s9413_s22 + $0x4] sm:$0xf] }
 0x10b   : > { %1509 = vmatpush.bf16.msra.mxu0 %v6573_v26  ;;  %v6673_v43 = vor.u32 %v8016_v36, %v6670_v37  ;;  %v6668_v45 = vld [vmem:[%s9413_s22 + $0x120] sm:$0xf]  ;;  %v8018_v46 = vld [vmem:[%s9413_s22 + $0x12c] sm:$0xf0]  ;;  %v6526_v47 = vld [vmem:[%s9413_s22 + $0x10] sm:$0xf0]  ;;  %v6541_v50 = vor.u32 %v7986_v41, %v6540_v40 }
 0x10c   : > { %1566 = vmatpush.bf16.msra.mxu3 %v6705_v19  ;;  %v8012_v48 = vld [vmem:[%s9413_s22 + $0x104] sm:$0xf]  ;;  %v6654_v49 = vld [vmem:[%s9413_s22 + $0x110] sm:$0xf0]  ;;  %v6508_v51 = vld [vmem:[#allocation2] sm:$0xf]  ;;  %v6669_v52 = vor.u32 %v8018_v46, %v6668_v45  ;;  %v6529_v55 = vor.u32 %v7980_v44, %v6526_v47 }
 0x10d   : > { %1528 = vmatpush.bf16.msra.mxu1 %v6701_v27  ;;  %v6524_v53 = vld [vmem:[%s9413_s22] sm:$0xf]  ;;  %v7982_v54 = vld [vmem:[%s9413_s22 + $0xc] sm:$0xf0]  ;;  %v6657_v56 = vor.u32 %v8012_v48, %v6654_v49  ;;  %v7976_v58 = vld [vmem:[#allocation2 + $0x4] sm:$0xf] }
 0x10e   : > { %1548 = vmatpush.bf16.msra.mxu2 %v6561_v30  ;;  %v7977_v57 = vld [vmem:[#allocation2 + $0x4] sm:$0xf0]  ;;  %v6510_v59 = vld [vmem:[#allocation2 + $0x8] sm:$0xf0]  ;;  %v8014_v61 = vld [vmem:[%s9413_s22 + $0x10c] sm:$0xf0]  ;;  %v6525_v62 = vor.u32 %v7982_v54, %v6524_v53 }
 0x10f   : > { %1510 = vmatpush.bf16.msra.mxu0 %v6557_v38  ;;  %v6652_v60 = vld [vmem:[%s9413_s22 + $0x100] sm:$0xf]  ;;  %v9536_v63 = vor.u32 %v7977_v57, %v6508_v51  ;;  %v9538_v0 = vor.u32 %v7976_v58, %v6510_v59  ;;  %v6516_v2 = vld [vmem:[#allocation2 + $0x10] sm:$0xf]  ;;  %v7979_v3 = vld [vmem:[#allocation2 + $0x14] sm:$0xf0] }
 0x110   : > { %1567 = vmatpush.bf16.msra.mxu3 %v6689_v31  ;;  %v6653_v1 = vor.u32 %v8014_v61, %v6652_v60  ;;  %v7978_v4 = vld [vmem:[#allocation2 + $0x14] sm:$0xf]  ;;  %v6518_v5 = vld [vmem:[#allocation2 + $0x18] sm:$0xf0]  ;;  %v9544_v6 = vor.u32 %v7979_v3, %v6516_v2  ;;  %v9039_v11 = vmov 256.0  }
 0x111   : > { %1529 = vmatpush.bf16.msra.mxu1 %v6685_v39  ;;  %v9546_v7 = vor.u32 %v7978_v4, %v6518_v5  ;;  %8458 = vrcp.f32 %v9039_v11  ;;  %v8009_v20 = vld [vmem:[%s9413_s22 + $0xec] sm:$0xf]  ;;  %v6646_v21 = vld [vmem:[%s9413_s22 + $0xf8] sm:$0xf0]  ;;  %v6644_v28 = vld [vmem:[%s9413_s22 + $0xe8] sm:$0xf] }
 0x112   : > { %1549 = vmatpush.bf16.msra.mxu2 %v6545_v42  ;;  %v8041_v22 = vld [vmem:[%s9413_s22 + $0x1ec] sm:$0xf]  ;;  %v6649_v23 = vor.u32 %v8009_v20, %v6646_v21  ;;  %v6774_v24 = vld [vmem:[%s9413_s22 + $0x1f8] sm:$0xf0]  ;;  %v8011_v29 = vld [vmem:[%s9413_s22 + $0xf4] sm:$0xf0] }
 0x113   : > { %1511 = vmatpush.bf16.msra.mxu0 %v6541_v50  ;;  %v8005_v25 = vld [vmem:[%s9413_s22 + $0xcc] sm:$0xf]  ;;  %v6630_v26 = vld [vmem:[%s9413_s22 + $0xd8] sm:$0xf0]  ;;  %v6777_v27 = vor.u32 %v8041_v22, %v6774_v24  ;;  %v6645_v32 = vor.u32 %v8011_v29, %v6644_v28  ;;  %v6772_v34 = vld [vmem:[%s9413_s22 + $0x1e8] sm:$0xf] }
 0x114   : > { %1568 = vmatpush.bf16.msra.mxu3 %v6673_v43  ;;  %v8037_v30 = vld [vmem:[%s9413_s22 + $0x1cc] sm:$0xf]  ;;  %v6633_v31 = vor.u32 %v8005_v25, %v6630_v26  ;;  %v6758_v33 = vld [vmem:[%s9413_s22 + $0x1d8] sm:$0xf0]  ;;  %v8043_v35 = vld [vmem:[%s9413_s22 + $0x1f4] sm:$0xf0] }
 0x115   : > { %1530 = vmatpush.bf16.msra.mxu1 %v6669_v52  ;;  %v6761_v37 = vor.u32 %v8037_v30, %v6758_v33  ;;  %v6773_v38 = vor.u32 %v8043_v35, %v6772_v34  ;;  %v8001_v39 = vld [vmem:[%s9413_s22 + $0xac] sm:$0xf]  ;;  %v6614_v40 = vld [vmem:[%s9413_s22 + $0xb8] sm:$0xf0]  ;;  %v6628_v41 = vld [vmem:[%s9413_s22 + $0xc8] sm:$0xf] }
 0x116   : > { %1550 = vmatpush.bf16.msra.mxu2 %v6529_v55  ;;  %v8007_v42 = vld [vmem:[%s9413_s22 + $0xd4] sm:$0xf0]  ;;  %v8033_v43 = vld [vmem:[%s9413_s22 + $0x1ac] sm:$0xf]  ;;  %v6742_v44 = vld [vmem:[%s9413_s22 + $0x1b8] sm:$0xf0]  ;;  %v6617_v48 = vor.u32 %v8001_v39, %v6614_v40 }
 0x117   : > { %1512 = vmatpush.bf16.msra.mxu0 %v6525_v62  ;;  %v8459_v13 = vpop.eup %8458  ;;  %v6629_v45 = vor.u32 %v8007_v42, %v6628_v41  ;;  %v6756_v46 = vld [vmem:[%s9413_s22 + $0x1c8] sm:$0xf]  ;;  %v8039_v47 = vld [vmem:[%s9413_s22 + $0x1d4] sm:$0xf0]  ;;  %v6745_v53 = vor.u32 %v8033_v43, %v6742_v44  ;;  %v7997_v54 = vld [vmem:[%s9413_s22 + $0x8c] sm:$0xf] }
 0x118   : > { %1569 = vmatpush.bf16.msra.mxu3 %v6657_v56  ;;  %v971_v16 = vmul.f32 256.0, %v8459_v13  ;;  %v6757_v49 = vor.u32 %v8039_v47, %v6756_v46  ;;  %v6612_v50 = vld [vmem:[%s9413_s22 + $0xa8] sm:$0xf]  ;;  %v8003_v51 = vld [vmem:[%s9413_s22 + $0xb4] sm:$0xf0]  ;;  %vm975_vm0 = vweird.f32 %v8459_v13 }
 0x119   : > { %1551 = vmatmul.bf16.vlgmr.msra.gmra.mxu2 %v9536_v63  ;;  %1531 = vmatpush.bf16.msra.mxu1 %v6653_v1  ;;  %v6598_v55 = vld [vmem:[%s9413_s22 + $0x98] sm:$0xf0]  ;;  %v6740_v56 = vld [vmem:[%s9413_s22 + $0x1a8] sm:$0xf]  ;;  %v6613_v57 = vor.u32 %v8003_v51, %v6612_v50  ;;  %v8029_v58 = vld [vmem:[%s9413_s22 + $0x18c] sm:$0xf] }
 0x11a   : > { %1513 = vmatmul.bf16.vlgmr.msra.gmra.mxu0 %v9536_v63  ;;  %v972_v19 = vsub.f32 1.0, %v971_v16  ;;  %1619 = vmatpush.bf16.msrb.mxu2 %v6649_v23  ;;  %v6726_v59 = vld [vmem:[%s9413_s22 + $0x198] sm:$0xf0]  ;;  %v8035_v60 = vld [vmem:[%s9413_s22 + $0x1b4] sm:$0xf0]  ;;  %v6601_v62 = vor.u32 %v7997_v54, %v6598_v55 }
 0x11b   : > { %1570 = vmatmul.bf16.vlgmr.msra.gmra.mxu3 %v9538_v0  ;;  %1581 = vmatpush.bf16.msrb.mxu0 %v6645_v32  ;;  %v6741_v61 = vor.u32 %v8035_v60, %v6740_v56  ;;  %v6729_v2 = vor.u32 %v8029_v58, %v6726_v59  ;;  %v7993_v3 = vld [vmem:[%s9413_s22 + $0x6c] sm:$0xf]  ;;  %v6582_v4 = vld [vmem:[%s9413_s22 + $0x78] sm:$0xf0]  ;;  %v6724_v42 = vld [vmem:[%s9413_s22 + $0x188] sm:$0xf] }
 0x11c   : > { %1532 = vmatmul.bf16.vlgmr.msra.gmra.mxu1 %v9538_v0  ;;  %v973_v36 = vmul.f32 %v8459_v13, %v972_v19  ;;  %1638 = vmatpush.bf16.msrb.mxu3 %v6777_v27  ;;  %v6585_v19 = vor.u32 %v7993_v3, %v6582_v4  ;;  %v6710_v40 = vld [vmem:[%s9413_s22 + $0x178] sm:$0xf0]  ;;  %v8031_v43 = vld [vmem:[%s9413_s22 + $0x194] sm:$0xf0]  ;;  %v7989_v44 = vld [vmem:[%s9413_s22 + $0x4c] sm:$0xf] }
 0x11d   : > { %1600 = vmatpush.bf16.msrb.mxu1 %v6773_v38  ;;  %v8025_v38 = vld [vmem:[%s9413_s22 + $0x16c] sm:$0xf]  ;;  %v6566_v46 = vld [vmem:[%s9413_s22 + $0x58] sm:$0xf0]  ;;  %v6580_v47 = vld [vmem:[%s9413_s22 + $0x68] sm:$0xf] }
 0x11e   : > { %1620 = vmatpush.bf16.msrb.mxu2 %v6633_v31  ;;  %v974_v52 = vadd.f32 %v8459_v13, %v973_v36  ;;  %v6713_v41 = vor.u32 %v8025_v38, %v6710_v40  ;;  %v8021_v51 = vld [vmem:[%s9413_s22 + $0x14c] sm:$0xf]  ;;  %v8027_v55 = vld [vmem:[%s9413_s22 + $0x174] sm:$0xf0]  ;;  %v6564_v60 = vld [vmem:[%s9413_s22 + $0x48] sm:$0xf] }
 0x11f   : > { %1582 = vmatpush.bf16.msrb.mxu0 %v6629_v45  ;;  %v6725_v45 = vor.u32 %v8031_v43, %v6724_v42  ;;  %v7985_v56 = vld [vmem:[%s9413_s22 + $0x2c] sm:$0xf]  ;;  %v6678_v3 = vld [vmem:[%s9413_s22 + $0x138] sm:$0xf0]  ;;  %v6660_v38 = vld [vmem:[%s9413_s22 + $0x108] sm:$0xf] }
 0x120   : > { %1639 = vmatpush.bf16.msrb.mxu3 %v6761_v37  ;;  %v9580_v1 = vsel %vm975_vm0, %v8459_v13, %v974_v52  ;;  %v7999_v37 = vld [vmem:[%s9413_s22 + $0x94] sm:$0xf0]  ;;  %v6694_v52 = vld [vmem:[%s9413_s22 + $0x158] sm:$0xf0] }
 0x121   : > { %1601 = vmatpush.bf16.msrb.mxu1 %v6757_v49  ;;  %12615 = vst [vmem:[#allocation30_spill] sm:$0xff] %v9580_v1  ;;  %v6569_v49 = vor.u32 %v7989_v44, %v6566_v46  ;;  %v6697_v54 = vor.u32 %v8021_v51, %v6694_v52 }
 0x122   : > { %1621 = vmatpush.bf16.msrb.mxu2 %v6617_v48  ;;  %v7995_v48 = vld [vmem:[%s9413_s22 + $0x74] sm:$0xf0] }
 0x123   : > { %1583 = vmatpush.bf16.msrb.mxu0 %v6613_v57  ;;  %v6581_v50 = vor.u32 %v7995_v48, %v6580_v47  ;;  %v6550_v57 = vld [vmem:[%s9413_s22 + $0x38] sm:$0xf0] }
 0x124   : > { %1640 = vmatpush.bf16.msrb.mxu3 %v6745_v53  ;;  %v6708_v53 = vld [vmem:[%s9413_s22 + $0x168] sm:$0xf]  ;;  %v6553_v59 = vor.u32 %v7985_v56, %v6550_v57 }
 0x125   : > { %1602 = vmatpush.bf16.msrb.mxu1 %v6741_v61  ;;  %v6709_v58 = vor.u32 %v8027_v55, %v6708_v53  ;;  %v7991_v61 = vld [vmem:[%s9413_s22 + $0x54] sm:$0xf0] }
 0x126   : > { %1622 = vmatpush.bf16.msrb.mxu2 %v6601_v62  ;;  %v8017_v62 = vld [vmem:[%s9413_s22 + $0x12c] sm:$0xf] }
 0x127   : > { %v6681_v4 = vor.u32 %v8017_v62, %v6678_v3 }
 0x128   : > { %1641 = vmatpush.bf16.msrb.mxu3 %v6729_v2  ;;  %v6565_v2 = vor.u32 %v7991_v61, %v6564_v60 }
 0x129   : > { %1556 = vmatmul.bf16.gmra.mxu2 %v9544_v6  ;;  %1603 = vmatpush.bf16.msrb.mxu1 %v6725_v45 }
 0x12a   : > { %1518 = vmatmul.bf16.gmra.mxu0 %v9544_v6  ;;  %1623 = vmatpush.bf16.msrb.mxu2 %v6585_v19 }
 0x12b   : > { %1575 = vmatmul.bf16.gmra.mxu3 %v9546_v7 }
 0x12c   : > { %1537 = vmatmul.bf16.gmra.mxu1 %v9546_v7  ;;  %1642 = vmatpush.bf16.msrb.mxu3 %v6713_v41 }
 0x12d   : > { %1604 = vmatpush.bf16.msrb.mxu1 %v6709_v58 }
 0x12e   : > { %1624 = vmatpush.bf16.msrb.mxu2 %v6569_v49 }
 0x130   : > { %1643 = vmatpush.bf16.msrb.mxu3 %v6697_v54 }
 0x132   : > { %1625 = vmatpush.bf16.msrb.mxu2 %v6553_v59 }
 0x134   : > { %1644 = vmatpush.bf16.msrb.mxu3 %v6681_v4 }
 0x16c   : > { %v960_v16 = vpop.xlane.xlu0 %959 }
 0x16d   : > { %v977_v20 = vmul.f32 %v9580_v1, %v960_v16  ;;  %v7981_v16 = vld [vmem:[%s9413_s22 + $0xc] sm:$0xf] }
 0x16f   : > { %v9593_v22 = vsub.f32 %v9452_v10, %v977_v20  ;;  %v9596_v23 = vsub.f32 %v9456_v12, %v977_v20  ;;  %v6534_v20 = vld [vmem:[%s9413_s22 + $0x18] sm:$0xf0] }
 0x170   : > { %v966_v5 = vpop.xlane.xlu1 %965 }
 0x171   : > { %v979_v11 = vmul.f32 %v9580_v1, %v966_v5  ;;  %v6692_v5 = vld [vmem:[%s9413_s22 + $0x148] sm:$0xf] }
 0x173   : > { %v9587_v21 = vsub.f32 %v9448_v8, %v979_v11  ;;  %v9590_v13 = vsub.f32 %v9450_v9, %v979_v11  ;;  %v989_v8 = vmul.f32 %v9593_v22, %v9593_v22  ;;  %v990_v9 = vmul.f32 %v9596_v23, %v9596_v23  ;;  %v8023_v11 = vld [vmem:[%s9413_s22 + $0x154] sm:$0xf0] }
 0x174   : > { %v963_v12 = vpop.xlane.xlu0 %962  ;;  %v6693_v19 = vor.u32 %v8023_v11, %v6692_v5 }
 0x175   : > { %v993_v24 = vmul.f32 %v9587_v21, %v9587_v21  ;;  %v994_v25 = vmul.f32 %v9590_v13, %v9590_v13  ;;  %v997_v10 = vadd.f32 %v990_v9, %v989_v8  ;;  %v978_v29 = vmul.f32 %v9580_v1, %v963_v12  ;;  %v8019_v12 = vld [vmem:[%s9413_s22 + $0x134] sm:$0xf0] }
 0x176   : > { %v6537_v8 = vor.u32 %v7981_v16, %v6534_v20  ;;  %1605 = vmatpush.bf16.msrb.mxu1 %v6693_v19 }
 0x177   : > { %v1003_v26 = vadd.f32 %v994_v25, %v993_v24  ;;  %998 = vadd.xlane.f32.xlu2 %v997_v10  ;;  %v9615_v32 = vsub.f32 %v9465_v17, %v978_v29  ;;  %v9618_v33 = vsub.f32 %v9467_v18, %v978_v29  ;;  %v6596_v18 = vld [vmem:[%s9413_s22 + $0x88] sm:$0xf]  ;;  %v7987_v25 = vld [vmem:[%s9413_s22 + $0x34] sm:$0xf0] }
 0x178   : > { %v969_v27 = vpop.xlane.xlu1 %968  ;;  %v6597_v39 = vor.u32 %v7999_v37, %v6596_v18  ;;  %v6548_v24 = vld [vmem:[%s9413_s22 + $0x28] sm:$0xf]  ;;  %1626 = vmatpush.bf16.msrb.mxu2 %v6537_v8 }
 0x179   : > { %v980_v28 = vmul.f32 %v9580_v1, %v969_v27  ;;  %1004 = vadd.xlane.f32.xlu0 %v1003_v26  ;;  %v6549_v9 = vor.u32 %v7987_v25, %v6548_v24  ;;  %v8013_v26 = vld [vmem:[%s9413_s22 + $0x10c] sm:$0xf]  ;;  %v6662_v27 = vld [vmem:[%s9413_s22 + $0x118] sm:$0xf0]  ;;  %v6676_v10 = vld [vmem:[%s9413_s22 + $0x128] sm:$0xf] }
 0x17a   : > { %1584 = vmatpush.bf16.msrb.mxu0 %v6597_v39  ;;  %v6677_v29 = vor.u32 %v8019_v12, %v6676_v10  ;;  %v8015_v39 = vld [vmem:[%s9413_s22 + $0x114] sm:$0xf0] }
 0x17b   : > { %v9609_v30 = vsub.f32 %v9460_v14, %v980_v28  ;;  %v9612_v31 = vsub.f32 %v9462_v15, %v980_v28  ;;  %v991_v14 = vmul.f32 %v9615_v32, %v9615_v32  ;;  %v992_v15 = vmul.f32 %v9618_v33, %v9618_v33  ;;  %1627 = vmatmul.bf16.vlgmr.msrb.gmra.mxu2 %v9536_v63 }
 0x17c   : > { %v6665_v28 = vor.u32 %v8013_v26, %v6662_v27  ;;  %1606 = vmatpush.bf16.msrb.mxu1 %v6677_v29  ;;  %v6661_v40 = vor.u32 %v8015_v39, %v6660_v38 }
 0x17d   : > { %v995_v34 = vmul.f32 %v9609_v30, %v9609_v30  ;;  %v996_v35 = vmul.f32 %v9612_v31, %v9612_v31  ;;  %v1000_v36 = vadd.f32 %v992_v15, %v991_v14  ;;  %v6532_v14 = vld [vmem:[%s9413_s22 + $0x8] sm:$0xf]  ;;  %v7983_v15 = vld [vmem:[%s9413_s22 + $0x14] sm:$0xf0]  ;;  %s12625_s22 = scalar_lea.vmem [#allocation12], %s9405_s17 }
 0x17e   : > { %1585 = vmatpush.bf16.msrb.mxu0 %v6581_v50  ;;  %1645 = vmatpush.bf16.msrb.mxu3 %v6665_v28  ;;  %v6533_v37 = vor.u32 %v7983_v15, %v6532_v14 }
 0x17f   : > { %v1006_v17 = vadd.f32 %v996_v35, %v995_v34  ;;  %1001 = vadd.xlane.f32.xlu2 %v1000_v36 }
 0x180   : > { %1607 = vmatpush.bf16.msrb.mxu1 %v6661_v40 }
 0x181   : > { %1007 = vadd.xlane.f32.xlu1 %v1006_v17  ;;  %1646 = vmatmul.bf16.vlgmr.msrb.gmra.mxu3 %v9538_v0  ;;  %v9665_v17 = vld [vmem:[%s9415_s21] sm:$0xf] }
 0x182   : > { %1586 = vmatpush.bf16.msrb.mxu0 %v6565_v2  ;;  %v1157_v41 = vperm.slane %v9665_v17, 0  ;;  %v1158_v42 = vperm.slane %v9665_v17, 1 }
 0x183   : > { %1608 = vmatmul.bf16.vlgmr.msrb.gmra.mxu1 %v9538_v0 }
 0x186   : > { %1587 = vmatpush.bf16.msrb.mxu0 %v6549_v9 }
 0x18a   : > { %1588 = vmatpush.bf16.msrb.mxu0 %v6533_v37 }
 0x18b   : > { %1632 = vmatmul.bf16.gmra.mxu2 %v9544_v6 }
 0x18d   : > { %1589 = vmatmul.bf16.vlgmr.msrb.gmra.mxu0 %v9536_v63 }
 0x191   : > { %1651 = vmatmul.bf16.gmra.mxu3 %v9546_v7 }
 0x193   : > { %1613 = vmatmul.bf16.gmra.mxu1 %v9546_v7 }
 0x197   : > { %v1514_v34 = vpop.f32.mrf.mxu0 }
 0x198   : > { %v1515_v45 = vadd.f32 %v1514_v34, %v1157_v41 }
 0x199   : > { %v1533_v36 = vpop.f32.mrf.mxu1 }
 0x19a   : > { %v1534_v51 = vadd.f32 %v1533_v36, %v1515_v45 }
 0x19c   : > { %v1552_v35 = vpop.f32.mrf.mxu2 }
 0x19d   : > { %v1553_v46 = vadd.f32 %v1552_v35, %v1158_v42  ;;  %1594 = vmatmul.bf16.gmra.mxu0 %v9544_v6 }
 0x19e   : > { %v1571_v18 = vpop.f32.mrf.mxu3 }
 0x19f   : > { %v1516_v43 = vpop.f32.mrf.mxu0  ;;  %v1572_v52 = vadd.f32 %v1571_v18, %v1553_v46 }
 0x1a0   : > { %v1517_v47 = vadd.f32 %v1516_v43, %v1157_v41 }
 0x1a1   : > { %v1535_v49 = vpop.f32.mrf.mxu1  ;;  %v1669_v55 = vpack.c.bf16 %v1572_v52, %v1534_v51 }
 0x1a2   : > { %v1536_v53 = vadd.f32 %v1535_v49, %v1517_v47 }
 0x1a3   : > { %v1870_v57 = vrot.slane %v1669_v55, 4  ;;  %v1717_v62 = vunpack.c.l.b16 %v1669_v55 }
 0x1a4   : > { %v1554_v44 = vpop.f32.mrf.mxu2 }
 0x1a5   : > { %v1555_v48 = vadd.f32 %v1554_v44, %v1158_v42  ;;  %v1876_v2 = vunpack.c.l.b16 %v1870_v57 }
 0x1a6   : > { %v1573_v50 = vpop.f32.mrf.mxu3 }
 0x1a7   : > { %v1574_v54 = vadd.f32 %v1573_v50, %v1555_v48  ;;  %v1519_v59 = vpop.f32.mrf.mxu0 }
 0x1a8   : > { %v1520_v4 = vadd.f32 %v1519_v59, %v1157_v41 }
 0x1a9   : > { %v1670_v56 = vpack.c.bf16 %v1574_v54, %v1536_v53  ;;  %v1538_v60 = vpop.f32.mrf.mxu1 }
 0x1aa   : > { %v1539_v8 = vadd.f32 %v1538_v60, %v1520_v4 }
 0x1ab   : > { %v1871_v58 = vrot.slane %v1670_v56, 4  ;;  %v1718_v3 = vunpack.c.l.b16 %v1670_v56  ;;  %v956_v56 = vld [vmem:[%s729_s25] sm:$0x3] }
 0x1ac   : > { %v1557_v63 = vpop.f32.mrf.mxu2 }
 0x1ad   : > { %v1877_v0 = vunpack.c.l.b16 %v1871_v58  ;;  %v1558_v5 = vadd.f32 %v1557_v63, %v1158_v42  ;;  %v1719_v11 = vpack.c.b16 %v1718_v3, %v1717_v62  ;;  %v957_v63 = vld [vmem:[%s739_s9] sm:$0x3]  ;;  %v1066_v62 = vperm.slane %v956_v56, 0 }
 0x1ae   : > { %v1576_v61 = vpop.f32.mrf.mxu3 }
 0x1af   : > { %v1878_v16 = vpack.c.b16 %v1877_v0, %v1876_v2  ;;  %v1521_v19 = vpop.f32.mrf.mxu0  ;;  %v1577_v9 = vadd.f32 %v1576_v61, %v1558_v5  ;;  %1728 = vmatpush.bf16.xpose.msra.mxu0 %v1719_v11  ;;  %v1067_v0 = vperm.slane %v956_v56, 1  ;;  %v1079_v11 = vperm.slane %v957_v63, 0 }
 0x1b0   : > { %v1522_v24 = vadd.f32 %v1521_v19, %v1157_v41 }
 0x1b1   : > { %v1540_v26 = vpop.f32.mrf.mxu1  ;;  %v1671_v12 = vpack.c.bf16 %v1577_v9, %v1539_v8 }
 0x1b2   : > { %v1541_v6 = vadd.f32 %v1540_v26, %v1522_v24 }
 0x1b3   : > { %v1743_v14 = vunpack.c.l.b16 %v1671_v12  ;;  %v1896_v15 = vrot.slane %v1671_v12, 4 }
 0x1b4   : > { %v1559_v20 = vpop.f32.mrf.mxu2 }
 0x1b5   : > { %v1560_v25 = vadd.f32 %v1559_v20, %v1158_v42  ;;  %v1902_v38 = vunpack.c.l.b16 %v1896_v15 }
 0x1b6   : > { %v1578_v27 = vpop.f32.mrf.mxu3 }
 0x1b7   : > { %1887 = vmatpush.bf16.xpose.msrb.mxu0 %v1878_v16  ;;  %v1579_v10 = vadd.f32 %v1578_v27, %v1560_v25 }
 0x1b9   : > { %v1672_v34 = vpack.c.bf16 %v1579_v10, %v1541_v6  ;;  %v1080_v6 = vperm.slane %v957_v63, 1 }
 0x1bb   : > { %v1744_v18 = vunpack.c.l.b16 %v1672_v34  ;;  %v1897_v39 = vrot.slane %v1672_v34, 4 }
 0x1bd   : > { %v1745_v40 = vpack.c.b16 %v1744_v18, %v1743_v14  ;;  %v1903_v41 = vunpack.c.l.b16 %v1897_v39 }
 0x1bf   : > { %1754 = vmatpush.bf16.xpose.msra.mxu1 %v1745_v40  ;;  %v1904_v43 = vpack.c.b16 %v1903_v41, %v1902_v38 }
 0x1c7   : > { %1913 = vmatpush.bf16.xpose.msrb.mxu1 %v1904_v43 }
 0x1ea   : > { %v999_v29 = vpop.xlane.xlu2 %998 }
 0x1eb   : > { %v1009_v35 = vmul.f32 %v999_v29, %v9580_v1 }
 0x1ec   : > { %v1005_v28 = vpop.xlane.xlu0 %1004 }
 0x1ed   : > { %v1011_v7 = vmul.f32 %v1005_v28, %v9580_v1  ;;  %v1013_v37 = vadd.f32 1e-06, %v1009_v35 }
 0x1ef   : > { %v1015_v36 = vadd.f32 1e-06, %v1011_v7  ;;  %vm1023_vm5 = vweird.f32 %v1013_v37 }
 0x1f1   : > { %8460 = vrsqrt.f32 %v1015_v36  ;;  %vm1043_vm1 = vweird.f32 %v1015_v36 }
 0x1f2   : > { %8462 = vrsqrt.f32 %v1013_v37  ;;  %v1002_v45 = vpop.xlane.xlu2 %1001 }
 0x1f3   : > { %v1010_v46 = vmul.f32 %v1002_v45, %v9580_v1 }
 0x1f4   : > { %v1008_v42 = vpop.xlane.xlu1 %1007 }
 0x1f5   : > { %v1012_v44 = vmul.f32 %v1008_v42, %v9580_v1  ;;  %v1014_v51 = vadd.f32 1e-06, %v1010_v46 }
 0x1f7   : > { %v8461_v47 = vpop.eup %8460  ;;  %v1016_v48 = vadd.f32 1e-06, %v1012_v44  ;;  %vm1033_vm11 = vweird.f32 %v1014_v51 }
 0x1f8   : > { %v8463_v49 = vpop.eup %8462  ;;  %v1038_v50 = vmul.f32 %v8461_v47, %v1015_v36  ;;  %vm1044_vm2 = vweird.f32 %v8461_v47 }
 0x1f9   : > { %v1018_v52 = vmul.f32 %v8463_v49, %v1013_v37  ;;  %8464 = vrsqrt.f32 %v1016_v48  ;;  %vm1024_vm3 = vweird.f32 %v8463_v49  ;;  %vm1045_vm4 = vmor %vm1043_vm1, %vm1044_vm2  ;;  %vm1053_vm7 = vweird.f32 %v1016_v48 }
 0x1fa   : > { %v1039_v53 = vmul.f32 %v8461_v47, %v1038_v50  ;;  %8466 = vrsqrt.f32 %v1014_v51  ;;  %vm1025_vm6 = vmor %vm1023_vm5, %vm1024_vm3 }
 0x1fb   : > { %v1019_v54 = vmul.f32 %v8463_v49, %v1018_v52 }
 0x1fc   : > { %v1040_v55 = vmul.f32 0.5, %v1039_v53 }
 0x1fd   : > { %v1020_v57 = vmul.f32 0.5, %v1019_v54 }
 0x1fe   : > { %v1041_v58 = vsub.f32 1.5, %v1040_v55 }
 0x1ff   : > { %v8465_v59 = vpop.eup %8464  ;;  %v1021_v60 = vsub.f32 1.5, %v1020_v57 }
 0x200   : > { %v8467_v61 = vpop.eup %8466  ;;  %v1042_v2 = vmul.f32 %v8461_v47, %v1041_v58  ;;  %v1048_v3 = vmul.f32 %v8465_v59, %v1016_v48  ;;  %vm1054_vm8 = vweird.f32 %v8465_v59 }
 0x201   : > { %v1022_v4 = vmul.f32 %v8463_v49, %v1021_v60  ;;  %v1028_v5 = vmul.f32 %v8467_v61, %v1014_v51  ;;  %vm1055_vm9 = vmor %vm1053_vm7, %vm1054_vm8  ;;  %vm1034_vm10 = vweird.f32 %v8467_v61 }
 0x202   : > { %v1046_v16 = vsel %vm1045_vm4, %v8461_v47, %v1042_v2  ;;  %v1049_v19 = vmul.f32 %v8465_v59, %v1048_v3  ;;  %vm1035_vm12 = vmor %vm1033_vm11, %vm1034_vm10 }
 0x203   : > { %v1026_v20 = vsel %vm1025_vm6, %v8463_v49, %v1022_v4  ;;  %v1061_v24 = vmul.f32 %v1046_v16, %v9587_v21  ;;  %v1062_v25 = vmul.f32 %v1046_v16, %v9590_v13  ;;  %v1029_v8 = vmul.f32 %v8467_v61, %v1028_v5 }
 0x204   : > { %v1057_v9 = vmul.f32 %v1026_v20, %v9593_v22  ;;  %v1058_v26 = vmul.f32 %v1026_v20, %v9596_v23  ;;  %v1050_v27 = vmul.f32 0.5, %v1049_v19 }
 0x205   : > { %v1074_v10 = vmul.f32 %v1066_v62, %v1061_v24  ;;  %v1075_v28 = vmul.f32 %v1067_v0, %v1062_v25  ;;  %v1030_v12 = vmul.f32 0.5, %v1029_v8  ;;  %v1628_v24 = vpop.f32.mrf.mxu2  ;;  %v1647_v25 = vpop.f32.mrf.mxu3  ;;  %v1160_v8 = vperm.slane %v9665_v17, 3 }
 0x206   : > { %v1070_v29 = vmul.f32 %v1066_v62, %v1057_v9  ;;  %v1071_v7 = vmul.f32 %v1067_v0, %v1058_v26  ;;  %v1051_v34 = vsub.f32 1.5, %v1050_v27  ;;  %v1159_v9 = vperm.slane %v9665_v17, 2 }
 0x207   : > { %v1031_v35 = vsub.f32 1.5, %v1030_v12  ;;  %v1087_v13 = vadd.f32 %v1079_v11, %v1074_v10  ;;  %v1088_v14 = vadd.f32 %v1080_v6, %v1075_v28  ;;  %v1629_v27 = vadd.f32 %v1628_v24, %v1160_v8  ;;  %v1609_v28 = vpop.f32.mrf.mxu1 }
 0x208   : > { %v1052_v21 = vmul.f32 %v8465_v59, %v1051_v34  ;;  %v1083_v22 = vadd.f32 %v1079_v11, %v1070_v29  ;;  %v1084_v23 = vadd.f32 %v1080_v6, %v1071_v7 }
 0x209   : > { %v1032_v15 = vmul.f32 %v8467_v61, %v1031_v35  ;;  %v1661_v43 = vmul.f32 0.088388346, %v1087_v13  ;;  %v1662_v44 = vmul.f32 0.088388346, %v1088_v14  ;;  %v1648_v7 = vadd.f32 %v1647_v25, %v1629_v27 }
 0x20a   : > { %v1056_v36 = vsel %vm1055_vm9, %v8465_v59, %v1052_v21  ;;  %v1657_v47 = vmul.f32 0.088388346, %v1083_v22  ;;  %v1658_v48 = vmul.f32 0.088388346, %v1084_v23 }
 0x20b   : > { %v1063_v18 = vmul.f32 %v1056_v36, %v9609_v30  ;;  %v1064_v37 = vmul.f32 %v1056_v36, %v9612_v31  ;;  %v1036_v38 = vsel %vm1035_vm12, %v8467_v61, %v1032_v15  ;;  %v1667_v31 = vpack.c.bf16 %v1662_v44, %v1661_v43 }
 0x20c   : > { %v1059_v39 = vmul.f32 %v1036_v38, %v9615_v32  ;;  %v1060_v40 = vmul.f32 %v1036_v38, %v9618_v33  ;;  %v1665_v32 = vpack.c.bf16 %v1658_v48, %v1657_v47 }
 0x20d   : > { %v1076_v41 = vmul.f32 %v1066_v62, %v1063_v18  ;;  %v1077_v42 = vmul.f32 %v1067_v0, %v1064_v37  ;;  %v1737_v57 = vunpack.c.l.b16 %v1667_v31  ;;  %v1894_v3 = vrot.slane %v1667_v31, 4  ;;  %v1630_v26 = vpop.f32.mrf.mxu2  ;;  %v1649_v12 = vpop.f32.mrf.mxu3 }
 0x20e   : > { %v1072_v45 = vmul.f32 %v1066_v62, %v1059_v39  ;;  %v1073_v46 = vmul.f32 %v1067_v0, %v1060_v40  ;;  %v1711_v59 = vunpack.c.l.b16 %v1665_v32  ;;  %v1868_v0 = vrot.slane %v1665_v32, 4 }
 0x20f   : > { %v1089_v49 = vadd.f32 %v1079_v11, %v1076_v41  ;;  %v1090_v50 = vadd.f32 %v1080_v6, %v1077_v42  ;;  %v1631_v34 = vadd.f32 %v1630_v26, %v1160_v8  ;;  %v1611_v22 = vpop.f32.mrf.mxu1 }
 0x210   : > { %v1085_v51 = vadd.f32 %v1079_v11, %v1072_v45  ;;  %v1086_v52 = vadd.f32 %v1080_v6, %v1073_v46  ;;  %v1898_v11 = vunpack.c.l.b16 %v1894_v3  ;;  %v1872_v16 = vunpack.c.l.b16 %v1868_v0  ;;  %v1590_v6 = vpop.f32.mrf.mxu0 }
 0x211   : > { %v1663_v30 = vmul.f32 0.088388346, %v1089_v49  ;;  %v1664_v53 = vmul.f32 0.088388346, %v1090_v50  ;;  %v1591_v10 = vadd.f32 %v1590_v6, %v1159_v9  ;;  %v1650_v15 = vadd.f32 %v1649_v12, %v1631_v34 }
 0x212   : > { %v1659_v54 = vmul.f32 0.088388346, %v1085_v51  ;;  %v1660_v55 = vmul.f32 0.088388346, %v1086_v52 }
 0x213   : > { %v1668_v56 = vpack.c.bf16 %v1664_v53, %v1663_v30  ;;  %v1610_v29 = vadd.f32 %v1609_v28, %v1591_v10 }
 0x214   : > { %v1666_v33 = vpack.c.bf16 %v1660_v55, %v1659_v54 }
 0x215   : > { %v1738_v58 = vunpack.c.l.b16 %v1668_v56  ;;  %v1895_v62 = vrot.slane %v1668_v56, 4  ;;  %v1673_v35 = vpack.c.bf16 %v1648_v7, %v1610_v29  ;;  %v1633_v13 = vpop.f32.mrf.mxu2  ;;  %v1652_v18 = vpop.f32.mrf.mxu3 }
 0x216   : > { %v1712_v63 = vunpack.c.l.b16 %v1666_v33  ;;  %v1869_v2 = vrot.slane %v1666_v33, 4  ;;  %v1634_v41 = vadd.f32 %v1633_v13, %v1160_v8 }
 0x217   : > { %v1739_v60 = vpack.c.b16 %v1738_v58, %v1737_v57  ;;  %v1899_v4 = vunpack.c.l.b16 %v1895_v62  ;;  %v1968_v23 = vrot.slane %v1673_v35, 4  ;;  %v1817_v37 = vunpack.c.l.b16 %v1673_v35  ;;  %v1614_v46 = vpop.f32.mrf.mxu1 }
 0x218   : > { %v1713_v61 = vpack.c.b16 %v1712_v63, %v1711_v59  ;;  %v1873_v5 = vunpack.c.l.b16 %v1869_v2  ;;  %v1592_v21 = vpop.f32.mrf.mxu0  ;;  %v1653_v49 = vadd.f32 %v1652_v18, %v1634_v41 }
 0x219   : > { %1755 = vmatmul.bf16.vlgmr.msra.gmra.mxu1 %v1739_v60  ;;  %v1900_v19 = vpack.c.b16 %v1899_v4, %v1898_v11  ;;  %v1593_v14 = vadd.f32 %v1592_v21, %v1159_v9  ;;  %v1975_v38 = vunpack.c.l.b16 %v1968_v23 }
 0x21a   : > { %1729 = vmatmul.bf16.vlgmr.msra.gmra.mxu0 %v1713_v61  ;;  %v1874_v20 = vpack.c.b16 %v1873_v5, %v1872_v16 }
 0x21b   : > { %v1612_v36 = vadd.f32 %v1611_v22, %v1593_v14 }
 0x21d   : > { %v1674_v17 = vpack.c.bf16 %v1650_v15, %v1612_v36  ;;  %v1635_v47 = vpop.f32.mrf.mxu2  ;;  %v1654_v52 = vpop.f32.mrf.mxu3 }
 0x21e   : > { %v1636_v51 = vadd.f32 %v1635_v47, %v1160_v8 }
 0x21f   : > { %v1818_v39 = vunpack.c.l.b16 %v1674_v17  ;;  %v1969_v40 = vrot.slane %v1674_v17, 4  ;;  %v1616_v55 = vpop.f32.mrf.mxu1 }
 0x220   : > { %v1595_v42 = vpop.f32.mrf.mxu0  ;;  %v1655_v54 = vadd.f32 %v1654_v52, %v1636_v51 }
 0x221   : > { %v1976_v43 = vunpack.c.l.b16 %v1969_v40  ;;  %v1596_v44 = vadd.f32 %v1595_v42, %v1159_v9  ;;  %v1819_v45 = vpack.c.b16 %v1818_v39, %v1817_v37 }
 0x223   : > { %v1615_v48 = vadd.f32 %v1614_v46, %v1596_v44  ;;  %1831 = vmatpush.bf16.msra.mxu2 %v1819_v45  ;;  %v1977_v50 = vpack.c.b16 %v1976_v43, %v1975_v38 }
 0x225   : > { %v1675_v30 = vpack.c.bf16 %v1653_v49, %v1615_v48 }
 0x227   : > { %1989 = vmatpush.bf16.msrb.mxu2 %v1977_v50  ;;  %v1996_v32 = vrot.slane %v1675_v30, 4  ;;  %v1845_v33 = vunpack.c.l.b16 %v1675_v30 }
 0x228   : > { %v1597_v53 = vpop.f32.mrf.mxu0 }
 0x229   : > { %1914 = vmatmul.bf16.vlgmr.msrb.gmra.mxu1 %v1900_v19  ;;  %v1598_v31 = vadd.f32 %v1597_v53, %v1159_v9  ;;  %v2003_v58 = vunpack.c.l.b16 %v1996_v32 }
 0x22a   : > { %1888 = vmatmul.bf16.vlgmr.msrb.gmra.mxu0 %v1874_v20 }
 0x22b   : > { %v1617_v56 = vadd.f32 %v1616_v55, %v1598_v31 }
 0x22d   : > { %v1676_v57 = vpack.c.bf16 %v1655_v54, %v1617_v56 }
 0x22f   : > { %v1846_v59 = vunpack.c.l.b16 %v1676_v57  ;;  %v1997_v63 = vrot.slane %v1676_v57, 4 }
 0x231   : > { %v2004_v60 = vunpack.c.l.b16 %v1997_v63  ;;  %v1847_v61 = vpack.c.b16 %v1846_v59, %v1845_v33 }
 0x233   : > { %1859 = vmatpush.bf16.msra.mxu3 %v1847_v61  ;;  %v2005_v62 = vpack.c.b16 %v2004_v60, %v2003_v58 }
 0x237   : > { %2017 = vmatpush.bf16.msrb.mxu3 %v2005_v62 }
 0x296   : > { %v1756_v2 = vpop.f32.mrf.mxu1 }
 0x297   : > { %v1730_v3 = vpop.f32.mrf.mxu0  ;;  %v1768_v0 = vsel %vm1761_vm13, %v1756_v2, -inf }
 0x298   : > { %v1762_v4 = vsel %vm1761_vm13, %v1730_v3, -inf  ;;  %1769 = vmax.xlane.f32.xlu1 %v1768_v0  ;;  %v8075_v0 = vld [vmem:[%s9417_s20 + $0xf4] sm:$0xf0] }
 0x299   : > { %1763 = vmax.xlane.f32.xlu2 %v1762_v4 }
 0x29e   : > { %v1758_v5 = vpop.f32.mrf.mxu1 }
 0x29f   : > { %v1732_v11 = vpop.f32.mrf.mxu0  ;;  %v1771_v16 = vsel %vm1761_vm13, %v1758_v5, -inf }
 0x2a0   : > { %v1765_v19 = vsel %vm1761_vm13, %v1732_v11, -inf }
 0x2a1   : > { %1766 = vmax.xlane.f32.xlu0 %v1765_v19  ;;  %1772 = vmax.xlane.f32.xlu2 %v1771_v16  ;;  %v6842_v16 = vld [vmem:[%s9417_s20 + $0xf8] sm:$0xf0] }
 0x2a6   : > { %v1915_v20 = vpop.f32.mrf.mxu1 }
 0x2a7   : > { %v1889_v24 = vpop.f32.mrf.mxu0  ;;  %v1926_v25 = vsel %vm1761_vm13, %v1915_v20, -inf }
 0x2a8   : > { %v1920_v8 = vsel %vm1761_vm13, %v1889_v24, -inf }
 0x2a9   : > { %1921 = vmax.xlane.f32.xlu0 %v1920_v8  ;;  %1927 = vmax.xlane.f32.xlu2 %v1926_v25 }
 0x2ae   : > { %v1917_v9 = vpop.f32.mrf.mxu1 }
 0x2af   : > { %v1891_v26 = vpop.f32.mrf.mxu0  ;;  %v1929_v27 = vsel %vm1761_vm13, %v1917_v9, -inf }
 0x2b0   : > { %v1923_v6 = vsel %vm1761_vm13, %v1891_v26, -inf }
 0x2b1   : > { %1924 = vmax.xlane.f32.xlu1 %v1923_v6  ;;  %1930 = vmax.xlane.f32.xlu0 %v1929_v27 }
 0x30b   : > { %v1770_v10 = vpop.xlane.xlu1 %1769 }
 0x30c   : > { %v1764_v28 = vpop.xlane.xlu2 %1763  ;;  %v1776_v12 = vsub.f32 %v1756_v2, %v1770_v10  ;;  %v8058_v10 = vld [vmem:[%s9417_s20 + $0x74] sm:$0xf] }
 0x30d   : > { %v1774_v29 = vsub.f32 %v1730_v3, %v1764_v28  ;;  %v6840_v3 = vld [vmem:[%s9417_s20 + $0xf0] sm:$0xf]  ;;  %v6906_v28 = vld [vmem:[%s9417_s20 + $0x78] sm:$0xf0] }
 0x30e   : > { %v1782_v7 = vmul.f32 1.442695, %v1776_v12 }
 0x30f   : > { %v1778_v34 = vmul.f32 1.442695, %v1774_v29  ;;  %v6904_v29 = vld [vmem:[%s9417_s20 + $0x70] sm:$0xf] }
 0x310   : > { %8468 = vpow2.f32 %v1782_v7  ;;  %v8059_v7 = vld [vmem:[%s9417_s20 + $0x74] sm:$0xf0] }
 0x311   : > { %8470 = vpow2.f32 %v1778_v34 }
 0x314   : > { %v1773_v35 = vpop.xlane.xlu2 %1772  ;;  %v1767_v21 = vpop.xlane.xlu0 %1766 }
 0x315   : > { %v1777_v13 = vsub.f32 %v1758_v5, %v1773_v35  ;;  %v1775_v14 = vsub.f32 %v1732_v11, %v1767_v21  ;;  %v6841_v5 = vor.u32 %v8075_v0, %v6840_v3  ;;  %v8074_v11 = vld [vmem:[%s9417_s20 + $0xf4] sm:$0xf]  ;;  %v8051_v3 = vld [vmem:[%s9417_s20 + $0x34] sm:$0xf0] }
 0x316   : > { %v8469_v15 = vpop.eup %8468  ;;  %v6845_v25 = vor.u32 %v8074_v11, %v6842_v16  ;;  %v8050_v0 = vld [vmem:[%s9417_s20 + $0x34] sm:$0xf] }
 0x317   : > { %v8471_v22 = vpop.eup %8470  ;;  %v1784_v23 = vmul.f32 1.442695, %v1777_v13  ;;  %v1780_v36 = vmul.f32 1.442695, %v1775_v14  ;;  %v1792_v18 = vsel %vm1761_vm13, %v8469_v15, 0.0  ;;  %2106 = vmatpush.bf16.msra.mxu0 %v6841_v5  ;;  %v6909_v14 = vor.u32 %v8058_v10, %v6906_v28 }
 0x318   : > { %v1786_v37 = vsel %vm1761_vm13, %v8471_v22, 0.0  ;;  %1793 = vadd.xlane.f32.xlu0 %v1792_v18  ;;  %2125 = vmatpush.bf16.msra.mxu1 %v6845_v25  ;;  %v6832_v25 = vld [vmem:[%s9417_s20 + $0xe0] sm:$0xf]  ;;  %v8049_v10 = vld [vmem:[%s9417_s20 + $0x24] sm:$0xf0] }
 0x319   : > { %8472 = vpow2.f32 %v1784_v23  ;;  %1787 = vadd.xlane.f32.xlu1 %v1786_v37  ;;  %v8056_v23 = vld [vmem:[%s9417_s20 + $0x64] sm:$0xf]  ;;  %v6896_v37 = vld [vmem:[%s9417_s20 + $0x60] sm:$0xf] }
 0x31a   : > { %8474 = vpow2.f32 %v1780_v36  ;;  %v6898_v36 = vld [vmem:[%s9417_s20 + $0x68] sm:$0xf0] }
 0x31c   : > { %v1928_v17 = vpop.xlane.xlu2 %1927  ;;  %v1922_v38 = vpop.xlane.xlu0 %1921 }
 0x31d   : > { %v1934_v39 = vsub.f32 %v1915_v20, %v1928_v17  ;;  %v1932_v40 = vsub.f32 %v1889_v24, %v1922_v38  ;;  %v8057_v17 = vld [vmem:[%s9417_s20 + $0x64] sm:$0xf0] }
 0x31f   : > { %v8473_v41 = vpop.eup %8472  ;;  %v1940_v42 = vmul.f32 1.442695, %v1934_v39  ;;  %v1936_v43 = vmul.f32 1.442695, %v1932_v40 }
 0x320   : > { %v8475_v44 = vpop.eup %8474  ;;  %v1795_v45 = vsel %vm1761_vm13, %v8473_v41, 0.0 }
 0x321   : > { %8476 = vpow2.f32 %v1940_v42  ;;  %1796 = vadd.xlane.f32.xlu1 %v1795_v45  ;;  %v1789_v46 = vsel %vm1761_vm13, %v8475_v44, 0.0  ;;  %v6890_v45 = vld [vmem:[%s9417_s20 + $0x58] sm:$0xf0] }
 0x322   : > { %8478 = vpow2.f32 %v1936_v43  ;;  %1790 = vadd.xlane.f32.xlu2 %v1789_v46  ;;  %v6897_v43 = vor.u32 %v8057_v17, %v6896_v37  ;;  %v6888_v46 = vld [vmem:[%s9417_s20 + $0x50] sm:$0xf]  ;;  %v8046_v37 = vld [vmem:[%s9417_s20 + $0x14] sm:$0xf]  ;;  %v6858_v17 = vld [vmem:[%s9417_s20 + $0x18] sm:$0xf0] }
 0x324   : > { %v1925_v47 = vpop.xlane.xlu1 %1924  ;;  %v1931_v48 = vpop.xlane.xlu0 %1930 }
 0x325   : > { %v1933_v49 = vsub.f32 %v1891_v26, %v1925_v47  ;;  %v1935_v50 = vsub.f32 %v1917_v9, %v1931_v48  ;;  %v8055_v47 = vld [vmem:[%s9417_s20 + $0x54] sm:$0xf0] }
 0x327   : > { %v9706_v51 = vpop.eup %8476  ;;  %v1938_v52 = vmul.f32 1.442695, %v1933_v49  ;;  %v1942_v30 = vmul.f32 1.442695, %v1935_v50 }
 0x328   : > { %v9708_v53 = vpop.eup %8478  ;;  %v1950_v31 = vsel %vm1761_vm13, %v9706_v51, 0.0 }
 0x329   : > { %8480 = vpow2.f32 %v1938_v52  ;;  %1951 = vadd.xlane.f32.xlu1 %v1950_v31  ;;  %v1944_v54 = vsel %vm1761_vm13, %v9708_v53, 0.0  ;;  %v6889_v52 = vor.u32 %v8055_v47, %v6888_v46  ;;  %v6882_v31 = vld [vmem:[%s9417_s20 + $0x48] sm:$0xf0] }
 0x32a   : > { %8482 = vpow2.f32 %v1942_v30  ;;  %1945 = vadd.xlane.f32.xlu2 %v1944_v54  ;;  %v8052_v30 = vld [vmem:[%s9417_s20 + $0x44] sm:$0xf] }
 0x32f   : > { %v9714_v55 = vpop.eup %8480 }
 0x330   : > { %v9716_v32 = vpop.eup %8482  ;;  %v1947_v56 = vsel %vm1761_vm13, %v9714_v55, 0.0 }
 0x331   : > { %1948 = vadd.xlane.f32.xlu0 %v1947_v56  ;;  %v1953_v33 = vsel %vm1761_vm13, %v9716_v32, 0.0  ;;  %v6880_v56 = vld [vmem:[%s9417_s20 + $0x40] sm:$0xf] }
 0x332   : > { %1954 = vadd.xlane.f32.xlu2 %v1953_v33  ;;  %v8053_v33 = vld [vmem:[%s9417_s20 + $0x44] sm:$0xf0] }
 0x38b   : > { %v1794_v58 = vpop.xlane.xlu0 %1793 }
 0x38c   : > { %v1788_v57 = vpop.xlane.xlu1 %1787  ;;  %8484 = vrcp.f32 %v1794_v58 }
 0x38d   : > { %8486 = vrcp.f32 %v1788_v57 }
 0x392   : > { %v8485_v63 = vpop.eup %8484 }
 0x393   : > { %v8487_v61 = vpop.eup %8486  ;;  %v1804_v62 = vmul.f32 %v8485_v63, %v8469_v15  ;;  %v6885_v63 = vor.u32 %v8052_v30, %v6882_v31  ;;  %v8067_v30 = vld [vmem:[%s9417_s20 + $0xb4] sm:$0xf0]  ;;  %v8066_v31 = vld [vmem:[%s9417_s20 + $0xb4] sm:$0xf] }
 0x394   : > { %v1797_v59 = vpop.xlane.xlu1 %1796  ;;  %v1802_v2 = vmul.f32 %v8487_v61, %v8471_v22  ;;  %v6905_v22 = vor.u32 %v8059_v7, %v6904_v29  ;;  %v6881_v61 = vor.u32 %v8053_v33, %v6880_v56  ;;  %v8048_v29 = vld [vmem:[%s9417_s20 + $0x24] sm:$0xf]  ;;  %v6866_v7 = vld [vmem:[%s9417_s20 + $0x28] sm:$0xf0]  ;;  %v6810_v56 = vld [vmem:[%s9417_s20 + $0xb8] sm:$0xf0] }
 0x395   : > { %8488 = vrcp.f32 %v1797_v59  ;;  %v1791_v60 = vpop.xlane.xlu2 %1790  ;;  %v1808_v20 = vpack.c.bf16 %v1804_v62, %v1804_v62  ;;  %v6872_v62 = vld [vmem:[%s9417_s20 + $0x30] sm:$0xf]  ;;  %v6813_v33 = vor.u32 %v8066_v31, %v6810_v56 }
 0x396   : > { %8490 = vrcp.f32 %v1791_v60  ;;  %v1806_v8 = vpack.c.bf16 %v1802_v2, %v1802_v2 }
 0x397   : > { %v1840_v34 = vunpack.c.l.b16 %v1808_v20 }
 0x398   : > { %v1812_v21 = vunpack.c.l.b16 %v1806_v8  ;;  %v8073_v8 = vld [vmem:[%s9417_s20 + $0xe4] sm:$0xf0] }
 0x39b   : > { %v8489_v4 = vpop.eup %8488 }
 0x39c   : > { %v8491_v19 = vpop.eup %8490  ;;  %v1805_v24 = vmul.f32 %v8489_v4, %v8473_v41  ;;  %v1952_v26 = vpop.xlane.xlu1 %1951  ;;  %v6901_v41 = vor.u32 %v8056_v23, %v6898_v36  ;;  %v6874_v4 = vld [vmem:[%s9417_s20 + $0x38] sm:$0xf0]  ;;  %v8047_v23 = vld [vmem:[%s9417_s20 + $0x14] sm:$0xf0] }
 0x39d   : > { %v1803_v9 = vmul.f32 %v8491_v19, %v8475_v44  ;;  %v1946_v27 = vpop.xlane.xlu2 %1945  ;;  %v8054_v44 = vld [vmem:[%s9417_s20 + $0x54] sm:$0xf]  ;;  %v6873_v19 = vor.u32 %v8051_v3, %v6872_v62  ;;  %v6877_v20 = vor.u32 %v8050_v0, %v6874_v4  ;;  %v6794_v3 = vld [vmem:[%s9417_s20 + $0x98] sm:$0xf0]  ;;  %v6784_v4 = vld [vmem:[%s9417_s20 + $0x80] sm:$0xf] }
 0x39e   : > { %v1809_v6 = vpack.c.bf16 %v1805_v24, %v1805_v24  ;;  %8492 = vrcp.f32 %v1946_v27  ;;  %v6893_v50 = vor.u32 %v8054_v44, %v6890_v45  ;;  %v6834_v27 = vld [vmem:[%s9417_s20 + $0xe8] sm:$0xf0]  ;;  %v6848_v44 = vld [vmem:[%s9417_s20] sm:$0xf]  ;;  %v8045_v45 = vld [vmem:[%s9417_s20 + $0x4] sm:$0xf0] }
 0x39f   : > { %v1807_v12 = vpack.c.bf16 %v1803_v9, %v1803_v9  ;;  %8494 = vrcp.f32 %v1952_v26  ;;  %v8072_v9 = vld [vmem:[%s9417_s20 + $0xe4] sm:$0xf]  ;;  %v6833_v26 = vor.u32 %v8073_v8, %v6832_v25  ;;  %v6849_v47 = vor.u32 %v8045_v45, %v6848_v44  ;;  %v8062_v62 = vld [vmem:[%s9417_s20 + $0x94] sm:$0xf] }
 0x3a0   : > { %v1841_v35 = vunpack.c.l.b16 %v1809_v6  ;;  %v6864_v6 = vld [vmem:[%s9417_s20 + $0x20] sm:$0xf]  ;;  %v6837_v28 = vor.u32 %v8072_v9, %v6834_v27  ;;  %v6797_v0 = vor.u32 %v8062_v62, %v6794_v3 }
 0x3a1   : > { %v1813_v13 = vunpack.c.l.b16 %v1807_v12  ;;  %v6865_v12 = vor.u32 %v8049_v10, %v6864_v6  ;;  %2107 = vmatpush.bf16.msra.mxu0 %v6833_v26 }
 0x3a2   : > { %v1842_v15 = vpack.c.b16 %v1841_v35, %v1840_v34  ;;  %v6869_v34 = vor.u32 %v8048_v29, %v6866_v7  ;;  %v6824_v35 = vld [vmem:[%s9417_s20 + $0xd0] sm:$0xf]  ;;  %2126 = vmatpush.bf16.msra.mxu1 %v6837_v28 }
 0x3a3   : > { %v1814_v18 = vpack.c.b16 %v1813_v13, %v1812_v21  ;;  %v8071_v21 = vld [vmem:[%s9417_s20 + $0xd4] sm:$0xf0]  ;;  %v8070_v13 = vld [vmem:[%s9417_s20 + $0xd4] sm:$0xf] }
 0x3a4   : > { %6779 = vmatmul.msk.bf16.vlgmr.msra.gmra.mxu3 %vm1761_vm13, %v1842_v15  ;;  %v1949_v38 = vpop.xlane.xlu0 %1948  ;;  %v8493_v39 = vpop.eup %8492  ;;  %v6826_v15 = vld [vmem:[%s9417_s20 + $0xd8] sm:$0xf0] }
 0x3a5   : > { %6778 = vmatmul.msk.bf16.vlgmr.msra.gmra.mxu2 %vm1761_vm13, %v1814_v18  ;;  %v1955_v40 = vpop.xlane.xlu2 %1954  ;;  %8496 = vrcp.f32 %v1949_v38  ;;  %2243 = vmatpush.bf16.msra.mxu3 %v6909_v14  ;;  %v8495_v42 = vpop.eup %8494  ;;  %v1960_v48 = vmul.f32 %v8493_v39, %v9708_v53  ;;  %v6825_v14 = vor.u32 %v8071_v21, %v6824_v35  ;;  %v6829_v36 = vor.u32 %v8070_v13, %v6826_v15  ;;  %v6816_v39 = vld [vmem:[%s9417_s20 + $0xc0] sm:$0xf] }
 0x3a6   : > { %8498 = vrcp.f32 %v1955_v40  ;;  %2224 = vmatpush.bf16.msra.mxu2 %v6905_v22  ;;  %v1962_v49 = vmul.f32 %v8495_v42, %v9706_v51  ;;  %v6856_v22 = vld [vmem:[%s9417_s20 + $0x10] sm:$0xf]  ;;  %v6861_v38 = vor.u32 %v8046_v37, %v6858_v17  ;;  %v8069_v40 = vld [vmem:[%s9417_s20 + $0xc4] sm:$0xf0]  ;;  %v8573_v17 = vld [vmem:[#allocation17 + $0x8] sm:$0xff] }
 0x3a7   : > { %v1964_v58 = vpack.c.bf16 %v1960_v48, %v1960_v48  ;;  %v6857_v18 = vor.u32 %v8047_v23, %v6856_v22  ;;  %2108 = vmatpush.bf16.msra.mxu0 %v6825_v14  ;;  %2127 = vmatpush.bf16.msra.mxu1 %v6829_v36  ;;  %v6817_v42 = vor.u32 %v8069_v40, %v6816_v39  ;;  %v8044_v48 = vld [vmem:[%s9417_s20 + $0x4] sm:$0xf] }
 0x3a8   : > { %v1966_v53 = vpack.c.bf16 %v1962_v49, %v1962_v49  ;;  %v6850_v49 = vld [vmem:[%s9417_s20 + $0x8] sm:$0xf0] }
 0x3a9   : > { %2244 = vmatpush.bf16.msra.mxu3 %v6901_v41  ;;  %v1972_v5 = vunpack.c.l.b16 %v1964_v58  ;;  %v8068_v41 = vld [vmem:[%s9417_s20 + $0xc4] sm:$0xf]  ;;  %v8065_v58 = vld [vmem:[%s9417_s20 + $0xa4] sm:$0xf0] }
 0x3aa   : > { %2225 = vmatpush.bf16.msra.mxu2 %v6897_v43  ;;  %v2000_v16 = vunpack.c.l.b16 %v1966_v53  ;;  %v6818_v43 = vld [vmem:[%s9417_s20 + $0xc8] sm:$0xf0] }
 0x3ab   : > { %v8497_v54 = vpop.eup %8496  ;;  %v6821_v46 = vor.u32 %v8068_v41, %v6818_v43  ;;  %2109 = vmatpush.bf16.msra.mxu0 %v6817_v42 }
 0x3ac   : > { %v8499_v57 = vpop.eup %8498  ;;  %v1961_v59 = vmul.f32 %v8497_v54, %v9714_v55 }
 0x3ad   : > { %v1963_v51 = vmul.f32 %v8499_v57, %v9716_v32  ;;  %2245 = vmatpush.bf16.msra.mxu3 %v6893_v50  ;;  %v6853_v50 = vor.u32 %v8044_v48, %v6850_v49  ;;  %2128 = vmatpush.bf16.msra.mxu1 %v6821_v46  ;;  %v6800_v57 = vld [vmem:[%s9417_s20 + $0xa0] sm:$0xf]  ;;  %v8574_v46 = vld [vmem:[#allocation17 + $0x10] sm:$0xff]  ;;  %v8575_v48 = vld [vmem:[#allocation17 + $0x18] sm:$0xff] }
 0x3ae   : > { %v1965_v60 = vpack.c.bf16 %v1961_v59, %v1961_v59  ;;  %2226 = vmatpush.bf16.msra.mxu2 %v6889_v52  ;;  %v6808_v52 = vld [vmem:[%s9417_s20 + $0xb0] sm:$0xf]  ;;  %v8064_v59 = vld [vmem:[%s9417_s20 + $0xa4] sm:$0xf]  ;;  %v6801_v53 = vor.u32 %v8065_v58, %v6800_v57 }
 0x3af   : > { %v1967_v2 = vpack.c.bf16 %v1963_v51, %v1963_v51  ;;  %v6809_v54 = vor.u32 %v8067_v30, %v6808_v52  ;;  %v6802_v51 = vld [vmem:[%s9417_s20 + $0xa8] sm:$0xf0] }
 0x3b0   : > { %v1973_v11 = vunpack.c.l.b16 %v1965_v60  ;;  %v6792_v60 = vld [vmem:[%s9417_s20 + $0x90] sm:$0xf] }
 0x3b1   : > { %v2001_v55 = vunpack.c.l.b16 %v1967_v2  ;;  %2246 = vmatpush.bf16.msra.mxu3 %v6885_v63  ;;  %2110 = vmatpush.bf16.msra.mxu0 %v6809_v54  ;;  %v6805_v63 = vor.u32 %v8064_v59, %v6802_v51  ;;  %v8576_v59 = vld [vmem:[#allocation17 + $0x20] sm:$0xff]  ;;  %v8577_v51 = vld [vmem:[#allocation17 + $0x28] sm:$0xff] }
 0x3b2   : > { %v1974_v32 = vpack.c.b16 %v1973_v11, %v1972_v5  ;;  %2227 = vmatpush.bf16.msra.mxu2 %v6881_v61  ;;  %2129 = vmatpush.bf16.msra.mxu1 %v6813_v33  ;;  %v8063_v61 = vld [vmem:[%s9417_s20 + $0x94] sm:$0xf0]  ;;  %v8061_v5 = vld [vmem:[%s9417_s20 + $0x84] sm:$0xf0]  ;;  %v8060_v11 = vld [vmem:[%s9417_s20 + $0x84] sm:$0xf] }
 0x3b3   : > { %v2002_v24 = vpack.c.b16 %v2001_v55, %v2000_v16  ;;  %v6793_v2 = vor.u32 %v8063_v61, %v6792_v60  ;;  %v6785_v16 = vor.u32 %v8061_v5, %v6784_v4  ;;  %v6786_v55 = vld [vmem:[%s9417_s20 + $0x88] sm:$0xf0] }
 0x3b5   : > { %6780 = vmatmul.msk.bf16.vlgmr.msrb.gmra.mxu2 %vm1761_vm13, %v1974_v32  ;;  %6781 = vmatmul.msk.bf16.vlgmr.msrb.gmra.mxu3 %vm1761_vm13, %v2002_v24  ;;  %v6789_v32 = vor.u32 %v8060_v11, %v6786_v55 }
 0x3b6   : > { %2228 = vmatpush.bf16.msra.mxu2 %v6873_v19  ;;  %2247 = vmatpush.bf16.msra.mxu3 %v6877_v20 }
 0x3b7   : > { %2111 = vmatpush.bf16.msra.mxu0 %v6801_v53  ;;  %2130 = vmatpush.bf16.msra.mxu1 %v6805_v63 }
 0x3ba   : > { %2229 = vmatpush.bf16.msra.mxu2 %v6865_v12  ;;  %2248 = vmatpush.bf16.msra.mxu3 %v6869_v34  ;;  %v2270_v34 = vld [vmem:[%s914_s23] sm:$0x3] }
 0x3bb   : > { %2112 = vmatpush.bf16.msra.mxu0 %v6793_v2  ;;  %2131 = vmatpush.bf16.msra.mxu1 %v6797_v0  ;;  %v2272_v14 = vperm.slane %v2270_v34, 0  ;;  %v2273_v22 = vperm.slane %v2270_v34, 1 }
 0x3be   : > { %2230 = vmatpush.bf16.msra.mxu2 %v6857_v18  ;;  %2249 = vmatpush.bf16.msra.mxu3 %v6861_v38  ;;  %v8572_v18 = vld [vmem:[#allocation17] sm:$0xff] }
 0x3bf   : > { %2113 = vmatpush.bf16.msra.mxu0 %v6785_v16  ;;  %2132 = vmatpush.bf16.msra.mxu1 %v6789_v32  ;;  %v8578_v16 = vld [vmem:[#allocation17 + $0x30] sm:$0xff]  ;;  %v8579_v32 = vld [vmem:[#allocation17 + $0x38] sm:$0xff] }
 0x3c2   : > { %2231 = vmatpush.bf16.msra.mxu2 %v6849_v47  ;;  %2250 = vmatpush.bf16.msra.mxu3 %v6853_v50 }
 0x427   : > { %v1861_v20 = vpop.f32.mrf.mxu3 }
 0x428   : > { %v1833_v19 = vpop.f32.mrf.mxu2 }
 0x42f   : > { %v1863_v9 = vpop.f32.mrf.mxu3 }
 0x430   : > { %v1835_v24 = vpop.f32.mrf.mxu2  ;;  %v1867_v6 = vpack.c.bf16 %v1863_v9, %v1861_v20 }
 0x431   : > { %v1866_v25 = vpack.c.bf16 %v1835_v24, %v1833_v19 }
 0x433   : > { %2232 = vmatmul.bf16.vlgmr.msra.gmra.mxu2 %v1866_v25  ;;  %2251 = vmatmul.bf16.vlgmr.msra.gmra.mxu3 %v1866_v25 }
 0x438   : > { %v1991_v8 = vpop.f32.mrf.mxu2  ;;  %v2019_v10 = vpop.f32.mrf.mxu3 }
 0x440   : > { %v1993_v26 = vpop.f32.mrf.mxu2  ;;  %v2021_v28 = vpop.f32.mrf.mxu3 }
 0x441   : > { %v2024_v27 = vpack.c.bf16 %v1993_v26, %v1991_v8  ;;  %v2025_v12 = vpack.c.bf16 %v2021_v28, %v2019_v10 }
 0x443   : > { %2114 = vmatmul.bf16.vlgmr.msra.gmra.mxu0 %v2024_v27  ;;  %2133 = vmatmul.bf16.vlgmr.msra.gmra.mxu1 %v2024_v27 }
 0x444   : > { %2237 = vmatmul.bf16.gmra.mxu2 %v1867_v6  ;;  %2256 = vmatmul.bf16.gmra.mxu3 %v1867_v6 }
 0x453   : > { %2119 = vmatmul.bf16.gmra.mxu0 %v2025_v12  ;;  %2138 = vmatmul.bf16.gmra.mxu1 %v2025_v12 }
 0x4b6   : > { %v2233_v29 = vpop.f32.mrf.mxu2  ;;  %v2252_v7 = vpop.f32.mrf.mxu3 }
 0x4be   : > { %v2235_v23 = vpop.f32.mrf.mxu2  ;;  %v2254_v36 = vpop.f32.mrf.mxu3 }
 0x4c0   : > { %v2115_v35 = vpop.f32.mrf.mxu0  ;;  %v2134_v21 = vpop.f32.mrf.mxu1 }
 0x4c1   : > { %v2234_v13 = vadd.f32 %v2233_v29, %v2115_v35  ;;  %v2253_v15 = vadd.f32 %v2252_v7, %v2134_v21 }
 0x4c3   : > { %v2262_v37 = vadd.f32 %v8572_v18, %v2234_v13  ;;  %v2263_v38 = vadd.f32 %v8573_v17, %v2253_v15 }
 0x4c5   : > { %v9799_v39 = vadd.f32 %v2272_v14, %v2262_v37  ;;  %v9801_v40 = vadd.f32 %v2273_v22, %v2263_v38 }
 0x4c7   : > { %12617 = vst [vmem:[#allocation31_spill] sm:$0xff] %v9799_v39  ;;  %v2286_v41 = vadd.f32 %v9801_v40, %v9799_v39  ;;  %v2238_v50 = vpop.f32.mrf.mxu2  ;;  %v2257_v52 = vpop.f32.mrf.mxu3 }
 0x4c8   : > { %12618 = vst [vmem:[#allocation32_spill] sm:$0xff] %v9801_v40  ;;  %v2117_v42 = vpop.f32.mrf.mxu0  ;;  %v2136_v43 = vpop.f32.mrf.mxu1 }
 0x4c9   : > { %v2236_v44 = vadd.f32 %v2235_v23, %v2117_v42  ;;  %v2255_v45 = vadd.f32 %v2254_v36, %v2136_v43  ;;  %2287 = vadd.xlane.f32.xlu0 %v2286_v41 }
 0x4cb   : > { %v2264_v47 = vadd.f32 %v8574_v46, %v2236_v44  ;;  %v2265_v49 = vadd.f32 %v8575_v48, %v2255_v45  ;;  %v8132_v46 = vld [vmem:[%s9420_s24 + $0x1c4] sm:$0xf]  ;;  %v7136_v48 = vld [vmem:[%s9420_s24 + $0x1c0] sm:$0xf] }
 0x4cd   : > { %v9805_v30 = vadd.f32 %v2272_v14, %v2264_v47  ;;  %v9807_v31 = vadd.f32 %v2273_v22, %v2265_v49  ;;  %v7138_v47 = vld [vmem:[%s9420_s24 + $0x1e0] sm:$0xf0] }
 0x4ce   : > { %v7141_v49 = vor.u32 %v8132_v46, %v7138_v47  ;;  %v8100_v47 = vld [vmem:[%s9420_s24 + $0xc4] sm:$0xf] }
 0x4cf   : > { %12619 = vst [vmem:[#allocation33_spill] sm:$0xff] %v9805_v30  ;;  %v2289_v54 = vadd.f32 %v9807_v31, %v9805_v30  ;;  %v2240_v62 = vpop.f32.mrf.mxu2  ;;  %v2259_v2 = vpop.f32.mrf.mxu3 }
 0x4d0   : > { %12620 = vst [vmem:[#allocation34_spill] sm:$0xff] %v9807_v31  ;;  %v2120_v56 = vpop.f32.mrf.mxu0  ;;  %v2139_v33 = vpop.f32.mrf.mxu1  ;;  %3240 = vmatpush.bf16.msrb.mxu2 %v7141_v49  ;;  %v7008_v49 = vld [vmem:[%s9420_s24 + $0xc0] sm:$0xf] }
 0x4d1   : > { %v2239_v57 = vadd.f32 %v2238_v50, %v2120_v56  ;;  %v2258_v58 = vadd.f32 %v2257_v52, %v2139_v33  ;;  %2290 = vadd.xlane.f32.xlu1 %v2289_v54  ;;  %v8136_v50 = vld [vmem:[%s9420_s24 + $0x1dc] sm:$0xf0] }
 0x4d2   : > { %v7392_v52 = vld [vmem:[%s9420_s24 + $0x3c0] sm:$0xf]  ;;  %v7137_v56 = vor.u32 %v8136_v50, %v7136_v48  ;;  %v7010_v48 = vld [vmem:[%s9420_s24 + $0xe0] sm:$0xf0] }
 0x4d3   : > { %v2266_v53 = vadd.f32 %v8576_v59, %v2239_v57  ;;  %v2267_v63 = vadd.f32 %v8577_v51, %v2258_v58  ;;  %v8200_v54 = vld [vmem:[%s9420_s24 + $0x3dc] sm:$0xf0]  ;;  %v8196_v57 = vld [vmem:[%s9420_s24 + $0x3c4] sm:$0xf]  ;;  %v7013_v50 = vor.u32 %v8100_v47, %v7010_v48 }
 0x4d4   : > { %v7393_v33 = vor.u32 %v8200_v54, %v7392_v52  ;;  %v7394_v58 = vld [vmem:[%s9420_s24 + $0x3e0] sm:$0xf0]  ;;  %3202 = vmatpush.bf16.msrb.mxu0 %v7137_v56  ;;  %v8104_v52 = vld [vmem:[%s9420_s24 + $0xdc] sm:$0xf0] }
 0x4d5   : > { %v9811_v60 = vadd.f32 %v2272_v14, %v2266_v53  ;;  %v9813_v61 = vadd.f32 %v2273_v22, %v2267_v63  ;;  %v7397_v59 = vor.u32 %v8196_v57, %v7394_v58  ;;  %v8124_v53 = vld [vmem:[%s9420_s24 + $0x184] sm:$0xf]  ;;  %v7104_v63 = vld [vmem:[%s9420_s24 + $0x180] sm:$0xf] }
 0x4d6   : > { %3221 = vmatpush.bf16.msrb.mxu1 %v7393_v33  ;;  %v7106_v51 = vld [vmem:[%s9420_s24 + $0x1a0] sm:$0xf0]  ;;  %v7264_v54 = vld [vmem:[%s9420_s24 + $0x2c0] sm:$0xf]  ;;  %v7009_v33 = vor.u32 %v8104_v52, %v7008_v49  ;;  %v8133_v52 = vld [vmem:[%s9420_s24 + $0x1cc] sm:$0xf] }
 0x4d7   : > { %12621 = vst [vmem:[#allocation35_spill] sm:$0xff] %v9811_v60  ;;  %v2292_v3 = vadd.f32 %v9813_v61, %v9811_v60  ;;  %3259 = vmatpush.bf16.msrb.mxu3 %v7397_v59  ;;  %v8168_v56 = vld [vmem:[%s9420_s24 + $0x2dc] sm:$0xf0]  ;;  %v8164_v58 = vld [vmem:[%s9420_s24 + $0x2c4] sm:$0xf] }
 0x4d8   : > { %12622 = vst [vmem:[#allocation36_spill] sm:$0xff] %v9813_v61  ;;  %v2122_v0 = vpop.f32.mrf.mxu0  ;;  %v2141_v4 = vpop.f32.mrf.mxu1  ;;  %v7265_v57 = vor.u32 %v8168_v56, %v7264_v54  ;;  %v7266_v59 = vld [vmem:[%s9420_s24 + $0x2e0] sm:$0xf0]  ;;  %v7146_v54 = vld [vmem:[%s9420_s24 + $0x1e8] sm:$0xf0] }
 0x4d9   : > { %v2241_v5 = vadd.f32 %v2240_v62, %v2122_v0  ;;  %v2260_v11 = vadd.f32 %v2259_v2, %v2141_v4  ;;  %2293 = vadd.xlane.f32.xlu2 %v2292_v3  ;;  %v7109_v62 = vor.u32 %v8124_v53, %v7106_v51  ;;  %v8128_v2 = vld [vmem:[%s9420_s24 + $0x19c] sm:$0xf0]  ;;  %v7269_v53 = vor.u32 %v8164_v58, %v7266_v59  ;;  %v8092_v51 = vld [vmem:[%s9420_s24 + $0x84] sm:$0xf]  ;;  %v7144_v56 = vld [vmem:[%s9420_s24 + $0x1c8] sm:$0xf] }
 0x4da   : > { %v7360_v3 = vld [vmem:[%s9420_s24 + $0x380] sm:$0xf]  ;;  %v7105_v4 = vor.u32 %v8128_v2, %v7104_v63  ;;  %v6978_v63 = vld [vmem:[%s9420_s24 + $0xa0] sm:$0xf0]  ;;  %v7400_v58 = vld [vmem:[%s9420_s24 + $0x3c8] sm:$0xf] }
 0x4db   : > { %v2268_v55 = vadd.f32 %v8578_v16, %v2241_v5  ;;  %v2269_v19 = vadd.f32 %v8579_v32, %v2260_v11  ;;  %v8192_v0 = vld [vmem:[%s9420_s24 + $0x39c] sm:$0xf0]  ;;  %v8188_v11 = vld [vmem:[%s9420_s24 + $0x384] sm:$0xf]  ;;  %3241 = vmatpush.bf16.msrb.mxu2 %v7109_v62  ;;  %v6981_v2 = vor.u32 %v8092_v51, %v6978_v63  ;;  %v8201_v59 = vld [vmem:[%s9420_s24 + $0x3e4] sm:$0xf0] }
 0x4dc   : > { %v7361_v5 = vor.u32 %v8192_v0, %v7360_v3  ;;  %v7362_v16 = vld [vmem:[%s9420_s24 + $0x3a0] sm:$0xf0]  ;;  %3203 = vmatpush.bf16.msrb.mxu0 %v7105_v4  ;;  %v6976_v62 = vld [vmem:[%s9420_s24 + $0x80] sm:$0xf]  ;;  %v7401_v63 = vor.u32 %v8201_v59, %v7400_v58  ;;  %v7048_v59 = vld [vmem:[%s9420_s24 + $0x108] sm:$0xf] }
 0x4dd   : > { %v9817_v20 = vadd.f32 %v2272_v14, %v2268_v55  ;;  %v9819_v24 = vadd.f32 %v2273_v22, %v2269_v19  ;;  %v7365_v55 = vor.u32 %v8188_v11, %v7362_v16  ;;  %v8116_v32 = vld [vmem:[%s9420_s24 + $0x144] sm:$0xf]  ;;  %v8096_v3 = vld [vmem:[%s9420_s24 + $0x9c] sm:$0xf0] }
 0x4de   : > { %3222 = vmatpush.bf16.msrb.mxu1 %v7361_v5  ;;  %v7074_v19 = vld [vmem:[%s9420_s24 + $0x160] sm:$0xf0]  ;;  %v7232_v0 = vld [vmem:[%s9420_s24 + $0x280] sm:$0xf]  ;;  %v6977_v5 = vor.u32 %v8096_v3, %v6976_v62  ;;  %v8197_v62 = vld [vmem:[%s9420_s24 + $0x3cc] sm:$0xf] }
 0x4df   : > { %12623 = vst [vmem:[#allocation37_spill] sm:$0xff] %v9817_v20  ;;  %v2295_v25 = vadd.f32 %v9819_v24, %v9817_v20  ;;  %3260 = vmatpush.bf16.msrb.mxu3 %v7365_v55  ;;  %v8160_v4 = vld [vmem:[%s9420_s24 + $0x29c] sm:$0xf0]  ;;  %v8156_v16 = vld [vmem:[%s9420_s24 + $0x284] sm:$0xf] }
 0x4e0   : > { %12624 = vst [vmem:[#allocation38_spill] sm:$0xff] %v9819_v24  ;;  %v7233_v11 = vor.u32 %v8160_v4, %v7232_v0  ;;  %v7234_v55 = vld [vmem:[%s9420_s24 + $0x2a0] sm:$0xf0]  ;;  %v8125_v4 = vld [vmem:[%s9420_s24 + $0x18c] sm:$0xf] }
 0x4e1   : > { %2296 = vadd.xlane.f32.xlu0 %v2295_v25  ;;  %v7072_v25 = vld [vmem:[%s9420_s24 + $0x140] sm:$0xf]  ;;  %v8140_v47 = vld [vmem:[%s9420_s24 + $0x204] sm:$0xf] }
 0x4e2   : > { %v7170_v48 = vld [vmem:[%s9420_s24 + $0x220] sm:$0xf0] }
 0x53c   : > { %v2288_v8 = vpop.xlane.xlu0 %2287 }
 0x53d   : > { %v2298_v9 = vmul.f32 %v2288_v8, %v9580_v1  ;;  %v7077_v8 = vor.u32 %v8116_v32, %v7074_v19  ;;  %v7237_v32 = vor.u32 %v8156_v16, %v7234_v55  ;;  %v8084_v19 = vld [vmem:[%s9420_s24 + $0x44] sm:$0xf] }
 0x53f   : > { %v9825_v26 = vsub.f32 %v9799_v39, %v2298_v9  ;;  %v9828_v27 = vsub.f32 %v9801_v40, %v2298_v9  ;;  %v8120_v9 = vld [vmem:[%s9420_s24 + $0x15c] sm:$0xf0]  ;;  %3242 = vmatpush.bf16.msrb.mxu2 %v7077_v8 }
 0x540   : > { %v6944_v8 = vld [vmem:[%s9420_s24 + $0x40] sm:$0xf] }
 0x541   : > { %v2310_v6 = vmul.f32 %v9825_v26, %v9825_v26  ;;  %v2311_v10 = vmul.f32 %v9828_v27, %v9828_v27 }
 0x543   : > { %v2318_v28 = vadd.f32 %v2311_v10, %v2310_v6  ;;  %v7328_v6 = vld [vmem:[%s9420_s24 + $0x340] sm:$0xf] }
 0x544   : > { %v2291_v12 = vpop.xlane.xlu1 %2290  ;;  %v8184_v10 = vld [vmem:[%s9420_s24 + $0x35c] sm:$0xf0] }
 0x545   : > { %v2299_v29 = vmul.f32 %v2291_v12, %v9580_v1  ;;  %2319 = vadd.xlane.f32.xlu1 %v2318_v28  ;;  %v7073_v28 = vor.u32 %v8120_v9, %v7072_v25  ;;  %v7329_v12 = vor.u32 %v8184_v10, %v7328_v6  ;;  %v6946_v25 = vld [vmem:[%s9420_s24 + $0x60] sm:$0xf0]  ;;  %v8088_v6 = vld [vmem:[%s9420_s24 + $0x5c] sm:$0xf0] }
 0x546   : > { %v6949_v9 = vor.u32 %v8084_v19, %v6946_v25  ;;  %v7200_v10 = vld [vmem:[%s9420_s24 + $0x240] sm:$0xf]  ;;  %v8129_v19 = vld [vmem:[%s9420_s24 + $0x1a4] sm:$0xf0] }
 0x547   : > { %v9836_v7 = vsub.f32 %v9805_v30, %v2299_v29  ;;  %v9839_v34 = vsub.f32 %v9807_v31, %v2299_v29  ;;  %v8180_v29 = vld [vmem:[%s9420_s24 + $0x344] sm:$0xf]  ;;  %3204 = vmatpush.bf16.msrb.mxu0 %v7073_v28  ;;  %3223 = vmatpush.bf16.msrb.mxu1 %v7329_v12  ;;  %v8152_v28 = vld [vmem:[%s9420_s24 + $0x25c] sm:$0xf0]  ;;  %v7368_v25 = vld [vmem:[%s9420_s24 + $0x388] sm:$0xf] }
 0x549   : > { %v2312_v35 = vmul.f32 %v9836_v7, %v9836_v7  ;;  %v2313_v21 = vmul.f32 %v9839_v34, %v9839_v34 }
 0x54b   : > { %v2321_v13 = vadd.f32 %v2313_v21, %v2312_v35  ;;  %v7330_v35 = vld [vmem:[%s9420_s24 + $0x360] sm:$0xf0] }
 0x54c   : > { %v2294_v14 = vpop.xlane.xlu2 %2293  ;;  %v7333_v21 = vor.u32 %v8180_v29, %v7330_v35  ;;  %v6945_v29 = vor.u32 %v8088_v6, %v6944_v8  ;;  %v7201_v35 = vor.u32 %v8152_v28, %v7200_v10  ;;  %v8193_v6 = vld [vmem:[%s9420_s24 + $0x3a4] sm:$0xf0]  ;;  %v8189_v10 = vld [vmem:[%s9420_s24 + $0x38c] sm:$0xf] }
 0x54d   : > { %v2300_v15 = vmul.f32 %v2294_v14, %v9580_v1  ;;  %2322 = vadd.xlane.f32.xlu2 %v2321_v13  ;;  %v8108_v13 = vld [vmem:[%s9420_s24 + $0x104] sm:$0xf]  ;;  %v7370_v28 = vld [vmem:[%s9420_s24 + $0x3a8] sm:$0xf0] }
 0x54e   : > { %v7042_v14 = vld [vmem:[%s9420_s24 + $0x120] sm:$0xf0]  ;;  %3261 = vmatpush.bf16.msrb.mxu3 %v7333_v21 }
 0x54f   : > { %v9847_v22 = vsub.f32 %v9811_v60, %v2300_v15  ;;  %v9850_v23 = vsub.f32 %v9813_v61, %v2300_v15  ;;  %v7040_v15 = vld [vmem:[%s9420_s24 + $0x100] sm:$0xf]  ;;  %v8148_v21 = vld [vmem:[%s9420_s24 + $0x244] sm:$0xf] }
 0x551   : > { %v2314_v36 = vmul.f32 %v9847_v22, %v9847_v22  ;;  %v2315_v18 = vmul.f32 %v9850_v23, %v9850_v23 }
 0x553   : > { %v2324_v37 = vadd.f32 %v2315_v18, %v2314_v36  ;;  %v7045_v36 = vor.u32 %v8108_v13, %v7042_v14  ;;  %v8112_v18 = vld [vmem:[%s9420_s24 + $0x11c] sm:$0xf0]  ;;  %v7202_v13 = vld [vmem:[%s9420_s24 + $0x260] sm:$0xf0] }
 0x554   : > { %v2297_v17 = vpop.xlane.xlu0 %2296 }
 0x555   : > { %v2301_v38 = vmul.f32 %v2297_v17, %v9580_v1  ;;  %2325 = vadd.xlane.f32.xlu0 %v2324_v37  ;;  %v7296_v37 = vld [vmem:[%s9420_s24 + $0x300] sm:$0xf]  ;;  %3243 = vmatpush.bf16.msrb.mxu2 %v7045_v36  ;;  %v8076_v36 = vld [vmem:[%s9420_s24 + $0x4] sm:$0xf] }
 0x556   : > { %v8176_v17 = vld [vmem:[%s9420_s24 + $0x31c] sm:$0xf0] }
 0x557   : > { %v9858_v41 = vsub.f32 %v9817_v20, %v2301_v38  ;;  %v9861_v42 = vsub.f32 %v9819_v24, %v2301_v38  ;;  %v7041_v38 = vor.u32 %v8112_v18, %v7040_v15  ;;  %v7205_v15 = vor.u32 %v8148_v21, %v7202_v13  ;;  %v6914_v18 = vld [vmem:[%s9420_s24 + $0x20] sm:$0xf0]  ;;  %v8117_v21 = vld [vmem:[%s9420_s24 + $0x14c] sm:$0xf] }
 0x558   : > { %v7082_v13 = vld [vmem:[%s9420_s24 + $0x168] sm:$0xf0] }
 0x559   : > { %v2316_v43 = vmul.f32 %v9858_v41, %v9858_v41  ;;  %v2317_v44 = vmul.f32 %v9861_v42, %v9861_v42  ;;  %3205 = vmatpush.bf16.msrb.mxu0 %v7041_v38  ;;  %3244 = vmatpush.bf16.msrb.mxu2 %v7013_v50  ;;  %v6917_v38 = vor.u32 %v8076_v36, %v6914_v18  ;;  %v8121_v36 = vld [vmem:[%s9420_s24 + $0x164] sm:$0xf0] }
 0x55a   : > { %v7173_v50 = vor.u32 %v8140_v47, %v7170_v48  ;;  %v7336_v18 = vld [vmem:[%s9420_s24 + $0x348] sm:$0xf]  ;;  %v7338_v47 = vld [vmem:[%s9420_s24 + $0x368] sm:$0xf0]  ;;  %v2284_v48 = vld [vmem:[%s12625_s22] sm:$0x3] }
 0x55b   : > { %v2327_v45 = vadd.f32 %v2317_v44, %v2316_v43  ;;  %v7297_v43 = vor.u32 %v8176_v17, %v7296_v37  ;;  %v8172_v44 = vld [vmem:[%s9420_s24 + $0x304] sm:$0xf]  ;;  %v6912_v37 = vld [vmem:[%s9420_s24] sm:$0xf] }
 0x55d   : > { %2328 = vadd.xlane.f32.xlu1 %v2327_v45  ;;  %v7298_v45 = vld [vmem:[%s9420_s24 + $0x320] sm:$0xf0]  ;;  %3224 = vmatpush.bf16.msrb.mxu1 %v7297_v43  ;;  %v8080_v43 = vld [vmem:[%s9420_s24 + $0x1c] sm:$0xf0] }
 0x55e   : > { %v7301_v46 = vor.u32 %v8172_v44, %v7298_v45  ;;  %3206 = vmatpush.bf16.msrb.mxu0 %v7009_v33  ;;  %3245 = vmatpush.bf16.msrb.mxu2 %v6981_v2  ;;  %v7168_v44 = vld [vmem:[%s9420_s24 + $0x200] sm:$0xf]  ;;  %v6913_v45 = vor.u32 %v8080_v43, %v6912_v37  ;;  %v7149_v33 = vor.u32 %v8133_v52, %v7146_v54  ;;  %v7402_v2 = vld [vmem:[%s9420_s24 + $0x3e8] sm:$0xf0]  ;;  %v8185_v37 = vld [vmem:[%s9420_s24 + $0x364] sm:$0xf0] }
 0x55f   : > { %v7405_v0 = vor.u32 %v8197_v62, %v7402_v2  ;;  %v8109_v54 = vld [vmem:[%s9420_s24 + $0x10c] sm:$0xf]  ;;  %v7304_v2 = vld [vmem:[%s9420_s24 + $0x308] sm:$0xf] }
 0x560   : > { %3262 = vmatpush.bf16.msrb.mxu3 %v7301_v46  ;;  %v8144_v46 = vld [vmem:[%s9420_s24 + $0x21c] sm:$0xf0] }
 0x561   : > { %3225 = vmatpush.bf16.msrb.mxu1 %v7265_v57  ;;  %v7169_v49 = vor.u32 %v8144_v46, %v7168_v44  ;;  %v8137_v57 = vld [vmem:[%s9420_s24 + $0x1e4] sm:$0xf0]  ;;  %v8181_v46 = vld [vmem:[%s9420_s24 + $0x34c] sm:$0xf] }
 0x562   : > { %3207 = vmatpush.bf16.msrb.mxu0 %v6977_v5  ;;  %3246 = vmatpush.bf16.msrb.mxu2 %v6949_v9  ;;  %v7145_v51 = vor.u32 %v8137_v57, %v7144_v56  ;;  %v7114_v5 = vld [vmem:[%s9420_s24 + $0x1a8] sm:$0xf0] }
 0x563   : > { %v7050_v56 = vld [vmem:[%s9420_s24 + $0x128] sm:$0xf0] }
 0x564   : > { %3263 = vmatpush.bf16.msrb.mxu3 %v7269_v53  ;;  %v7053_v58 = vor.u32 %v8109_v54, %v7050_v56 }
 0x565   : > { %3226 = vmatpush.bf16.msrb.mxu1 %v7233_v11  ;;  %v7112_v11 = vld [vmem:[%s9420_s24 + $0x188] sm:$0xf] }
 0x566   : > { %3208 = vmatpush.bf16.msrb.mxu0 %v6945_v29  ;;  %3247 = vmatpush.bf16.msrb.mxu2 %v6917_v38  ;;  %v7113_v9 = vor.u32 %v8129_v19, %v7112_v11  ;;  %v7373_v29 = vor.u32 %v8189_v10, %v7370_v28  ;;  %v9994_v11 = vperm.slane %v2284_v48, 1 }
 0x568   : > { %3264 = vmatpush.bf16.msrb.mxu3 %v7237_v32  ;;  %v7117_v32 = vor.u32 %v8125_v4, %v7114_v5  ;;  %v2285_v4 = vld [vmem:[%s918_s26] sm:$0x3]  ;;  %v9992_v5 = vperm.slane %v2284_v48, 0 }
 0x569   : > { %3227 = vmatpush.bf16.msrb.mxu1 %v7201_v35 }
 0x56a   : > { %3209 = vmatpush.bf16.msrb.mxu0 %v6913_v45  ;;  %3316 = vmatpush.bf16.msra.mxu2 %v7149_v33  ;;  %v7337_v45 = vor.u32 %v8185_v37, %v7336_v18  ;;  %v8165_v18 = vld [vmem:[%s9420_s24 + $0x2cc] sm:$0xf] }
 0x56b   : > { %v7274_v37 = vld [vmem:[%s9420_s24 + $0x2e8] sm:$0xf0] }
 0x56c   : > { %3265 = vmatpush.bf16.msrb.mxu3 %v7205_v15  ;;  %v7085_v15 = vor.u32 %v8117_v21, %v7082_v13  ;;  %v10008_v21 = vperm.slane %v2285_v4, 0 }
 0x56d   : > { %3228 = vmatpush.bf16.msrb.mxu1 %v7169_v49 }
 0x56e   : > { %3278 = vmatpush.bf16.msra.mxu0 %v7145_v51  ;;  %3317 = vmatpush.bf16.msra.mxu2 %v7117_v32  ;;  %v7306_v32 = vld [vmem:[%s9420_s24 + $0x328] sm:$0xf0] }
 0x570   : > { %3266 = vmatpush.bf16.msrb.mxu3 %v7173_v50  ;;  %v7341_v50 = vor.u32 %v8181_v46, %v7338_v47 }
 0x571   : > { %3297 = vmatpush.bf16.msra.mxu1 %v7401_v63 }
 0x572   : > { %3279 = vmatpush.bf16.msra.mxu0 %v7113_v9  ;;  %3318 = vmatpush.bf16.msra.mxu2 %v7085_v15  ;;  %v7018_v9 = vld [vmem:[%s9420_s24 + $0xe8] sm:$0xf0] }
 0x574   : > { %3335 = vmatpush.bf16.msra.mxu3 %v7405_v0  ;;  %v8173_v0 = vld [vmem:[%s9420_s24 + $0x30c] sm:$0xf] }
 0x576   : > { %3319 = vmatpush.bf16.msra.mxu2 %v7053_v58 }
 0x578   : > { %3336 = vmatpush.bf16.msra.mxu3 %v7373_v29  ;;  %v7272_v29 = vld [vmem:[%s9420_s24 + $0x2c8] sm:$0xf] }
 0x57c   : > { %3337 = vmatpush.bf16.msra.mxu3 %v7341_v50  ;;  %v7240_v50 = vld [vmem:[%s9420_s24 + $0x288] sm:$0xf] }
 0x5b8   : > { %v2320_v12 = vpop.xlane.xlu1 %2319 }
 0x5b9   : > { %v2330_v14 = vmul.f32 %v2320_v12, %v9580_v1  ;;  %v7369_v12 = vor.u32 %v8193_v6, %v7368_v25  ;;  %v7309_v25 = vor.u32 %v8173_v0, %v7306_v32  ;;  %v7016_v6 = vld [vmem:[%s9420_s24 + $0xc8] sm:$0xf] }
 0x5ba   : > { %v8089_v32 = vld [vmem:[%s9420_s24 + $0x64] sm:$0xf0] }
 0x5bb   : > { %v9927_v17 = vadd.f32 1e-06, %v2330_v14  ;;  %v7080_v14 = vld [vmem:[%s9420_s24 + $0x148] sm:$0xf]  ;;  %3298 = vmatpush.bf16.msra.mxu1 %v7369_v12  ;;  %3338 = vmatpush.bf16.msra.mxu3 %v7309_v25 }
 0x5bc   : > { %v7081_v44 = vor.u32 %v8121_v36, %v7080_v14  ;;  %v8105_v12 = vld [vmem:[%s9420_s24 + $0xe4] sm:$0xf0] }
 0x5bd   : > { %8500 = vrsqrt.f32 %v9927_v17  ;;  %vm2344_vm15 = vweird.f32 %v9927_v17  ;;  %v7017_v15 = vor.u32 %v8105_v12, %v7016_v6  ;;  %v8153_v6 = vld [vmem:[%s9420_s24 + $0x264] sm:$0xf0] }
 0x5be   : > { %3280 = vmatpush.bf16.msra.mxu0 %v7081_v44  ;;  %v6986_v44 = vld [vmem:[%s9420_s24 + $0xa8] sm:$0xf0] }
 0x5bf   : > { %3299 = vmatpush.bf16.msra.mxu1 %v7337_v45  ;;  %v6984_v45 = vld [vmem:[%s9420_s24 + $0x88] sm:$0xf] }
 0x5c0   : > { %v2323_v53 = vpop.xlane.xlu2 %2322 }
 0x5c1   : > { %v2331_v3 = vmul.f32 %v2323_v53, %v9580_v1  ;;  %v8113_v53 = vld [vmem:[%s9420_s24 + $0x124] sm:$0xf0] }
 0x5c2   : > { %v7049_v62 = vor.u32 %v8113_v53, %v7048_v59  ;;  %v8161_v59 = vld [vmem:[%s9420_s24 + $0x2a4] sm:$0xf0] }
 0x5c3   : > { %v9947_v16 = vpop.eup %8500  ;;  %v9949_v55 = vadd.f32 1e-06, %v2331_v3  ;;  %v8177_v3 = vld [vmem:[%s9420_s24 + $0x324] sm:$0xf0] }
 0x5c4   : > { %v2339_v8 = vmul.f32 %v9947_v16, %v9927_v17  ;;  %vm2345_vm14 = vweird.f32 %v9947_v16  ;;  %v7305_v17 = vor.u32 %v8177_v3, %v7304_v2  ;;  %3281 = vmatpush.bf16.msra.mxu0 %v7049_v62  ;;  %v7242_v62 = vld [vmem:[%s9420_s24 + $0x2a8] sm:$0xf0]  ;;  %v10034_v3 = vperm.slane %v2285_v4, 1 }
 0x5c5   : > { %8502 = vrsqrt.f32 %v9949_v55  ;;  %vm2346_vm0 = vmor %vm2344_vm15, %vm2345_vm14  ;;  %vm2354_vm2 = vweird.f32 %v9949_v55  ;;  %v6954_v2 = vld [vmem:[%s9420_s24 + $0x68] sm:$0xf0] }
 0x5c6   : > { %v2340_v35 = vmul.f32 %v9947_v16, %v2339_v8  ;;  %v8101_v8 = vld [vmem:[%s9420_s24 + $0xcc] sm:$0xf]  ;;  %3300 = vmatpush.bf16.msra.mxu1 %v7305_v17  ;;  %v6952_v17 = vld [vmem:[%s9420_s24 + $0x48] sm:$0xf] }
 0x5c7   : > { %v7021_v28 = vor.u32 %v8101_v8, %v7018_v9  ;;  %v6953_v8 = vor.u32 %v8089_v32, %v6952_v17  ;;  %v7208_v9 = vld [vmem:[%s9420_s24 + $0x248] sm:$0xf]  ;;  %v8138_v32 = vld [vmem:[%s9420_s24 + $0x1ec] sm:$0xf0] }
 0x5c8   : > { %v2341_v38 = vmul.f32 0.5, %v2340_v35  ;;  %v2326_v43 = vpop.xlane.xlu0 %2325  ;;  %v8169_v35 = vld [vmem:[%s9420_s24 + $0x2e4] sm:$0xf0]  ;;  %3282 = vmatpush.bf16.msra.mxu0 %v7017_v15 }
 0x5c9   : > { %v2332_v49 = vmul.f32 %v2326_v43, %v9580_v1  ;;  %v7273_v36 = vor.u32 %v8169_v35, %v7272_v29  ;;  %3320 = vmatpush.bf16.msra.mxu2 %v7021_v28  ;;  %v8093_v43 = vld [vmem:[%s9420_s24 + $0x8c] sm:$0xf]  ;;  %v7209_v35 = vor.u32 %v8153_v6, %v7208_v9  ;;  %v8198_v9 = vld [vmem:[%s9420_s24 + $0x3d4] sm:$0xf] }
 0x5ca   : > { %v2342_v52 = vsub.f32 1.5, %v2341_v38  ;;  %v7277_v38 = vor.u32 %v8165_v18, %v7274_v37  ;;  %v6989_v48 = vor.u32 %v8093_v43, %v6986_v44  ;;  %v6920_v18 = vld [vmem:[%s9420_s24 + $0x8] sm:$0xf]  ;;  %v7410_v6 = vld [vmem:[%s9420_s24 + $0x3f0] sm:$0xf0] }
 0x5cb   : > { %v9974_v33 = vpop.eup %8502  ;;  %v9976_v57 = vadd.f32 1e-06, %v2332_v49  ;;  %v8097_v49 = vld [vmem:[%s9420_s24 + $0xa4] sm:$0xf0]  ;;  %3301 = vmatpush.bf16.msra.mxu1 %v7273_v36 }
 0x5cc   : > { %v2343_v51 = vmul.f32 %v9947_v16, %v2342_v52  ;;  %v2349_v63 = vmul.f32 %v9974_v33, %v9949_v55  ;;  %vm2355_vm1 = vweird.f32 %v9974_v33  ;;  %v6985_v58 = vor.u32 %v8097_v49, %v6984_v45  ;;  %3339 = vmatpush.bf16.msra.mxu3 %v7277_v38  ;;  %v8081_v37 = vld [vmem:[%s9420_s24 + $0x24] sm:$0xf0] }
 0x5cd   : > { %8504 = vrsqrt.f32 %v9976_v57  ;;  %vm2356_vm3 = vmor %vm2354_vm2, %vm2355_vm1  ;;  %3321 = vmatpush.bf16.msra.mxu2 %v6989_v48  ;;  %v8145_v43 = vld [vmem:[%s9420_s24 + $0x224] sm:$0xf0]  ;;  %v6921_v45 = vor.u32 %v8081_v37, %v6920_v18  ;;  %vm2364_vm5 = vweird.f32 %v9976_v57  ;;  %v8190_v18 = vld [vmem:[%s9420_s24 + $0x394] sm:$0xf] }
 0x5ce   : > { %v2350_v19 = vmul.f32 %v9974_v33, %v2349_v63  ;;  %v2347_v10 = vsel %vm2346_vm0, %v9947_v16, %v2343_v51  ;;  %v7241_v63 = vor.u32 %v8161_v59, %v7240_v50  ;;  %3283 = vmatpush.bf16.msra.mxu0 %v6985_v58  ;;  %v7378_v37 = vld [vmem:[%s9420_s24 + $0x3b0] sm:$0xf0] }
 0x5cf   : > { %v2378_v46 = vmul.f32 %v2347_v10, %v9825_v26  ;;  %v2379_v54 = vmul.f32 %v2347_v10, %v9828_v27  ;;  %v8157_v26 = vld [vmem:[%s9420_s24 + $0x28c] sm:$0xf] }
 0x5d0   : > { %v2351_v13 = vmul.f32 0.5, %v2350_v19  ;;  %v2329_v14 = vpop.xlane.xlu1 %2328  ;;  %v8085_v27 = vld [vmem:[%s9420_s24 + $0x4c] sm:$0xf]  ;;  %v7245_v55 = vor.u32 %v8157_v26, %v7242_v62  ;;  %3302 = vmatpush.bf16.msra.mxu1 %v7241_v63 }
 0x5d1   : > { %v2333_v16 = vmul.f32 %v2329_v14, %v9580_v1  ;;  %v6957_v0 = vor.u32 %v8085_v27, %v6954_v2  ;;  %v2391_v19 = vmul.f32 %v9992_v5, %v2378_v46  ;;  %v8149_v10 = vld [vmem:[%s9420_s24 + $0x24c] sm:$0xf]  ;;  %v2392_v28 = vmul.f32 %v9994_v11, %v2379_v54  ;;  %v8134_v2 = vld [vmem:[%s9420_s24 + $0x1d4] sm:$0xf] }
 0x5d2   : > { %v2352_v47 = vsub.f32 1.5, %v2351_v13  ;;  %v8077_v13 = vld [vmem:[%s9420_s24 + $0xc] sm:$0xf]  ;;  %3340 = vmatpush.bf16.msra.mxu3 %v7245_v55  ;;  %3284 = vmatpush.bf16.msra.mxu0 %v6953_v8  ;;  %v7154_v55 = vld [vmem:[%s9420_s24 + $0x1f0] sm:$0xf0] }
 0x5d3   : > { %v10020_v52 = vpop.eup %8504  ;;  %v10023_v56 = vadd.f32 1e-06, %v2333_v16  ;;  %v6922_v14 = vld [vmem:[%s9420_s24 + $0x28] sm:$0xf0]  ;;  %3322 = vmatpush.bf16.msra.mxu2 %v6957_v0  ;;  %v2404_v49 = vadd.f32 %v10008_v21, %v2391_v19  ;;  %v2405_v50 = vadd.f32 %v10034_v3, %v2392_v28  ;;  %v7152_v0 = vld [vmem:[%s9420_s24 + $0x1d0] sm:$0xf]  ;;  %v7157_v17 = vor.u32 %v8134_v2, %v7154_v55 }
 0x5d4   : > { %v2353_v53 = vmul.f32 %v9974_v33, %v2352_v47  ;;  %v2359_v51 = vmul.f32 %v10020_v52, %v9976_v57  ;;  %v6925_v38 = vor.u32 %v8077_v13, %v6922_v14  ;;  %vm2365_vm4 = vweird.f32 %v10020_v52  ;;  %v8141_v46 = vld [vmem:[%s9420_s24 + $0x20c] sm:$0xf]  ;;  %3303 = vmatpush.bf16.msra.mxu1 %v7209_v35  ;;  %v7408_v19 = vld [vmem:[%s9420_s24 + $0x3d0] sm:$0xf]  ;;  %v7122_v35 = vld [vmem:[%s9420_s24 + $0x1b0] sm:$0xf0] }
 0x5d5   : > { %8506 = vrsqrt.f32 %v10023_v56  ;;  %v7178_v47 = vld [vmem:[%s9420_s24 + $0x228] sm:$0xf0]  ;;  %vm2366_vm6 = vmor %vm2364_vm5, %vm2365_vm4  ;;  %vm2374_vm8 = vweird.f32 %v10023_v56  ;;  %v7280_v14 = vld [vmem:[%s9420_s24 + $0x2d0] sm:$0xf] }
 0x5d6   : > { %v2357_v25 = vsel %vm2356_vm3, %v9974_v33, %v2353_v53  ;;  %v2360_v4 = vmul.f32 %v10020_v52, %v2359_v51  ;;  %v7210_v33 = vld [vmem:[%s9420_s24 + $0x268] sm:$0xf0]  ;;  %v7181_v62 = vor.u32 %v8141_v46, %v7178_v47  ;;  %3285 = vmatpush.bf16.msra.mxu0 %v6921_v45 }
 0x5d7   : > { %v2380_v12 = vmul.f32 %v2357_v25, %v9836_v7  ;;  %v2381_v29 = vmul.f32 %v2357_v25, %v9839_v34  ;;  %v7213_v36 = vor.u32 %v8149_v10, %v7210_v33  ;;  %v7176_v34 = vld [vmem:[%s9420_s24 + $0x208] sm:$0xf]  ;;  %3323 = vmatpush.bf16.msra.mxu2 %v6925_v38  ;;  %v7120_v33 = vld [vmem:[%s9420_s24 + $0x190] sm:$0xf]  ;;  %v7381_v38 = vor.u32 %v8190_v18, %v7378_v37 }
 0x5d8   : > { %v2361_v15 = vmul.f32 0.5, %v2360_v4  ;;  %v7177_v63 = vor.u32 %v8145_v43, %v7176_v34  ;;  %v7153_v4 = vor.u32 %v8138_v32, %v7152_v0  ;;  %v8118_v34 = vld [vmem:[%s9420_s24 + $0x154] sm:$0xf] }
 0x5d9   : > { %v2393_v16 = vmul.f32 %v9992_v5, %v2380_v12  ;;  %v2394_v7 = vmul.f32 %v9994_v11, %v2381_v29  ;;  %3341 = vmatpush.bf16.msra.mxu3 %v7213_v36  ;;  %v7413_v12 = vor.u32 %v8198_v9, %v7410_v6  ;;  %v8126_v29 = vld [vmem:[%s9420_s24 + $0x194] sm:$0xf]  ;;  %v8194_v36 = vld [vmem:[%s9420_s24 + $0x3ac] sm:$0xf0] }
 0x5da   : > { %v2362_v44 = vsub.f32 1.5, %v2361_v15  ;;  %3304 = vmatpush.bf16.msra.mxu1 %v7177_v63  ;;  %v7090_v43 = vld [vmem:[%s9420_s24 + $0x170] sm:$0xf0] }
 0x5db   : > { %v10062_v48 = vpop.eup %8506  ;;  %v2406_v54 = vadd.f32 %v10008_v21, %v2393_v16  ;;  %v2407_v58 = vadd.f32 %v10034_v3, %v2394_v7  ;;  %v7093_v47 = vor.u32 %v8118_v34, %v7090_v43  ;;  %v8182_v63 = vld [vmem:[%s9420_s24 + $0x354] sm:$0xf] }
 0x5dc   : > { %v2363_v59 = vmul.f32 %v10020_v52, %v2362_v44  ;;  %v2369_v26 = vmul.f32 %v10062_v48, %v10023_v56  ;;  %vm2375_vm7 = vweird.f32 %v10062_v48  ;;  %v7376_v56 = vld [vmem:[%s9420_s24 + $0x390] sm:$0xf]  ;;  %v7058_v0 = vld [vmem:[%s9420_s24 + $0x130] sm:$0xf0] }
 0x5dd   : > { %v10072_v53 = vpack.c.bf16 %v2406_v54, %v2404_v49  ;;  %v10074_v51 = vpack.c.bf16 %v2407_v58, %v2405_v50  ;;  %3342 = vmatpush.bf16.msra.mxu3 %v7181_v62  ;;  %vm10101_vm9 = vmor %vm2374_vm8, %vm2375_vm7  ;;  %v7377_v7 = vor.u32 %v8194_v36, %v7376_v56  ;;  %v7088_v44 = vld [vmem:[%s9420_s24 + $0x150] sm:$0xf]  ;;  %v7346_v62 = vld [vmem:[%s9420_s24 + $0x370] sm:$0xf0] }
 0x5de   : > { %v2367_v27 = vsel %vm2366_vm6, %v10020_v52, %v2363_v59  ;;  %v2370_v57 = vmul.f32 %v10062_v48, %v2369_v26  ;;  %v8202_v52 = vld [vmem:[%s9420_s24 + $0x3ec] sm:$0xf0]  ;;  %v7349_v55 = vor.u32 %v8182_v63, %v7346_v62  ;;  %v7314_v9 = vld [vmem:[%s9420_s24 + $0x330] sm:$0xf0] }
 0x5df   : > { %3210 = vmatmul.bf16.vlgmr.msrb.gmra.mxu0 %v10072_v53  ;;  %3229 = vmatmul.bf16.vlgmr.msrb.gmra.mxu1 %v10074_v51  ;;  %v7409_v8 = vor.u32 %v8202_v52, %v7408_v19  ;;  %v2382_v10 = vmul.f32 %v2367_v27, %v9847_v22  ;;  %v2383_v28 = vmul.f32 %v2367_v27, %v9850_v23  ;;  %v8130_v23 = vld [vmem:[%s9420_s24 + $0x1ac] sm:$0xf0]  ;;  %v8110_v27 = vld [vmem:[%s9420_s24 + $0x114] sm:$0xf] }
 0x5e0   : > { %v2371_v25 = vmul.f32 0.5, %v2370_v57  ;;  %3248 = vmatmul.bf16.vlgmr.msrb.gmra.mxu2 %v10072_v53  ;;  %3267 = vmatmul.bf16.vlgmr.msrb.gmra.mxu3 %v10074_v51  ;;  %v7125_v22 = vor.u32 %v8126_v29, %v7122_v35  ;;  %v7121_v15 = vor.u32 %v8130_v23, %v7120_v33  ;;  %v8122_v49 = vld [vmem:[%s9420_s24 + $0x16c] sm:$0xf0]  ;;  %v8102_v35 = vld [vmem:[%s9420_s24 + $0xd4] sm:$0xf] }
 0x5e1   : > { %3392 = vmatpush.bf16.msrb.mxu2 %v7157_v17  ;;  %3354 = vmatpush.bf16.msrb.mxu0 %v7153_v4  ;;  %v2395_v45 = vmul.f32 %v9992_v5, %v2382_v10  ;;  %v2396_v46 = vmul.f32 %v9994_v11, %v2383_v28  ;;  %v7344_v50 = vld [vmem:[%s9420_s24 + $0x350] sm:$0xf]  ;;  %v7089_v59 = vor.u32 %v8122_v49, %v7088_v44  ;;  %v8166_v56 = vld [vmem:[%s9420_s24 + $0x2d4] sm:$0xf] }
 0x5e2   : > { %v2372_v13 = vsub.f32 1.5, %v2371_v25  ;;  %3373 = vmatpush.bf16.msrb.mxu1 %v7409_v8  ;;  %3411 = vmatpush.bf16.msrb.mxu3 %v7413_v12  ;;  %v8186_v54 = vld [vmem:[%s9420_s24 + $0x36c] sm:$0xf0]  ;;  %v8174_v8 = vld [vmem:[%s9420_s24 + $0x314] sm:$0xf] }
 0x5e3   : > { %v7345_v26 = vor.u32 %v8186_v54, %v7344_v50  ;;  %v8114_v17 = vld [vmem:[%s9420_s24 + $0x12c] sm:$0xf0]  ;;  %v2408_v25 = vadd.f32 %v10008_v21, %v2395_v45  ;;  %v2409_v6 = vadd.f32 %v10034_v3, %v2396_v46  ;;  %v7317_v29 = vor.u32 %v8174_v8, %v7314_v9  ;;  %v8094_v36 = vld [vmem:[%s9420_s24 + $0x94] sm:$0xf] }
 0x5e4   : > { %v2373_v16 = vmul.f32 %v10062_v48, %v2372_v13  ;;  %v7312_v52 = vld [vmem:[%s9420_s24 + $0x310] sm:$0xf]  ;;  %v8158_v46 = vld [vmem:[%s9420_s24 + $0x294] sm:$0xf] }
 0x5e5   : > { %3393 = vmatpush.bf16.msrb.mxu2 %v7125_v22  ;;  %3355 = vmatpush.bf16.msrb.mxu0 %v7121_v15  ;;  %v8178_v4 = vld [vmem:[%s9420_s24 + $0x32c] sm:$0xf0]  ;;  %v7282_v15 = vld [vmem:[%s9420_s24 + $0x2f0] sm:$0xf0] }
 0x5e6   : > { %v2377_v58 = vsel %vm10101_vm9, %v10062_v48, %v2373_v16  ;;  %3374 = vmatpush.bf16.msrb.mxu1 %v7377_v7  ;;  %3412 = vmatpush.bf16.msrb.mxu3 %v7381_v38  ;;  %v7056_v48 = vld [vmem:[%s9420_s24 + $0x110] sm:$0xf]  ;;  %v7313_v12 = vor.u32 %v8178_v4, %v7312_v52  ;;  %v7285_v37 = vor.u32 %v8166_v56, %v7282_v15  ;;  %v6994_v16 = vld [vmem:[%s9420_s24 + $0xb0] sm:$0xf0]  ;;  %v8127_v56 = vld [vmem:[%s9420_s24 + $0x19c] sm:$0xf] }
 0x5e7   : > { %v2384_v57 = vmul.f32 %v2377_v58, %v9858_v41  ;;  %v2385_v2 = vmul.f32 %v2377_v58, %v9861_v42  ;;  %v7061_v41 = vor.u32 %v8110_v27, %v7058_v0  ;;  %v7057_v42 = vor.u32 %v8114_v17, %v7056_v48  ;;  %v7024_v33 = vld [vmem:[%s9420_s24 + $0xd0] sm:$0xf]  ;;  %v8086_v49 = vld [vmem:[%s9420_s24 + $0x54] sm:$0xf] }
 0x5e8   : > { %v8106_v13 = vld [vmem:[%s9420_s24 + $0xec] sm:$0xf0]  ;;  %v6997_v34 = vor.u32 %v8094_v36, %v6994_v16  ;;  %v6962_v50 = vld [vmem:[%s9420_s24 + $0x70] sm:$0xf0]  ;;  %v7130_v36 = vld [vmem:[%s9420_s24 + $0x1b8] sm:$0xf0] }
 0x5e9   : > { %v2397_v32 = vmul.f32 %v9992_v5, %v2384_v57  ;;  %v2398_v19 = vmul.f32 %v9994_v11, %v2385_v2  ;;  %3394 = vmatpush.bf16.msrb.mxu2 %v7093_v47  ;;  %3356 = vmatpush.bf16.msrb.mxu0 %v7089_v59  ;;  %v8170_v22 = vld [vmem:[%s9420_s24 + $0x2ec] sm:$0xf0]  ;;  %v7025_v23 = vor.u32 %v8106_v13, %v7024_v33  ;;  %v7250_v47 = vld [vmem:[%s9420_s24 + $0x2b0] sm:$0xf0]  ;;  %v7416_v33 = vld [vmem:[%s9420_s24 + $0x3d8] sm:$0xf] }
 0x5ea   : > { %3375 = vmatpush.bf16.msrb.mxu1 %v7345_v26  ;;  %3413 = vmatpush.bf16.msrb.mxu3 %v7349_v55  ;;  %v7281_v18 = vor.u32 %v8170_v22, %v7280_v14  ;;  %v6992_v7 = vld [vmem:[%s9420_s24 + $0x90] sm:$0xf]  ;;  %v7253_v26 = vor.u32 %v8158_v46, %v7250_v47  ;;  %v6965_v27 = vor.u32 %v8086_v49, %v6962_v50  ;;  %v8150_v2 = vld [vmem:[%s9420_s24 + $0x254] sm:$0xf]  ;;  %v8199_v22 = vld [vmem:[%s9420_s24 + $0x3dc] sm:$0xf] }
 0x5eb   : > { %v2410_v10 = vadd.f32 %v10008_v21, %v2397_v32  ;;  %v2411_v5 = vadd.f32 %v10034_v3, %v2398_v19  ;;  %v7026_v21 = vld [vmem:[%s9420_s24 + $0xf0] sm:$0xf0]  ;;  %v8098_v38 = vld [vmem:[%s9420_s24 + $0xac] sm:$0xf0]  ;;  %v7133_v16 = vor.u32 %v8127_v56, %v7130_v36  ;;  %v8119_v46 = vld [vmem:[%s9420_s24 + $0x15c] sm:$0xf] }
 0x5ec   : > { %v7029_v3 = vor.u32 %v8102_v35, %v7026_v21  ;;  %v6993_v43 = vor.u32 %v8098_v38, %v6992_v7  ;;  %v7248_v44 = vld [vmem:[%s9420_s24 + $0x290] sm:$0xf]  ;;  %v7218_v55 = vld [vmem:[%s9420_s24 + $0x270] sm:$0xf0]  ;;  %v8139_v21 = vld [vmem:[%s9420_s24 + $0x1f4] sm:$0xf0] }
 0x5ed   : > { %v10140_v11 = vpack.c.bf16 %v2410_v10, %v2408_v25  ;;  %v10142_v28 = vpack.c.bf16 %v2411_v5, %v2409_v6  ;;  %3395 = vmatpush.bf16.msrb.mxu2 %v7061_v41  ;;  %3357 = vmatpush.bf16.msrb.mxu0 %v7057_v42  ;;  %v8162_v45 = vld [vmem:[%s9420_s24 + $0x2ac] sm:$0xf0]  ;;  %v8078_v0 = vld [vmem:[%s9420_s24 + $0x14] sm:$0xf]  ;;  %v7221_v52 = vor.u32 %v8150_v2, %v7218_v55  ;;  %v8135_v5 = vld [vmem:[%s9420_s24 + $0x1dc] sm:$0xf] }
 0x5ee   : > { %3376 = vmatpush.bf16.msrb.mxu1 %v7313_v12  ;;  %3414 = vmatpush.bf16.msrb.mxu3 %v7317_v29  ;;  %v6960_v54 = vld [vmem:[%s9420_s24 + $0x50] sm:$0xf]  ;;  %v7249_v59 = vor.u32 %v8162_v45, %v7248_v44  ;;  %v6930_v48 = vld [vmem:[%s9420_s24 + $0x30] sm:$0xf0]  ;;  %v7162_v12 = vld [vmem:[%s9420_s24 + $0x1f8] sm:$0xf0] }
 0x5ef   : > { %3215 = vmatmul.bf16.gmra.mxu0 %v10140_v11  ;;  %3234 = vmatmul.bf16.gmra.mxu1 %v10142_v28  ;;  %v8090_v58 = vld [vmem:[%s9420_s24 + $0x6c] sm:$0xf0]  ;;  %v6933_v41 = vor.u32 %v8078_v0, %v6930_v48  ;;  %v8142_v8 = vld [vmem:[%s9420_s24 + $0x214] sm:$0xf]  ;;  %v7160_v29 = vld [vmem:[%s9420_s24 + $0x1d8] sm:$0xf]  ;;  %v7165_v35 = vor.u32 %v8135_v5, %v7162_v12 }
 0x5f0   : > { %3253 = vmatmul.bf16.gmra.mxu2 %v10140_v11  ;;  %3272 = vmatmul.bf16.gmra.mxu3 %v10142_v28  ;;  %v7216_v63 = vld [vmem:[%s9420_s24 + $0x250] sm:$0xf]  ;;  %v6961_v57 = vor.u32 %v8090_v58, %v6960_v54  ;;  %v7186_v9 = vld [vmem:[%s9420_s24 + $0x230] sm:$0xf0]  ;;  %v7161_v13 = vor.u32 %v8139_v21, %v7160_v29  ;;  %v7384_v38 = vld [vmem:[%s9420_s24 + $0x398] sm:$0xf] }
 0x5f1   : > { %3396 = vmatpush.bf16.msrb.mxu2 %v7029_v3  ;;  %3358 = vmatpush.bf16.msrb.mxu0 %v7025_v23  ;;  %v8154_v62 = vld [vmem:[%s9420_s24 + $0x26c] sm:$0xf0]  ;;  %v7189_v10 = vor.u32 %v8142_v8, %v7186_v9  ;;  %v8203_v3 = vld [vmem:[%s9420_s24 + $0x3f4] sm:$0xf0]  ;;  %v7418_v23 = vld [vmem:[%s9420_s24 + $0x3f8] sm:$0xf0] }
 0x5f2   : > { %3377 = vmatpush.bf16.msrb.mxu1 %v7281_v18  ;;  %3415 = vmatpush.bf16.msrb.mxu3 %v7285_v37  ;;  %v6928_v17 = vld [vmem:[%s9420_s24 + $0x10] sm:$0xf]  ;;  %v7217_v19 = vor.u32 %v8154_v62, %v7216_v63  ;;  %v7417_v14 = vor.u32 %v8203_v3, %v7416_v33  ;;  %v7421_v15 = vor.u32 %v8199_v22, %v7418_v23  ;;  %v7128_v18 = vld [vmem:[%s9420_s24 + $0x198] sm:$0xf]  ;;  %v7386_v45 = vld [vmem:[%s9420_s24 + $0x3b8] sm:$0xf0] }
 0x5f3   : > { %v8082_v32 = vld [vmem:[%s9420_s24 + $0x2c] sm:$0xf0]  ;;  %v8131_v37 = vld [vmem:[%s9420_s24 + $0x1b4] sm:$0xf0]  ;;  %v7098_v47 = vld [vmem:[%s9420_s24 + $0x178] sm:$0xf0] }
 0x5f4   : > { %v7184_v25 = vld [vmem:[%s9420_s24 + $0x210] sm:$0xf]  ;;  %v6929_v42 = vor.u32 %v8082_v32, %v6928_v17  ;;  %v7129_v7 = vor.u32 %v8131_v37, %v7128_v18  ;;  %v7096_v50 = vld [vmem:[%s9420_s24 + $0x158] sm:$0xf]  ;;  %v7354_v63 = vld [vmem:[%s9420_s24 + $0x378] sm:$0xf0]  ;;  %v7101_v62 = vor.u32 %v8119_v46, %v7098_v47 }
 0x5f5   : > { %3397 = vmatpush.bf16.msrb.mxu2 %v6997_v34  ;;  %3359 = vmatpush.bf16.msrb.mxu0 %v6993_v43  ;;  %v8146_v4 = vld [vmem:[%s9420_s24 + $0x22c] sm:$0xf0]  ;;  %v8195_v34 = vld [vmem:[%s9420_s24 + $0x3b4] sm:$0xf0]  ;;  %v8191_v43 = vld [vmem:[%s9420_s24 + $0x39c] sm:$0xf] }
 0x5f6   : > { %3378 = vmatpush.bf16.msrb.mxu1 %v7249_v59  ;;  %3416 = vmatpush.bf16.msrb.mxu3 %v7253_v26  ;;  %v7185_v6 = vor.u32 %v8146_v4, %v7184_v25  ;;  %v7385_v44 = vor.u32 %v8195_v34, %v7384_v38  ;;  %v7389_v49 = vor.u32 %v8191_v43, %v7386_v45  ;;  %v8123_v54 = vld [vmem:[%s9420_s24 + $0x174] sm:$0xf0]  ;;  %v8183_v26 = vld [vmem:[%s9420_s24 + $0x35c] sm:$0xf] }
 0x5f7   : > { %v7352_v58 = vld [vmem:[%s9420_s24 + $0x358] sm:$0xf]  ;;  %v7357_v55 = vor.u32 %v8183_v26, %v7354_v63  ;;  %v7066_v0 = vld [vmem:[%s9420_s24 + $0x138] sm:$0xf0] }
 0x5f8   : > { %v8187_v59 = vld [vmem:[%s9420_s24 + $0x374] sm:$0xf0]  ;;  %v8103_v9 = vld [vmem:[%s9420_s24 + $0xdc] sm:$0xf] }
 0x5f9   : > { %3398 = vmatpush.bf16.msrb.mxu2 %v6965_v27  ;;  %3360 = vmatpush.bf16.msrb.mxu0 %v6961_v57  ;;  %v7097_v27 = vor.u32 %v8123_v54, %v7096_v50  ;;  %v8111_v57 = vld [vmem:[%s9420_s24 + $0x11c] sm:$0xf]  ;;  %v7353_v2 = vor.u32 %v8187_v59, %v7352_v58  ;;  %v7064_v48 = vld [vmem:[%s9420_s24 + $0x118] sm:$0xf] }
 0x5fa   : > { %3379 = vmatpush.bf16.msrb.mxu1 %v7217_v19  ;;  %3417 = vmatpush.bf16.msrb.mxu3 %v7221_v52  ;;  %v8115_v17 = vld [vmem:[%s9420_s24 + $0x134] sm:$0xf0]  ;;  %v7069_v19 = vor.u32 %v8111_v57, %v7066_v0  ;;  %v8167_v33 = vld [vmem:[%s9420_s24 + $0x2dc] sm:$0xf] }
 0x5fb   : > { %v7320_v32 = vld [vmem:[%s9420_s24 + $0x318] sm:$0xf]  ;;  %v7065_v52 = vor.u32 %v8115_v17, %v7064_v48  ;;  %v7290_v3 = vld [vmem:[%s9420_s24 + $0x2f8] sm:$0xf0] }
 0x5fc   : > { %v8179_v25 = vld [vmem:[%s9420_s24 + $0x334] sm:$0xf0]  ;;  %v7293_v22 = vor.u32 %v8167_v33, %v7290_v3  ;;  %v7002_v23 = vld [vmem:[%s9420_s24 + $0xb8] sm:$0xf0] }
 0x5fd   : > { %3399 = vmatpush.bf16.msrb.mxu2 %v6933_v41  ;;  %3361 = vmatpush.bf16.msrb.mxu0 %v6929_v42  ;;  %v8175_v41 = vld [vmem:[%s9420_s24 + $0x31c] sm:$0xf]  ;;  %v7321_v4 = vor.u32 %v8179_v25, %v7320_v32  ;;  %v8107_v12 = vld [vmem:[%s9420_s24 + $0xf4] sm:$0xf0] }
 0x5fe   : > { %3380 = vmatpush.bf16.msrb.mxu1 %v7185_v6  ;;  %3418 = vmatpush.bf16.msrb.mxu3 %v7189_v10  ;;  %v7322_v42 = vld [vmem:[%s9420_s24 + $0x338] sm:$0xf0]  ;;  %v7032_v10 = vld [vmem:[%s9420_s24 + $0xd8] sm:$0xf] }
 0x5ff   : > { %3286 = vmatmul.bf16.vlgmr.msra.gmra.mxu0 %v10072_v53  ;;  %3305 = vmatmul.bf16.vlgmr.msra.gmra.mxu1 %v10074_v51  ;;  %v7325_v8 = vor.u32 %v8175_v41, %v7322_v42  ;;  %v7034_v6 = vld [vmem:[%s9420_s24 + $0xf8] sm:$0xf0]  ;;  %v7288_v29 = vld [vmem:[%s9420_s24 + $0x2d8] sm:$0xf]  ;;  %v7033_v21 = vor.u32 %v8107_v12, %v7032_v10  ;;  %v10269_v42 = vld [vmem:[%s9422_s3] sm:$0xff] }
 0x600   : > { %3324 = vmatmul.bf16.vlgmr.msra.gmra.mxu2 %v10072_v53  ;;  %3343 = vmatmul.bf16.vlgmr.msra.gmra.mxu3 %v10074_v51  ;;  %v7037_v5 = vor.u32 %v8103_v9, %v7034_v6  ;;  %v7000_v56 = vld [vmem:[%s9420_s24 + $0x98] sm:$0xf]  ;;  %v7258_v38 = vld [vmem:[%s9420_s24 + $0x2b8] sm:$0xf0] }
 0x601   : > { %3468 = vmatpush.bf16.msra.mxu2 %v7165_v35  ;;  %3430 = vmatpush.bf16.msra.mxu0 %v7161_v13  ;;  %v8171_v35 = vld [vmem:[%s9420_s24 + $0x2f4] sm:$0xf0]  ;;  %v8095_v13 = vld [vmem:[%s9420_s24 + $0x9c] sm:$0xf] }
 0x602   : > { %3449 = vmatpush.bf16.msra.mxu1 %v7417_v14  ;;  %3487 = vmatpush.bf16.msra.mxu3 %v7421_v15  ;;  %v7289_v14 = vor.u32 %v8171_v35, %v7288_v29  ;;  %v8099_v15 = vld [vmem:[%s9420_s24 + $0xb4] sm:$0xf0]  ;;  %v7005_v36 = vor.u32 %v8095_v13, %v7002_v23  ;;  %v8087_v34 = vld [vmem:[%s9420_s24 + $0x5c] sm:$0xf] }
 0x603   : > { %v7001_v18 = vor.u32 %v8099_v15, %v7000_v56  ;;  %v7256_v37 = vld [vmem:[%s9420_s24 + $0x298] sm:$0xf]  ;;  %v6970_v43 = vld [vmem:[%s9420_s24 + $0x78] sm:$0xf0] }
 0x604   : > { %v8091_v45 = vld [vmem:[%s9420_s24 + $0x74] sm:$0xf0]  ;;  %v6973_v54 = vor.u32 %v8087_v34, %v6970_v43  ;;  %v8151_v59 = vld [vmem:[%s9420_s24 + $0x25c] sm:$0xf] }
 0x605   : > { %3469 = vmatpush.bf16.msra.mxu2 %v7133_v16  ;;  %3431 = vmatpush.bf16.msra.mxu0 %v7129_v7  ;;  %v8163_v16 = vld [vmem:[%s9420_s24 + $0x2b4] sm:$0xf0]  ;;  %v8159_v7 = vld [vmem:[%s9420_s24 + $0x29c] sm:$0xf] }
 0x606   : > { %3450 = vmatpush.bf16.msra.mxu1 %v7385_v44  ;;  %3488 = vmatpush.bf16.msra.mxu3 %v7389_v49  ;;  %v6968_v44 = vld [vmem:[%s9420_s24 + $0x58] sm:$0xf]  ;;  %v7257_v46 = vor.u32 %v8163_v16, %v7256_v37  ;;  %v7261_v47 = vor.u32 %v8159_v7, %v7258_v38  ;;  %v7226_v26 = vld [vmem:[%s9420_s24 + $0x278] sm:$0xf0] }
 0x607   : > { %v7224_v49 = vld [vmem:[%s9420_s24 + $0x258] sm:$0xf]  ;;  %v6969_v58 = vor.u32 %v8091_v45, %v6968_v44  ;;  %v8079_v63 = vld [vmem:[%s9420_s24 + $0x1c] sm:$0xf] }
 0x608   : > { %v8155_v50 = vld [vmem:[%s9420_s24 + $0x274] sm:$0xf0] }
 0x609   : > { %3470 = vmatpush.bf16.msra.mxu2 %v7101_v62  ;;  %3432 = vmatpush.bf16.msra.mxu0 %v7097_v27  ;;  %v6938_v62 = vld [vmem:[%s9420_s24 + $0x38] sm:$0xf0]  ;;  %v6936_v27 = vld [vmem:[%s9420_s24 + $0x18] sm:$0xf] }
 0x60a   : > { %3451 = vmatpush.bf16.msra.mxu1 %v7353_v2  ;;  %3489 = vmatpush.bf16.msra.mxu3 %v7357_v55  ;;  %v8083_v57 = vld [vmem:[%s9420_s24 + $0x34] sm:$0xf0]  ;;  %v7225_v2 = vor.u32 %v8155_v50, %v7224_v49  ;;  %v7229_v55 = vor.u32 %v8151_v59, %v7226_v26  ;;  %v6941_v48 = vor.u32 %v8079_v63, %v6938_v62 }
 0x60b   : > { %v7192_v0 = vld [vmem:[%s9420_s24 + $0x218] sm:$0xf]  ;;  %v6937_v17 = vor.u32 %v8083_v57, %v6936_v27 }
 0x60c   : > { %v8147_v32 = vld [vmem:[%s9420_s24 + $0x234] sm:$0xf0] }
 0x60d   : > { %3471 = vmatpush.bf16.msra.mxu2 %v7069_v19  ;;  %3433 = vmatpush.bf16.msra.mxu0 %v7065_v52  ;;  %v8143_v19 = vld [vmem:[%s9420_s24 + $0x21c] sm:$0xf]  ;;  %v7193_v25 = vor.u32 %v8147_v32, %v7192_v0 }
 0x60e   : > { %3452 = vmatpush.bf16.msra.mxu1 %v7321_v4  ;;  %3490 = vmatpush.bf16.msra.mxu3 %v7325_v8  ;;  %v7194_v52 = vld [vmem:[%s9420_s24 + $0x238] sm:$0xf0]  ;;  %v10272_v4 = vperm.slane %v10269_v42, 0 }
 0x60f   : > { %3291 = vmatmul.bf16.gmra.mxu0 %v10140_v11  ;;  %3310 = vmatmul.bf16.gmra.mxu1 %v10142_v28  ;;  %v7197_v41 = vor.u32 %v8143_v19, %v7194_v52 }
 0x610   : > { %3329 = vmatmul.bf16.gmra.mxu2 %v10140_v11  ;;  %3348 = vmatmul.bf16.gmra.mxu3 %v10142_v28 }
 0x611   : > { %3472 = vmatpush.bf16.msra.mxu2 %v7037_v5  ;;  %3434 = vmatpush.bf16.msra.mxu0 %v7033_v21 }
 0x612   : > { %3453 = vmatpush.bf16.msra.mxu1 %v7289_v14  ;;  %3491 = vmatpush.bf16.msra.mxu3 %v7293_v22 }
 0x615   : > { %3473 = vmatpush.bf16.msra.mxu2 %v7005_v36  ;;  %3435 = vmatpush.bf16.msra.mxu0 %v7001_v18 }
 0x616   : > { %3454 = vmatpush.bf16.msra.mxu1 %v7257_v46  ;;  %3492 = vmatpush.bf16.msra.mxu3 %v7261_v47 }
 0x619   : > { %3474 = vmatpush.bf16.msra.mxu2 %v6973_v54  ;;  %3436 = vmatpush.bf16.msra.mxu0 %v6969_v58 }
 0x61a   : > { %3455 = vmatpush.bf16.msra.mxu1 %v7225_v2  ;;  %3493 = vmatpush.bf16.msra.mxu3 %v7229_v55 }
 0x61d   : > { %3475 = vmatpush.bf16.msra.mxu2 %v6941_v48  ;;  %3437 = vmatpush.bf16.msra.mxu0 %v6937_v17 }
 0x61e   : > { %3456 = vmatpush.bf16.msra.mxu1 %v7193_v25  ;;  %3494 = vmatpush.bf16.msra.mxu3 %v7197_v41 }
 0x61f   : > { %3362 = vmatmul.bf16.vlgmr.msrb.gmra.mxu0 %v10072_v53  ;;  %3381 = vmatmul.bf16.vlgmr.msrb.gmra.mxu1 %v10074_v51 }
 0x620   : > { %3400 = vmatmul.bf16.vlgmr.msrb.gmra.mxu2 %v10072_v53  ;;  %3419 = vmatmul.bf16.vlgmr.msrb.gmra.mxu3 %v10074_v51 }
 0x62f   : > { %3367 = vmatmul.bf16.gmra.mxu0 %v10140_v11  ;;  %3386 = vmatmul.bf16.gmra.mxu1 %v10142_v28 }
 0x630   : > { %3405 = vmatmul.bf16.gmra.mxu2 %v10140_v11  ;;  %3424 = vmatmul.bf16.gmra.mxu3 %v10142_v28 }
 0x63f   : > { %3438 = vmatmul.bf16.vlgmr.msra.gmra.mxu0 %v10072_v53  ;;  %3457 = vmatmul.bf16.vlgmr.msra.gmra.mxu1 %v10074_v51 }
 0x640   : > { %3476 = vmatmul.bf16.vlgmr.msra.gmra.mxu2 %v10072_v53  ;;  %3495 = vmatmul.bf16.vlgmr.msra.gmra.mxu3 %v10074_v51  ;;  %v10278_v51 = vperm.slane %v10269_v42, 1 }
 0x64f   : > { %3443 = vmatmul.bf16.gmra.mxu0 %v10140_v11  ;;  %3462 = vmatmul.bf16.gmra.mxu1 %v10142_v28 }
 0x650   : > { %3481 = vmatmul.bf16.gmra.mxu2 %v10140_v11  ;;  %3500 = vmatmul.bf16.gmra.mxu3 %v10142_v28 }
 0x65c   : > { %v3211_v8 = vpop.f32.mrf.mxu0  ;;  %v3230_v9 = vpop.f32.mrf.mxu1 }
 0x65d   : > { %v3212_v6 = vadd.f32 %v3211_v8, %v10272_v4 }
 0x65f   : > { %v10275_v53 = vadd.f32 %v3230_v9, %v3212_v6 }
 0x661   : > { %v10281_v10 = vmul.f32 0.70710677, %v10275_v53 }
 0x663   : > { %v3570_v11 = vmul.f32 %v10281_v10, %v10281_v10  ;;  %v3249_v28 = vpop.f32.mrf.mxu2  ;;  %v3268_v12 = vpop.f32.mrf.mxu3 }
 0x664   : > { %v3250_v5 = vadd.f32 %v3249_v28, %v10278_v51  ;;  %v3213_v29 = vpop.f32.mrf.mxu0  ;;  %v3232_v3 = vpop.f32.mrf.mxu1 }
 0x665   : > { %v10286_v35 = vmin.f32 %v3570_v11, 16.0  ;;  %v3214_v21 = vadd.f32 %v3213_v29, %v10272_v4 }
 0x666   : > { %v10289_v33 = vadd.f32 %v3268_v12, %v3250_v5 }
 0x667   : > { %v3572_v13 = vmul.f32 2.1237322e-06, %v10286_v35  ;;  %v3583_v14 = vmul.f32 3.8918573e-05, %v10286_v35  ;;  %v10293_v22 = vadd.f32 %v3232_v3, %v3214_v21 }
 0x668   : > { %v10296_v23 = vmul.f32 0.70710677, %v10289_v33 }
 0x669   : > { %v3573_v56 = vadd.f32 0.00028619796, %v3572_v13  ;;  %v3584_v15 = vadd.f32 0.001143296, %v3583_v14  ;;  %v10301_v18 = vmul.f32 0.70710677, %v10293_v22 }
 0x66a   : > { %v3610_v36 = vmul.f32 %v10296_v23, %v10296_v23 }
 0x66b   : > { %v3585_v37 = vmul.f32 %v3584_v15, %v10286_v35  ;;  %v3251_v16 = vpop.f32.mrf.mxu2  ;;  %v3574_v7 = vmul.f32 %v3573_v56, %v10286_v35  ;;  %v3890_v34 = vmul.f32 %v10301_v18, %v10301_v18  ;;  %v3270_v50 = vpop.f32.mrf.mxu3 }
 0x66c   : > { %v10305_v38 = vmin.f32 %v3610_v36, 16.0  ;;  %v3252_v43 = vadd.f32 %v3251_v16, %v10278_v51  ;;  %v3216_v45 = vpop.f32.mrf.mxu0  ;;  %v3235_v19 = vpop.f32.mrf.mxu1 }
 0x66d   : > { %v3586_v44 = vadd.f32 0.014752088, %v3585_v37  ;;  %v10312_v49 = vmin.f32 %v3890_v34, 16.0  ;;  %v3575_v59 = vadd.f32 0.0036580483, %v3574_v7  ;;  %v3217_v62 = vadd.f32 %v3216_v45, %v10272_v4 }
 0x66e   : > { %v3612_v46 = vmul.f32 2.1237322e-06, %v10305_v38  ;;  %v3623_v47 = vmul.f32 3.8918573e-05, %v10305_v38  ;;  %v10315_v58 = vadd.f32 %v3270_v50, %v3252_v43 }
 0x66f   : > { %v3587_v54 = vmul.f32 %v3586_v44, %v10286_v35  ;;  %v3892_v63 = vmul.f32 2.1237322e-06, %v10312_v49  ;;  %v3903_v2 = vmul.f32 3.8918573e-05, %v10312_v49  ;;  %v3576_v52 = vmul.f32 %v3575_v59, %v10286_v35 }
 0x670   : > { %v3624_v26 = vadd.f32 0.001143296, %v3623_v47  ;;  %v3613_v57 = vadd.f32 0.00028619796, %v3612_v46  ;;  %v10323_v32 = vmul.f32 0.70710677, %v10315_v58  ;;  %v10326_v41 = vadd.f32 %v3235_v19, %v3217_v62 }
 0x671   : > { %v3588_v27 = vadd.f32 0.112945676, %v3587_v54  ;;  %v3893_v0 = vadd.f32 0.00028619796, %v3892_v63  ;;  %v3904_v17 = vadd.f32 0.001143296, %v3903_v2 }
 0x672   : > { %v3625_v55 = vmul.f32 %v3624_v26, %v10305_v38  ;;  %v3614_v9 = vmul.f32 %v3613_v57, %v10305_v38  ;;  %v3930_v11 = vmul.f32 %v10323_v32, %v10323_v32  ;;  %v10338_v13 = vmul.f32 0.70710677, %v10326_v41 }
 0x673   : > { %v3589_v48 = vmul.f32 %v3588_v27, %v10286_v35  ;;  %v3905_v6 = vmul.f32 %v3904_v17, %v10312_v49  ;;  %v3894_v5 = vmul.f32 %v3893_v0, %v10312_v49  ;;  %v3577_v14 = vadd.f32 0.05243302, %v3576_v52 }
 0x674   : > { %v3626_v25 = vadd.f32 0.014752088, %v3625_v55  ;;  %v10335_v21 = vmin.f32 %v3930_v11, 16.0  ;;  %v3615_v15 = vadd.f32 0.0036580483, %v3614_v9  ;;  %v4210_v44 = vmul.f32 %v10338_v13, %v10338_v13 }
 0x675   : > { %v3590_v8 = vadd.f32 0.4994258, %v3589_v48  ;;  %v3906_v29 = vadd.f32 0.014752088, %v3905_v6  ;;  %v3895_v16 = vadd.f32 0.0036580483, %v3894_v5  ;;  %v3578_v45 = vmul.f32 %v3577_v14, %v10286_v35 }
 0x676   : > { %v3627_v28 = vmul.f32 %v3626_v25, %v10305_v38  ;;  %v3932_v7 = vmul.f32 2.1237322e-06, %v10335_v21  ;;  %v3943_v34 = vmul.f32 3.8918573e-05, %v10335_v21  ;;  %v3616_v46 = vmul.f32 %v3615_v15, %v10305_v38 }
 0x677   : > { %v3591_v12 = vmul.f32 %v3590_v8, %v10286_v35  ;;  %v3907_v36 = vmul.f32 %v3906_v29, %v10312_v49  ;;  %v3896_v50 = vmul.f32 %v3895_v16, %v10312_v49  ;;  %v10354_v62 = vmin.f32 %v4210_v44, 16.0 }
 0x678   : > { %v3628_v3 = vadd.f32 0.112945676, %v3627_v28  ;;  %v3933_v26 = vadd.f32 0.00028619796, %v3932_v7  ;;  %v3944_v63 = vadd.f32 0.001143296, %v3943_v34 }
 0x679   : > { %v10340_v56 = vadd.f32 1.0, %v3591_v12  ;;  %v3908_v47 = vadd.f32 0.112945676, %v3907_v36  ;;  %v3579_v57 = vadd.f32 0.18741608, %v3578_v45  ;;  %v3254_v36 = vpop.f32.mrf.mxu2  ;;  %v10376_v7 = vmul.f32 0.5, %v10275_v53 }
 0x67a   : > { %v3629_v37 = vmul.f32 %v3628_v3, %v10305_v38  ;;  %v3617_v2 = vadd.f32 0.05243302, %v3616_v46  ;;  %v3945_v0 = vmul.f32 %v3944_v63, %v10335_v21  ;;  %v3897_v48 = vadd.f32 0.05243302, %v3896_v50 }
 0x67b   : > { %8508 = vrcp.f32 %v10340_v56  ;;  %v3909_v59 = vmul.f32 %v3908_v47, %v10312_v49  ;;  %v3934_v52 = vmul.f32 %v3933_v26, %v10335_v21  ;;  %v4223_v9 = vmul.f32 3.8918573e-05, %v10354_v62 }
 0x67c   : > { %v3630_v43 = vadd.f32 0.4994258, %v3629_v37  ;;  %v3946_v8 = vadd.f32 0.014752088, %v3945_v0  ;;  %v3580_v6 = vmul.f32 %v3579_v57, %v10286_v35  ;;  %v3618_v11 = vmul.f32 %v3617_v2, %v10305_v38 }
 0x67d   : > { %v3910_v55 = vadd.f32 0.4994258, %v3909_v59  ;;  %v4212_v28 = vmul.f32 2.1237322e-06, %v10354_v62  ;;  %v3898_v5 = vmul.f32 %v3897_v48, %v10312_v49  ;;  %v3935_v14 = vadd.f32 0.0036580483, %v3934_v52  ;;  %v3273_v52 = vpop.f32.mrf.mxu3 }
 0x67e   : > { %v3631_v54 = vmul.f32 %v3630_v43, %v10305_v38  ;;  %v3947_v29 = vmul.f32 %v3946_v8, %v10335_v21  ;;  %v4224_v15 = vadd.f32 0.001143296, %v4223_v9  ;;  %v3581_v37 = vadd.f32 1.1283791, %v3580_v6 }
 0x67f   : > { %v3911_v25 = vmul.f32 %v3910_v55, %v10312_v49  ;;  %v3619_v35 = vadd.f32 0.18741608, %v3618_v11  ;;  %v4213_v16 = vadd.f32 0.00028619796, %v4212_v28  ;;  %v10379_v34 = vmul.f32 0.5, %v10289_v33  ;;  %v3218_v55 = vpop.f32.mrf.mxu0 }
 0x680   : > { %v10361_v19 = vadd.f32 1.0, %v3631_v54  ;;  %v3899_v43 = vadd.f32 0.18741608, %v3898_v5  ;;  %v3948_v44 = vadd.f32 0.112945676, %v3947_v29  ;;  %v10383_v46 = vmul.f32 0.5, %v10293_v22 }
 0x681   : > { %v10356_v27 = vpop.eup %8508  ;;  %v10370_v12 = vadd.f32 1.0, %v3911_v25  ;;  %v3936_v47 = vmul.f32 %v3935_v14, %v10335_v21  ;;  %v3255_v50 = vadd.f32 %v3254_v36, %v10278_v51  ;;  %v10388_v54 = vmul.f32 0.5, %v10315_v58 }
 0x682   : > { %v3594_v17 = vmul.f32 %v10356_v27, %v10340_v56  ;;  %8510 = vrcp.f32 %v10361_v19  ;;  %v3949_v53 = vmul.f32 %v3948_v44, %v10335_v21  ;;  %v10392_v59 = vmul.f32 0.5, %v10326_v41 }
 0x683   : > { %8512 = vrcp.f32 %v10370_v12  ;;  %v4225_v33 = vmul.f32 %v4224_v15, %v10354_v62  ;;  %v3582_v63 = vmul.f32 %v3581_v37, %v10281_v10  ;;  %v3602_v22 = vand.u32 2147483647, %v10340_v56 }
 0x684   : > { %v3595_v3 = vsub.f32 1.0, %v3594_v17  ;;  %v3620_v57 = vmul.f32 %v3619_v35, %v10305_v38  ;;  %v4214_v2 = vmul.f32 %v4213_v16, %v10354_v62  ;;  %v3604_v0 = vand.u32 2147483648, %v10340_v56  ;;  %v3237_v16 = vpop.f32.mrf.mxu1 }
 0x685   : > { %v3900_v41 = vmul.f32 %v3899_v43, %v10312_v49  ;;  %v3950_v48 = vadd.f32 0.4994258, %v3949_v53  ;;  %v4226_v17 = vadd.f32 0.014752088, %v4225_v33  ;;  %vm3599_vm10 = vweird.f32 %v10356_v27 }
 0x686   : > { %v3596_v45 = vmul.f32 %v10356_v27, %v3595_v3  ;;  %v3937_v10 = vadd.f32 0.05243302, %v3936_v47  ;;  %v10407_v8 = vadd.f32 %v3273_v52, %v3255_v50  ;;  %v3219_v11 = vadd.f32 %v3218_v55, %v10272_v4 }
 0x687   : > { %v3951_v9 = vmul.f32 %v3950_v48, %v10335_v21  ;;  %v4227_v6 = vmul.f32 %v4226_v17, %v10354_v62  ;;  %vm3598_vm11 = vweird.f32 %v10340_v56  ;;  %v3621_v49 = vadd.f32 1.1283791, %v3620_v57  ;;  %v3256_v48 = vpop.f32.mrf.mxu2 }
 0x688   : > { %v10395_v26 = vpop.eup %8510  ;;  %v3597_v25 = vadd.f32 %v10356_v27, %v3596_v45  ;;  %v4215_v5 = vadd.f32 0.0036580483, %v4214_v2  ;;  %vm10417_vm12 = vmor %vm3598_vm11, %vm3599_vm10  ;;  %vm10421_vm13 = vcmp.eq.f32.partialorder %v3602_v22, 8.507059e+37  ;;  %v3644_v14 = vand.u32 2147483648, %v10361_v19 }
 0x689   : > { %v10401_v58 = vpop.eup %8512  ;;  %v3634_v38 = vmul.f32 %v10395_v26, %v10361_v19  ;;  %v3901_v15 = vadd.f32 1.1283791, %v3900_v41  ;;  %v10426_v36 = vadd.f32 1.0, %v3951_v9  ;;  %v3938_v56 = vmul.f32 %v3937_v10, %v10335_v21 }
 0x68a   : > { %v3914_v28 = vmul.f32 %v10401_v58, %v10370_v12  ;;  %v3601_v4 = vsel %vm10417_vm12, %v10356_v27, %v3597_v25  ;;  %v4228_v37 = vadd.f32 0.112945676, %v4227_v6  ;;  %v10433_v35 = vmul.f32 0.70710677, %v10407_v8 }
 0x68b   : > { %v3605_v43 = vor.u32 1.1754944e-38, %v3604_v0  ;;  %v3635_v44 = vsub.f32 1.0, %v3634_v38  ;;  %8514 = vrcp.f32 %v10426_v36  ;;  %v10436_v45 = vadd.f32 %v3237_v16, %v3219_v11 }
 0x68c   : > { %v10439_v47 = vmul.f32 %v3621_v49, %v10296_v23  ;;  %v3915_v50 = vsub.f32 1.0, %v3914_v28  ;;  %v4216_v53 = vmul.f32 %v4215_v5, %v10354_v62  ;;  %v4229_v27 = vmul.f32 %v4228_v37, %v10354_v62 }
 0x68d   : > { %v3606_v33 = vsel %vm10421_vm13, %v3605_v43, %v3601_v4  ;;  %vm3638_vm14 = vweird.f32 %v10361_v19  ;;  %v3642_v22 = vand.u32 2147483647, %v10361_v19  ;;  %v3645_v57 = vor.u32 1.1754944e-38, %v3644_v14  ;;  %v7512_v19 = vld [vmem:[%s9424_s27 + $0x70] sm:$0xf] }
 0x68e   : > { %v4250_v2 = vmul.f32 %v10433_v35, %v10433_v35  ;;  %v10450_v55 = vmul.f32 %v3901_v15, %v10301_v18  ;;  %v3922_v23 = vand.u32 2147483647, %v10370_v12  ;;  %v3939_v0 = vadd.f32 0.18741608, %v3938_v56 }
 0x68f   : > { %v4230_v41 = vadd.f32 0.4994258, %v4229_v27  ;;  %v3636_v17 = vmul.f32 %v10395_v26, %v3635_v44  ;;  %vm3639_vm15 = vweird.f32 %v10395_v26  ;;  %v10458_v25 = vmul.f32 0.70710677, %v10436_v45 }
 0x690   : > { %v10455_v52 = vmin.f32 %v4250_v2, 16.0  ;;  %v3607_v10 = vmul.f32 %v3606_v33, %v3582_v63  ;;  %v3916_v38 = vmul.f32 %v10401_v58, %v3915_v50  ;;  %v4217_v9 = vadd.f32 0.05243302, %v4216_v53  ;;  %v3275_v50 = vpop.f32.mrf.mxu3  ;;  %vm10496_vm3 = vmor %vm3638_vm14, %vm3639_vm15 }
 0x691   : > { %v4231_v18 = vmul.f32 %v4230_v41, %v10354_v62  ;;  %v10462_v6 = vpop.eup %8514  ;;  %vm10464_vm0 = vcmp.eq.f32.partialorder %v3642_v22, 8.507059e+37  ;;  %v4530_v5 = vmul.f32 %v10458_v25, %v10458_v25  ;;  %v3257_v63 = vadd.f32 %v3256_v48, %v10278_v51 }
 0x692   : > { %v4252_v49 = vmul.f32 2.1237322e-06, %v10455_v52  ;;  %v4263_v28 = vmul.f32 3.8918573e-05, %v10455_v52  ;;  %v3924_v29 = vand.u32 2147483648, %v10370_v12  ;;  %v3940_v3 = vmul.f32 %v3939_v0, %v10335_v21 }
 0x693   : > { %v3954_v14 = vmul.f32 %v10462_v6, %v10426_v36  ;;  %v10477_v15 = vadd.f32 1.0, %v4231_v18  ;;  %v3637_v4 = vadd.f32 %v10395_v26, %v3636_v17  ;;  %vm10480_vm1 = vcmp.eq.f32.partialorder %v3922_v23, 8.507059e+37 }
 0x694   : > { %v4264_v37 = vadd.f32 0.001143296, %v4263_v28  ;;  %v10484_v16 = vmin.f32 %v4530_v5, 16.0  ;;  %v7422_v43 = vclamps-f32 %v3607_v10, 1.0  ;;  %v4218_v44 = vmul.f32 %v4217_v9, %v10354_v62  ;;  %v8219_v10 = vld [vmem:[%s9424_s27 + $0x74] sm:$0xf0] }
 0x695   : > { %v3955_v51 = vsub.f32 1.0, %v3954_v14  ;;  %v4253_v21 = vadd.f32 0.00028619796, %v4252_v49  ;;  %v3917_v53 = vadd.f32 %v10401_v58, %v3916_v38  ;;  %vm3919_vm2 = vweird.f32 %v10401_v58 }
 0x696   : > { %v4265_v27 = vmul.f32 %v4264_v37, %v10455_v52  ;;  %v10490_v33 = vadd.f32 %v3275_v50, %v3257_v63  ;;  %v3925_v2 = vor.u32 1.1754944e-38, %v3924_v29  ;;  %v3941_v23 = vadd.f32 1.1283791, %v3940_v3 }
 0x697   : > { %8516 = vrcp.f32 %v10477_v15  ;;  %v4543_v0 = vmul.f32 3.8918573e-05, %v10484_v16  ;;  %v3641_v41 = vsel %vm10496_vm3, %v10395_v26, %v3637_v4  ;;  %vm3918_vm4 = vweird.f32 %v10370_v12 }
 0x698   : > { %v3956_v48 = vmul.f32 %v10462_v6, %v3955_v51  ;;  %v4266_v17 = vadd.f32 0.014752088, %v4265_v27  ;;  %v4850_v38 = vadd.f32 1.0, %v7422_v43  ;;  %vm10511_vm5 = vmor %vm3918_vm4, %vm3919_vm2  ;;  %v4219_v18 = vadd.f32 0.18741608, %v4218_v44  ;;  %v3287_v27 = vpop.f32.mrf.mxu0 }
 0x699   : > { %v4254_v49 = vmul.f32 %v4253_v21, %v10455_v52  ;;  %v4544_v28 = vadd.f32 0.001143296, %v4543_v0  ;;  %v3921_v12 = vsel %vm10511_vm5, %v10401_v58, %v3917_v53  ;;  %v4532_v5 = vmul.f32 2.1237322e-06, %v10484_v16 }
 0x69a   : > { %v4267_v26 = vmul.f32 %v4266_v17, %v10455_v52  ;;  %v10522_v63 = vmul.f32 0.70710677, %v10490_v33  ;;  %v3646_v29 = vsel %vm10464_vm0, %v3645_v57, %v3641_v41  ;;  %v3942_v3 = vmul.f32 %v3941_v23, %v10323_v32 }
 0x69b   : > { %v4545_v14 = vmul.f32 %v4544_v28, %v10484_v16  ;;  %v7513_v4 = vor.u32 %v8219_v10, %v7512_v19  ;;  %v3957_v37 = vadd.f32 %v10462_v6, %v3956_v48  ;;  %vm3959_vm6 = vweird.f32 %v10462_v6 }
 0x69c   : > { %v3964_v58 = vand.u32 2147483648, %v10426_v36  ;;  %v10532_v43 = vperm.slane %v10269_v42, 2  ;;  %v3926_v11 = vsel %vm10480_vm1, %v3925_v2, %v3921_v12  ;;  %v4255_v57 = vadd.f32 0.0036580483, %v4254_v49 }
 0x69d   : > { %v10534_v51 = vpop.eup %8516  ;;  %v4268_v44 = vadd.f32 0.112945676, %v4267_v26  ;;  %v4546_v32 = vadd.f32 0.014752088, %v4545_v14  ;;  %5698 = vmatpush.bf16.msrb.mxu0 %v7513_v4  ;;  %vm3958_vm7 = vweird.f32 %v10426_v36  ;;  %v3962_v21 = vand.u32 2147483647, %v10426_v36  ;;  %v3306_v4 = vpop.f32.mrf.mxu1 }
 0x69e   : > { %v4533_v50 = vadd.f32 0.00028619796, %v4532_v5  ;;  %v4570_v53 = vmul.f32 %v10522_v63, %v10522_v63  ;;  %v3647_v22 = vmul.f32 %v3646_v29, %v10439_v47  ;;  %vm10545_vm8 = vmor %vm3958_vm7, %vm3959_vm6  ;;  %v4220_v2 = vmul.f32 %v4219_v18, %v10354_v62 }
 0x69f   : > { %v4269_v23 = vmul.f32 %v4268_v44, %v10455_v52  ;;  %v4547_v0 = vmul.f32 %v4546_v32, %v10484_v16  ;;  %v3927_v36 = vmul.f32 %v3926_v11, %v10450_v55  ;;  %v3961_v41 = vsel %vm10545_vm8, %v10462_v6, %v3957_v37 }
 0x6a0   : > { %v4234_v47 = vmul.f32 %v10534_v51, %v10477_v15  ;;  %v10558_v48 = vmin.f32 %v4570_v53, 16.0  ;;  %v3965_v17 = vor.u32 1.1754944e-38, %v3964_v58  ;;  %v4256_v19 = vmul.f32 %v4255_v57, %v10455_v52 }
 0x6a1   : > { %v4270_v10 = vadd.f32 0.4994258, %v4269_v23  ;;  %v3288_v62 = vadd.f32 %v3287_v27, %v10532_v43  ;;  %vm3963_vm9 = vcmp.eq.f32.partialorder %v3962_v21, 8.507059e+37  ;;  %v4534_v9 = vmul.f32 %v4533_v50, %v10484_v16  ;;  %v3325_v23 = vpop.f32.mrf.mxu2 }
 0x6a2   : > { %v4548_v18 = vadd.f32 0.112945676, %v4547_v0  ;;  %v4572_v55 = vmul.f32 2.1237322e-06, %v10558_v48  ;;  %v7423_v49 = vclamps-f32 %v3647_v22, 1.0  ;;  %v3966_v28 = vsel %vm3963_vm9, %v3965_v17, %v3961_v41 }
 0x6a3   : > { %v10565_v6 = vmul.f32 0.5, %v10407_v8  ;;  %v4271_v12 = vmul.f32 %v4270_v10, %v10455_v52  ;;  %v7430_v26 = vclamps-f32 %v3927_v36, 1.0  ;;  %v4221_v5 = vadd.f32 1.1283791, %v4220_v2  ;;  %v7504_v0 = vld [vmem:[%s9424_s27 + $0x60] sm:$0xf] }
 0x6a4   : > { %v4235_v29 = vsub.f32 1.0, %v4234_v47  ;;  %v4549_v14 = vmul.f32 %v4548_v18, %v10484_v16  ;;  %v4257_v37 = vadd.f32 0.05243302, %v4256_v19  ;;  %v4583_v11 = vmul.f32 3.8918573e-05, %v10558_v48 }
 0x6a5   : > { %v10569_v58 = vadd.f32 1.0, %v4271_v12  ;;  %v10572_v57 = vadd.f32 %v3306_v4, %v3288_v62  ;;  %v3967_v44 = vmul.f32 %v3966_v28, %v3942_v3  ;;  %v4535_v8 = vadd.f32 0.0036580483, %v4534_v9 }
 0x6a6   : > { %v4550_v32 = vadd.f32 0.4994258, %v4549_v14  ;;  %v4573_v21 = vadd.f32 0.00028619796, %v4572_v55  ;;  %v10575_v50 = vmul.f32 %v4850_v38, %v10376_v7  ;;  %v4851_v53 = vadd.f32 1.0, %v7423_v49 }
 0x6a7   : > { %v10578_v27 = vmul.f32 0.5, %v10436_v45  ;;  %v10581_v22 = vperm.slane %v10269_v42, 3  ;;  %v10584_v56 = vmul.f32 %v4221_v5, %v10338_v13  ;;  %v4236_v2 = vmul.f32 %v10534_v51, %v4235_v29  ;;  %v8217_v7 = vld [vmem:[%s9424_s27 + $0x64] sm:$0xf0]  ;;  %v3344_v5 = vpop.f32.mrf.mxu3 }
 0x6a8   : > { %8518 = vrcp.f32 %v10569_v58  ;;  %v4551_v3 = vmul.f32 %v4550_v32, %v10484_v16  ;;  %v4858_v38 = vadd.f32 1.0, %v7430_v26  ;;  %v4258_v36 = vmul.f32 %v4257_v37, %v10455_v52 }
 0x6a9   : > { %v4584_v45 = vadd.f32 0.001143296, %v4583_v11  ;;  %v10593_v41 = vmul.f32 0.70710677, %v10572_v57  ;;  %v7431_v42 = vclamps-f32 %v3967_v44, 1.0  ;;  %v4536_v13 = vmul.f32 %v4535_v8, %v10484_v16 }
 0x6aa   : > { %v10596_v47 = vadd.f32 1.0, %v4551_v3  ;;  %v4574_v17 = vmul.f32 %v4573_v21, %v10558_v48  ;;  %v3326_v62 = vadd.f32 %v3325_v23, %v10581_v22  ;;  %v7505_v9 = vor.u32 %v8217_v7, %v7504_v0  ;;  %v3289_v7 = vpop.f32.mrf.mxu0 }
 0x6ab   : > { %v4585_v19 = vmul.f32 %v4584_v45, %v10558_v48  ;;  %v3650_v10 = vmul.f32 %v10593_v41, %v10593_v41  ;;  %v4237_v18 = vadd.f32 %v10534_v51, %v4236_v2  ;;  %vm4239_vm10 = vweird.f32 %v10534_v51  ;;  %v8235_v2 = vld [vmem:[%s9424_s27 + $0xf4] sm:$0xf0] }
 0x6ac   : > { %v4242_v55 = vand.u32 2147483647, %v10477_v15  ;;  %v10607_v49 = vmul.f32 0.5, %v10490_v33  ;;  %v4244_v28 = vand.u32 2147483648, %v10477_v15  ;;  %v4259_v12 = vadd.f32 0.18741608, %v4258_v36  ;;  %5699 = vmatpush.bf16.msrb.mxu0 %v7505_v9 }
 0x6ad   : > { %8520 = vrcp.f32 %v10596_v47  ;;  %v10611_v26 = vmin.f32 %v3650_v10, 16.0  ;;  %v4859_v14 = vadd.f32 1.0, %v7431_v42  ;;  %vm4238_vm11 = vweird.f32 %v10477_v15  ;;  %v7576_v33 = vld [vmem:[%s9424_s27 + $0xf0] sm:$0xf] }
 0x6ae   : > { %v10613_v29 = vpop.eup %8518  ;;  %v4586_v4 = vadd.f32 0.014752088, %v4585_v19  ;;  %v10616_v37 = vadd.f32 %v3344_v5, %v3326_v62  ;;  %v4883_v11 = vmul.f32 %v4851_v53, %v10379_v34  ;;  %v4890_v44 = vmul.f32 %v4858_v38, %v10383_v46  ;;  %vm10623_vm12 = vmor %vm4238_vm11, %vm4239_vm10 }
 0x6af   : > { %v4537_v32 = vadd.f32 0.05243302, %v4536_v13  ;;  %v4575_v21 = vadd.f32 0.0036580483, %v4574_v17  ;;  %v4241_v15 = vsel %vm10623_vm12, %v10534_v51, %v4237_v18  ;;  %vm4243_vm13 = vcmp.eq.f32.partialorder %v4242_v55, 8.507059e+37 }
 0x6b0   : > { %v4587_v3 = vmul.f32 %v4586_v4, %v10558_v48  ;;  %v3663_v34 = vmul.f32 3.8918573e-05, %v10611_v26  ;;  %v4245_v53 = vor.u32 1.1754944e-38, %v4244_v28  ;;  %v4260_v46 = vmul.f32 %v4259_v12, %v10455_v52 }
 0x6b1   : > { %v4274_v23 = vmul.f32 %v10613_v29, %v10569_v58  ;;  %v10637_v0 = vmul.f32 0.70710677, %v10616_v37  ;;  %v4891_v38 = vmul.f32 %v4859_v14, %v10388_v54  ;;  %v7577_v51 = vor.u32 %v8235_v2, %v7576_v33 }
 0x6b2   : > { %v4588_v36 = vadd.f32 0.112945676, %v4587_v3  ;;  %v3664_v45 = vadd.f32 0.001143296, %v3663_v34  ;;  %v4246_v13 = vsel %vm4243_vm13, %v4245_v53, %v4241_v15  ;;  %v4538_v17 = vmul.f32 %v4537_v32, %v10484_v16 }
 0x6b3   : > { %v10640_v42 = vpop.eup %8520  ;;  %v4576_v19 = vmul.f32 %v4575_v21, %v10558_v48  ;;  %v3652_v52 = vmul.f32 2.1237322e-06, %v10611_v26  ;;  %v3690_v9 = vmul.f32 %v10637_v0, %v10637_v0  ;;  %v3290_v54 = vadd.f32 %v3289_v7, %v10532_v43  ;;  %5717 = vmatpush.bf16.msrb.mxu1 %v7577_v51 }
 0x6b4   : > { %v4589_v10 = vmul.f32 %v4588_v36, %v10558_v48  ;;  %v3665_v62 = vmul.f32 %v3664_v45, %v10611_v26  ;;  %v10651_v18 = vpack.c.bf16 %v4890_v44, %v10575_v50  ;;  %v4261_v55 = vadd.f32 1.1283791, %v4260_v46  ;;  %v3308_v50 = vpop.f32.mrf.mxu1 }
 0x6b5   : > { %v4275_v28 = vsub.f32 1.0, %v4274_v23  ;;  %v10654_v12 = vmul.f32 0.5, %v10572_v57  ;;  %v4554_v5 = vmul.f32 %v10640_v42, %v10596_v47  ;;  %v10658_v33 = vmin.f32 %v3690_v9, 16.0  ;;  %v8215_v9 = vld [vmem:[%s9424_s27 + $0x54] sm:$0xf0] }
 0x6b6   : > { %v4590_v14 = vadd.f32 0.4994258, %v4589_v10  ;;  %v3666_v4 = vadd.f32 0.014752088, %v3665_v62  ;;  %v10660_v8 = vpack.c.bf16 %v4891_v38, %v4883_v11  ;;  %v4247_v32 = vmul.f32 %v4246_v13, %v10584_v56  ;;  %v7496_v62 = vld [vmem:[%s9424_s27 + $0x50] sm:$0xf] }
 0x6b7   : > { %v4539_v21 = vadd.f32 0.18741608, %v4538_v17  ;;  %v3653_v2 = vadd.f32 0.00028619796, %v3652_v52  ;;  %v4577_v44 = vadd.f32 0.05243302, %v4576_v19  ;;  %v10665_v3 = vadd.f32 %v3308_v50, %v3290_v54 }
 0x6b8   : > { %v4591_v15 = vmul.f32 %v4590_v14, %v10558_v48  ;;  %v3667_v57 = vmul.f32 %v3666_v4, %v10611_v26  ;;  %v10668_v34 = vmul.f32 %v4261_v55, %v10433_v35  ;;  %v4276_v53 = vmul.f32 %v10613_v29, %v4275_v28  ;;  %v8233_v14 = vld [vmem:[%s9424_s27 + $0xe4] sm:$0xf0] }
 0x6b9   : > { %v4282_v11 = vand.u32 2147483647, %v10569_v58  ;;  %v3703_v46 = vmul.f32 3.8918573e-05, %v10658_v33  ;;  %v4284_v56 = vand.u32 2147483648, %v10569_v58  ;;  %v4555_v23 = vsub.f32 1.0, %v4554_v5 }
 0x6ba   : > { %v10674_v7 = vadd.f32 1.0, %v4591_v15  ;;  %v3668_v38 = vadd.f32 0.112945676, %v3667_v57  ;;  %v7438_v36 = vclamps-f32 %v4247_v32, 1.0  ;;  %v3654_v45 = vmul.f32 %v3653_v2, %v10611_v26  ;;  %v7568_v5 = vld [vmem:[%s9424_s27 + $0xe0] sm:$0xf] }
 0x6bb   : > { %v3692_v35 = vmul.f32 2.1237322e-06, %v10658_v33  ;;  %v3704_v51 = vadd.f32 0.001143296, %v3703_v46  ;;  %vm4278_vm14 = vweird.f32 %v10569_v58  ;;  %v4540_v13 = vmul.f32 %v4539_v21, %v10484_v16  ;;  %v3327_v58 = vpop.f32.mrf.mxu2 }
 0x6bc   : > { %v4578_v17 = vmul.f32 %v4577_v44, %v10558_v48  ;;  %v10682_v19 = vmul.f32 0.70710677, %v10665_v3  ;;  %v4277_v52 = vadd.f32 %v10613_v29, %v4276_v53  ;;  %vm4279_vm15 = vweird.f32 %v10613_v29 }
 0x6bd   : > { %vm10686_vm0 = vcmp.eq.f32.partialorder %v4282_v11, 8.507059e+37  ;;  %8522 = vrcp.f32 %v10674_v7  ;;  %v4285_v54 = vor.u32 1.1754944e-38, %v4284_v56  ;;  %v4556_v16 = vmul.f32 %v10640_v42, %v4555_v23  ;;  %vm10703_vm1 = vmor %vm4278_vm14, %vm4279_vm15 }
 0x6be   : > { %v3669_v55 = vmul.f32 %v3668_v38, %v10611_v26  ;;  %v3705_v28 = vmul.f32 %v3704_v51, %v10658_v33  ;;  %v4866_v4 = vadd.f32 1.0, %v7438_v36  ;;  %v4564_v32 = vand.u32 2147483648, %v10596_v47  ;;  %v8213_v51 = vld [vmem:[%s9424_s27 + $0x44] sm:$0xf0] }
 0x6bf   : > { %v3655_v21 = vadd.f32 0.0036580483, %v3654_v45  ;;  %v3693_v2 = vadd.f32 0.00028619796, %v3692_v35  ;;  %v4579_v44 = vadd.f32 0.18741608, %v4578_v17  ;;  %v3970_v53 = vmul.f32 %v10682_v19, %v10682_v19 }
 0x6c0   : > { %v3670_v15 = vadd.f32 0.4994258, %v3669_v55  ;;  %v3706_v57 = vadd.f32 0.014752088, %v3705_v28  ;;  %v4281_v11 = vsel %vm10703_vm1, %v10613_v29, %v4277_v52  ;;  %vm4559_vm2 = vweird.f32 %v10640_v42  ;;  %v7488_v35 = vld [vmem:[%s9424_s27 + $0x40] sm:$0xf] }
 0x6c1   : > { %v7497_v46 = vor.u32 %v8215_v9, %v7496_v62  ;;  %v7569_v56 = vor.u32 %v8233_v14, %v7568_v5  ;;  %v4557_v23 = vadd.f32 %v10640_v42, %v4556_v16  ;;  %v10716_v45 = vmin.f32 %v3970_v53, 16.0 }
 0x6c2   : > { %v3671_v38 = vmul.f32 %v3670_v15, %v10611_v26  ;;  %v3707_v36 = vmul.f32 %v3706_v57, %v10658_v33  ;;  %vm4558_vm3 = vweird.f32 %v10596_v47  ;;  %v4562_v29 = vand.u32 2147483647, %v10596_v47 }
 0x6c3   : > { %v10720_v17 = vpop.eup %8522  ;;  %v3656_v52 = vmul.f32 %v3655_v21, %v10611_v26  ;;  %v3694_v62 = vmul.f32 %v3693_v2, %v10658_v33  ;;  %5700 = vmatpush.bf16.msrb.mxu0 %v7497_v46  ;;  %5718 = vmatpush.bf16.msrb.mxu1 %v7569_v56  ;;  %v4286_v9 = vsel %vm10686_vm0, %v4285_v54, %v4281_v11  ;;  %v4541_v5 = vadd.f32 1.1283791, %v4540_v13  ;;  %vm10733_vm4 = vmor %vm4558_vm3, %vm4559_vm2  ;;  %v3292_v56 = vpop.f32.mrf.mxu0 }
 0x6c4   : > { %v10728_v16 = vadd.f32 1.0, %v3671_v38  ;;  %v3708_v55 = vadd.f32 0.112945676, %v3707_v36  ;;  %v3328_v28 = vadd.f32 %v3327_v58, %v10581_v22  ;;  %v4580_v47 = vmul.f32 %v4579_v44, %v10558_v48  ;;  %v3346_v44 = vpop.f32.mrf.mxu3 }
 0x6c5   : > { %v3983_v21 = vmul.f32 3.8918573e-05, %v10716_v45  ;;  %v7489_v2 = vor.u32 %v8213_v51, %v7488_v35  ;;  %v10740_v10 = vmul.f32 %v4866_v4, %v10392_v59  ;;  %v4561_v54 = vsel %vm10733_vm4, %v10640_v42, %v4557_v23 }
 0x6c6   : > { %v4565_v50 = vor.u32 1.1754944e-38, %v4564_v32  ;;  %v4594_v13 = vmul.f32 %v10720_v17, %v10674_v7  ;;  %v4287_v15 = vmul.f32 %v4286_v9, %v10668_v34  ;;  %v3657_v57 = vadd.f32 0.05243302, %v3656_v52 }
 0x6c7   : > { %v3695_v53 = vadd.f32 0.0036580483, %v3694_v62  ;;  %v3709_v48 = vmul.f32 %v3708_v55, %v10658_v33  ;;  %5701 = vmatpush.bf16.msrb.mxu0 %v7489_v2  ;;  %vm4563_vm5 = vcmp.eq.f32.partialorder %v4562_v29, 8.507059e+37  ;;  %8524 = vrcp.f32 %v10728_v16 }
 0x6c8   : > { %v3984_v59 = vadd.f32 0.001143296, %v3983_v21  ;;  %v10750_v4 = vadd.f32 %v3346_v44, %v3328_v28  ;;  %v4566_v11 = vsel %vm4563_vm5, %v4565_v50, %v4561_v54  ;;  %v4581_v42 = vadd.f32 1.1283791, %v4580_v47 }
 0x6c9   : > { %v3710_v32 = vadd.f32 0.4994258, %v3709_v48  ;;  %v3972_v46 = vmul.f32 2.1237322e-06, %v10716_v45  ;;  %v4542_v34 = vmul.f32 %v4541_v5, %v10458_v25  ;;  %v4595_v58 = vsub.f32 1.0, %v4594_v13 }
 0x6ca   : > { %v3985_v23 = vmul.f32 %v3984_v59, %v10716_v45  ;;  %v10756_v38 = vmul.f32 0.70710677, %v10750_v4  ;;  %v7439_v36 = vclamps-f32 %v4287_v15, 1.0  ;;  %v3658_v35 = vmul.f32 %v3657_v57, %v10611_v26  ;;  %v3311_v57 = vpop.f32.mrf.mxu1  ;;  %v7560_v59 = vld [vmem:[%s9424_s27 + $0xd0] sm:$0xf] }
 0x6cb   : > { %v3696_v51 = vmul.f32 %v3695_v53, %v10658_v33  ;;  %v3711_v29 = vmul.f32 %v3710_v32, %v10658_v33  ;;  %v4567_v52 = vmul.f32 %v4566_v11, %v4542_v34  ;;  %v3293_v25 = vadd.f32 %v3292_v56, %v10532_v43 }
 0x6cc   : > { %v3986_v62 = vadd.f32 0.014752088, %v3985_v23  ;;  %v4010_v9 = vmul.f32 %v10756_v38, %v10756_v38  ;;  %v10765_v55 = vmul.f32 %v4581_v42, %v10522_v63  ;;  %v4602_v28 = vand.u32 2147483647, %v10674_v7  ;;  %v8211_v23 = vld [vmem:[%s9424_s27 + $0x34] sm:$0xf0] }
 0x6cd   : > { %v10769_v5 = vmul.f32 0.5, %v10616_v37  ;;  %v3973_v14 = vadd.f32 0.00028619796, %v3972_v46  ;;  %v10771_v47 = vpop.eup %8524  ;;  %v4596_v21 = vmul.f32 %v10720_v17, %v4595_v58  ;;  %v10774_v2 = vadd.f32 1.0, %v3711_v29  ;;  %v8231_v46 = vld [vmem:[%s9424_s27 + $0xd4] sm:$0xf0] }
 0x6ce   : > { %v3987_v54 = vmul.f32 %v3986_v62, %v10716_v45  ;;  %v10777_v50 = vmin.f32 %v4010_v9, 16.0  ;;  %v4604_v63 = vand.u32 2147483648, %v10674_v7  ;;  %v3659_v13 = vadd.f32 0.18741608, %v3658_v35 }
 0x6cf   : > { %v3697_v15 = vadd.f32 0.05243302, %v3696_v51  ;;  %v10781_v37 = vmul.f32 0.5, %v10665_v3  ;;  %v4867_v53 = vadd.f32 1.0, %v7439_v36  ;;  %v7446_v48 = vclamps-f32 %v4567_v52, 1.0 }
 0x6d0   : > { %8526 = vrcp.f32 %v10774_v2  ;;  %v10784_v44 = vadd.f32 %v3311_v57, %v3293_v25  ;;  %vm4598_vm6 = vweird.f32 %v10674_v7  ;;  %v3674_v11 = vmul.f32 %v10771_v47, %v10728_v16  ;;  %v7480_v3 = vld [vmem:[%s9424_s27 + $0x30] sm:$0xf] }
 0x6d1   : > { %v3974_v42 = vmul.f32 %v3973_v14, %v10716_v45  ;;  %v3988_v32 = vadd.f32 0.112945676, %v3987_v54  ;;  %v4597_v56 = vadd.f32 %v10720_v17, %v4596_v21  ;;  %vm4599_vm7 = vweird.f32 %v10720_v17 }
 0x6d2   : > { %vm10795_vm8 = vcmp.eq.f32.partialorder %v4602_v28, 8.507059e+37  ;;  %v4023_v58 = vmul.f32 3.8918573e-05, %v10777_v50  ;;  %v4605_v36 = vor.u32 1.1754944e-38, %v4604_v63  ;;  %v3660_v35 = vmul.f32 %v3659_v13, %v10611_v26  ;;  %vm10809_vm9 = vmor %vm4598_vm6, %vm4599_vm7 }
 0x6d3   : > { %v3698_v51 = vmul.f32 %v3697_v15, %v10658_v33  ;;  %v3989_v29 = vmul.f32 %v3988_v32, %v10716_v45  ;;  %v4874_v52 = vadd.f32 1.0, %v7446_v48  ;;  %v10805_v9 = vmul.f32 0.70710677, %v10784_v44  ;;  %v7552_v48 = vld [vmem:[%s9424_s27 + $0xc0] sm:$0xf] }
 0x6d4   : > { %v4024_v62 = vadd.f32 0.001143296, %v4023_v58  ;;  %v7561_v25 = vor.u32 %v8231_v46, %v7560_v59  ;;  %v3675_v14 = vsub.f32 1.0, %v3674_v11  ;;  %v3975_v26 = vadd.f32 0.0036580483, %v3974_v42 }
 0x6d5   : > { %v3990_v21 = vadd.f32 0.4994258, %v3989_v29  ;;  %v7481_v54 = vor.u32 %v8211_v23, %v7480_v3  ;;  %v4601_v13 = vsel %vm10809_vm9, %v10720_v17, %v4597_v56  ;;  %v4012_v15 = vmul.f32 2.1237322e-06, %v10777_v50  ;;  %v8229_v59 = vld [vmem:[%s9424_s27 + $0xc4] sm:$0xf0] }
 0x6d6   : > { %v10813_v63 = vpop.eup %8526  ;;  %v4025_v57 = vmul.f32 %v4024_v62, %v10777_v50  ;;  %v4290_v7 = vmul.f32 %v10805_v9, %v10805_v9  ;;  %5719 = vmatpush.bf16.msrb.mxu1 %v7561_v25  ;;  %v10825_v11 = vmul.f32 %v4867_v53, %v10565_v6  ;;  %v3661_v42 = vadd.f32 1.1283791, %v3660_v35 }
 0x6d7   : > { %v3682_v32 = vand.u32 2147483647, %v10728_v16  ;;  %v3699_v46 = vadd.f32 0.18741608, %v3698_v51  ;;  %5702 = vmatpush.bf16.msrb.mxu0 %v7481_v54  ;;  %v3714_v17 = vmul.f32 %v10813_v63, %v10774_v2  ;;  %v3991_v3 = vmul.f32 %v3990_v21, %v10716_v45  ;;  %v3330_v54 = vpop.f32.mrf.mxu2 }
 0x6d8   : > { %v4026_v56 = vadd.f32 0.014752088, %v4025_v57  ;;  %v10831_v58 = vmin.f32 %v4290_v7, 16.0  ;;  %v4606_v23 = vsel %vm10795_vm8, %v4605_v36, %v4601_v13  ;;  %v3676_v29 = vmul.f32 %v10771_v47, %v3675_v14  ;;  %v7472_v13 = vld [vmem:[%s9424_s27 + $0x20] sm:$0xf] }
 0x6d9   : > { %v3976_v6 = vmul.f32 %v3975_v26, %v10716_v45  ;;  %v7553_v53 = vor.u32 %v8229_v59, %v7552_v48  ;;  %v3684_v35 = vand.u32 2147483648, %v10728_v16  ;;  %v10838_v51 = vadd.f32 1.0, %v3991_v3  ;;  %v7544_v48 = vld [vmem:[%s9424_s27 + $0xb0] sm:$0xf]  ;;  %v3294_v3 = vpop.f32.mrf.mxu0 }
 0x6da   : > { %v4013_v62 = vadd.f32 0.00028619796, %v4012_v15  ;;  %v4027_v25 = vmul.f32 %v4026_v56, %v10777_v50  ;;  %v10842_v28 = vmul.f32 %v4874_v52, %v10578_v27  ;;  %v10845_v34 = vmul.f32 %v3661_v42, %v10593_v41  ;;  %v8209_v52 = vld [vmem:[%s9424_s27 + $0x24] sm:$0xf0]  ;;  %v8227_v56 = vld [vmem:[%s9424_s27 + $0xb4] sm:$0xf0] }
 0x6db   : > { %v3700_v36 = vmul.f32 %v3699_v46, %v10658_v33  ;;  %v4303_v14 = vmul.f32 3.8918573e-05, %v10831_v58  ;;  %5720 = vmatpush.bf16.msrb.mxu1 %v7553_v53  ;;  %v4607_v26 = vmul.f32 %v4606_v23, %v10765_v55  ;;  %vm3678_vm10 = vweird.f32 %v10728_v16  ;;  %v3349_v53 = vpop.f32.mrf.mxu3 }
 0x6dc   : > { %v3715_v21 = vsub.f32 1.0, %v3714_v17  ;;  %8528 = vrcp.f32 %v10838_v51  ;;  %v3677_v27 = vadd.f32 %v10771_v47, %v3676_v29  ;;  %vm3679_vm11 = vweird.f32 %v10771_v47 }
 0x6dd   : > { %v3977_v41 = vadd.f32 0.05243302, %v3976_v6  ;;  %v4028_v33 = vadd.f32 0.112945676, %v4027_v25  ;;  %vm10856_vm12 = vcmp.eq.f32.partialorder %v3682_v32, 8.507059e+37  ;;  %v3685_v55 = vor.u32 1.1754944e-38, %v3684_v35  ;;  %vm10870_vm13 = vmor %vm3678_vm10, %vm3679_vm11 }
 0x6de   : > { %v4014_v57 = vmul.f32 %v4013_v62, %v10777_v50  ;;  %v4304_v7 = vadd.f32 0.001143296, %v4303_v14  ;;  %v3701_v59 = vadd.f32 1.1283791, %v3700_v36  ;;  %v4292_v46 = vmul.f32 2.1237322e-06, %v10831_v58 }
 0x6df   : > { %v4029_v42 = vmul.f32 %v4028_v33, %v10777_v50  ;;  %v3331_v17 = vadd.f32 %v3330_v54, %v10581_v22  ;;  %v7447_v23 = vclamps-f32 %v4607_v26, 1.0  ;;  %v3716_v29 = vmul.f32 %v10813_v63, %v3715_v21 }
 0x6e0   : > { %v4305_v6 = vmul.f32 %v4304_v7, %v10831_v58  ;;  %v7473_v35 = vor.u32 %v8209_v52, %v7472_v13  ;;  %v3681_v62 = vsel %vm10870_vm13, %v10771_v47, %v3677_v27  ;;  %v3978_v25 = vmul.f32 %v3977_v41, %v10716_v45 }
 0x6e1   : > { %v4030_v36 = vadd.f32 0.4994258, %v4029_v42  ;;  %v10880_v14 = vadd.f32 %v3349_v53, %v3331_v17  ;;  %v4015_v26 = vadd.f32 0.0036580483, %v4014_v57  ;;  %v3295_v21 = vadd.f32 %v3294_v3, %v10532_v43 }
 0x6e2   : > { %v10882_v16 = vpop.eup %8528  ;;  %v4306_v54 = vadd.f32 0.014752088, %v4305_v6  ;;  %5703 = vmatpush.bf16.msrb.mxu0 %v7473_v35  ;;  %v7545_v33 = vor.u32 %v8227_v56, %v7544_v48  ;;  %vm3718_vm14 = vweird.f32 %v10774_v2  ;;  %v3722_v13 = vand.u32 2147483647, %v10774_v2 }
 0x6e3   : > { %v3994_v47 = vmul.f32 %v10882_v16, %v10838_v51  ;;  %v4293_v27 = vadd.f32 0.00028619796, %v4292_v46  ;;  %v3717_v41 = vadd.f32 %v10813_v63, %v3716_v29  ;;  %vm3719_vm15 = vweird.f32 %v10813_v63  ;;  %v3313_v46 = vpop.f32.mrf.mxu1 }
 0x6e4   : > { %v4031_v52 = vmul.f32 %v4030_v36, %v10777_v50  ;;  %v4307_v57 = vmul.f32 %v4306_v54, %v10831_v58  ;;  %5721 = vmatpush.bf16.msrb.mxu1 %v7545_v33  ;;  %v3686_v43 = vsel %vm10856_vm12, %v3685_v55, %v3681_v62  ;;  %v3724_v7 = vand.u32 2147483648, %v10774_v2  ;;  %vm10906_vm0 = vmor %vm3718_vm14, %vm3719_vm15  ;;  %v7536_v33 = vld [vmem:[%s9424_s27 + $0xa0] sm:$0xf] }
 0x6e5   : > { %v3979_v48 = vadd.f32 0.18741608, %v3978_v25  ;;  %v10897_v42 = vmul.f32 0.70710677, %v10880_v14  ;;  %v4016_v17 = vmul.f32 %v4015_v26, %v10777_v50  ;;  %v10902_v32 = vadd.f32 %v3313_v46, %v3295_v21  ;;  %v7464_v25 = vld [vmem:[%s9424_s27 + $0x10] sm:$0xf] }
 0x6e6   : > { %v10900_v3 = vadd.f32 1.0, %v4031_v52  ;;  %v4308_v56 = vadd.f32 0.112945676, %v4307_v57  ;;  %v3995_v55 = vsub.f32 1.0, %v3994_v47  ;;  %v10911_v29 = vmul.f32 0.5, %v10750_v4 }
 0x6e7   : > { %v4294_v6 = vmul.f32 %v4293_v27, %v10831_v58  ;;  %v4330_v53 = vmul.f32 %v10897_v42, %v10897_v42  ;;  %v4875_v35 = vadd.f32 1.0, %v7447_v23  ;;  %v3702_v62 = vmul.f32 %v3701_v59, %v10637_v0  ;;  %v8207_v21 = vld [vmem:[%s9424_s27 + $0x14] sm:$0xf0] }
 0x6e8   : > { %v3721_v2 = vsel %vm10906_vm0, %v10813_v63, %v3717_v41  ;;  %8530 = vrcp.f32 %v10900_v3  ;;  %v3687_v36 = vmul.f32 %v3686_v43, %v10845_v34  ;;  %v3725_v4 = vor.u32 1.1754944e-38, %v3724_v7  ;;  %v8225_v34 = vld [vmem:[%s9424_s27 + $0xa4] sm:$0xf0] }
 0x6e9   : > { %v4309_v26 = vmul.f32 %v4308_v56, %v10831_v58  ;;  %v10924_v54 = vmin.f32 %v4330_v53, 16.0  ;;  %vm3723_vm1 = vcmp.eq.f32.partialorder %v3722_v13, 8.507059e+37  ;;  %v3980_v0 = vmul.f32 %v3979_v48, %v10716_v45 }
 0x6ea   : > { %v4017_v59 = vadd.f32 0.05243302, %v4016_v17  ;;  %v10930_v23 = vmul.f32 0.70710677, %v10902_v32  ;;  %v3726_v63 = vsel %vm3723_vm1, %v3725_v4, %v3721_v2  ;;  %v3996_v47 = vmul.f32 %v10882_v16, %v3995_v55 }
 0x6eb   : > { %v4295_v27 = vadd.f32 0.0036580483, %v4294_v6  ;;  %v4310_v41 = vadd.f32 0.4994258, %v4309_v26  ;;  %v4332_v52 = vmul.f32 2.1237322e-06, %v10924_v54  ;;  %v7465_v13 = vor.u32 %v8207_v21, %v7464_v25 }
 0x6ec   : > { %v4343_v57 = vmul.f32 3.8918573e-05, %v10924_v54  ;;  %v4610_v43 = vmul.f32 %v10930_v23, %v10930_v23  ;;  %v10939_v45 = vmul.f32 %v4875_v35, %v10607_v49  ;;  %v7424_v7 = vclamps-f32 %v3687_v36, 1.0  ;;  %v3332_v35 = vpop.f32.mrf.mxu2 }
 0x6ed   : > { %v10942_v48 = vmul.f32 0.5, %v10784_v44  ;;  %v4311_v46 = vmul.f32 %v4310_v41, %v10831_v58  ;;  %v3981_v56 = vadd.f32 1.1283791, %v3980_v0  ;;  %5704 = vmatpush.bf16.msrb.mxu0 %v7465_v13  ;;  %v7537_v6 = vor.u32 %v8225_v34, %v7536_v33  ;;  %v7456_v0 = vld [vmem:[%s9424_s27] sm:$0xf] }
 0x6ee   : > { %v10945_v17 = vpop.eup %8530  ;;  %v4344_v15 = vadd.f32 0.001143296, %v4343_v57  ;;  %v10947_v55 = vmin.f32 %v4610_v43, 16.0  ;;  %v3727_v53 = vmul.f32 %v3726_v63, %v3702_v62  ;;  %v4018_v2 = vmul.f32 %v4017_v59, %v10777_v50 }
 0x6ef   : > { %v4034_v49 = vmul.f32 %v10945_v17, %v10900_v3  ;;  %v4296_v44 = vmul.f32 %v4295_v27, %v10831_v58  ;;  %v3997_v25 = vadd.f32 %v10882_v16, %v3996_v47  ;;  %vm3999_vm2 = vweird.f32 %v10882_v16  ;;  %5722 = vmatpush.bf16.msrb.mxu1 %v7537_v6  ;;  %v8205_v27 = vld [vmem:[%s9424_s27 + $0x4] sm:$0xf0] }
 0x6f0   : > { %v4333_v36 = vadd.f32 0.00028619796, %v4332_v52  ;;  %v4345_v4 = vmul.f32 %v4344_v15, %v10924_v54  ;;  %v4852_v26 = vadd.f32 1.0, %v7424_v7  ;;  %v10956_v62 = vadd.f32 1.0, %v4311_v46  ;;  %v3351_v15 = vpop.f32.mrf.mxu3 }
 0x6f1   : > { %v4035_v21 = vsub.f32 1.0, %v4034_v49  ;;  %v4623_v33 = vmul.f32 3.8918573e-05, %v10947_v55  ;;  %vm3998_vm3 = vweird.f32 %v10838_v51  ;;  %v4002_v59 = vand.u32 2147483647, %v10838_v51 }
 0x6f2   : > { %v4004_v63 = vand.u32 2147483648, %v10838_v51  ;;  %v3333_v47 = vadd.f32 %v3332_v35, %v10581_v22  ;;  %v3982_v41 = vmul.f32 %v3981_v56, %v10682_v19  ;;  %vm10968_vm4 = vmor %vm3998_vm3, %vm3999_vm2  ;;  %v4019_v52 = vadd.f32 0.18741608, %v4018_v2 }
 0x6f3   : > { %v4297_v57 = vadd.f32 0.05243302, %v4296_v44  ;;  %v4346_v43 = vadd.f32 0.014752088, %v4345_v4  ;;  %v7425_v13 = vclamps-f32 %v3727_v53, 1.0  ;;  %v4001_v7 = vsel %vm10968_vm4, %v10882_v16, %v3997_v25 }
 0x6f4   : > { %v4334_v51 = vmul.f32 %v4333_v36, %v10924_v54  ;;  %v4624_v22 = vadd.f32 0.001143296, %v4623_v33  ;;  %v4036_v46 = vmul.f32 %v10945_v17, %v4035_v21  ;;  %8532 = vrcp.f32 %v10956_v62 }
 0x6f5   : > { %v4347_v19 = vmul.f32 %v4346_v43, %v10924_v54  ;;  %v4612_v56 = vmul.f32 2.1237322e-06, %v10947_v55  ;;  %v4005_v6 = vor.u32 1.1754944e-38, %v4004_v63  ;;  %v10981_v53 = vadd.f32 %v3351_v15, %v3333_v47  ;;  %v3363_v43 = vpop.f32.mrf.mxu0 }
 0x6f6   : > { %v4625_v2 = vmul.f32 %v4624_v22, %v10947_v55  ;;  %v7457_v49 = vor.u32 %v8205_v27, %v7456_v0  ;;  %vm4003_vm5 = vcmp.eq.f32.partialorder %v4002_v59, 8.507059e+37  ;;  %v4020_v16 = vmul.f32 %v4019_v52, %v10777_v50  ;;  %v10996_v27 = vld [vmem:[%s9422_s3] sm:$0xff] }
 0x6f7   : > { %v4298_v44 = vmul.f32 %v4297_v57, %v10831_v58  ;;  %v4348_v35 = vadd.f32 0.112945676, %v4347_v19  ;;  %v10986_v25 = vmul.f32 %v4852_v26, %v10654_v12  ;;  %v4853_v36 = vadd.f32 1.0, %v7425_v13 }
 0x6f8   : > { %v4006_v4 = vsel %vm4003_vm5, %v4005_v6, %v4001_v7  ;;  %v4626_v21 = vadd.f32 0.014752088, %v4625_v2  ;;  %5705 = vmatpush.bf16.msrb.mxu0 %v7457_v49  ;;  %v4037_v33 = vadd.f32 %v10945_v17, %v4036_v46  ;;  %vm4039_vm6 = vweird.f32 %v10945_v17  ;;  %v7528_v2 = vld [vmem:[%s9424_s27 + $0x90] sm:$0xf]  ;;  %v8223_v49 = vld [vmem:[%s9424_s27 + $0x94] sm:$0xf0] }
 0x6f9   : > { %v4335_v63 = vadd.f32 0.0036580483, %v4334_v51  ;;  %v4613_v0 = vadd.f32 0.00028619796, %v4612_v56  ;;  %v4349_v59 = vmul.f32 %v4348_v35, %v10924_v54  ;;  %v10993_v47 = vmul.f32 0.70710677, %v10981_v53 }
 0x6fa   : > { %v4627_v50 = vmul.f32 %v4626_v21, %v10947_v55  ;;  %v10999_v12 = vperm.slane %v10996_v27, 4  ;;  %v11001_v26 = vpop.eup %8532  ;;  %v4021_v34 = vadd.f32 1.1283791, %v4020_v16  ;;  %vm4038_vm7 = vweird.f32 %v10900_v3 }
 0x6fb   : > { %v4044_v52 = vand.u32 2147483648, %v10900_v3  ;;  %v4299_v57 = vadd.f32 0.18741608, %v4298_v44  ;;  %5706 = vmatmul.bf16.vlgmr.msrb.gmra.mxu0 %v10651_v18  ;;  %vm11008_vm8 = vmor %vm4038_vm7, %vm4039_vm6  ;;  %v4042_v7 = vand.u32 2147483647, %v10900_v3  ;;  %v4650_v46 = vmul.f32 %v10993_v47, %v10993_v47 }
 0x6fc   : > { %v4350_v51 = vadd.f32 0.4994258, %v4349_v59  ;;  %v4628_v22 = vadd.f32 0.112945676, %v4627_v50  ;;  %v4007_v19 = vmul.f32 %v4006_v4, %v3982_v41  ;;  %v4041_v56 = vsel %vm11008_vm8, %v10945_v17, %v4037_v33  ;;  %v7640_v33 = vld [vmem:[%s9424_s27 + $0x170] sm:$0xf] }
 0x6fd   : > { %v4336_v15 = vmul.f32 %v4335_v63, %v10924_v54  ;;  %v4614_v6 = vmul.f32 %v4613_v0, %v10947_v55  ;;  %v4314_v3 = vmul.f32 %v11001_v26, %v10956_v62  ;;  %v3364_v41 = vadd.f32 %v3363_v43, %v10999_v12  ;;  %v8251_v50 = vld [vmem:[%s9424_s27 + $0x174] sm:$0xf0] }
 0x6fe   : > { %v4351_v16 = vmul.f32 %v4350_v51, %v10924_v54  ;;  %v4629_v44 = vmul.f32 %v4628_v22, %v10947_v55  ;;  %v4045_v35 = vor.u32 1.1754944e-38, %v4044_v52  ;;  %v4300_v4 = vmul.f32 %v4299_v57, %v10831_v58  ;;  %v3382_v22 = vpop.f32.mrf.mxu1 }
 0x6ff   : > { %v11029_v17 = vmul.f32 0.5, %v10880_v14  ;;  %v11031_v21 = vmin.f32 %v4650_v46, 16.0  ;;  %vm4043_vm9 = vcmp.eq.f32.partialorder %v4042_v7, 8.507059e+37  ;;  %v7529_v59 = vor.u32 %v8223_v49, %v7528_v2  ;;  %v7520_v7 = vld [vmem:[%s9424_s27 + $0x80] sm:$0xf] }
 0x700   : > { %v11034_v63 = vadd.f32 1.0, %v4351_v16  ;;  %v4630_v0 = vadd.f32 0.4994258, %v4629_v44  ;;  %v7432_v13 = vclamps-f32 %v4007_v19, 1.0  ;;  %v4046_v51 = vsel %vm4043_vm9, %v4045_v35, %v4041_v56  ;;  %v8221_v16 = vld [vmem:[%s9424_s27 + $0x84] sm:$0xf0] }
 0x701   : > { %v4337_v43 = vadd.f32 0.05243302, %v4336_v15  ;;  %v4615_v52 = vadd.f32 0.0036580483, %v4614_v6  ;;  %v11038_v58 = vmul.f32 %v4853_v36, %v10769_v5  ;;  %v4022_v14 = vmul.f32 %v4021_v34, %v10756_v38  ;;  %5723 = vmatpush.bf16.msrb.mxu1 %v7529_v59  ;;  %v7632_v59 = vld [vmem:[%s9424_s27 + $0x160] sm:$0xf] }
 0x702   : > { %v4315_v57 = vsub.f32 1.0, %v4314_v3  ;;  %v11041_v46 = vadd.f32 %v3382_v22, %v3364_v41  ;;  %v4301_v1 = vadd.f32 1.1283791, %v4300_v4  ;;  %v4322_v2 = vand.u32 2147483647, %v10956_v62 }
 0x703   : > { %v4631_v19 = vmul.f32 %v4630_v0, %v10947_v55  ;;  %v4652_v56 = vmul.f32 2.1237322e-06, %v11031_v21  ;;  %v4047_v15 = vmul.f32 %v4046_v51, %v4022_v14  ;;  %8534 = vrcp.f32 %v11034_v63  ;;  %v7704_v22 = vld [vmem:[%s9424_s27 + $0x1f0] sm:$0xf]  ;;  %v8267_v14 = vld [vmem:[%s9424_s27 + $0x1f4] sm:$0xf0] }
 0x704   : > { %v4663_v5 = vmul.f32 3.8918573e-05, %v11031_v21  ;;  %v7641_v38 = vor.u32 %v8251_v50, %v7640_v33  ;;  %v4860_v36 = vadd.f32 1.0, %v7432_v13  ;;  %v4338_v34 = vmul.f32 %v4337_v43, %v10924_v54 }
 0x705   : > { %v4616_v6 = vmul.f32 %v4615_v52, %v10947_v55  ;;  %v11052_v49 = vadd.f32 1.0, %v4631_v19  ;;  %v4316_v3 = vmul.f32 %v11001_v26, %v4315_v57  ;;  %v11056_v41 = vmul.f32 0.70710677, %v11041_v46  ;;  %v3401_v19 = vpop.f32.mrf.mxu2 }
 0x706   : > { %v4664_v44 = vadd.f32 0.001143296, %v4663_v5  ;;  %5736 = vmatpush.bf16.msrb.mxu2 %v7641_v38  ;;  %v7521_v35 = vor.u32 %v8221_v16, %v7520_v7  ;;  %v11059_v4 = vmul.f32 %v4301_v1, %v10805_v9  ;;  %vm4318_vm10 = vweird.f32 %v10956_v62  ;;  %v8249_v1 = vld [vmem:[%s9424_s27 + $0x164] sm:$0xf0]  ;;  %v3365_v38 = vpop.f32.mrf.mxu0 }
 0x707   : > { %v11063_v33 = vmul.f32 0.5, %v10902_v32  ;;  %v4653_v0 = vadd.f32 0.00028619796, %v4652_v56  ;;  %v7433_v50 = vclamps-f32 %v4047_v15, 1.0  ;;  %vm11066_vm11 = vcmp.eq.f32.partialorder %v4322_v2, 8.507059e+37 }
 0x708   : > { %v4324_v51 = vand.u32 2147483648, %v10956_v62  ;;  %v4665_v43 = vmul.f32 %v4664_v44, %v11031_v21  ;;  %5724 = vmatpush.bf16.msrb.mxu1 %v7521_v35  ;;  %v4892_v9 = vmul.f32 %v4860_v36, %v10781_v37  ;;  %v4617_v52 = vadd.f32 0.05243302, %v4616_v6 }
 0x709   : > { %8536 = vrcp.f32 %v11052_v49  ;;  %v3730_v32 = vmul.f32 %v11056_v41, %v11056_v41  ;;  %v11079_v57 = vpop.eup %8534  ;;  %v4317_v7 = vadd.f32 %v11001_v26, %v4316_v3  ;;  %vm4319_vm12 = vweird.f32 %v11001_v26 }
 0x70a   : > { %v4339_v16 = vadd.f32 0.18741608, %v4338_v34  ;;  %v4666_v2 = vadd.f32 0.014752088, %v4665_v43  ;;  %v4654_v56 = vmul.f32 %v4653_v0, %v11031_v21  ;;  %v11087_v15 = vperm.slane %v10996_v27, 5  ;;  %vm11093_vm13 = vmor %vm4318_vm10, %vm4319_vm12 }
 0x70b   : > { %v11084_v37 = vmin.f32 %v3730_v32, 16.0  ;;  %v7633_v5 = vor.u32 %v8249_v1, %v7632_v59  ;;  %5725 = vmatmul.bf16.vlgmr.msrb.gmra.mxu1 %v10660_v8  ;;  %v4861_v36 = vadd.f32 1.0, %v7433_v50  ;;  %v4325_v6 = vor.u32 1.1754944e-38, %v4324_v51  ;;  %v3420_v1 = vpop.f32.mrf.mxu3 }
 0x70c   : > { %v4667_v3 = vmul.f32 %v4666_v2, %v11031_v21  ;;  %v7705_v44 = vor.u32 %v8267_v14, %v7704_v22  ;;  %v4354_v35 = vmul.f32 %v11079_v57, %v11034_v63  ;;  %v4618_v0 = vmul.f32 %v4617_v52, %v10947_v55 }
 0x70d   : > { %v3743_v59 = vmul.f32 3.8918573e-05, %v11084_v37  ;;  %v3402_v43 = vadd.f32 %v3401_v19, %v11087_v15  ;;  %5737 = vmatpush.bf16.msrb.mxu2 %v7633_v5  ;;  %v4321_v50 = vsel %vm11093_vm13, %v11001_v26, %v4317_v7  ;;  %v4340_v62 = vmul.f32 %v4339_v16, %v10924_v54 }
 0x70e   : > { %v4668_v51 = vadd.f32 0.112945676, %v4667_v3  ;;  %v3366_v32 = vadd.f32 %v3365_v38, %v10999_v12  ;;  %5755 = vmatpush.bf16.msrb.mxu3 %v7705_v44  ;;  %v4655_v14 = vadd.f32 0.0036580483, %v4654_v56  ;;  %v3732_v52 = vmul.f32 2.1237322e-06, %v11084_v37  ;;  %v3384_v3 = vpop.f32.mrf.mxu1 }
 0x70f   : > { %v11107_v22 = vpop.eup %8536  ;;  %v3744_v2 = vadd.f32 0.001143296, %v3743_v59  ;;  %v11110_v24 = vadd.f32 %v3420_v1, %v3402_v43  ;;  %v11113_v19 = vpack.c.bf16 %v4892_v9, %v10986_v25  ;;  %v4893_v26 = vmul.f32 %v4861_v36, %v10911_v29 }
 0x710   : > { %v11117_v54 = vmul.f32 0.5, %v10981_v53  ;;  %v4669_v7 = vmul.f32 %v4668_v51, %v11031_v21  ;;  %v4326_v16 = vsel %vm11066_vm11, %v4325_v6, %v4321_v50  ;;  %v4355_v5 = vsub.f32 1.0, %v4354_v35 }
 0x711   : > { %12669 = vst [vmem:[#allocation39_spill] sm:$0xff] %v11113_v19  ;;  %v4619_v56 = vadd.f32 0.18741608, %v4618_v0  ;;  %v3745_v38 = vmul.f32 %v3744_v2, %v11084_v37  ;;  %v11123_v44 = vadd.f32 1.1283791, %v4340_v62  ;;  %v4634_v25 = vmul.f32 %v11107_v22, %v11052_v49 }
 0x712   : > { %v4670_v9 = vadd.f32 0.4994258, %v4669_v7  ;;  %v11127_v29 = vadd.f32 %v3384_v3, %v3366_v32  ;;  %v4656_v53 = vmul.f32 %v4655_v14, %v11031_v21  ;;  %v3733_v36 = vadd.f32 0.00028619796, %v3732_v52  ;;  %v7624_v7 = vld [vmem:[%s9424_s27 + $0x150] sm:$0xf] }
 0x713   : > { %v3746_v34 = vadd.f32 0.014752088, %v3745_v38  ;;  %v11131_v13 = vmul.f32 0.70710677, %v11110_v24  ;;  %v4327_v6 = vmul.f32 %v4326_v16, %v11059_v4  ;;  %v4362_v35 = vand.u32 2147483647, %v11034_v63 }
 0x714   : > { %v4364_v0 = vand.u32 2147483648, %v11034_v63  ;;  %v4671_v59 = vmul.f32 %v4670_v9, %v11031_v21  ;;  %v4356_v43 = vmul.f32 %v11079_v57, %v4355_v5  ;;  %v4620_v50 = vmul.f32 %v4619_v56, %v10947_v55  ;;  %v8247_v38 = vld [vmem:[%s9424_s27 + $0x154] sm:$0xf0] }
 0x715   : > { %v11140_v62 = vmul.f32 0.5, %v11041_v46  ;;  %v3747_v51 = vmul.f32 %v3746_v34, %v11084_v37  ;;  %v4635_v1 = vsub.f32 1.0, %v4634_v25  ;;  %v3770_v4 = vmul.f32 %v11131_v13, %v11131_v13  ;;  %v8265_v34 = vld [vmem:[%s9424_s27 + $0x1e4] sm:$0xf0] }
 0x716   : > { %v11143_v32 = vadd.f32 1.0, %v4671_v59  ;;  %v11148_v14 = vmul.f32 0.70710677, %v11127_v29  ;;  %v11151_v52 = vpack.c.bf16 %v4893_v26, %v11038_v58  ;;  %v4657_v55 = vadd.f32 0.05243302, %v4656_v53 }
 0x717   : > { %v3734_v2 = vmul.f32 %v3733_v36, %v11084_v37  ;;  %v3748_v46 = vadd.f32 0.112945676, %v3747_v51  ;;  %v7440_v16 = vclamps-f32 %v4327_v6, 1.0  ;;  %vm4358_vm14 = vweird.f32 %v11034_v63  ;;  %v7696_v26 = vld [vmem:[%s9424_s27 + $0x1e0] sm:$0xf] }
 0x718   : > { %12670 = vst [vmem:[#allocation40_spill] sm:$0xff] %v11151_v52  ;;  %vm11156_vm15 = vcmp.eq.f32.partialorder %v4362_v35, 8.507059e+37  ;;  %v4365_v56 = vor.u32 1.1754944e-38, %v4364_v0  ;;  %v4357_v3 = vadd.f32 %v11079_v57, %v4356_v43  ;;  %vm4359_vm0 = vweird.f32 %v11079_v57 }
 0x719   : > { %8538 = vrcp.f32 %v11143_v32  ;;  %v3749_v58 = vmul.f32 %v3748_v46, %v11084_v37  ;;  %v4621_v25 = vadd.f32 1.1283791, %v4620_v50  ;;  %v4636_v9 = vmul.f32 %v11107_v22, %v4635_v1  ;;  %vm11175_vm1 = vmor %vm4358_vm14, %vm4359_vm0 }
 0x71a   : > { %v11167_v53 = vmin.f32 %v3770_v4, 16.0  ;;  %v4050_v36 = vmul.f32 %v11148_v14, %v11148_v14  ;;  %v4658_v6 = vmul.f32 %v4657_v55, %v11031_v21  ;;  %v3735_v35 = vadd.f32 0.0036580483, %v3734_v2  ;;  %v3403_v4 = vpop.f32.mrf.mxu2 }
 0x71b   : > { %v3750_v0 = vadd.f32 0.4994258, %v3749_v58  ;;  %v7625_v59 = vor.u32 %v8247_v38, %v7624_v7  ;;  %vm4638_vm2 = vweird.f32 %v11052_v49  ;;  %v4361_v55 = vsel %vm11175_vm1, %v11079_v57, %v4357_v3 }
 0x71c   : > { %v3772_v50 = vmul.f32 2.1237322e-06, %v11167_v53  ;;  %v3783_v51 = vmul.f32 3.8918573e-05, %v11167_v53  ;;  %v11182_v1 = vmin.f32 %v4050_v36, 16.0  ;;  %v4644_v2 = vand.u32 2147483648, %v11052_v49 }
 0x71d   : > { %v3751_v63 = vmul.f32 %v3750_v0, %v11084_v37  ;;  %5738 = vmatpush.bf16.msrb.mxu2 %v7625_v59  ;;  %v7697_v46 = vor.u32 %v8265_v34, %v7696_v26  ;;  %v4637_v7 = vadd.f32 %v11107_v22, %v4636_v9  ;;  %vm4639_vm3 = vweird.f32 %v11107_v22 }
 0x71e   : > { %v3773_v38 = vadd.f32 0.00028619796, %v3772_v50  ;;  %v3784_v58 = vadd.f32 0.001143296, %v3783_v51  ;;  %v4642_v36 = vand.u32 2147483647, %v11052_v49  ;;  %v3404_v57 = vadd.f32 %v3403_v4, %v11087_v15  ;;  %vm11208_vm4 = vmor %vm4638_vm2, %vm4639_vm3 }
 0x71f   : > { %v11191_v61 = vpop.eup %8538  ;;  %v4659_v31 = vadd.f32 0.18741608, %v4658_v6  ;;  %v11194_v40 = vadd.f32 1.0, %v3751_v63  ;;  %5756 = vmatpush.bf16.msrb.mxu3 %v7697_v46  ;;  %v4366_v3 = vsel %vm11156_vm15, %v4365_v56, %v4361_v55  ;;  %v3736_v26 = vmul.f32 %v3735_v35, %v11084_v37  ;;  %v3422_v35 = vpop.f32.mrf.mxu3  ;;  %v7616_v49 = vld [vmem:[%s9424_s27 + $0x140] sm:$0xf] }
 0x720   : > { %v3785_v9 = vmul.f32 %v3784_v58, %v11167_v53  ;;  %v4063_v34 = vmul.f32 3.8918573e-05, %v11182_v1  ;;  %v4868_v0 = vadd.f32 1.0, %v7440_v16  ;;  %v4342_v6 = vmul.f32 %v11123_v44, %v10897_v42  ;;  %v8245_v55 = vld [vmem:[%s9424_s27 + $0x144] sm:$0xf0] }
 0x721   : > { %8540 = vrcp.f32 %v11194_v40  ;;  %v4052_v5 = vmul.f32 2.1237322e-06, %v11182_v1  ;;  %v4641_v56 = vsel %vm11208_vm4, %v11107_v22, %v4637_v7  ;;  %v4645_v16 = vor.u32 1.1754944e-38, %v4644_v2 }
 0x722   : > { %v4674_v42 = vmul.f32 %v11191_v61, %v11143_v32  ;;  %v3774_v44 = vmul.f32 %v3773_v38, %v11167_v53  ;;  %v4367_v43 = vmul.f32 %v4366_v3, %v4342_v6  ;;  %v3786_v50 = vadd.f32 0.014752088, %v3785_v9 }
 0x723   : > { %v4064_v51 = vadd.f32 0.001143296, %v4063_v34  ;;  %v11221_v4 = vadd.f32 %v3422_v35, %v3404_v57  ;;  %v4622_v63 = vmul.f32 %v4621_v25, %v10930_v23  ;;  %vm4643_vm5 = vcmp.eq.f32.partialorder %v4642_v36, 8.507059e+37 }
 0x724   : > { %v4660_v46 = vmul.f32 %v4659_v31, %v11031_v21  ;;  %v3737_v22 = vadd.f32 0.05243302, %v3736_v26  ;;  %v4646_v2 = vsel %vm4643_vm5, %v4645_v16, %v4641_v56  ;;  %v3787_v7 = vmul.f32 %v3786_v50, %v11167_v53 }
 0x725   : > { %v4053_v58 = vadd.f32 0.00028619796, %v4052_v5  ;;  %v4065_v38 = vmul.f32 %v4064_v51, %v11182_v1  ;;  %v4675_v59 = vsub.f32 1.0, %v4674_v42  ;;  %v3775_v20 = vadd.f32 0.0036580483, %v3774_v44  ;;  %v3368_v5 = vpop.f32.mrf.mxu0 }
 0x726   : > { %v11229_v3 = vmul.f32 0.70710677, %v11221_v4  ;;  %v7617_v57 = vor.u32 %v8245_v55, %v7616_v49  ;;  %v11234_v23 = vmul.f32 %v4868_v0, %v10942_v48  ;;  %v7441_v25 = vclamps-f32 %v4367_v43, 1.0 }
 0x727   : > { %v11231_v9 = vpop.eup %8540  ;;  %v3788_v31 = vadd.f32 0.112945676, %v3787_v7  ;;  %v4066_v21 = vadd.f32 0.014752088, %v4065_v38  ;;  %v4647_v36 = vmul.f32 %v4646_v2, %v4622_v63  ;;  %v4661_v26 = vadd.f32 1.1283791, %v4660_v46 }
 0x728   : > { %v3738_v34 = vmul.f32 %v3737_v22, %v11084_v37  ;;  %v11238_v6 = vmul.f32 0.5, %v11110_v24  ;;  %5739 = vmatpush.bf16.msrb.mxu2 %v7617_v57  ;;  %v11242_v16 = vmul.f32 0.5, %v11127_v29  ;;  %v4054_v48 = vmul.f32 %v4053_v58, %v11182_v1 }
 0x729   : > { %v3789_v56 = vmul.f32 %v3788_v31, %v11167_v53  ;;  %v4067_v0 = vmul.f32 %v4066_v21, %v11182_v1  ;;  %v4676_v42 = vmul.f32 %v11191_v61, %v4675_v59  ;;  %v3754_v44 = vmul.f32 %v11231_v9, %v11194_v40  ;;  %v3387_v59 = vpop.f32.mrf.mxu1 }
 0x72a   : > { %v3776_v35 = vmul.f32 %v3775_v20, %v11167_v53  ;;  %v4090_v24 = vmul.f32 %v11229_v3, %v11229_v3  ;;  %v4869_v49 = vadd.f32 1.0, %v7441_v25  ;;  %v3369_v29 = vadd.f32 %v3368_v5, %v10999_v12 }
 0x72b   : > { %v3790_v43 = vadd.f32 0.4994258, %v3789_v56  ;;  %v4068_v50 = vadd.f32 0.112945676, %v4067_v0  ;;  %v7448_v51 = vclamps-f32 %v4647_v36, 1.0  ;;  %vm4678_vm6 = vweird.f32 %v11143_v32 }
 0x72c   : > { %v3739_v55 = vadd.f32 0.18741608, %v3738_v34  ;;  %v11254_v63 = vmin.f32 %v4090_v24, 16.0  ;;  %vm4679_vm7 = vweird.f32 %v11191_v61  ;;  %v4055_v22 = vadd.f32 0.0036580483, %v4054_v48 }
 0x72d   : > { %v3791_v46 = vmul.f32 %v3790_v43, %v11167_v53  ;;  %v4069_v20 = vmul.f32 %v4068_v50, %v11182_v1  ;;  %v4677_v2 = vadd.f32 %v11191_v61, %v4676_v42  ;;  %v3755_v7 = vsub.f32 1.0, %v3754_v44  ;;  %vm11276_vm8 = vmor %vm4678_vm6, %vm4679_vm7  ;;  %v8261_v42 = vld [vmem:[%s9424_s27 + $0x1c4] sm:$0xf0] }
 0x72e   : > { %v3777_v58 = vadd.f32 0.05243302, %v3776_v35  ;;  %v4103_v38 = vmul.f32 3.8918573e-05, %v11254_v63  ;;  %v4092_v31 = vmul.f32 2.1237322e-06, %v11254_v63  ;;  %v11264_v21 = vadd.f32 %v3387_v59, %v3369_v29 }
 0x72f   : > { %v11261_v57 = vadd.f32 1.0, %v3791_v46  ;;  %v4070_v25 = vadd.f32 0.4994258, %v4069_v20  ;;  %v4876_v36 = vadd.f32 1.0, %v7448_v51  ;;  %v4682_v34 = vand.u32 2147483647, %v11143_v32 }
 0x730   : > { %v4684_v5 = vand.u32 2147483648, %v11143_v32  ;;  %v4104_v56 = vadd.f32 0.001143296, %v4103_v38  ;;  %v11269_v48 = vmul.f32 %v4869_v49, %v11029_v17  ;;  %v4662_v0 = vmul.f32 %v4661_v26, %v10993_v47  ;;  %v7688_v49 = vld [vmem:[%s9424_s27 + $0x1d0] sm:$0xf] }
 0x731   : > { %v3740_v44 = vmul.f32 %v3739_v55, %v11084_v37  ;;  %v4056_v35 = vmul.f32 %v4055_v22, %v11182_v1  ;;  %v4681_v24 = vsel %vm11276_vm8, %v11191_v61, %v4677_v2  ;;  %v3756_v17 = vmul.f32 %v11231_v9, %v3755_v7  ;;  %v8263_v32 = vld [vmem:[%s9424_s27 + $0x1d4] sm:$0xf0] }
 0x732   : > { %v3778_v47 = vmul.f32 %v3777_v58, %v11167_v53  ;;  %v4071_v26 = vmul.f32 %v4070_v25, %v11182_v1  ;;  %8542 = vrcp.f32 %v11261_v57  ;;  %v4093_v43 = vadd.f32 0.00028619796, %v4092_v31  ;;  %v8243_v38 = vld [vmem:[%s9424_s27 + $0x134] sm:$0xf0] }
 0x733   : > { %v4105_v37 = vmul.f32 %v4104_v56, %v11254_v63  ;;  %v11293_v50 = vmul.f32 0.70710677, %v11264_v21  ;;  %v11296_v61 = vmul.f32 %v4876_v36, %v11063_v33  ;;  %vm4683_vm9 = vcmp.eq.f32.partialorder %v4682_v34, 8.507059e+37  ;;  %v7608_v33 = vld [vmem:[%s9424_s27 + $0x130] sm:$0xf] }
 0x734   : > { %v4685_v29 = vor.u32 1.1754944e-38, %v4684_v5  ;;  %v11298_v51 = vadd.f32 1.0, %v4071_v26  ;;  %v4057_v55 = vadd.f32 0.05243302, %v4056_v35  ;;  %v7689_v20 = vor.u32 %v8263_v32, %v7688_v49  ;;  %v7680_v34 = vld [vmem:[%s9424_s27 + $0x1c0] sm:$0xf] }
 0x735   : > { %v4106_v46 = vadd.f32 0.014752088, %v4105_v37  ;;  %v4370_v22 = vmul.f32 %v11293_v50, %v11293_v50  ;;  %v3757_v7 = vadd.f32 %v11231_v9, %v3756_v17  ;;  %vm3759_vm10 = vweird.f32 %v11231_v9  ;;  %v8241_v32 = vld [vmem:[%s9424_s27 + $0x124] sm:$0xf0] }
 0x736   : > { %v4686_v2 = vsel %vm4683_vm9, %v4685_v29, %v4681_v24  ;;  %v3779_v58 = vadd.f32 0.18741608, %v3778_v47  ;;  %v3741_v59 = vadd.f32 1.1283791, %v3740_v44  ;;  %v4094_v25 = vmul.f32 %v4093_v43, %v11254_v63  ;;  %5757 = vmatpush.bf16.msrb.mxu3 %v7689_v20  ;;  %v3406_v44 = vpop.f32.mrf.mxu2 }
 0x737   : > { %v4107_v31 = vmul.f32 %v4106_v46, %v11254_v63  ;;  %v11308_v36 = vmin.f32 %v4370_v22, 16.0  ;;  %vm3758_vm11 = vweird.f32 %v11194_v40  ;;  %v3762_v5 = vand.u32 2147483647, %v11194_v40 }
 0x738   : > { %v3764_v56 = vand.u32 2147483648, %v11194_v40  ;;  %8544 = vrcp.f32 %v11298_v51  ;;  %v11316_v35 = vpop.eup %8542  ;;  %v4687_v24 = vmul.f32 %v4686_v2, %v4662_v0  ;;  %vm11320_vm12 = vmor %vm3758_vm11, %vm3759_vm10  ;;  %v4058_v47 = vmul.f32 %v4057_v55, %v11182_v1  ;;  %v7600_v40 = vld [vmem:[%s9424_s27 + $0x120] sm:$0xf] }
 0x739   : > { %v4108_v26 = vadd.f32 0.112945676, %v4107_v31  ;;  %v11327_v49 = vpack.c.bf16 %v10842_v28, %v10740_v10  ;;  %v3761_v43 = vsel %vm11320_vm12, %v11231_v9, %v3757_v7  ;;  %v3780_v0 = vmul.f32 %v3779_v58, %v11167_v53 }
 0x73a   : > { %v4383_v37 = vmul.f32 3.8918573e-05, %v11308_v36  ;;  %v7609_v29 = vor.u32 %v8243_v38, %v7608_v33  ;;  %v4095_v46 = vadd.f32 0.0036580483, %v4094_v25  ;;  %v7681_v55 = vor.u32 %v8261_v42, %v7680_v34  ;;  %v3425_v38 = vpop.f32.mrf.mxu3 }
 0x73b   : > { %12681 = vst [vmem:[#allocation41_spill] sm:$0xff] %v11327_v49  ;;  %v4109_v22 = vmul.f32 %v4108_v26, %v11254_v63  ;;  %5711 = vmatmul.bf16.gmra.mxu0 %v11327_v49  ;;  %v3407_v10 = vadd.f32 %v3406_v44, %v11087_v15  ;;  %v3794_v28 = vmul.f32 %v11316_v35, %v11261_v57  ;;  %v4372_v20 = vmul.f32 2.1237322e-06, %v11308_v36  ;;  %v3370_v44 = vpop.f32.mrf.mxu0 }
 0x73c   : > { %v4384_v2 = vadd.f32 0.001143296, %v4383_v37  ;;  %5740 = vmatpush.bf16.msrb.mxu2 %v7609_v29  ;;  %v7601_v9 = vor.u32 %v8241_v32, %v7600_v40  ;;  %v3742_v53 = vmul.f32 %v3741_v59, %v11056_v41  ;;  %v3765_v7 = vor.u32 1.1754944e-38, %v3764_v56  ;;  %5758 = vmatpush.bf16.msrb.mxu3 %v7681_v55 }
 0x73d   : > { %v4059_v58 = vadd.f32 0.18741608, %v4058_v47  ;;  %v4110_v33 = vadd.f32 0.4994258, %v4109_v22  ;;  %vm3763_vm13 = vcmp.eq.f32.partialorder %v3762_v5, 8.507059e+37  ;;  %v11346_v31 = vmul.f32 0.5, %v11221_v4 }
 0x73e   : > { %v11343_v25 = vpop.eup %8544  ;;  %v4385_v34 = vmul.f32 %v4384_v2, %v11308_v36  ;;  %v11349_v42 = vadd.f32 %v3425_v38, %v3407_v10  ;;  %v3766_v17 = vsel %vm3763_vm13, %v3765_v7, %v3761_v43  ;;  %v3781_v26 = vadd.f32 1.1283791, %v3780_v0  ;;  %v3389_v2 = vpop.f32.mrf.mxu1 }
 0x73f   : > { %v4096_v41 = vmul.f32 %v4095_v46, %v11254_v63  ;;  %v4111_v59 = vmul.f32 %v4110_v33, %v11254_v63  ;;  %v7449_v56 = vclamps-f32 %v4687_v24, 1.0  ;;  %v3795_v47 = vsub.f32 1.0, %v3794_v28 }
 0x740   : > { %v4373_v40 = vadd.f32 0.00028619796, %v4372_v20  ;;  %v4386_v32 = vadd.f32 0.014752088, %v4385_v34  ;;  %5741 = vmatpush.bf16.msrb.mxu2 %v7601_v9  ;;  %v4060_v5 = vmul.f32 %v4059_v58, %v11182_v1  ;;  %v4074_v4 = vmul.f32 %v11343_v25, %v11298_v51  ;;  %v8259_v34 = vld [vmem:[%s9424_s27 + $0x1b4] sm:$0xf0] }
 0x741   : > { %v11356_v37 = vadd.f32 1.0, %v4111_v59  ;;  %v3371_v29 = vadd.f32 %v3370_v44, %v10999_v12  ;;  %v11359_v43 = vmul.f32 %v3766_v17, %v3742_v53  ;;  %v3804_v0 = vand.u32 2147483648, %v11261_v57 }
 0x742   : > { %v4387_v24 = vmul.f32 %v4386_v32, %v11308_v36  ;;  %v11364_v46 = vmul.f32 0.70710677, %v11349_v42  ;;  %v3802_v22 = vand.u32 2147483647, %v11261_v57  ;;  %v4097_v1 = vadd.f32 0.05243302, %v4096_v41 }
 0x743   : > { %8546 = vrcp.f32 %v11356_v37  ;;  %v11369_v55 = vmul.f32 0.5, %v11264_v21  ;;  %v11371_v12 = vadd.f32 1.0, %v7449_v56  ;;  %v11374_v10 = vmul.f32 %v3781_v26, %v11131_v13  ;;  %v7672_v21 = vld [vmem:[%s9424_s27 + $0x1b0] sm:$0xf] }
 0x744   : > { %v3796_v28 = vmul.f32 %v11316_v35, %v3795_v47  ;;  %v4374_v20 = vmul.f32 %v4373_v40, %v11308_v36  ;;  %v4075_v9 = vsub.f32 1.0, %v4074_v4  ;;  %v4388_v53 = vadd.f32 0.112945676, %v4387_v24  ;;  %v7592_v32 = vld [vmem:[%s9424_s27 + $0x110] sm:$0xf] }
 0x745   : > { %v4410_v7 = vmul.f32 %v11364_v46, %v11364_v46  ;;  %v11380_v58 = vadd.f32 %v3389_v2, %v3371_v29  ;;  %v7426_v33 = vclamps-f32 %v11359_v43, 1.0  ;;  %vm3798_vm14 = vweird.f32 %v11261_v57  ;;  %v8239_v24 = vld [vmem:[%s9424_s27 + $0x114] sm:$0xf0] }
 0x746   : > { %v3805_v13 = vor.u32 1.1754944e-38, %v3804_v0  ;;  %v4061_v38 = vadd.f32 1.1283791, %v4060_v5  ;;  %vm11386_vm15 = vcmp.eq.f32.partialorder %v3802_v22, 8.507059e+37  ;;  %v4082_v17 = vand.u32 2147483647, %v11298_v51 }
 0x747   : > { %v4098_v26 = vmul.f32 %v4097_v1, %v11254_v63  ;;  %v4389_v41 = vmul.f32 %v4388_v53, %v11308_v36  ;;  %v11393_v59 = vmin.f32 %v4410_v7, 16.0  ;;  %v3797_v56 = vadd.f32 %v11316_v35, %v3796_v28  ;;  %v7664_v53 = vld [vmem:[%s9424_s27 + $0x1a0] sm:$0xf]  ;;  %v8257_v7 = vld [vmem:[%s9424_s27 + $0x1a4] sm:$0xf0] }
 0x748   : > { %vm3799_vm0 = vweird.f32 %v11316_v35  ;;  %v11398_v47 = vmul.f32 0.70710677, %v11380_v58  ;;  %v11402_v40 = vpack.c.bf16 %v10939_v45, %v10825_v11  ;;  %v4076_v4 = vmul.f32 %v11343_v25, %v4075_v9 }
 0x749   : > { %v11405_v5 = vpop.eup %8546  ;;  %v4375_v29 = vadd.f32 0.0036580483, %v4374_v20  ;;  %v4390_v43 = vadd.f32 0.4994258, %v4389_v41  ;;  %v7673_v0 = vor.u32 %v8259_v34, %v7672_v21  ;;  %v4084_v22 = vand.u32 2147483648, %v11298_v51  ;;  %vm11419_vm1 = vmor %vm3798_vm14, %vm3799_vm0 }
 0x74a   : > { %12684 = vst [vmem:[#allocation42_spill] sm:$0xff] %v11402_v40  ;;  %v4114_v1 = vmul.f32 %v11405_v5, %v11356_v37  ;;  %v4412_v28 = vmul.f32 2.1237322e-06, %v11393_v59  ;;  %v4423_v11 = vmul.f32 3.8918573e-05, %v11393_v59  ;;  %5730 = vmatmul.bf16.gmra.mxu1 %v11402_v40  ;;  %vm4079_vm2 = vweird.f32 %v11343_v25 }
 0x74b   : > { %v4099_v20 = vadd.f32 0.18741608, %v4098_v26  ;;  %v4391_v2 = vmul.f32 %v4390_v43, %v11308_v36  ;;  %v4690_v9 = vmul.f32 %v11398_v47, %v11398_v47  ;;  %5759 = vmatpush.bf16.msrb.mxu3 %v7673_v0  ;;  %v3801_v21 = vsel %vm11419_vm1, %v11316_v35, %v3797_v56  ;;  %v3408_v56 = vpop.f32.mrf.mxu2 }
 0x74c   : > { %v4115_v57 = vsub.f32 1.0, %v4114_v1  ;;  %v4424_v34 = vadd.f32 0.001143296, %v4423_v11  ;;  %v7593_v41 = vor.u32 %v8239_v24, %v7592_v32  ;;  %v4077_v60 = vadd.f32 %v11343_v25, %v4076_v4  ;;  %v7584_v11 = vld [vmem:[%s9424_s27 + $0x100] sm:$0xf] }
 0x74d   : > { %v4376_v30 = vmul.f32 %v4375_v29, %v11308_v36  ;;  %v11434_v26 = vadd.f32 1.0, %v4391_v2  ;;  %v11436_v43 = vmin.f32 %v4690_v9, 16.0  ;;  %v4413_v39 = vadd.f32 0.00028619796, %v4412_v28 }
 0x74e   : > { %v4116_v0 = vmul.f32 %v11405_v5, %v4115_v57  ;;  %v4425_v40 = vmul.f32 %v4424_v34, %v11393_v59  ;;  %5742 = vmatpush.bf16.msrb.mxu2 %v7593_v41  ;;  %v7665_v35 = vor.u32 %v8257_v7, %v7664_v53  ;;  %v11440_v1 = vadd.f32 1.0, %v7426_v33  ;;  %v8237_v33 = vld [vmem:[%s9424_s27 + $0x104] sm:$0xf0] }
 0x74f   : > { %v4062_v32 = vmul.f32 %v4061_v38, %v11148_v14  ;;  %v4100_v4 = vmul.f32 %v4099_v20, %v11254_v63  ;;  %8548 = vrcp.f32 %v11434_v26  ;;  %v3806_v29 = vsel %vm11386_vm15, %v3805_v13, %v3801_v21  ;;  %v3427_v20 = vpop.f32.mrf.mxu3 }
 0x750   : > { %vm4078_vm3 = vweird.f32 %v11298_v51  ;;  %vm11448_vm4 = vcmp.eq.f32.partialorder %v4082_v17, 8.507059e+37  ;;  %v4085_v28 = vor.u32 1.1754944e-38, %v4084_v22  ;;  %5760 = vmatpush.bf16.msrb.mxu3 %v7665_v35  ;;  %v4377_v63 = vadd.f32 0.05243302, %v4376_v30 }
 0x751   : > { %vm11456_vm5 = vmor %vm4078_vm3, %vm4079_vm2  ;;  %v4426_v38 = vadd.f32 0.014752088, %v4425_v40  ;;  %v4703_v13 = vmul.f32 3.8918573e-05, %v11436_v43  ;;  %v3409_v51 = vadd.f32 %v3408_v56, %v11087_v15  ;;  %v4117_v17 = vadd.f32 %v11405_v5, %v4116_v0 }
 0x752   : > { %v4081_v44 = vsel %vm11456_vm5, %v11343_v25, %v4077_v60  ;;  %vm4119_vm6 = vweird.f32 %v11405_v5  ;;  %v4414_v22 = vmul.f32 %v4413_v39, %v11393_v59  ;;  %v4101_v45 = vadd.f32 1.1283791, %v4100_v4  ;;  %v8255_v39 = vld [vmem:[%s9424_s27 + $0x194] sm:$0xf0] }
 0x753   : > { %vm4118_vm7 = vweird.f32 %v11356_v37  ;;  %v4427_v30 = vmul.f32 %v4426_v38, %v11393_v59  ;;  %v4704_v40 = vadd.f32 0.001143296, %v4703_v13  ;;  %v4122_v2 = vand.u32 2147483647, %v11356_v37 }
 0x754   : > { %v4124_v15 = vand.u32 2147483648, %v11356_v37  ;;  %v11472_v9 = vadd.f32 %v3427_v20, %v3409_v51  ;;  %v7585_v60 = vor.u32 %v8237_v33, %v7584_v11  ;;  %v4086_v53 = vsel %vm11448_vm4, %v4085_v28, %v4081_v44  ;;  %vm11478_vm8 = vmor %vm4118_vm7, %vm4119_vm6 }
 0x755   : > { %v11474_v25 = vpop.eup %8548  ;;  %v4378_v7 = vmul.f32 %v4377_v63, %v11308_v36  ;;  %v4428_v21 = vadd.f32 0.112945676, %v4427_v30  ;;  %v4705_v57 = vmul.f32 %v4704_v40, %v11436_v43  ;;  %v3807_v34 = vmul.f32 %v3806_v29, %v11374_v10 }
 0x756   : > { %v4121_v37 = vsel %vm11478_vm8, %v11405_v5, %v4117_v17  ;;  %v4415_v41 = vadd.f32 0.0036580483, %v4414_v22  ;;  %v4692_v0 = vmul.f32 2.1237322e-06, %v11436_v43  ;;  %5743 = vmatpush.bf16.msrb.mxu2 %v7585_v60  ;;  %v4394_v35 = vmul.f32 %v11474_v25, %v11434_v26  ;;  %v3439_v5 = vpop.f32.mrf.mxu0 }
 0x757   : > { %v4429_v56 = vmul.f32 %v4428_v21, %v11393_v59  ;;  %v4706_v4 = vadd.f32 0.014752088, %v4705_v57  ;;  %v11493_v24 = vperm.slane %v10996_v27, 6  ;;  %v4087_v28 = vmul.f32 %v4086_v53, %v4062_v32  ;;  %v7656_v53 = vld [vmem:[%s9424_s27 + $0x190] sm:$0xf] }
 0x758   : > { %v4102_v10 = vmul.f32 %v4101_v45, %v11229_v3  ;;  %v4125_v29 = vor.u32 1.1754944e-38, %v4124_v15  ;;  %v11497_v11 = vmul.f32 0.70710677, %v11472_v9  ;;  %vm4123_vm9 = vcmp.eq.f32.partialorder %v4122_v2, 8.507059e+37 }
 0x759   : > { %v4379_v33 = vadd.f32 0.18741608, %v4378_v7  ;;  %v4430_v14 = vadd.f32 0.4994258, %v4429_v56  ;;  %v4707_v63 = vmul.f32 %v4706_v4, %v11436_v43  ;;  %5744 = vmatmul.bf16.vlgmr.msrb.gmra.mxu2 %v11113_v19  ;;  %v4416_v27 = vmul.f32 %v4415_v41, %v11393_v59 }
 0x75a   : > { %v4126_v38 = vsel %vm4123_vm9, %v4125_v29, %v4121_v37  ;;  %v4693_v32 = vadd.f32 0.00028619796, %v4692_v0  ;;  %v4730_v3 = vmul.f32 %v11497_v11, %v11497_v11  ;;  %v4395_v13 = vsub.f32 1.0, %v4394_v35  ;;  %v7768_v37 = vld [vmem:[%s9424_s27 + $0x270] sm:$0xf] }
 0x75b   : > { %v4431_v51 = vmul.f32 %v4430_v14, %v11393_v59  ;;  %v4708_v44 = vadd.f32 0.112945676, %v4707_v63  ;;  %v3440_v17 = vadd.f32 %v3439_v5, %v11493_v24  ;;  %v7427_v22 = vclamps-f32 %v3807_v34, 1.0  ;;  %v3458_v34 = vpop.f32.mrf.mxu1  ;;  %v8283_v35 = vld [vmem:[%s9424_s27 + $0x274] sm:$0xf0] }
 0x75c   : > { %v7434_v45 = vclamps-f32 %v4087_v28, 1.0  ;;  %v11507_v30 = vmul.f32 0.5, %v11349_v42  ;;  %v11509_v40 = vmin.f32 %v4730_v3, 16.0  ;;  %v4127_v20 = vmul.f32 %v4126_v38, %v4102_v10 }
 0x75d   : > { %v4380_v2 = vmul.f32 %v4379_v33, %v11308_v36  ;;  %v11512_v15 = vadd.f32 1.0, %v4431_v51  ;;  %v4709_v60 = vmul.f32 %v4708_v44, %v11436_v43  ;;  %v11519_v7 = vmul.f32 %v11371_v12, %v11117_v54  ;;  %v7648_v54 = vld [vmem:[%s9424_s27 + $0x180] sm:$0xf]  ;;  %v8253_v12 = vld [vmem:[%s9424_s27 + $0x184] sm:$0xf0] }
 0x75e   : > { %v4417_v42 = vadd.f32 0.05243302, %v4416_v27  ;;  %v4694_v21 = vmul.f32 %v4693_v32, %v11436_v43  ;;  %v4743_v57 = vmul.f32 3.8918573e-05, %v11509_v40  ;;  %v11526_v36 = vmul.f32 %v11440_v1, %v11140_v62 }
 0x75f   : > { %v4396_v41 = vmul.f32 %v11474_v25, %v4395_v13  ;;  %8550 = vrcp.f32 %v11512_v15  ;;  %v11530_v0 = vadd.f32 %v3458_v34, %v3440_v17  ;;  %v4855_v56 = vadd.f32 1.0, %v7427_v22  ;;  %v7760_v34 = vld [vmem:[%s9424_s27 + $0x260] sm:$0xf] }
 0x760   : > { %v4862_v4 = vadd.f32 1.0, %v7434_v45  ;;  %v4710_v28 = vadd.f32 0.4994258, %v4709_v60  ;;  %v4732_v10 = vmul.f32 2.1237322e-06, %v11509_v40  ;;  %v7435_v29 = vclamps-f32 %v4127_v20, 1.0 }
 0x761   : > { %v4381_v5 = vadd.f32 1.1283791, %v4380_v2  ;;  %v4744_v33 = vadd.f32 0.001143296, %v4743_v57  ;;  %v7657_v14 = vor.u32 %v8255_v39, %v7656_v53  ;;  %vm4399_vm10 = vweird.f32 %v11474_v25  ;;  %v8581_v2 = vld [vmem:[%s9422_s3] sm:$0xff]  ;;  %v3477_v57 = vpop.f32.mrf.mxu2 }
 0x762   : > { %v4418_v62 = vmul.f32 %v4417_v42, %v11393_v59  ;;  %v4695_v1 = vadd.f32 0.0036580483, %v4694_v21  ;;  %v4711_v63 = vmul.f32 %v4710_v28, %v11436_v43  ;;  %v4397_v38 = vadd.f32 %v11474_v25, %v4396_v41 }
 0x763   : > { %v4745_v27 = vmul.f32 %v4744_v33, %v11509_v40  ;;  %v11542_v32 = vmul.f32 0.70710677, %v11530_v0  ;;  %5761 = vmatpush.bf16.msrb.mxu3 %v7657_v14  ;;  %v7769_v3 = vor.u32 %v8283_v35, %v7768_v37  ;;  %vm4398_vm11 = vweird.f32 %v11434_v26  ;;  %v8281_v37 = vld [vmem:[%s9424_s27 + $0x264] sm:$0xf0]  ;;  %v8299_v33 = vld [vmem:[%s9424_s27 + $0x2f4] sm:$0xf0] }
 0x764   : > { %v4402_v13 = vand.u32 2147483647, %v11434_v26  ;;  %v4733_v51 = vadd.f32 0.00028619796, %v4732_v10  ;;  %v7649_v44 = vor.u32 %v8253_v12, %v7648_v54  ;;  %v4404_v22 = vand.u32 2147483648, %v11434_v26  ;;  %vm11557_vm12 = vmor %vm4398_vm11, %vm4399_vm10 }
 0x765   : > { %v11546_v17 = vpop.eup %8550  ;;  %v4746_v45 = vadd.f32 0.014752088, %v4745_v27  ;;  %v3810_v20 = vmul.f32 %v11542_v32, %v11542_v32  ;;  %5774 = vmatpush.bf16.msra.mxu0 %v7769_v3  ;;  %v11552_v60 = vperm.slane %v8581_v2, 7  ;;  %v4887_v53 = vmul.f32 %v4855_v56, %v11238_v6 }
 0x766   : > { %v4863_v39 = vadd.f32 1.0, %v7435_v29  ;;  %v4696_v26 = vmul.f32 %v4695_v1, %v11436_v43  ;;  %v11562_v21 = vadd.f32 1.0, %v4711_v63  ;;  %v4894_v41 = vmul.f32 %v4862_v4, %v11242_v16  ;;  %v7832_v29 = vld [vmem:[%s9424_s27 + $0x2f0] sm:$0xf]  ;;  %v3441_v1 = vpop.f32.mrf.mxu0 }
 0x767   : > { %v4382_v6 = vmul.f32 %v4381_v5, %v11293_v50  ;;  %v4401_v35 = vsel %vm11557_vm12, %v11474_v25, %v4397_v38  ;;  %v4419_v54 = vadd.f32 0.18741608, %v4418_v62  ;;  %5762 = vmatpush.bf16.msrb.mxu3 %v7649_v44  ;;  %v4434_v12 = vmul.f32 %v11546_v17, %v11512_v15  ;;  %v3496_v62 = vpop.f32.mrf.mxu3 }
 0x768   : > { %v4734_v56 = vmul.f32 %v4733_v51, %v11509_v40  ;;  %v4747_v28 = vmul.f32 %v4746_v45, %v11509_v40  ;;  %v11575_v10 = vmin.f32 %v3810_v20, 16.0  ;;  %vm4403_vm13 = vcmp.eq.f32.partialorder %v4402_v13, 8.507059e+37 }
 0x769   : > { %v4405_v16 = vor.u32 1.1754944e-38, %v4404_v22  ;;  %v3478_v50 = vadd.f32 %v3477_v57, %v11552_v60  ;;  %v7761_v4 = vor.u32 %v8281_v37, %v7760_v34  ;;  %v4895_v25 = vmul.f32 %v4863_v39, %v11346_v31 }
 0x76a   : > { %v4697_v5 = vadd.f32 0.05243302, %v4696_v26  ;;  %8552 = vrcp.f32 %v11562_v21  ;;  %v4748_v14 = vadd.f32 0.112945676, %v4747_v28  ;;  %5763 = vmatmul.bf16.vlgmr.msrb.gmra.mxu3 %v11151_v52  ;;  %v3823_v38 = vmul.f32 3.8918573e-05, %v11575_v10 }
 0x76b   : > { %v4406_v63 = vsel %vm4403_vm13, %v4405_v16, %v4401_v35  ;;  %v11584_v27 = vadd.f32 %v3496_v62, %v3478_v50  ;;  %5775 = vmatpush.bf16.msra.mxu0 %v7761_v4  ;;  %v7833_v3 = vor.u32 %v8299_v33, %v7832_v29  ;;  %v4420_v13 = vmul.f32 %v4419_v54, %v11393_v59 }
 0x76c   : > { %v4435_v51 = vsub.f32 1.0, %v4434_v12  ;;  %v4735_v44 = vadd.f32 0.0036580483, %v4734_v56  ;;  %v4749_v31 = vmul.f32 %v4748_v14, %v11509_v40  ;;  %v3812_v22 = vmul.f32 2.1237322e-06, %v11575_v10 }
 0x76d   : > { %v3824_v45 = vadd.f32 0.001143296, %v3823_v38  ;;  %v11590_v20 = vmul.f32 0.70710677, %v11584_v27  ;;  %v3442_v2 = vadd.f32 %v3441_v1, %v11493_v24  ;;  %5793 = vmatpush.bf16.msra.mxu1 %v7833_v3  ;;  %v11594_v39 = vpack.c.bf16 %v4894_v41, %v11526_v36  ;;  %v7752_v38 = vld [vmem:[%s9424_s27 + $0x250] sm:$0xf] }
 0x76e   : > { %v4407_v42 = vmul.f32 %v4406_v63, %v4382_v6  ;;  %v11597_v26 = vmul.f32 0.5, %v11380_v58  ;;  %v4698_v59 = vmul.f32 %v4697_v5, %v11436_v43  ;;  %v11600_v57 = vpack.c.bf16 %v4895_v25, %v4887_v53  ;;  %v3460_v6 = vpop.f32.mrf.mxu1  ;;  %v8279_v3 = vld [vmem:[%s9424_s27 + $0x254] sm:$0xf0] }
 0x76f   : > { %12695 = vst [vmem:[#allocation43_spill] sm:$0xff] %v11594_v39  ;;  %v11603_v34 = vmul.f32 0.5, %v11472_v9  ;;  %v4750_v37 = vadd.f32 0.4994258, %v4749_v31  ;;  %v3825_v35 = vmul.f32 %v3824_v45, %v11575_v10  ;;  %v4421_v12 = vadd.f32 1.1283791, %v4420_v13 }
 0x770   : > { %12696 = vst [vmem:[#allocation44_spill] sm:$0xff] %v11600_v57  ;;  %v11606_v54 = vpop.eup %8552  ;;  %v4436_v36 = vmul.f32 %v11546_v17, %v4435_v51  ;;  %v4736_v41 = vmul.f32 %v4735_v44, %v11509_v40  ;;  %v3850_v58 = vmul.f32 %v11590_v20, %v11590_v20  ;;  %v3813_v56 = vadd.f32 0.00028619796, %v3812_v22  ;;  %v7824_v44 = vld [vmem:[%s9424_s27 + $0x2e0] sm:$0xf] }
 0x771   : > { %v4751_v53 = vmul.f32 %v4750_v37, %v11509_v40  ;;  %v3826_v9 = vadd.f32 0.014752088, %v3825_v35  ;;  %v11613_v28 = vadd.f32 %v3460_v6, %v3442_v2  ;;  %v7442_v29 = vclamps-f32 %v4407_v42, 1.0  ;;  %v8297_v31 = vld [vmem:[%s9424_s27 + $0x2e4] sm:$0xf0] }
 0x772   : > { %v4442_v33 = vand.u32 2147483647, %v11512_v15  ;;  %v4699_v16 = vadd.f32 0.18741608, %v4698_v59  ;;  %v11616_v50 = vmin.f32 %v3850_v58, 16.0  ;;  %v4444_v4 = vand.u32 2147483648, %v11512_v15 }
 0x773   : > { %v4714_v25 = vmul.f32 %v11606_v54, %v11562_v21  ;;  %v11621_v5 = vadd.f32 1.0, %v4751_v53  ;;  %v3827_v14 = vmul.f32 %v3826_v9, %v11575_v10  ;;  %v4437_v62 = vadd.f32 %v11546_v17, %v4436_v36  ;;  %v8277_v58 = vld [vmem:[%s9424_s27 + $0x244] sm:$0xf0] }
 0x774   : > { %vm4439_vm14 = vweird.f32 %v11546_v17  ;;  %v4737_v1 = vadd.f32 0.05243302, %v4736_v41  ;;  %v11627_v63 = vmul.f32 0.5, %v11530_v0  ;;  %vm4438_vm15 = vweird.f32 %v11512_v15  ;;  %v7744_v41 = vld [vmem:[%s9424_s27 + $0x240] sm:$0xf] }
 0x775   : > { %8554 = vrcp.f32 %v11621_v5  ;;  %v3814_v13 = vmul.f32 %v3813_v56, %v11575_v10  ;;  %v11635_v51 = vmul.f32 0.70710677, %v11613_v28  ;;  %v4870_v22 = vadd.f32 1.0, %v7442_v29  ;;  %vm11644_vm0 = vmor %vm4438_vm15, %vm4439_vm14 }
 0x776   : > { %v4700_v45 = vmul.f32 %v4699_v16, %v11436_v43  ;;  %v3828_v0 = vadd.f32 0.112945676, %v3827_v14  ;;  %v3852_v2 = vmul.f32 2.1237322e-06, %v11616_v50  ;;  %v4422_v42 = vmul.f32 %v4421_v12, %v11364_v46 }
 0x777   : > { %vm11648_vm1 = vcmp.eq.f32.partialorder %v4442_v33, 8.507059e+37  ;;  %v4445_v37 = vor.u32 1.1754944e-38, %v4444_v4  ;;  %v4715_v35 = vsub.f32 1.0, %v4714_v25  ;;  %v4441_v43 = vsel %vm11644_vm0, %v11546_v17, %v4437_v62  ;;  %v3479_v4 = vpop.f32.mrf.mxu2 }
 0x778   : > { %v4738_v36 = vmul.f32 %v4737_v1, %v11509_v40  ;;  %v3829_v46 = vmul.f32 %v3828_v0, %v11575_v10  ;;  %v3863_v12 = vmul.f32 3.8918573e-05, %v11616_v50  ;;  %v3815_v6 = vadd.f32 0.0036580483, %v3814_v13 }
 0x779   : > { %v4130_v53 = vmul.f32 %v11635_v51, %v11635_v51  ;;  %v7753_v56 = vor.u32 %v8279_v3, %v7752_v38  ;;  %v7825_v9 = vor.u32 %v8297_v31, %v7824_v44  ;;  %v11663_v29 = vmul.f32 %v4870_v22, %v11369_v55 }
 0x77a   : > { %v4701_v33 = vadd.f32 1.1283791, %v4700_v45  ;;  %v3830_v16 = vadd.f32 0.4994258, %v3829_v46  ;;  %v3853_v17 = vadd.f32 0.00028619796, %v3852_v2  ;;  %v4716_v14 = vmul.f32 %v11606_v54, %v4715_v35 }
 0x77b   : > { %v11665_v25 = vpop.eup %8554  ;;  %v3864_v62 = vadd.f32 0.001143296, %v3863_v12  ;;  %v11668_v1 = vmin.f32 %v4130_v53, 16.0  ;;  %5776 = vmatpush.bf16.msra.mxu0 %v7753_v56  ;;  %5794 = vmatpush.bf16.msra.mxu1 %v7825_v9  ;;  %v7745_v13 = vor.u32 %v8277_v58, %v7744_v41  ;;  %v4446_v38 = vsel %vm11648_vm1, %v4445_v37, %v4441_v43 }
 0x77c   : > { %v4722_v55 = vand.u32 2147483647, %v11562_v21  ;;  %v4739_v3 = vadd.f32 0.18741608, %v4738_v36  ;;  %v4754_v44 = vmul.f32 %v11665_v25, %v11621_v5  ;;  %v3816_v31 = vmul.f32 %v3815_v6, %v11575_v10  ;;  %v3498_v6 = vpop.f32.mrf.mxu3 }
 0x77d   : > { %v3831_v22 = vmul.f32 %v3830_v16, %v11575_v10  ;;  %v3865_v45 = vmul.f32 %v3864_v62, %v11616_v50  ;;  %v3480_v0 = vadd.f32 %v3479_v4, %v11552_v60  ;;  %v4724_v2 = vand.u32 2147483648, %v11562_v21  ;;  %v8295_v62 = vld [vmem:[%s9424_s27 + $0x2d4] sm:$0xf0] }
 0x77e   : > { %v3854_v15 = vmul.f32 %v3853_v17, %v11616_v50  ;;  %v4132_v59 = vmul.f32 2.1237322e-06, %v11668_v1  ;;  %v4143_v37 = vmul.f32 3.8918573e-05, %v11668_v1  ;;  %v4717_v35 = vadd.f32 %v11606_v54, %v4716_v14  ;;  %v7816_v14 = vld [vmem:[%s9424_s27 + $0x2d0] sm:$0xf] }
 0x77f   : > { %vm4719_vm2 = vweird.f32 %v11606_v54  ;;  %v11685_v43 = vadd.f32 1.0, %v3831_v22  ;;  %v3866_v36 = vadd.f32 0.014752088, %v3865_v45  ;;  %5777 = vmatpush.bf16.msra.mxu0 %v7745_v13  ;;  %v11687_v46 = vmul.f32 %v4446_v38, %v4422_v42 }
 0x780   : > { %v4740_v12 = vmul.f32 %v4739_v3, %v11509_v40  ;;  %v4755_v41 = vsub.f32 1.0, %v4754_v44  ;;  %v4144_v58 = vadd.f32 0.001143296, %v4143_v37  ;;  %v4702_v53 = vmul.f32 %v4701_v33, %v11398_v47  ;;  %v3444_v44 = vpop.f32.mrf.mxu0 }
 0x781   : > { %vm4718_vm3 = vweird.f32 %v11562_v21  ;;  %v3817_v56 = vadd.f32 0.05243302, %v3816_v31  ;;  %v11692_v9 = vadd.f32 %v3498_v6, %v3480_v0  ;;  %vm11698_vm5 = vcmp.eq.f32.partialorder %v4722_v55, 8.507059e+37  ;;  %v7736_v6 = vld [vmem:[%s9424_s27 + $0x230] sm:$0xf] }
 0x782   : > { %vm11694_vm4 = vmor %vm4718_vm3, %vm4719_vm2  ;;  %v3855_v40 = vadd.f32 0.0036580483, %v3854_v15  ;;  %v3867_v17 = vmul.f32 %v3866_v36, %v11616_v50  ;;  %v4133_v4 = vadd.f32 0.00028619796, %v4132_v59  ;;  %v4725_v21 = vor.u32 1.1754944e-38, %v4724_v2 }
 0x783   : > { %v4721_v47 = vsel %vm11694_vm4, %v11606_v54, %v4717_v35  ;;  %8556 = vrcp.f32 %v11685_v43  ;;  %v4145_v33 = vmul.f32 %v4144_v58, %v11668_v1  ;;  %v7443_v13 = vclamps-f32 %v11687_v46, 1.0 }
 0x784   : > { %v4741_v38 = vadd.f32 1.1283791, %v4740_v12  ;;  %v4756_v55 = vmul.f32 %v11665_v25, %v4755_v41  ;;  %v3868_v3 = vadd.f32 0.112945676, %v3867_v17  ;;  %v4764_v31 = vand.u32 2147483648, %v11621_v5 }
 0x785   : > { %v3818_v22 = vmul.f32 %v3817_v56, %v11575_v10  ;;  %v4146_v54 = vadd.f32 0.014752088, %v4145_v33  ;;  %v11715_v45 = vmul.f32 0.70710677, %v11692_v9  ;;  %v4726_v0 = vsel %vm11698_vm5, %v4725_v21, %v4721_v47 }
 0x786   : > { %v3856_v2 = vmul.f32 %v3855_v40, %v11616_v50  ;;  %v3869_v15 = vmul.f32 %v3868_v3, %v11616_v50  ;;  %v4134_v59 = vmul.f32 %v4133_v4, %v11668_v1  ;;  %v3445_v36 = vadd.f32 %v3444_v44, %v11493_v24 }
 0x787   : > { %v4147_v37 = vmul.f32 %v4146_v54, %v11668_v1  ;;  %v4170_v35 = vmul.f32 %v11715_v45, %v11715_v45  ;;  %v7817_v12 = vor.u32 %v8295_v62, %v7816_v14  ;;  %v4757_v41 = vadd.f32 %v11665_v25, %v4756_v55  ;;  %v3463_v14 = vpop.f32.mrf.mxu1  ;;  %v8275_v62 = vld [vmem:[%s9424_s27 + $0x234] sm:$0xf0]  ;;  %v3482_v55 = vpop.f32.mrf.mxu2 }
 0x788   : > { %vm4758_vm6 = vweird.f32 %v11621_v5  ;;  %vm4759_vm7 = vweird.f32 %v11665_v25  ;;  %v4762_v58 = vand.u32 2147483647, %v11621_v5  ;;  %v3819_v16 = vadd.f32 0.18741608, %v3818_v22 }
 0x789   : > { %v11731_v56 = vpop.eup %8556  ;;  %v3870_v42 = vadd.f32 0.4994258, %v3869_v15  ;;  %v4148_v40 = vadd.f32 0.112945676, %v4147_v37  ;;  %5795 = vmatpush.bf16.msra.mxu1 %v7817_v12  ;;  %v11735_v17 = vpack.c.bf16 %v11296_v61, %v11234_v23  ;;  %v4727_v4 = vmul.f32 %v4726_v0, %v4702_v53  ;;  %vm11744_vm8 = vmor %vm4758_vm6, %vm4759_vm7 }
 0x78a   : > { %v4765_v47 = vor.u32 1.1754944e-38, %v4764_v31  ;;  %v3857_v21 = vadd.f32 0.05243302, %v3856_v2  ;;  %v11737_v33 = vmin.f32 %v4170_v35, 16.0  ;;  %v4135_v44 = vadd.f32 0.0036580483, %v4134_v59 }
 0x78b   : > { %12705 = vst [vmem:[#allocation45_spill] sm:$0xff] %v11735_v17  ;;  %v3871_v3 = vmul.f32 %v3870_v42, %v11616_v50  ;;  %v4149_v23 = vmul.f32 %v4148_v40, %v11668_v1  ;;  %v11750_v61 = vadd.f32 %v3463_v14, %v3445_v36  ;;  %5749 = vmatmul.bf16.gmra.mxu2 %v11735_v17  ;;  %vm4763_vm9 = vcmp.eq.f32.partialorder %v4762_v58, 8.507059e+37 }
 0x78c   : > { %v4761_v53 = vsel %vm11744_vm8, %v11665_v25, %v4757_v41  ;;  %v3834_v5 = vmul.f32 %v11731_v56, %v11685_v43  ;;  %v4172_v31 = vmul.f32 2.1237322e-06, %v11737_v33  ;;  %v4183_v22 = vmul.f32 3.8918573e-05, %v11737_v33 }
 0x78d   : > { %v3820_v54 = vmul.f32 %v3819_v16, %v11575_v10  ;;  %v11761_v0 = vadd.f32 1.0, %v3871_v3  ;;  %v4150_v2 = vadd.f32 0.4994258, %v4149_v23  ;;  %v7737_v15 = vor.u32 %v8275_v62, %v7736_v6  ;;  %v7808_v10 = vld [vmem:[%s9424_s27 + $0x2c0] sm:$0xf] }
 0x78e   : > { %v4742_v59 = vmul.f32 %v4741_v38, %v11497_v11  ;;  %v3858_v25 = vmul.f32 %v3857_v21, %v11616_v50  ;;  %v4184_v37 = vadd.f32 0.001143296, %v4183_v22  ;;  %v7450_v35 = vclamps-f32 %v4727_v4, 1.0  ;;  %v8293_v11 = vld [vmem:[%s9424_s27 + $0x2c4] sm:$0xf0] }
 0x78f   : > { %v4766_v36 = vsel %vm4763_vm9, %v4765_v47, %v4761_v53  ;;  %v4136_v12 = vmul.f32 %v4135_v44, %v11668_v1  ;;  %v11767_v41 = vmul.f32 0.70710677, %v11750_v61  ;;  %5778 = vmatpush.bf16.msra.mxu0 %v7737_v15  ;;  %v3835_v16 = vsub.f32 1.0, %v3834_v5  ;;  %v7728_v22 = vld [vmem:[%s9424_s27 + $0x220] sm:$0xf] }
 0x790   : > { %8558 = vrcp.f32 %v11761_v0  ;;  %v4151_v6 = vmul.f32 %v4150_v2, %v11668_v1  ;;  %v4173_v42 = vadd.f32 0.00028619796, %v4172_v31  ;;  %v3821_v38 = vadd.f32 1.1283791, %v3820_v54 }
 0x791   : > { %v11774_v58 = vmul.f32 0.5, %v11584_v27  ;;  %v11777_v40 = vmul.f32 0.5, %v11613_v28  ;;  %v4185_v4 = vmul.f32 %v4184_v37, %v11737_v33  ;;  %v11782_v47 = vadd.f32 1.0, %v7443_v13 }
 0x792   : > { %v4767_v21 = vmul.f32 %v4766_v36, %v4742_v59  ;;  %v3859_v14 = vadd.f32 0.18741608, %v3858_v25  ;;  %v11784_v62 = vadd.f32 1.0, %v4151_v6  ;;  %v4137_v3 = vadd.f32 0.05243302, %v4136_v12 }
 0x793   : > { %v4186_v44 = vadd.f32 0.014752088, %v4185_v4  ;;  %v4450_v27 = vmul.f32 %v11767_v41, %v11767_v41  ;;  %v7809_v23 = vor.u32 %v8293_v11, %v7808_v10  ;;  %v11788_v28 = vadd.f32 1.0, %v7450_v35 }
 0x794   : > { %v3836_v53 = vmul.f32 %v11731_v56, %v3835_v16  ;;  %8560 = vrcp.f32 %v11784_v62  ;;  %v4174_v46 = vmul.f32 %v4173_v42, %v11737_v33  ;;  %v11794_v13 = vmul.f32 %v3821_v38, %v11542_v32  ;;  %v8273_v32 = vld [vmem:[%s9424_s27 + $0x224] sm:$0xf0]  ;;  %v3501_v42 = vpop.f32.mrf.mxu3 }
 0x795   : > { %vm3838_vm10 = vweird.f32 %v11685_v43  ;;  %v4187_v5 = vmul.f32 %v4186_v44, %v11737_v33  ;;  %5796 = vmatpush.bf16.msra.mxu1 %v7809_v23  ;;  %v3483_v31 = vadd.f32 %v3482_v55, %v11552_v60  ;;  %v3842_v2 = vand.u32 2147483647, %v11685_v43 }
 0x796   : > { %v11800_v54 = vpop.eup %8558  ;;  %v3844_v15 = vand.u32 2147483648, %v11685_v43  ;;  %v3860_v59 = vmul.f32 %v3859_v14, %v11616_v50  ;;  %v11805_v25 = vmin.f32 %v4450_v27, 16.0  ;;  %v7451_v37 = vclamps-f32 %v4767_v21, 1.0  ;;  %v3465_v14 = vpop.f32.mrf.mxu1 }
 0x797   : > { %vm3839_vm11 = vweird.f32 %v11731_v56  ;;  %v4138_v35 = vmul.f32 %v4137_v3, %v11668_v1  ;;  %v4188_v36 = vadd.f32 0.112945676, %v4187_v5  ;;  %v3837_v12 = vadd.f32 %v11731_v56, %v3836_v53  ;;  %v3446_v5 = vpop.f32.mrf.mxu0 }
 0x798   : > { %v4175_v10 = vadd.f32 0.0036580483, %v4174_v46  ;;  %v4452_v16 = vmul.f32 2.1237322e-06, %v11805_v25  ;;  %v4463_v6 = vmul.f32 3.8918573e-05, %v11805_v25  ;;  %v3874_v50 = vmul.f32 %v11800_v54, %v11761_v0  ;;  %vm11835_vm13 = vmor %vm3838_vm10, %vm3839_vm11 }
 0x799   : > { %v4189_v11 = vmul.f32 %v4188_v36, %v11737_v33  ;;  %v11816_v38 = vadd.f32 %v3501_v42, %v3483_v31  ;;  %v7729_v4 = vor.u32 %v8273_v32, %v7728_v22  ;;  %vm11820_vm12 = vcmp.eq.f32.partialorder %v3842_v2, 8.507059e+37 }
 0x79a   : > { %v11818_v21 = vpop.eup %8560  ;;  %v3845_v55 = vor.u32 1.1754944e-38, %v3844_v15  ;;  %v4453_v3 = vadd.f32 0.00028619796, %v4452_v16  ;;  %v4464_v44 = vadd.f32 0.001143296, %v4463_v6  ;;  %v11827_v53 = vmul.f32 0.5, %v11692_v9 }
 0x79b   : > { %v4139_v27 = vadd.f32 0.18741608, %v4138_v35  ;;  %v4154_v23 = vmul.f32 %v11818_v21, %v11784_v62  ;;  %v4190_v46 = vadd.f32 0.4994258, %v4189_v11  ;;  %5779 = vmatpush.bf16.msra.mxu0 %v7729_v4  ;;  %v11829_v31 = vadd.f32 1.0, %v7451_v37 }
 0x79c   : > { %v3861_v2 = vadd.f32 1.1283791, %v3860_v59  ;;  %v4176_v15 = vmul.f32 %v4175_v10, %v11737_v33  ;;  %v4465_v32 = vmul.f32 %v4464_v44, %v11805_v25  ;;  %v3841_v9 = vsel %vm11835_vm13, %v11731_v56, %v3837_v12 }
 0x79d   : > { %v3875_v35 = vsub.f32 1.0, %v3874_v50  ;;  %v4191_v37 = vmul.f32 %v4190_v46, %v11737_v33  ;;  %v11846_v36 = vmul.f32 0.70710677, %v11816_v38  ;;  %v3884_v43 = vand.u32 2147483648, %v11761_v0 }
 0x79e   : > { %v4454_v16 = vmul.f32 %v4453_v3, %v11805_v25  ;;  %v4466_v6 = vadd.f32 0.014752088, %v4465_v32  ;;  %v3447_v59 = vadd.f32 %v3446_v5, %v11493_v24  ;;  %v3882_v10 = vand.u32 2147483647, %v11761_v0 }
 0x79f   : > { %v4140_v42 = vmul.f32 %v4139_v27, %v11668_v1  ;;  %v4155_v11 = vsub.f32 1.0, %v4154_v23  ;;  %v11853_v4 = vadd.f32 1.0, %v4191_v37  ;;  %v3846_v56 = vsel %vm11820_vm12, %v3845_v55, %v3841_v9 }
 0x7a0   : > { %v4177_v12 = vadd.f32 0.05243302, %v4176_v15  ;;  %v4467_v50 = vmul.f32 %v4466_v6, %v11805_v25  ;;  %v4490_v3 = vmul.f32 %v11846_v36, %v11846_v36  ;;  %v11861_v44 = vmul.f32 %v3861_v2, %v11590_v20  ;;  %v7800_v2 = vld [vmem:[%s9424_s27 + $0x2b0] sm:$0xf] }
 0x7a1   : > { %v3876_v24 = vmul.f32 %v11800_v54, %v3875_v35  ;;  %8562 = vrcp.f32 %v11853_v4  ;;  %v11866_v1 = vmul.f32 0.5, %v11750_v61  ;;  %vm3878_vm14 = vweird.f32 %v11761_v0 }
 0x7a2   : > { %v3885_v55 = vor.u32 1.1754944e-38, %v3884_v43  ;;  %v4455_v27 = vadd.f32 0.0036580483, %v4454_v16  ;;  %v11869_v23 = vadd.f32 %v3465_v14, %v3447_v59  ;;  %v11872_v46 = vmul.f32 %v3846_v56, %v11794_v13  ;;  %v8291_v13 = vld [vmem:[%s9424_s27 + $0x2b4] sm:$0xf0] }
 0x7a3   : > { %v4156_v20 = vmul.f32 %v11818_v21, %v4155_v11  ;;  %v4468_v5 = vadd.f32 0.112945676, %v4467_v50  ;;  %v11875_v22 = vmin.f32 %v4490_v3, 16.0  ;;  %vm11878_vm15 = vcmp.eq.f32.partialorder %v3882_v10, 8.507059e+37  ;;  %v7720_v50 = vld [vmem:[%s9424_s27 + $0x210] sm:$0xf] }
 0x7a4   : > { %v4141_v15 = vadd.f32 1.1283791, %v4140_v42  ;;  %vm4158_vm0 = vweird.f32 %v11784_v62  ;;  %v4164_v32 = vand.u32 2147483648, %v11784_v62  ;;  %v4178_v9 = vmul.f32 %v4177_v12, %v11737_v33  ;;  %v8271_v3 = vld [vmem:[%s9424_s27 + $0x214] sm:$0xf0] }
 0x7a5   : > { %v3877_v35 = vadd.f32 %v11800_v54, %v3876_v24  ;;  %vm3879_vm1 = vweird.f32 %v11800_v54  ;;  %v4469_v37 = vmul.f32 %v4468_v5, %v11805_v25  ;;  %v4492_v43 = vmul.f32 2.1237322e-06, %v11875_v22 }
 0x7a6   : > { %v4456_v16 = vmul.f32 %v4455_v27, %v11805_v25  ;;  %v4503_v6 = vmul.f32 3.8918573e-05, %v11875_v22  ;;  %v11893_v59 = vmul.f32 0.70710677, %v11869_v23  ;;  %v11897_v10 = vpack.c.bf16 %v11519_v7, %v11269_v48  ;;  %vm11907_vm3 = vmor %vm3878_vm14, %vm3879_vm1 }
 0x7a7   : > { %v11899_v42 = vpop.eup %8562  ;;  %v4157_v11 = vadd.f32 %v11818_v21, %v4156_v20  ;;  %vm4159_vm2 = vweird.f32 %v11818_v21  ;;  %v4470_v56 = vadd.f32 0.4994258, %v4469_v37  ;;  %v7801_v12 = vor.u32 %v8291_v13, %v7800_v2  ;;  %v8289_v13 = vld [vmem:[%s9424_s27 + $0x2a4] sm:$0xf0] }
 0x7a8   : > { %12714 = vst [vmem:[#allocation46_spill] sm:$0xff] %v11897_v10  ;;  %v4179_v48 = vadd.f32 0.18741608, %v4178_v9  ;;  %v4194_v7 = vmul.f32 %v11899_v42, %v11853_v4  ;;  %v4493_v14 = vadd.f32 0.00028619796, %v4492_v43  ;;  %5768 = vmatmul.bf16.gmra.mxu3 %v11897_v10  ;;  %v3881_v20 = vsel %vm11907_vm3, %v11800_v54, %v3877_v35  ;;  %vm11927_vm4 = vmor %vm4158_vm0, %vm4159_vm2 }
 0x7a9   : > { %v4504_v27 = vadd.f32 0.001143296, %v4503_v6  ;;  %v4162_v5 = vand.u32 2147483647, %v11784_v62  ;;  %v4471_v0 = vmul.f32 %v4470_v56, %v11805_v25  ;;  %v4770_v2 = vmul.f32 %v11893_v59, %v11893_v59  ;;  %5797 = vmatpush.bf16.msra.mxu1 %v7801_v12  ;;  %v7792_v9 = vld [vmem:[%s9424_s27 + $0x2a0] sm:$0xf] }
 0x7aa   : > { %v4195_v43 = vsub.f32 1.0, %v4194_v7  ;;  %v4457_v54 = vadd.f32 0.05243302, %v4456_v16  ;;  %v7721_v6 = vor.u32 %v8271_v3, %v7720_v50  ;;  %v4161_v56 = vsel %vm11927_vm4, %v11818_v21, %v4157_v11 }
 0x7ab   : > { %v4505_v35 = vmul.f32 %v4504_v27, %v11875_v22  ;;  %v4165_v12 = vor.u32 1.1754944e-38, %v4164_v32  ;;  %v11935_v24 = vadd.f32 1.0, %v4471_v0  ;;  %v11937_v10 = vmin.f32 %v4770_v2, 16.0  ;;  %v3484_v27 = vpop.f32.mrf.mxu2 }
 0x7ac   : > { %v4180_v62 = vmul.f32 %v4179_v48, %v11737_v33  ;;  %v4494_v17 = vmul.f32 %v4493_v14, %v11875_v22  ;;  %5780 = vmatpush.bf16.msra.mxu0 %v7721_v6  ;;  %v7793_v16 = vor.u32 %v8289_v13, %v7792_v9  ;;  %v7428_v50 = vclamps-f32 %v11872_v46, 1.0  ;;  %v7712_v48 = vld [vmem:[%s9424_s27 + $0x200] sm:$0xf]  ;;  %v8269_v14 = vld [vmem:[%s9424_s27 + $0x204] sm:$0xf0] }
 0x7ad   : > { %v4506_v7 = vadd.f32 0.014752088, %v4505_v35  ;;  %v3886_v21 = vsel %vm11878_vm15, %v3885_v55, %v3881_v20  ;;  %vm4163_vm5 = vcmp.eq.f32.partialorder %v4162_v5, 8.507059e+37  ;;  %8564 = vrcp.f32 %v11935_v24  ;;  %v7784_v20 = vld [vmem:[%s9424_s27 + $0x290] sm:$0xf] }
 0x7ae   : > { %v4142_v32 = vmul.f32 %v4141_v15, %v11635_v51  ;;  %v4166_v33 = vsel %vm4163_vm5, %v4165_v12, %v4161_v56  ;;  %v4196_v11 = vmul.f32 %v11899_v42, %v4195_v43  ;;  %v4458_v3 = vmul.f32 %v4457_v54, %v11805_v25  ;;  %5798 = vmatpush.bf16.msra.mxu1 %v7793_v16  ;;  %v8287_v13 = vld [vmem:[%s9424_s27 + $0x294] sm:$0xf0]  ;;  %v7896_v56 = vld [vmem:[%s9424_s27 + $0x370] sm:$0xf] }
 0x7af   : > { %v4507_v0 = vmul.f32 %v4506_v7, %v11875_v22  ;;  %v4772_v2 = vmul.f32 2.1237322e-06, %v11937_v10  ;;  %v4783_v55 = vmul.f32 3.8918573e-05, %v11937_v10  ;;  %v3485_v61 = vadd.f32 %v3484_v27, %v11552_v60  ;;  %v7960_v46 = vld [vmem:[%s9424_s27 + $0x3f0] sm:$0xf] }
 0x7b0   : > { %v11957_v51 = vmul.f32 %v11782_v47, %v11507_v30  ;;  %v11960_v15 = vmul.f32 %v3886_v21, %v11861_v44  ;;  %v11962_v5 = vadd.f32 1.1283791, %v4180_v62  ;;  %v4495_v9 = vadd.f32 0.0036580483, %v4494_v17  ;;  %v3503_v30 = vpop.f32.mrf.mxu3  ;;  %v8315_v44 = vld [vmem:[%s9424_s27 + $0x374] sm:$0xf0] }
 0x7b1   : > { %v4167_v37 = vmul.f32 %v4166_v33, %v4142_v32  ;;  %v4508_v43 = vadd.f32 0.112945676, %v4507_v0  ;;  %v4773_v54 = vadd.f32 0.00028619796, %v4772_v2  ;;  %v4784_v35 = vadd.f32 0.001143296, %v4783_v55 }
 0x7b2   : > { %v4197_v60 = vadd.f32 %v11899_v42, %v4196_v11  ;;  %vm4199_vm6 = vweird.f32 %v11899_v42  ;;  %v4459_v6 = vadd.f32 0.18741608, %v4458_v3  ;;  %v7713_v47 = vor.u32 %v8269_v14, %v7712_v48  ;;  %v8218_v33 = vld [vmem:[%s9424_s27 + $0x74] sm:$0xf]  ;;  %v7514_v11 = vld [vmem:[%s9424_s27 + $0x78] sm:$0xf0] }
 0x7b3   : > { %v11969_v12 = vpop.eup %8564  ;;  %v4509_v17 = vmul.f32 %v4508_v43, %v11875_v22  ;;  %v4785_v62 = vmul.f32 %v4784_v35, %v11937_v10  ;;  %v11973_v7 = vadd.f32 %v3503_v30, %v3485_v61  ;;  %v7785_v16 = vor.u32 %v8287_v13, %v7784_v20  ;;  %v7776_v43 = vld [vmem:[%s9424_s27 + $0x280] sm:$0xf] }
 0x7b4   : > { %vm4198_vm7 = vweird.f32 %v11853_v4  ;;  %v4204_v27 = vand.u32 2147483648, %v11853_v4  ;;  %v4496_v21 = vmul.f32 %v4495_v9, %v11875_v22  ;;  %v4774_v32 = vmul.f32 %v4773_v54, %v11937_v10  ;;  %5781 = vmatpush.bf16.msra.mxu0 %v7713_v47 }
 0x7b5   : > { %12719 = vst [vmem:[#allocation47_spill] sm:$0xff] %v11973_v7  ;;  %v4202_v3 = vand.u32 2147483647, %v11853_v4  ;;  %v4510_v48 = vadd.f32 0.4994258, %v4509_v17  ;;  %5799 = vmatpush.bf16.msra.mxu1 %v7785_v16  ;;  %v7897_v0 = vor.u32 %v8315_v44, %v7896_v56  ;;  %v7429_v2 = vclamps-f32 %v11960_v15, 1.0  ;;  %vm11985_vm8 = vmor %vm4198_vm7, %vm4199_vm6 }
 0x7b6   : > { %v4786_v14 = vadd.f32 0.014752088, %v4785_v62  ;;  %v7436_v55 = vclamps-f32 %v4167_v37, 1.0  ;;  %v4460_v20 = vmul.f32 %v4459_v6, %v11805_v25  ;;  %v4474_v4 = vmul.f32 %v11969_v12, %v11935_v24  ;;  %v8285_v25 = vld [vmem:[%s9424_s27 + $0x284] sm:$0xf0] }
 0x7b7   : > { %v4201_v9 = vsel %vm11985_vm8, %v11899_v42, %v4197_v60  ;;  %v4511_v13 = vmul.f32 %v4510_v48, %v11875_v22  ;;  %v11998_v37 = vmul.f32 0.70710677, %v11973_v7  ;;  %5782 = vmatmul.bf16.vlgmr.msra.gmra.mxu0 %v11594_v39  ;;  %5812 = vmatpush.bf16.msra.mxu2 %v7897_v0  ;;  %v4205_v54 = vor.u32 1.1754944e-38, %v4204_v27  ;;  %v7888_v60 = vld [vmem:[%s9424_s27 + $0x360] sm:$0xf] }
 0x7b8   : > { %v4787_v15 = vmul.f32 %v4786_v14, %v11937_v10  ;;  %v4497_v35 = vadd.f32 0.05243302, %v4496_v21  ;;  %v4775_v6 = vadd.f32 0.0036580483, %v4774_v32  ;;  %v7517_v42 = vor.u32 %v8218_v33, %v7514_v11  ;;  %v8313_v44 = vld [vmem:[%s9424_s27 + $0x364] sm:$0xf0] }
 0x7b9   : > { %v12006_v30 = vadd.f32 1.0, %v7428_v50  ;;  %vm4203_vm9 = vcmp.eq.f32.partialorder %v4202_v3, 8.507059e+37  ;;  %v4810_v56 = vmul.f32 %v11998_v37, %v11998_v37  ;;  %v4475_v62 = vsub.f32 1.0, %v4474_v4  ;;  %v8216_v21 = vld [vmem:[%s9424_s27 + $0x64] sm:$0xf] }
 0x7ba   : > { %v4788_v47 = vadd.f32 0.112945676, %v4787_v15  ;;  %v4206_v17 = vsel %vm4203_vm9, %v4205_v54, %v4201_v9  ;;  %v12011_v16 = vadd.f32 1.0, %v4511_v13  ;;  %5850 = vmatpush.bf16.msrb.mxu0 %v7517_v42  ;;  %v7777_v27 = vor.u32 %v8285_v25, %v7776_v43  ;;  %v7506_v32 = vld [vmem:[%s9424_s27 + $0x68] sm:$0xf0] }
 0x7bb   : > { %v8331_v50 = vld [vmem:[%s9424_s27 + $0x3f4] sm:$0xf0]  ;;  %v8234_v33 = vld [vmem:[%s9424_s27 + $0xf4] sm:$0xf]  ;;  %v12018_v11 = vadd.f32 1.0, %v7429_v2  ;;  %v12020_v3 = vadd.f32 1.0, %v7436_v55  ;;  %v4182_v48 = vmul.f32 %v11962_v5, %v11715_v45  ;;  %v4498_v61 = vmul.f32 %v4497_v35, %v11875_v22 }
 0x7bc   : > { %v12024_v14 = vadd.f32 1.1283791, %v4460_v20  ;;  %v7578_v0 = vld [vmem:[%s9424_s27 + $0xf8] sm:$0xf0]  ;;  %v4776_v4 = vmul.f32 %v4775_v6, %v11937_v10  ;;  %v4789_v9 = vmul.f32 %v4788_v47, %v11937_v10  ;;  %v12030_v13 = vmin.f32 %v4810_v56, 16.0  ;;  %5800 = vmatpush.bf16.msra.mxu1 %v7777_v27 }
 0x7bd   : > { %v7880_v2 = vld [vmem:[%s9424_s27 + $0x350] sm:$0xf]  ;;  %v8311_v55 = vld [vmem:[%s9424_s27 + $0x354] sm:$0xf0]  ;;  %v8214_v15 = vld [vmem:[%s9424_s27 + $0x54] sm:$0xf]  ;;  %v12037_v5 = vmul.f32 %v4206_v17, %v4182_v48  ;;  %v7889_v54 = vor.u32 %v8313_v44, %v7888_v60  ;;  %v4476_v6 = vmul.f32 %v11969_v12, %v4475_v62  ;;  %8566 = vrcp.f32 %v12011_v16 }
 0x7be   : > { %v7498_v43 = vld [vmem:[%s9424_s27 + $0x58] sm:$0xf0]  ;;  %v7952_v45 = vld [vmem:[%s9424_s27 + $0x3e0] sm:$0xf]  ;;  %v4482_v20 = vand.u32 2147483647, %v11935_v24  ;;  %v7509_v48 = vor.u32 %v8216_v21, %v7506_v32  ;;  %v7961_v52 = vor.u32 %v8331_v50, %v7960_v46  ;;  %v7581_v60 = vor.u32 %v8234_v33, %v7578_v0 }
 0x7bf   : > { %v4484_v25 = vand.u32 2147483648, %v11935_v24  ;;  %v8329_v35 = vld [vmem:[%s9424_s27 + $0x3e4] sm:$0xf0]  ;;  %v4790_v42 = vadd.f32 0.4994258, %v4789_v9  ;;  %5813 = vmatpush.bf16.msra.mxu2 %v7889_v54  ;;  %5801 = vmatmul.bf16.vlgmr.msra.gmra.mxu1 %v11600_v57  ;;  %v7881_v54 = vor.u32 %v8311_v55, %v7880_v2  ;;  %v7501_v21 = vor.u32 %v8214_v15, %v7498_v43 }
 0x7c0   : > { %v4812_v47 = vmul.f32 2.1237322e-06, %v12030_v13  ;;  %v8232_v56 = vld [vmem:[%s9424_s27 + $0xe4] sm:$0xf]  ;;  %v7570_v27 = vld [vmem:[%s9424_s27 + $0xe8] sm:$0xf0]  ;;  %5851 = vmatpush.bf16.msrb.mxu0 %v7509_v48  ;;  %5831 = vmatpush.bf16.msra.mxu3 %v7961_v52  ;;  %v7953_v32 = vor.u32 %v8329_v35, %v7952_v45  ;;  %v12056_v33 = vadd.f32 %v11969_v12, %v4476_v6  ;;  %vm4479_vm10 = vweird.f32 %v11969_v12 }
 0x7c1   : > { %v4823_v17 = vmul.f32 3.8918573e-05, %v12030_v13  ;;  %v7872_v44 = vld [vmem:[%s9424_s27 + $0x340] sm:$0xf]  ;;  %v8309_v39 = vld [vmem:[%s9424_s27 + $0x344] sm:$0xf0]  ;;  %v4791_v9 = vmul.f32 %v4790_v42, %v11937_v10  ;;  %5869 = vmatpush.bf16.msrb.mxu1 %v7581_v60  ;;  %v7573_v43 = vor.u32 %v8232_v56, %v7570_v27  ;;  %v4911_v35 = vmul.f32 %v11829_v31, %v11603_v34 }
 0x7c2   : > { %v4499_v62 = vadd.f32 0.18741608, %v4498_v61  ;;  %v4777_v19 = vadd.f32 0.05243302, %v4776_v4  ;;  %v4813_v49 = vadd.f32 0.00028619796, %v4812_v47  ;;  %v12090_v27 = vmul.f32 %v12006_v30, %v11627_v63 }
 0x7c3   : > { %v4824_v7 = vadd.f32 0.001143296, %v4823_v17  ;;  %v8212_v57 = vld [vmem:[%s9424_s27 + $0x44] sm:$0xf]  ;;  %v7490_v46 = vld [vmem:[%s9424_s27 + $0x48] sm:$0xf0]  ;;  %5814 = vmatpush.bf16.msra.mxu2 %v7881_v54  ;;  %vm4478_vm12 = vweird.f32 %v11935_v24  ;;  %vm4518_vm14 = vweird.f32 %v12011_v16 }
 0x7c4   : > { %v7437_v50 = vclamps-f32 %v12037_v5, 1.0  ;;  %vm12059_vm11 = vcmp.eq.f32.partialorder %v4482_v20, 8.507059e+37  ;;  %v12063_v61 = vor.u32 1.1754944e-38, %v4484_v25  ;;  %v7944_v52 = vld [vmem:[%s9424_s27 + $0x3d0] sm:$0xf]  ;;  %v12067_v2 = vadd.f32 1.0, %v4791_v9  ;;  %v12073_v20 = vpop.eup %8566  ;;  %5852 = vmatpush.bf16.msrb.mxu0 %v7501_v21  ;;  %5832 = vmatpush.bf16.msra.mxu3 %v7953_v32  ;;  %vm12106_vm13 = vmor %vm4478_vm12, %vm4479_vm10 }
 0x7c5   : > { %v8327_v4 = vld [vmem:[%s9424_s27 + $0x3d4] sm:$0xf0]  ;;  %v4814_v55 = vmul.f32 %v4813_v49, %v12030_v13  ;;  %v4825_v15 = vmul.f32 %v4824_v7, %v12030_v13  ;;  %v8230_v45 = vld [vmem:[%s9424_s27 + $0xd4] sm:$0xf]  ;;  %v7562_v5 = vld [vmem:[%s9424_s27 + $0xd8] sm:$0xf0]  ;;  %v4910_v25 = vmul.f32 %v11788_v28, %v11597_v26  ;;  %v4778_v6 = vmul.f32 %v4777_v19, %v11937_v10  ;;  %5870 = vmatpush.bf16.msrb.mxu1 %v7573_v43 }
 0x7c6   : > { %v7873_v49 = vor.u32 %v8309_v39, %v7872_v44  ;;  %v7864_v42 = vld [vmem:[%s9424_s27 + $0x330] sm:$0xf]  ;;  %v8307_v7 = vld [vmem:[%s9424_s27 + $0x334] sm:$0xf0]  ;;  %v12083_v47 = vld [vmem:[%s9424_s27 + $0x34] sm:$0xf]  ;;  %v4500_v26 = vmul.f32 %v4499_v62, %v11875_v22  ;;  %8568 = vrcp.f32 %v12067_v2  ;;  %v12102_v28 = vmul.f32 %v12020_v3, %v11777_v40 }
 0x7c7   : > { %v12086_v56 = vld [vmem:[%s9424_s27 + $0x38] sm:$0xf0]  ;;  %v7936_v19 = vld [vmem:[%s9424_s27 + $0x3c0] sm:$0xf]  ;;  %v8325_v39 = vld [vmem:[%s9424_s27 + $0x3c4] sm:$0xf0]  ;;  %v7493_v24 = vor.u32 %v8212_v57, %v7490_v46  ;;  %v4481_v40 = vsel %vm12106_vm13, %v11969_v12, %v12056_v33  ;;  %v7945_v3 = vor.u32 %v8327_v4, %v7944_v52  ;;  %v7565_v48 = vor.u32 %v8230_v45, %v7562_v5 }
 0x7c8   : > { %v12098_v34 = vld [vmem:[%s9424_s27 + $0xc4] sm:$0xf]  ;;  %v4815_v31 = vadd.f32 0.0036580483, %v4814_v55  ;;  %v4826_v22 = vadd.f32 0.014752088, %v4825_v15  ;;  %5815 = vmatpush.bf16.msra.mxu2 %v7873_v49  ;;  %v4514_v62 = vmul.f32 %v12073_v20, %v12011_v16  ;;  %v12123_v54 = vpack.c.bf16 %v4910_v25, %v11663_v29 }
 0x7c9   : > { %v7554_v30 = vld [vmem:[%s9424_s27 + $0xc8] sm:$0xf0]  ;;  %v12111_v17 = vadd.f32 1.0, %v7437_v50  ;;  %v7856_v60 = vld [vmem:[%s9424_s27 + $0x320] sm:$0xf]  ;;  %5853 = vmatpush.bf16.msrb.mxu0 %v7493_v24  ;;  %5833 = vmatpush.bf16.msra.mxu3 %v7945_v3  ;;  %v7865_v46 = vor.u32 %v8307_v7, %v7864_v42  ;;  %v7485_v50 = vor.u32 %v12083_v47, %v12086_v56  ;;  %v7937_v33 = vor.u32 %v8325_v39, %v7936_v19 }
 0x7ca   : > { %v8305_v44 = vld [vmem:[%s9424_s27 + $0x324] sm:$0xf0]  ;;  %v4779_v9 = vadd.f32 0.18741608, %v4778_v6  ;;  %v4827_v57 = vmul.f32 %v4826_v22, %v12030_v13  ;;  %v8208_v21 = vld [vmem:[%s9424_s27 + $0x24] sm:$0xf]  ;;  %v4462_v29 = vmul.f32 %v12024_v14, %v11767_v41  ;;  %v4816_v55 = vmul.f32 %v4815_v31, %v12030_v13  ;;  %5871 = vmatpush.bf16.msrb.mxu1 %v7565_v48  ;;  %5787 = vmatmul.bf16.gmra.mxu0 %v12123_v54 }
 0x7cb   : > { %v7474_v32 = vld [vmem:[%s9424_s27 + $0x28] sm:$0xf0]  ;;  %v12127_v12 = vadd.f32 1.1283791, %v4500_v26  ;;  %v7928_v52 = vld [vmem:[%s9424_s27 + $0x3b0] sm:$0xf]  ;;  %v7557_v43 = vor.u32 %v12098_v34, %v7554_v30  ;;  %v4486_v6 = vsel %vm12059_vm11, %v12063_v61, %v4481_v40  ;;  %v7857_v14 = vor.u32 %v8305_v44, %v7856_v60 }
 0x7cc   : > { %v8323_v4 = vld [vmem:[%s9424_s27 + $0x3b4] sm:$0xf0]  ;;  %v4828_v15 = vadd.f32 0.112945676, %v4827_v57  ;;  %v8226_v45 = vld [vmem:[%s9424_s27 + $0xb4] sm:$0xf]  ;;  %v12140_v25 = vpop.eup %8568  ;;  %5816 = vmatpush.bf16.msra.mxu2 %v7865_v46  ;;  %v12147_v49 = vpack.c.bf16 %v4911_v35, %v11957_v51  ;;  %v4780_v26 = vmul.f32 %v4779_v9, %v11937_v10  ;;  %v7477_v39 = vor.u32 %v8208_v21, %v7474_v32 }
 0x7cd   : > { %v7546_v5 = vld [vmem:[%s9424_s27 + $0xb8] sm:$0xf0]  ;;  %v4522_v41 = vand.u32 2147483647, %v12011_v16  ;;  %v7848_v42 = vld [vmem:[%s9424_s27 + $0x310] sm:$0xf]  ;;  %v4794_v0 = vmul.f32 %v12140_v25, %v12067_v2  ;;  %5854 = vmatpush.bf16.msrb.mxu0 %v7485_v50  ;;  %5834 = vmatpush.bf16.msra.mxu3 %v7937_v33  ;;  %v7929_v34 = vor.u32 %v8323_v4, %v7928_v52  ;;  %v12173_v22 = vmul.f32 %v4486_v6, %v4462_v29 }
 0x7ce   : > { %v8303_v7 = vld [vmem:[%s9424_s27 + $0x314] sm:$0xf0]  ;;  %v4515_v47 = vsub.f32 1.0, %v4514_v62  ;;  %v4524_v56 = vand.u32 2147483648, %v12011_v16  ;;  %v12156_v61 = vld [vmem:[%s9424_s27 + $0x14] sm:$0xf]  ;;  %v4829_v35 = vmul.f32 %v4828_v15, %v12030_v13  ;;  %5872 = vmatpush.bf16.msrb.mxu1 %v7557_v43  ;;  %v7549_v40 = vor.u32 %v8226_v45, %v7546_v5 }
 0x7cf   : > { %v12159_v19 = vld [vmem:[%s9424_s27 + $0x18] sm:$0xf0]  ;;  %v12162_v51 = vld [vmem:[%s9424_s27 + $0x3a0] sm:$0xf]  ;;  %v8321_v63 = vld [vmem:[%s9424_s27 + $0x3a4] sm:$0xf0]  ;;  %5806 = vmatmul.bf16.gmra.mxu1 %v12147_v49  ;;  %v7849_v62 = vor.u32 %v8303_v7, %v7848_v42  ;;  %vm4799_vm15 = vweird.f32 %v12140_v25  ;;  %vm4519_vm0 = vweird.f32 %v12073_v20  ;;  %vm4798_vm1 = vweird.f32 %v12067_v2 }
 0x7d0   : > { %v12168_v10 = vld [vmem:[%s9424_s27 + $0xa4] sm:$0xf]  ;;  %v12171_v31 = vld [vmem:[%s9424_s27 + $0xa8] sm:$0xf0]  ;;  %v4795_v24 = vsub.f32 1.0, %v4794_v0  ;;  %v4804_v60 = vand.u32 2147483648, %v12067_v2  ;;  %5817 = vmatpush.bf16.msra.mxu2 %v7857_v14  ;;  %v4516_v9 = vmul.f32 %v12073_v20, %v4515_v47  ;;  %v7469_v33 = vor.u32 %v12156_v61, %v12159_v19  ;;  %vm4800_vm3 = vmor %vm4798_vm1, %vm4799_vm15 }
 0x7d1   : > { %v4817_v30 = vadd.f32 0.05243302, %v4816_v55  ;;  %v12176_v3 = vld [vmem:[%s9424_s27 + $0x300] sm:$0xf]  ;;  %v4802_v48 = vand.u32 2147483647, %v12067_v2  ;;  %5855 = vmatpush.bf16.msrb.mxu0 %v7477_v39  ;;  %5835 = vmatpush.bf16.msra.mxu3 %v7929_v34  ;;  %v7921_v52 = vor.u32 %v8321_v63, %v12162_v51  ;;  %v7541_v45 = vor.u32 %v12168_v10, %v12171_v31  ;;  %vm12235_vm5 = vmor %vm4518_vm14, %vm4519_vm0 }
 0x7d2   : > { %v4830_v44 = vadd.f32 0.4994258, %v4829_v35  ;;  %v4781_v57 = vadd.f32 1.1283791, %v4780_v26  ;;  %v4796_v21 = vmul.f32 %v12140_v25, %v4795_v24  ;;  %v8301_v32 = vld [vmem:[%s9424_s27 + $0x304] sm:$0xf0]  ;;  %5873 = vmatpush.bf16.msrb.mxu1 %v7549_v40  ;;  %v4517_v0 = vadd.f32 %v12073_v20, %v4516_v9 }
 0x7d3   : > { %v12186_v46 = vld [vmem:[%s9424_s27 + $0x4] sm:$0xf]  ;;  %v7458_v4 = vld [vmem:[%s9424_s27 + $0x8] sm:$0xf0]  ;;  %v8250_v29 = vld [vmem:[%s9424_s27 + $0x174] sm:$0xf]  ;;  %v4818_v43 = vmul.f32 %v4817_v30, %v12030_v13  ;;  %v7841_v47 = vor.u32 %v8301_v32, %v12176_v3  ;;  %v12229_v24 = vpack.c.bf16 %v12102_v28, %v12090_v27  ;;  %v4897_v27 = vmul.f32 %v12111_v17, %v11827_v53 }
 0x7d4   : > { %v4831_v50 = vmul.f32 %v4830_v44, %v12030_v13  ;;  %v7642_v55 = vld [vmem:[%s9424_s27 + $0x178] sm:$0xf0]  ;;  %v4797_v15 = vadd.f32 %v12140_v25, %v4796_v21  ;;  %v7912_v5 = vld [vmem:[%s9424_s27 + $0x390] sm:$0xf]  ;;  %v8319_v6 = vld [vmem:[%s9424_s27 + $0x394] sm:$0xf0]  ;;  %5818 = vmatpush.bf16.msra.mxu2 %v7849_v62  ;;  %v7461_v63 = vor.u32 %v12186_v46, %v7458_v4  ;;  %v4889_v21 = vmul.f32 %v12018_v11, %v11774_v58 }
 0x7d5   : > { %v8222_v14 = vld [vmem:[%s9424_s27 + $0x94] sm:$0xf]  ;;  %vm12204_vm2 = vcmp.eq.f32.partialorder %v4522_v41, 8.507059e+37  ;;  %vm4803_vm4 = vcmp.eq.f32.partialorder %v4802_v48, 8.507059e+37  ;;  %v4805_v2 = vor.u32 1.1754944e-38, %v4804_v60  ;;  %v4782_v41 = vmul.f32 %v4781_v57, %v11893_v59  ;;  %5856 = vmatpush.bf16.msrb.mxu0 %v7469_v33  ;;  %5836 = vmatpush.bf16.msra.mxu3 %v7921_v52  ;;  %v5707_v52 = vpop.f32.mrf.mxu0 }
 0x7d6   : > { %v12210_v7 = vadd.f32 1.0, %v4831_v50  ;;  %v7530_v26 = vld [vmem:[%s9424_s27 + $0x98] sm:$0xf0]  ;;  %v4801_v61 = vsel %vm4800_vm3, %v12140_v25, %v4797_v15  ;;  %v7645_v19 = vor.u32 %v8250_v29, %v7642_v55  ;;  %v8282_v51 = vld [vmem:[%s9424_s27 + $0x274] sm:$0xf]  ;;  %v7913_v10 = vor.u32 %v8319_v6, %v7912_v5  ;;  %5874 = vmatpush.bf16.msrb.mxu1 %v7541_v45 }
 0x7d7   : > { %v7770_v35 = vld [vmem:[%s9424_s27 + $0x278] sm:$0xf0]  ;;  %v12220_v39 = vld [vmem:[%s9424_s27 + $0x380] sm:$0xf]  ;;  %v4806_v34 = vsel %vm4803_vm4, %v4805_v2, %v4801_v61  ;;  %v8317_v59 = vld [vmem:[%s9424_s27 + $0x384] sm:$0xf0]  ;;  %v7533_v48 = vor.u32 %v8222_v14, %v7530_v26  ;;  %v4521_v53 = vsel %vm12235_vm5, %v12073_v20, %v4517_v0  ;;  %v5726_v61 = vpop.f32.mrf.mxu1 }
 0x7d8   : > { %8570 = vrcp.f32 %v12210_v7  ;;  %v8248_v25 = vld [vmem:[%s9424_s27 + $0x164] sm:$0xf]  ;;  %v7634_v31 = vld [vmem:[%s9424_s27 + $0x168] sm:$0xf0]  ;;  %v4807_v40 = vmul.f32 %v4806_v34, %v4782_v41  ;;  %v4819_v3 = vadd.f32 0.18741608, %v4818_v43  ;;  %5819 = vmatpush.bf16.msra.mxu2 %v7841_v47  ;;  %v7773_v28 = vor.u32 %v8282_v51, %v7770_v35 }
 0x7d9   : > { %v8220_v60 = vld [vmem:[%s9424_s27 + $0x84] sm:$0xf]  ;;  %v7522_v44 = vld [vmem:[%s9424_s27 + $0x88] sm:$0xf0]  ;;  %v8266_v9 = vld [vmem:[%s9424_s27 + $0x1f4] sm:$0xf]  ;;  %v7637_v32 = vor.u32 %v8248_v25, %v7634_v31  ;;  %5857 = vmatpush.bf16.msrb.mxu0 %v7461_v63  ;;  %5837 = vmatpush.bf16.msra.mxu3 %v7913_v10  ;;  %v7905_v58 = vor.u32 %v8317_v59, %v12220_v39  ;;  %v4502_v51 = vmul.f32 %v12127_v12, %v11846_v36  ;;  %vm4838_vm7 = vweird.f32 %v12210_v7 }
 0x7da   : > { %v8280_v62 = vld [vmem:[%s9424_s27 + $0x264] sm:$0xf]  ;;  %v7706_v57 = vld [vmem:[%s9424_s27 + $0x1f8] sm:$0xf0]  ;;  %v7762_v46 = vld [vmem:[%s9424_s27 + $0x268] sm:$0xf0]  ;;  %v4820_v15 = vmul.f32 %v4819_v3, %v12030_v13  ;;  %5875 = vmatpush.bf16.msrb.mxu1 %v7533_v48  ;;  %v7525_v20 = vor.u32 %v8220_v60, %v7522_v44  ;;  %v12282_v34 = vadd.f32 %v5726_v61, %v5707_v52 }
 0x7db   : > { %v8298_v50 = vld [vmem:[%s9424_s27 + $0x2f4] sm:$0xf]  ;;  %v7834_v33 = vld [vmem:[%s9424_s27 + $0x2f8] sm:$0xf0]  ;;  %v7444_v4 = vclamps-f32 %v12173_v22, 1.0  ;;  %v4525_v17 = vor.u32 1.1754944e-38, %v4524_v56  ;;  %5820 = vmatmul.bf16.vlgmr.msra.gmra.mxu2 %v12229_v24  ;;  %v7709_v16 = vor.u32 %v8266_v9, %v7706_v57  ;;  %v12264_v22 = vpack.c.bf16 %v4897_v27, %v4889_v21 }
 0x7dc   : > { %5888 = vmatpush.bf16.msrb.mxu2 %v7645_v19  ;;  %v8246_v11 = vld [vmem:[%s9424_s27 + $0x154] sm:$0xf]  ;;  %v7626_v29 = vld [vmem:[%s9424_s27 + $0x158] sm:$0xf0]  ;;  %v7452_v55 = vclamps-f32 %v4807_v40, 1.0  ;;  %v7765_v43 = vor.u32 %v8280_v62, %v7762_v46  ;;  %v7837_v45 = vor.u32 %v8298_v50, %v7834_v33  ;;  %5858 = vmatmul.bf16.vlgmr.msrb.gmra.mxu0 %v10651_v18  ;;  %v3536_v42 = vmul.f32 0.5, %v11869_v23 }
 0x7dd   : > { %5926 = vmatpush.bf16.msra.mxu0 %v7773_v28  ;;  %v8278_v5 = vld [vmem:[%s9424_s27 + $0x254] sm:$0xf]  ;;  %v8264_v6 = vld [vmem:[%s9424_s27 + $0x1e4] sm:$0xf]  ;;  %v7698_v13 = vld [vmem:[%s9424_s27 + $0x1e8] sm:$0xf0]  ;;  %v4526_v14 = vsel %vm12204_vm2, %v4525_v17, %v4521_v53  ;;  %v7629_v47 = vor.u32 %v8246_v11, %v7626_v29  ;;  %5838 = vmatpush.bf16.msra.mxu3 %v7905_v58  ;;  %v5709_v52 = vpop.f32.mrf.mxu0 }
 0x7de   : > { %v12262_v56 = vpop.eup %8570  ;;  %v7754_v26 = vld [vmem:[%s9424_s27 + $0x258] sm:$0xf0]  ;;  %v8296_v0 = vld [vmem:[%s9424_s27 + $0x2e4] sm:$0xf]  ;;  %v7826_v41 = vld [vmem:[%s9424_s27 + $0x2e8] sm:$0xf0]  ;;  %5876 = vmatpush.bf16.msrb.mxu1 %v7525_v20  ;;  %v7701_v59 = vor.u32 %v8264_v6, %v7698_v13  ;;  %v4527_v36 = vmul.f32 %v4526_v14, %v4502_v51 }
 0x7df   : > { %v4834_v2 = vmul.f32 %v12262_v56, %v12210_v7  ;;  %v4872_v19 = vadd.f32 1.0, %v7444_v4  ;;  %v8244_v35 = vld [vmem:[%s9424_s27 + $0x144] sm:$0xf]  ;;  %v7618_v39 = vld [vmem:[%s9424_s27 + $0x148] sm:$0xf0]  ;;  %v4880_v18 = vadd.f32 1.0, %v7452_v55  ;;  %v7757_v12 = vor.u32 %v8278_v5, %v7754_v26 }
 0x7e0   : > { %5889 = vmatpush.bf16.msrb.mxu2 %v7637_v32  ;;  %v4821_v63 = vadd.f32 1.1283791, %v4820_v15  ;;  %v8276_v25 = vld [vmem:[%s9424_s27 + $0x244] sm:$0xf]  ;;  %v7746_v31 = vld [vmem:[%s9424_s27 + $0x248] sm:$0xf0]  ;;  %v7829_v30 = vor.u32 %v8296_v0, %v7826_v41  ;;  %vm4839_vm6 = vweird.f32 %v12262_v56  ;;  %5839 = vmatmul.bf16.vlgmr.msra.gmra.mxu3 %v12264_v22  ;;  %v7621_v44 = vor.u32 %v8244_v35, %v7618_v39 }
 0x7e1   : > { %v4835_v10 = vsub.f32 1.0, %v4834_v2  ;;  %5907 = vmatpush.bf16.msrb.mxu3 %v7709_v16  ;;  %v4844_v23 = vand.u32 2147483648, %v12210_v7  ;;  %5927 = vmatpush.bf16.msra.mxu0 %v7765_v43  ;;  %v8262_v40 = vld [vmem:[%s9424_s27 + $0x1d4] sm:$0xf]  ;;  %v7690_v3 = vld [vmem:[%s9424_s27 + $0x1d8] sm:$0xf0]  ;;  %v4904_v62 = vmul.f32 %v4872_v19, %v11866_v1  ;;  %v4912_v21 = vmul.f32 %v4880_v18, %v3536_v42  ;;  %vm12305_vm8 = vmor %vm4838_vm7, %vm4839_vm6  ;;  %v5728_v16 = vpop.f32.mrf.mxu1 }
 0x7e2   : > { %5945 = vmatpush.bf16.msra.mxu1 %v7837_v45  ;;  %v4842_v60 = vand.u32 2147483647, %v12210_v7  ;;  %v8294_v27 = vld [vmem:[%s9424_s27 + $0x2d4] sm:$0xf]  ;;  %v7818_v28 = vld [vmem:[%s9424_s27 + $0x2d8] sm:$0xf0]  ;;  %v7693_v46 = vor.u32 %v8262_v40, %v7690_v3  ;;  %v7749_v7 = vor.u32 %v8276_v25, %v7746_v31  ;;  %v4822_v11 = vmul.f32 %v4821_v63, %v11998_v37 }
 0x7e3   : > { %v4836_v48 = vmul.f32 %v12262_v56, %v4835_v10  ;;  %5877 = vmatmul.bf16.vlgmr.msrb.gmra.mxu1 %v10660_v8  ;;  %v8242_v9 = vld [vmem:[%s9424_s27 + $0x134] sm:$0xf]  ;;  %v7610_v57 = vld [vmem:[%s9424_s27 + $0x138] sm:$0xf0]  ;;  %v7445_v4 = vclamps-f32 %v4527_v36, 1.0  ;;  %v4845_v1 = vor.u32 1.1754944e-38, %v4844_v23  ;;  %v7821_v53 = vor.u32 %v8294_v27, %v7818_v28 }
 0x7e4   : > { %5890 = vmatpush.bf16.msrb.mxu2 %v7629_v47  ;;  %v8274_v50 = vld [vmem:[%s9424_s27 + $0x234] sm:$0xf]  ;;  %v7738_v33 = vld [vmem:[%s9424_s27 + $0x238] sm:$0xf0]  ;;  %v8260_v17 = vld [vmem:[%s9424_s27 + $0x1c4] sm:$0xf]  ;;  %v7613_v55 = vor.u32 %v8242_v9, %v7610_v57  ;;  %v12319_v6 = vadd.f32 %v5728_v16, %v5709_v52  ;;  %v12321_v13 = vpack.c.bf16 %v4912_v21, %v4904_v62 }
 0x7e5   : > { %v4837_v32 = vadd.f32 %v12262_v56, %v4836_v48  ;;  %5908 = vmatpush.bf16.msrb.mxu3 %v7701_v59  ;;  %5928 = vmatpush.bf16.msra.mxu0 %v7757_v12  ;;  %v7682_v58 = vld [vmem:[%s9424_s27 + $0x1c8] sm:$0xf0]  ;;  %vm4843_vm9 = vcmp.eq.f32.partialorder %v4842_v60, 8.507059e+37  ;;  %v8292_v15 = vld [vmem:[%s9424_s27 + $0x2c4] sm:$0xf]  ;;  %v7741_v2 = vor.u32 %v8274_v50, %v7738_v33  ;;  %v4873_v61 = vadd.f32 1.0, %v7445_v4  ;;  %v5712_v62 = vpop.f32.mrf.mxu0 }
 0x7e6   : > { %5946 = vmatpush.bf16.msra.mxu1 %v7829_v30  ;;  %v7810_v20 = vld [vmem:[%s9424_s27 + $0x2c8] sm:$0xf0]  ;;  %v8240_v45 = vld [vmem:[%s9424_s27 + $0x124] sm:$0xf]  ;;  %v8258_v0 = vld [vmem:[%s9424_s27 + $0x1b4] sm:$0xf] }
 0x7e7   : > { %v4841_v29 = vsel %vm12305_vm8, %v12262_v56, %v4837_v32  ;;  %v7602_v5 = vld [vmem:[%s9424_s27 + $0x128] sm:$0xf0]  ;;  %v7685_v56 = vor.u32 %v8260_v17, %v7682_v58  ;;  %v8272_v14 = vld [vmem:[%s9424_s27 + $0x224] sm:$0xf]  ;;  %v7813_v47 = vor.u32 %v8292_v15, %v7810_v20  ;;  %v7674_v41 = vld [vmem:[%s9424_s27 + $0x1b8] sm:$0xf0] }
 0x7e8   : > { %5891 = vmatpush.bf16.msrb.mxu2 %v7621_v44  ;;  %v4846_v43 = vsel %vm4843_vm9, %v4845_v1, %v4841_v29  ;;  %v7730_v26 = vld [vmem:[%s9424_s27 + $0x228] sm:$0xf0]  ;;  %v7605_v51 = vor.u32 %v8240_v45, %v7602_v5  ;;  %v8290_v42 = vld [vmem:[%s9424_s27 + $0x2b4] sm:$0xf]  ;;  %v7802_v35 = vld [vmem:[%s9424_s27 + $0x2b8] sm:$0xf0]  ;;  %v7677_v31 = vor.u32 %v8258_v0, %v7674_v41 }
 0x7e9   : > { %v4847_v37 = vmul.f32 %v4846_v43, %v4822_v11  ;;  %5909 = vmatpush.bf16.msrb.mxu3 %v7693_v46  ;;  %5929 = vmatpush.bf16.msra.mxu0 %v7749_v7  ;;  %v8238_v39 = vld [vmem:[%s9424_s27 + $0x114] sm:$0xf]  ;;  %v7594_v18 = vld [vmem:[%s9424_s27 + $0x118] sm:$0xf0]  ;;  %v3529_v63 = vmul.f32 0.5, %v11816_v38  ;;  %v12732_v10 = vld [vmem:[#allocation47_spill] sm:$0xff]  ;;  %v7733_v36 = vor.u32 %v8272_v14, %v7730_v26  ;;  %v7805_v23 = vor.u32 %v8290_v42, %v7802_v35  ;;  %v5731_v9 = vpop.f32.mrf.mxu1 }
 0x7ea   : > { %5947 = vmatpush.bf16.msra.mxu1 %v7821_v53  ;;  %v3537_v59 = vmul.f32 0.5, %v12732_v10  ;;  %v8270_v12 = vld [vmem:[%s9424_s27 + $0x214] sm:$0xf]  ;;  %v8256_v30 = vld [vmem:[%s9424_s27 + $0x1a4] sm:$0xf]  ;;  %v12733_v48 = vld [vmem:[#allocation41_spill] sm:$0xff]  ;;  %v7597_v60 = vor.u32 %v8238_v39, %v7594_v18  ;;  %v12343_v32 = vadd.f32 %v5731_v9, %v5712_v62 }
 0x7eb   : > { %v7453_v19 = vclamps-f32 %v4847_v37, 1.0  ;;  %5825 = vmatmul.bf16.gmra.mxu2 %v12321_v13  ;;  %v7666_v40 = vld [vmem:[%s9424_s27 + $0x1a8] sm:$0xf0]  ;;  %v4905_v38 = vmul.f32 %v4873_v61, %v3529_v63  ;;  %v7722_v44 = vld [vmem:[%s9424_s27 + $0x218] sm:$0xf0] }
 0x7ec   : > { %5892 = vmatpush.bf16.msrb.mxu2 %v7613_v55  ;;  %5863 = vmatmul.bf16.gmra.mxu0 %v12733_v48  ;;  %v8288_v27 = vld [vmem:[%s9424_s27 + $0x2a4] sm:$0xf]  ;;  %v7794_v28 = vld [vmem:[%s9424_s27 + $0x2a8] sm:$0xf0]  ;;  %v7669_v50 = vor.u32 %v8256_v30, %v7666_v40  ;;  %v8314_v33 = vld [vmem:[%s9424_s27 + $0x374] sm:$0xf]  ;;  %v7725_v4 = vor.u32 %v8270_v12, %v7722_v44 }
 0x7ed   : > { %v4881_v25 = vadd.f32 1.0, %v7453_v19  ;;  %5910 = vmatpush.bf16.msrb.mxu3 %v7685_v56  ;;  %5930 = vmatpush.bf16.msra.mxu0 %v7741_v2  ;;  %v8236_v57 = vld [vmem:[%s9424_s27 + $0x104] sm:$0xf]  ;;  %v7586_v21 = vld [vmem:[%s9424_s27 + $0x108] sm:$0xf0]  ;;  %v7797_v8 = vor.u32 %v8288_v27, %v7794_v28  ;;  %v12738_v28 = vld [vmem:[#allocation44_spill] sm:$0xff] }
 0x7ee   : > { %5948 = vmatpush.bf16.msra.mxu1 %v7813_v47  ;;  %v7898_v52 = vld [vmem:[%s9424_s27 + $0x378] sm:$0xf0]  ;;  %v8268_v1 = vld [vmem:[%s9424_s27 + $0x204] sm:$0xf]  ;;  %v8254_v7 = vld [vmem:[%s9424_s27 + $0x194] sm:$0xf]  ;;  %v7589_v17 = vor.u32 %v8236_v57, %v7586_v21 }
 0x7ef   : > { %v4913_v3 = vmul.f32 %v4881_v25, %v3537_v59  ;;  %v7658_v53 = vld [vmem:[%s9424_s27 + $0x198] sm:$0xf0]  ;;  %v7714_v58 = vld [vmem:[%s9424_s27 + $0x208] sm:$0xf0]  ;;  %v8286_v11 = vld [vmem:[%s9424_s27 + $0x294] sm:$0xf]  ;;  %v7901_v15 = vor.u32 %v8314_v33, %v7898_v52  ;;  %v5745_v25 = vpop.f32.mrf.mxu2 }
 0x7f0   : > { %5893 = vmatpush.bf16.msrb.mxu2 %v7605_v51  ;;  %v7786_v29 = vld [vmem:[%s9424_s27 + $0x298] sm:$0xf0]  ;;  %v12734_v55 = vld [vmem:[#allocation42_spill] sm:$0xff]  ;;  %v7661_v20 = vor.u32 %v8254_v7, %v7658_v53  ;;  %v7890_v43 = vld [vmem:[%s9424_s27 + $0x368] sm:$0xf0]  ;;  %v7717_v45 = vor.u32 %v8268_v1, %v7714_v58 }
 0x7f1   : > { %v12345_v46 = vpack.c.bf16 %v4913_v3, %v4905_v38  ;;  %5911 = vmatpush.bf16.msrb.mxu3 %v7677_v31  ;;  %5931 = vmatpush.bf16.msra.mxu0 %v7733_v36  ;;  %v8312_v16 = vld [vmem:[%s9424_s27 + $0x364] sm:$0xf]  ;;  %v7789_v5 = vor.u32 %v8286_v11, %v7786_v29  ;;  %v7650_v56 = vld [vmem:[%s9424_s27 + $0x188] sm:$0xf0]  ;;  %v8330_v47 = vld [vmem:[%s9424_s27 + $0x3f4] sm:$0xf]  ;;  %v5746_v36 = vadd.f32 %v5745_v25, %v12282_v34  ;;  %v5764_v34 = vpop.f32.mrf.mxu3 }
 0x7f2   : > { %5949 = vmatpush.bf16.msra.mxu1 %v7805_v23  ;;  %v8252_v37 = vld [vmem:[%s9424_s27 + $0x184] sm:$0xf]  ;;  %v7778_v2 = vld [vmem:[%s9424_s27 + $0x288] sm:$0xf0]  ;;  %v7962_v26 = vld [vmem:[%s9424_s27 + $0x3f8] sm:$0xf0]  ;;  %v7893_v0 = vor.u32 %v8312_v16, %v7890_v43 }
 0x7f3   : > { %5844 = vmatmul.bf16.gmra.mxu3 %v12345_v46  ;;  %5882 = vmatmul.bf16.gmra.mxu1 %v12734_v55  ;;  %v8284_v14 = vld [vmem:[%s9424_s27 + $0x284] sm:$0xf]  ;;  %v7653_v41 = vor.u32 %v8252_v37, %v7650_v56  ;;  %v8310_v61 = vld [vmem:[%s9424_s27 + $0x354] sm:$0xf]  ;;  %v7882_v19 = vld [vmem:[%s9424_s27 + $0x358] sm:$0xf0]  ;;  %v7965_v42 = vor.u32 %v8330_v47, %v7962_v26  ;;  %v5765_v9 = vadd.f32 %v5764_v34, %v5746_v36 }
 0x7f4   : > { %5894 = vmatpush.bf16.msrb.mxu2 %v7597_v60  ;;  %v7781_v51 = vor.u32 %v8284_v14, %v7778_v2  ;;  %v8328_v35 = vld [vmem:[%s9424_s27 + $0x3e4] sm:$0xf]  ;;  %v7954_v39 = vld [vmem:[%s9424_s27 + $0x3e8] sm:$0xf0]  ;;  %v7885_v18 = vor.u32 %v8310_v61, %v7882_v19  ;;  %v8326_v12 = vld [vmem:[%s9424_s27 + $0x3d4] sm:$0xf]  ;;  %v5714_v61 = vpop.f32.mrf.mxu0 }
 0x7f5   : > { %5912 = vmatpush.bf16.msrb.mxu3 %v7669_v50  ;;  %5932 = vmatpush.bf16.msra.mxu0 %v7725_v4  ;;  %v12735_v63 = vld [vmem:[#allocation39_spill] sm:$0xff]  ;;  %v8308_v10 = vld [vmem:[%s9424_s27 + $0x344] sm:$0xf]  ;;  %v7957_v31 = vor.u32 %v8328_v35, %v7954_v39  ;;  %v7946_v30 = vld [vmem:[%s9424_s27 + $0x3d8] sm:$0xf0] }
 0x7f6   : > { %5950 = vmatpush.bf16.msra.mxu1 %v7797_v8  ;;  %v7874_v59 = vld [vmem:[%s9424_s27 + $0x348] sm:$0xf0]  ;;  %v8306_v38 = vld [vmem:[%s9424_s27 + $0x334] sm:$0xf]  ;;  %v7866_v3 = vld [vmem:[%s9424_s27 + $0x338] sm:$0xf0]  ;;  %v7949_v48 = vor.u32 %v8326_v12, %v7946_v30 }
 0x7f7   : > { %v12736_v23 = vld [vmem:[#allocation43_spill] sm:$0xff]  ;;  %v7877_v40 = vor.u32 %v8308_v10, %v7874_v59  ;;  %v12737_v60 = vld [vmem:[#allocation40_spill] sm:$0xff]  ;;  %v8324_v44 = vld [vmem:[%s9424_s27 + $0x3c4] sm:$0xf]  ;;  %v7869_v62 = vor.u32 %v8306_v38, %v7866_v3  ;;  %v5747_v50 = vpop.f32.mrf.mxu2 }
 0x7f8   : > { %5895 = vmatpush.bf16.msrb.mxu2 %v7589_v17  ;;  %v7938_v27 = vld [vmem:[%s9424_s27 + $0x3c8] sm:$0xf0]  ;;  %v8304_v57 = vld [vmem:[%s9424_s27 + $0x324] sm:$0xf]  ;;  %v5748_v52 = vadd.f32 %v5747_v50, %v12319_v6  ;;  %v8322_v4 = vld [vmem:[%s9424_s27 + $0x3b4] sm:$0xf] }
 0x7f9   : > { %5913 = vmatpush.bf16.msrb.mxu3 %v7661_v20  ;;  %5933 = vmatpush.bf16.msra.mxu0 %v7717_v45  ;;  %v7858_v21 = vld [vmem:[%s9424_s27 + $0x328] sm:$0xf0]  ;;  %v7941_v33 = vor.u32 %v8324_v44, %v7938_v27  ;;  %v7930_v8 = vld [vmem:[%s9424_s27 + $0x3b8] sm:$0xf0]  ;;  %v8302_v7 = vld [vmem:[%s9424_s27 + $0x314] sm:$0xf]  ;;  %v5766_v6 = vpop.f32.mrf.mxu3 }
 0x7fa   : > { %5951 = vmatpush.bf16.msra.mxu1 %v7789_v5  ;;  %v7861_v1 = vor.u32 %v8304_v57, %v7858_v21  ;;  %v7850_v53 = vld [vmem:[%s9424_s27 + $0x318] sm:$0xf0]  ;;  %v7933_v17 = vor.u32 %v8322_v4, %v7930_v8  ;;  %v8320_v58 = vld [vmem:[%s9424_s27 + $0x3a4] sm:$0xf]  ;;  %v7922_v11 = vld [vmem:[%s9424_s27 + $0x3a8] sm:$0xf0]  ;;  %v5767_v43 = vadd.f32 %v5766_v6, %v5748_v52 }
 0x7fb   : > { %5896 = vmatmul.bf16.vlgmr.msrb.gmra.mxu2 %v12735_v63  ;;  %v7853_v29 = vor.u32 %v8302_v7, %v7850_v53  ;;  %v12739_v55 = vld [vmem:[#allocation45_spill] sm:$0xff]  ;;  %v7842_v20 = vld [vmem:[%s9424_s27 + $0x308] sm:$0xf0]  ;;  %v7925_v16 = vor.u32 %v8320_v58, %v7922_v11  ;;  %v8318_v45 = vld [vmem:[%s9424_s27 + $0x394] sm:$0xf] }
 0x7fc   : > { %5964 = vmatpush.bf16.msra.mxu2 %v7901_v15  ;;  %5934 = vmatmul.bf16.vlgmr.msra.gmra.mxu0 %v12736_v23  ;;  %v8300_v15 = vld [vmem:[%s9424_s27 + $0x304] sm:$0xf]  ;;  %v7914_v5 = vld [vmem:[%s9424_s27 + $0x398] sm:$0xf0] }
 0x7fd   : > { %5914 = vmatpush.bf16.msrb.mxu3 %v7653_v41  ;;  %v7845_v37 = vor.u32 %v8300_v15, %v7842_v20  ;;  %v7917_v14 = vor.u32 %v8318_v45, %v7914_v5  ;;  %v12740_v47 = vld [vmem:[#allocation46_spill] sm:$0xff]  ;;  %v12743_v8 = vld [vmem:[#allocation33_spill] sm:$0xff] }
 0x7fe   : > { %5952 = vmatpush.bf16.msra.mxu1 %v7781_v51  ;;  %v8316_v26 = vld [vmem:[%s9424_s27 + $0x384] sm:$0xf] }
 0x800   : > { %5965 = vmatpush.bf16.msra.mxu2 %v7893_v0  ;;  %v7906_v0 = vld [vmem:[%s9424_s27 + $0x388] sm:$0xf0] }
 0x801   : > { %5983 = vmatpush.bf16.msra.mxu3 %v7965_v42  ;;  %v7909_v41 = vor.u32 %v8316_v26, %v7906_v0 }
 0x803   : > { %5915 = vmatmul.bf16.vlgmr.msrb.gmra.mxu3 %v12737_v60  ;;  %5953 = vmatmul.bf16.vlgmr.msra.gmra.mxu1 %v12738_v28  ;;  %v6010_v60 = vld [vmem:[%s922_s2] sm:$0x3]  ;;  %s12750_s2 = sld [smem:[#allocation25_spill]] }
 0x804   : > { %5966 = vmatpush.bf16.msra.mxu2 %v7885_v18  ;;  %v6012_v34 = vperm.slane %v6010_v60, 0 }
 0x805   : > { %5984 = vmatpush.bf16.msra.mxu3 %v7957_v31 }
 0x808   : > { %5967 = vmatpush.bf16.msra.mxu2 %v7877_v40 }
 0x809   : > { %5985 = vmatpush.bf16.msra.mxu3 %v7949_v48  ;;  %p7966_p5 = scmp.eq.s32.totalorder %s12750_s2, 1 }
 0x80b   : > { %5901 = vmatmul.bf16.gmra.mxu2 %v12739_v55  ;;  %v12744_v55 = vld [vmem:[#allocation35_spill] sm:$0xff] }
 0x80c   : > { %5968 = vmatpush.bf16.msra.mxu2 %v7869_v62  ;;  %5939 = vmatmul.bf16.gmra.mxu0 %v12123_v54  ;;  %v12742_v62 = vld [vmem:[#allocation31_spill] sm:$0xff] }
 0x80d   : > { %5986 = vmatpush.bf16.msra.mxu3 %v7941_v33 }
 0x80e   : > { %v5750_v56 = vpop.f32.mrf.mxu2 }
 0x80f   : > { %v5751_v2 = vadd.f32 %v5750_v56, %v12343_v32  ;;  %v5733_v32 = vpop.f32.mrf.mxu1  ;;  %v12745_v56 = vld [vmem:[#allocation37_spill] sm:$0xff] }
 0x810   : > { %5969 = vmatpush.bf16.msra.mxu2 %v7861_v1  ;;  %v5734_v42 = vadd.f32 %v5733_v32, %v5714_v61 }
 0x811   : > { %5987 = vmatpush.bf16.msra.mxu3 %v7933_v17 }
 0x813   : > { %5920 = vmatmul.bf16.gmra.mxu3 %v12740_v47  ;;  %5958 = vmatmul.bf16.gmra.mxu1 %v12147_v49 }
 0x814   : > { %5970 = vmatpush.bf16.msra.mxu2 %v7853_v29 }
 0x815   : > { %5988 = vmatpush.bf16.msra.mxu3 %v7925_v16 }
 0x816   : > { %v5752_v51 = vpop.f32.mrf.mxu2 }
 0x817   : > { %v5753_v35 = vadd.f32 %v5752_v51, %v5734_v42 }
 0x818   : > { %5971 = vmatpush.bf16.msra.mxu2 %v7845_v37 }
 0x819   : > { %5989 = vmatpush.bf16.msra.mxu3 %v7917_v14 }
 0x81b   : > { %5972 = vmatmul.bf16.vlgmr.msra.gmra.mxu2 %v12229_v24 }
 0x81d   : > { %5990 = vmatpush.bf16.msra.mxu3 %v7909_v41 }
 0x823   : > { %5991 = vmatmul.bf16.vlgmr.msra.gmra.mxu3 %v12264_v22 }
 0x82b   : > { %5977 = vmatmul.bf16.gmra.mxu2 %v12321_v13  ;;  %v5769_v54 = vpop.f32.mrf.mxu3 }
 0x82c   : > { %v5770_v19 = vadd.f32 %v5769_v54, %v5751_v2 }
 0x833   : > { %5996 = vmatmul.bf16.gmra.mxu3 %v12345_v46  ;;  %v5771_v49 = vpop.f32.mrf.mxu3 }
 0x834   : > { %v5783_v39 = vpop.f32.mrf.mxu0  ;;  %v5772_v18 = vadd.f32 %v5771_v49, %v5753_v35 }
 0x835   : > { %v5784_v63 = vadd.f32 %v5783_v39, %v5765_v9 }
 0x83c   : > { %v5802_v10 = vpop.f32.mrf.mxu1  ;;  %v5785_v24 = vpop.f32.mrf.mxu0 }
 0x83d   : > { %v5803_v59 = vadd.f32 %v5802_v10, %v5784_v63  ;;  %v5786_v22 = vadd.f32 %v5785_v24, %v5767_v43 }
 0x844   : > { %v5804_v25 = vpop.f32.mrf.mxu1 }
 0x845   : > { %v5805_v13 = vadd.f32 %v5804_v25, %v5786_v22 }
 0x847   : > { %v5788_v31 = vpop.f32.mrf.mxu0 }
 0x848   : > { %v5789_v36 = vadd.f32 %v5788_v31, %v5770_v19 }
 0x84c   : > { %v5807_v23 = vpop.f32.mrf.mxu1 }
 0x84d   : > { %v5808_v12 = vadd.f32 %v5807_v23, %v5789_v36 }
 0x84f   : > { %v5790_v30 = vpop.f32.mrf.mxu0 }
 0x850   : > { %v5791_v40 = vadd.f32 %v5790_v30, %v5772_v18 }
 0x854   : > { %v5809_v38 = vpop.f32.mrf.mxu1 }
 0x855   : > { %v5810_v46 = vadd.f32 %v5809_v38, %v5791_v40 }
 0x859   : > { %v5859_v52 = vpop.f32.mrf.mxu0 }
 0x85e   : > { %v5821_v3 = vpop.f32.mrf.mxu2 }
 0x85f   : > { %v5822_v48 = vadd.f32 %v5821_v3, %v5803_v59  ;;  %v6013_v3 = vperm.slane %v6010_v60, 1 }
 0x860   : > { %v5878_v17 = vpop.f32.mrf.mxu1 }
 0x861   : > { %v5861_v6 = vpop.f32.mrf.mxu0  ;;  %v5879_v42 = vadd.f32 %v5878_v17, %v5859_v52 }
 0x863   : > { %v5840_v44 = vpop.f32.mrf.mxu3 }
 0x864   : > { %v5841_v27 = vadd.f32 %v5840_v44, %v5822_v48 }
 0x866   : > { %v5823_v28 = vpop.f32.mrf.mxu2  ;;  %v6002_v9 = vadd.f32 %v5841_v27, %v12742_v62  ;;  %v12746_v27 = vld [vmem:[#allocation32_spill] sm:$0xff] }
 0x867   : > { %v5824_v57 = vadd.f32 %v5823_v28, %v5805_v13 }
 0x868   : > { %v12412_v21 = vadd.f32 %v6012_v34, %v6002_v9  ;;  %v5880_v43 = vpop.f32.mrf.mxu1 }
 0x869   : > { %v5864_v47 = vpop.f32.mrf.mxu0  ;;  %v5881_v24 = vadd.f32 %v5880_v43, %v5861_v6 }
 0x86b   : > { %v5842_v50 = vpop.f32.mrf.mxu3 }
 0x86c   : > { %v5843_v33 = vadd.f32 %v5842_v50, %v5824_v57 }
 0x86e   : > { %v5826_v4 = vpop.f32.mrf.mxu2  ;;  %v6004_v1 = vadd.f32 %v5843_v33, %v12743_v8 }
 0x86f   : > { %v5827_v7 = vadd.f32 %v5826_v4, %v5808_v12 }
 0x870   : > { %v12415_v53 = vadd.f32 %v6012_v34, %v6004_v1  ;;  %v5883_v0 = vpop.f32.mrf.mxu1 }
 0x871   : > { %v5866_v54 = vpop.f32.mrf.mxu0  ;;  %v5884_v40 = vadd.f32 %v5883_v0, %v5864_v47 }
 0x876   : > { %v5845_v58 = vpop.f32.mrf.mxu3  ;;  %v5828_v29 = vpop.f32.mrf.mxu2 }
 0x877   : > { %v5846_v11 = vadd.f32 %v5845_v58, %v5827_v7  ;;  %v5829_v20 = vadd.f32 %v5828_v29, %v5810_v46  ;;  %v12747_v58 = vld [vmem:[#allocation34_spill] sm:$0xff] }
 0x878   : > { %v5885_v32 = vpop.f32.mrf.mxu1 }
 0x879   : > { %v6006_v15 = vadd.f32 %v5846_v11, %v12744_v55  ;;  %v5935_v35 = vpop.f32.mrf.mxu0  ;;  %v5886_v52 = vadd.f32 %v5885_v32, %v5866_v54 }
 0x87b   : > { %v12418_v16 = vadd.f32 %v6012_v34, %v6006_v15 }
 0x87e   : > { %v5847_v45 = vpop.f32.mrf.mxu3  ;;  %v5897_v37 = vpop.f32.mrf.mxu2 }
 0x87f   : > { %v5848_v5 = vadd.f32 %v5847_v45, %v5829_v20  ;;  %v5898_v39 = vadd.f32 %v5897_v37, %v5879_v42 }
 0x880   : > { %v5954_v63 = vpop.f32.mrf.mxu1 }
 0x881   : > { %v6008_v14 = vadd.f32 %v5848_v5, %v12745_v56  ;;  %v5937_v13 = vpop.f32.mrf.mxu0  ;;  %v12748_v5 = vld [vmem:[#allocation36_spill] sm:$0xff] }
 0x883   : > { %v12421_v2 = vadd.f32 %v6012_v34, %v6008_v14 }
 0x886   : > { %v5916_v26 = vpop.f32.mrf.mxu3  ;;  %v5899_v41 = vpop.f32.mrf.mxu2 }
 0x887   : > { %v5917_v18 = vadd.f32 %v5916_v26, %v5898_v39  ;;  %v5900_v25 = vadd.f32 %v5899_v41, %v5881_v24 }
 0x888   : > { %v5956_v12 = vpop.f32.mrf.mxu1 }
 0x889   : > { %v5936_v59 = vadd.f32 %v5935_v35, %v5917_v18  ;;  %v5940_v57 = vpop.f32.mrf.mxu0 }
 0x88b   : > { %v5955_v36 = vadd.f32 %v5954_v63, %v5936_v59 }
 0x88e   : > { %v5918_v61 = vpop.f32.mrf.mxu3  ;;  %v5902_v19 = vpop.f32.mrf.mxu2 }
 0x88f   : > { %v5919_v31 = vadd.f32 %v5918_v61, %v5900_v25  ;;  %v5903_v44 = vadd.f32 %v5902_v19, %v5884_v40  ;;  %v12749_v61 = vld [vmem:[#allocation38_spill] sm:$0xff] }
 0x890   : > { %v5959_v1 = vpop.f32.mrf.mxu1 }
 0x891   : > { %v5938_v38 = vadd.f32 %v5937_v13, %v5919_v31  ;;  %v5942_v20 = vpop.f32.mrf.mxu0 }
 0x893   : > { %v5957_v9 = vadd.f32 %v5956_v12, %v5938_v38 }
 0x896   : > { %v5921_v51 = vpop.f32.mrf.mxu3  ;;  %v5904_v49 = vpop.f32.mrf.mxu2 }
 0x897   : > { %v5922_v28 = vadd.f32 %v5921_v51, %v5903_v44  ;;  %v5905_v17 = vadd.f32 %v5904_v49, %v5886_v52 }
 0x898   : > { %v5961_v56 = vpop.f32.mrf.mxu1 }
 0x899   : > { %v5941_v4 = vadd.f32 %v5940_v57, %v5922_v28 }
 0x89b   : > { %v5960_v55 = vadd.f32 %v5959_v1, %v5941_v4 }
 0x89e   : > { %v5923_v10 = vpop.f32.mrf.mxu3  ;;  %v5973_v22 = vpop.f32.mrf.mxu2 }
 0x89f   : > { %v5974_v23 = vadd.f32 %v5973_v22, %v5955_v36  ;;  %v5924_v29 = vadd.f32 %v5923_v10, %v5905_v17 }
 0x8a1   : > { %v5943_v43 = vadd.f32 %v5942_v20, %v5924_v29 }
 0x8a3   : > { %v5962_v26 = vadd.f32 %v5961_v56, %v5943_v43 }
 0x8a6   : > { %v5992_v30 = vpop.f32.mrf.mxu3  ;;  %v5975_v48 = vpop.f32.mrf.mxu2 }
 0x8a7   : > { %v5993_v46 = vadd.f32 %v5992_v30, %v5974_v23  ;;  %v5976_v50 = vadd.f32 %v5975_v48, %v5957_v9 }
 0x8a9   : > { %v6003_v34 = vadd.f32 %v5993_v46, %v12746_v27 }
 0x8ab   : > { %v6017_v62 = vadd.f32 %v6013_v3, %v6003_v34 }
 0x8ae   : > { %v5994_v33 = vpop.f32.mrf.mxu3  ;;  %v5978_v7 = vpop.f32.mrf.mxu2 }
 0x8af   : > { %v5995_v8 = vadd.f32 %v5994_v33, %v5976_v50  ;;  %v5979_v15 = vadd.f32 %v5978_v7, %v5960_v55 }
 0x8b1   : > { %v6005_v11 = vadd.f32 %v5995_v8, %v12747_v58 }
 0x8b3   : > { %v6019_v60 = vadd.f32 %v6013_v3, %v6005_v11 }
 0x8b6   : > { %v5997_v6 = vpop.f32.mrf.mxu3  ;;  %v5980_v14 = vpop.f32.mrf.mxu2 }
 0x8b7   : > { %v5998_v45 = vadd.f32 %v5997_v6, %v5979_v15  ;;  %v5981_v0 = vadd.f32 %v5980_v14, %v5962_v26 }
 0x8b9   : > { %v6007_v37 = vadd.f32 %v5998_v45, %v12748_v5 }
 0x8bb   : > { %v6021_v47 = vadd.f32 %v6013_v3, %v6007_v37 }
 0x8be   : > { %v5999_v41 = vpop.f32.mrf.mxu3 }
 0x8bf   : > { %v6000_v54 = vadd.f32 %v5999_v41, %v5981_v0  ;;  %6027 = sbr.rel (%p7966_p5) target bundleno = 2252 (0x8cc), region = 140 }
 0x8c1   : > { %v6009_v19 = vadd.f32 %v6000_v54, %v12749_v61 }
 0x8c3   : > { %v6023_v32 = vadd.f32 %v6013_v3, %v6009_v19 }
 0x8c4   : > { %6028 = vst [vmem:[#allocation17] sm:$0xff] %v12412_v21 }
 0x8c5   : > { %6029 = vst [vmem:[#allocation17 + $0x8] sm:$0xff] %v6017_v62 }
 0x8c6   : > { %6030 = vst [vmem:[#allocation17 + $0x10] sm:$0xff] %v12415_v53 }
 0x8c7   : > { %6031 = vst [vmem:[#allocation17 + $0x18] sm:$0xff] %v6019_v60 }
 0x8c8   : > { %6032 = vst [vmem:[#allocation17 + $0x20] sm:$0xff] %v12418_v16 }
 0x8c9   : > { %6033 = vst [vmem:[#allocation17 + $0x28] sm:$0xff] %v6021_v47 }
 0x8ca   : > { %6034 = vst [vmem:[#allocation17 + $0x30] sm:$0xff] %v12421_v2 }
 0x8cb   : > { %6035 = vst [vmem:[#allocation17 + $0x38] sm:$0xff] %v6023_v32 }
 0x8cc PF: > { %s12751_s30 = sld [smem:[#allocation25_spill]] }
 0x8d2   : > { %p7967_p9 = scmp.ne.s32.totalorder %s12751_s30, 1 }
 0x8d3   : > { %s12753_s18 = sld [smem:[#allocation57_spill]] (!%p7967_p9) }
 0x8d4   : > { %6039 = sbr.rel (%p7967_p9) target bundleno = 2547 (0x9f3), region = 144 }
 0x8d9   : > { %v6048_v51 = vadd.f32 %v6021_v47, %v12418_v16  ;;  %v6042_v42 = vadd.f32 %v6017_v62, %v12412_v21  ;;  %v6051_v35 = vadd.f32 %v6023_v32, %v12421_v2  ;;  %v6045_v49 = vadd.f32 %v6019_v60, %v12415_v53  ;;  %v12752_v63 = vld [vmem:[#allocation30_spill] sm:$0xff]  ;;  %v6040_v5 = vld [vmem:[#allocation16] sm:$0x3] }
 0x8da   : > { %v6143_v54 = vperm.slane %v6040_v5, 0  ;;  %v6144_v19 = vperm.slane %v6040_v5, 1 }
 0x8db   : > { %6049 = vadd.xlane.f32.xlu1 %v6048_v51  ;;  %6043 = vadd.xlane.f32.xlu0 %v6042_v42 }
 0x8e3   : > { %6052 = vadd.xlane.f32.xlu1 %v6051_v35  ;;  %6046 = vadd.xlane.f32.xlu0 %v6045_v49 }
 0x94e   : > { %v6050_v39 = vpop.xlane.xlu1 %6049  ;;  %v6044_v18 = vpop.xlane.xlu0 %6043 }
 0x94f   : > { %v6056_v10 = vmul.f32 %v6050_v39, %v12752_v63  ;;  %v6054_v24 = vmul.f32 %v6044_v18, %v12752_v63 }
 0x951   : > { %v12442_v59 = vsub.f32 %v12418_v16, %v6056_v10  ;;  %v12444_v22 = vsub.f32 %v6021_v47, %v6056_v10  ;;  %v12447_v25 = vsub.f32 %v12412_v21, %v6054_v24  ;;  %v12449_v13 = vsub.f32 %v6017_v62, %v6054_v24  ;;  %v6041_v47 = vld [vmem:[%s12753_s18] sm:$0x3] }
 0x952   : > { %v6156_v35 = vperm.slane %v6041_v47, 0  ;;  %v6157_v49 = vperm.slane %v6041_v47, 1 }
 0x953   : > { %v6070_v31 = vmul.f32 %v12442_v59, %v12442_v59  ;;  %v6071_v36 = vmul.f32 %v12444_v22, %v12444_v22  ;;  %v6066_v23 = vmul.f32 %v12447_v25, %v12447_v25  ;;  %v6067_v16 = vmul.f32 %v12449_v13, %v12449_v13 }
 0x955   : > { %v6080_v12 = vadd.f32 %v6071_v36, %v6070_v31  ;;  %v6074_v30 = vadd.f32 %v6067_v16, %v6066_v23 }
 0x956   : > { %v6053_v40 = vpop.xlane.xlu1 %6052  ;;  %v6047_v38 = vpop.xlane.xlu0 %6046 }
 0x957   : > { %v6057_v21 = vmul.f32 %v6053_v40, %v12752_v63  ;;  %v6055_v46 = vmul.f32 %v6047_v38, %v12752_v63  ;;  %6081 = vadd.xlane.f32.xlu0 %v6080_v12  ;;  %6075 = vadd.xlane.f32.xlu2 %v6074_v30 }
 0x959   : > { %v12462_v3 = vsub.f32 %v12421_v2, %v6057_v21  ;;  %v12464_v48 = vsub.f32 %v6023_v32, %v6057_v21  ;;  %v12467_v44 = vsub.f32 %v12415_v53, %v6055_v46  ;;  %v12469_v27 = vsub.f32 %v6019_v60, %v6055_v46 }
 0x95b   : > { %v6072_v34 = vmul.f32 %v12462_v3, %v12462_v3  ;;  %v6073_v28 = vmul.f32 %v12464_v48, %v12464_v48  ;;  %v6068_v62 = vmul.f32 %v12467_v44, %v12467_v44  ;;  %v6069_v2 = vmul.f32 %v12469_v27, %v12469_v27 }
 0x95d   : > { %v6083_v9 = vadd.f32 %v6073_v28, %v6072_v34  ;;  %v6077_v57 = vadd.f32 %v6069_v2, %v6068_v62 }
 0x95f   : > { %6084 = vadd.xlane.f32.xlu1 %v6083_v9  ;;  %6078 = vadd.xlane.f32.xlu2 %v6077_v57 }
 0x9ca   : > { %v6076_v53 = vpop.xlane.xlu2 %6075  ;;  %v6082_v50 = vpop.xlane.xlu0 %6081 }
 0x9cb   : > { %v6086_v33 = vmul.f32 %v6076_v53, %v12752_v63  ;;  %v6088_v52 = vmul.f32 %v6082_v50, %v12752_v63 }
 0x9cd   : > { %v6090_v4 = vadd.f32 1e-06, %v6086_v33  ;;  %v6092_v8 = vadd.f32 1e-06, %v6088_v52 }
 0x9cf   : > { %8582 = vrsqrt.f32 %v6090_v4  ;;  %vm6100_vm12 = vweird.f32 %v6090_v4  ;;  %vm6120_vm14 = vweird.f32 %v6092_v8 }
 0x9d0   : > { %8584 = vrsqrt.f32 %v6092_v8 }
 0x9d2   : > { %v6085_v1 = vpop.xlane.xlu1 %6084  ;;  %v6079_v7 = vpop.xlane.xlu2 %6078 }
 0x9d3   : > { %v6089_v17 = vmul.f32 %v6085_v1, %v12752_v63  ;;  %v6087_v58 = vmul.f32 %v6079_v7, %v12752_v63 }
 0x9d5   : > { %v8583_v11 = vpop.eup %8582  ;;  %v6093_v29 = vadd.f32 1e-06, %v6089_v17  ;;  %v6091_v60 = vadd.f32 1e-06, %v6087_v58 }
 0x9d6   : > { %v8585_v55 = vpop.eup %8584  ;;  %v6095_v15 = vmul.f32 %v8583_v11, %v6090_v4  ;;  %vm6101_vm10 = vweird.f32 %v8583_v11 }
 0x9d7   : > { %v6115_v20 = vmul.f32 %v8585_v55, %v6092_v8  ;;  %8586 = vrsqrt.f32 %v6093_v29  ;;  %vm6121_vm11 = vweird.f32 %v8585_v55  ;;  %vm6102_vm13 = vmor %vm6100_vm12, %vm6101_vm10  ;;  %vm6130_vm2 = vweird.f32 %v6093_v29 }
 0x9d8   : > { %v6096_v6 = vmul.f32 %v8583_v11, %v6095_v15  ;;  %8588 = vrsqrt.f32 %v6091_v60  ;;  %vm6122_vm15 = vmor %vm6120_vm14, %vm6121_vm11  ;;  %vm6110_vm4 = vweird.f32 %v6091_v60 }
 0x9d9   : > { %v6116_v43 = vmul.f32 %v8585_v55, %v6115_v20 }
 0x9da   : > { %v6097_v45 = vmul.f32 0.5, %v6096_v6 }
 0x9db   : > { %v6117_v37 = vmul.f32 0.5, %v6116_v43 }
 0x9dc   : > { %v6098_v56 = vsub.f32 1.5, %v6097_v45 }
 0x9dd   : > { %v8587_v14 = vpop.eup %8586  ;;  %v6118_v26 = vsub.f32 1.5, %v6117_v37 }
 0x9de   : > { %v8589_v0 = vpop.eup %8588  ;;  %v6099_v41 = vmul.f32 %v8583_v11, %v6098_v56  ;;  %v6125_v61 = vmul.f32 %v8587_v14, %v6093_v29  ;;  %vm6131_vm0 = vweird.f32 %v8587_v14 }
 0x9df   : > { %v6119_v32 = vmul.f32 %v8585_v55, %v6118_v26  ;;  %v6105_v51 = vmul.f32 %v8589_v0, %v6091_v60  ;;  %vm6111_vm1 = vweird.f32 %v8589_v0  ;;  %vm6132_vm3 = vmor %vm6130_vm2, %vm6131_vm0 }
 0x9e0   : > { %v6103_v42 = vsel %vm6102_vm13, %v8583_v11, %v6099_v41  ;;  %v6126_v39 = vmul.f32 %v8587_v14, %v6125_v61  ;;  %vm6112_vm5 = vmor %vm6110_vm4, %vm6111_vm1 }
 0x9e1   : > { %v6134_v18 = vmul.f32 %v6103_v42, %v12447_v25  ;;  %v6135_v63 = vmul.f32 %v6103_v42, %v12449_v13  ;;  %v6123_v10 = vsel %vm6122_vm15, %v8585_v55, %v6119_v32  ;;  %v6106_v24 = vmul.f32 %v8589_v0, %v6105_v51 }
 0x9e2   : > { %v6138_v31 = vmul.f32 %v6123_v10, %v12442_v59  ;;  %v6139_v36 = vmul.f32 %v6123_v10, %v12444_v22  ;;  %v6127_v23 = vmul.f32 0.5, %v6126_v39 }
 0x9e3   : > { %v6147_v16 = vmul.f32 %v6143_v54, %v6134_v18  ;;  %v6148_v12 = vmul.f32 %v6144_v19, %v6135_v63  ;;  %v6107_v30 = vmul.f32 0.5, %v6106_v24 }
 0x9e4   : > { %v6151_v40 = vmul.f32 %v6143_v54, %v6138_v31  ;;  %v6152_v38 = vmul.f32 %v6144_v19, %v6139_v36  ;;  %v6128_v21 = vsub.f32 1.5, %v6127_v23 }
 0x9e5   : > { %v6160_v46 = vadd.f32 %v6156_v35, %v6147_v16  ;;  %v6161_v34 = vadd.f32 %v6157_v49, %v6148_v12  ;;  %v6108_v28 = vsub.f32 1.5, %v6107_v30 }
 0x9e6   : > { %v6164_v25 = vadd.f32 %v6156_v35, %v6151_v40  ;;  %v6165_v13 = vadd.f32 %v6157_v49, %v6152_v38  ;;  %v6129_v62 = vmul.f32 %v8587_v14, %v6128_v21 }
 0x9e7   : > { %6168 = vst [vmem:[#allocation17] sm:$0xff] %v6160_v46  ;;  %v6109_v59 = vmul.f32 %v8589_v0, %v6108_v28 }
 0x9e8   : > { %6169 = vst [vmem:[#allocation17 + $0x8] sm:$0xff] %v6161_v34  ;;  %v6133_v22 = vsel %vm6132_vm3, %v8587_v14, %v6129_v62 }
 0x9e9   : > { %6172 = vst [vmem:[#allocation17 + $0x20] sm:$0xff] %v6164_v25  ;;  %v6140_v2 = vmul.f32 %v6133_v22, %v12462_v3  ;;  %v6141_v9 = vmul.f32 %v6133_v22, %v12464_v48  ;;  %v6113_v57 = vsel %vm6112_vm5, %v8589_v0, %v6109_v59 }
 0x9ea   : > { %6173 = vst [vmem:[#allocation17 + $0x28] sm:$0xff] %v6165_v13  ;;  %v6136_v53 = vmul.f32 %v6113_v57, %v12467_v44  ;;  %v6137_v50 = vmul.f32 %v6113_v57, %v12469_v27 }
 0x9eb   : > { %v6153_v33 = vmul.f32 %v6143_v54, %v6140_v2  ;;  %v6154_v52 = vmul.f32 %v6144_v19, %v6141_v9 }
 0x9ec   : > { %v6149_v4 = vmul.f32 %v6143_v54, %v6136_v53  ;;  %v6150_v8 = vmul.f32 %v6144_v19, %v6137_v50 }
 0x9ed   : > { %v6166_v1 = vadd.f32 %v6156_v35, %v6153_v33  ;;  %v6167_v7 = vadd.f32 %v6157_v49, %v6154_v52 }
 0x9ee   : > { %v6162_v17 = vadd.f32 %v6156_v35, %v6149_v4  ;;  %v6163_v58 = vadd.f32 %v6157_v49, %v6150_v8 }
 0x9ef   : > { %6174 = vst [vmem:[#allocation17 + $0x30] sm:$0xff] %v6166_v1 }
 0x9f0   : > { %6175 = vst [vmem:[#allocation17 + $0x38] sm:$0xff] %v6167_v7 }
 0x9f1   : > { %6170 = vst [vmem:[#allocation17 + $0x10] sm:$0xff] %v6162_v17 }
 0x9f2   : > { %6171 = vst [vmem:[#allocation17 + $0x18] sm:$0xff] %v6163_v58 }
 0x9f3 PF: > { %s12754_s16 = sld [smem:[#allocation58_spill]]  ;;  %s9040_s26 = smov [#allocation17]  }
 0x9f4   : > { %s6181_s28 = sshll.u32 %s9040_s26, 4  ;;  %s9041_s4 = smov 256   ;;  %s6182_s28 = int_to_ptr.vmem [resolvable:$true] %s6181_s28 }
 0x9f5   : > { %s9042_s13 = smov 16  }
 0x9f9   : > { %s6183_s15 = sshll.u32 %s12754_s16, 4  ;;  %s6184_s15 = int_to_ptr.hbm [resolvable:$true] %s6183_s15 }
 0x9fa   : > { %8363 = dma.vmem_to_hbm [thread:$0]  (%p7966_p5), %s6182_s28, 1024, %s6184_s15, [#allocation4], %s9041_s4, %s9041_s4, %s9042_s13  }
 0x9fb   : > { %9011 = dma.done.wait (%p7966_p5), [#allocation4], 1024  }
 0x9fc   : > { %9013 = vsyncadd (%p7966_p5), [#allocation4], 4294966272 }
 0x9fd PF: > { %s12756_s24 = sld [smem:[#allocation26_spill]] }
 0x9fe   : > { %s12757_s21 = sld [smem:[#allocation23_spill]] }
 0x9ff   : > { %s12758_s22 = sld [smem:[#allocation24_spill]] }
 0xa00   : > { %s12759_s23 = sld [smem:[#allocation27_spill]] }
 0xa03   : > { %p26_p10 = scmp.ge.s32.totalorder %s12756_s24, 4  }
 0xa05   :  { %28 = sbr.rel (!%p26_p10) target bundleno = 16 (0x10), region = 241 }
 0xa0a   :  { %6200 = vsyncpa [#allocation3], 1 }
 0xa0b   :  { %6202 = vsyncpa [#allocation3 + $0x1], 1 }
 0xa0c   :  { %6203 = vsyncpa [#allocation6], 1 }
 0xa0d   :  { %6204 = vsyncpa [#allocation4], 1 }
 0xa0e   :  { %6206 = vsyncpa [#allocation4 + $0x1], 1 }

</bundles_post_ra>
